<compile_context>
chip_gen: v5e
topology: v5e:2x2
jax: 0.10.0
libtpu: 0.0.40
codegen_flags: <defaults>
</compile_context>

<pallas_src>
import functools

import jax
import jax.numpy as jnp
from jax.experimental import pallas as pl
from jax.experimental.pallas import tpu as pltpu

LEAKY_SLOPE = 0.01  # nn.LeakyReLU default negative_slope


def _leaky_relu(x):
    return jnp.where(x >= 0, x, LEAKY_SLOPE * x)


def _round_up(x, m):
    return ((x + m - 1) // m) * m


def spam_mlp_kernel(x_ref, w1_ref, b1_ref, w2_ref, b2_ref, w3_ref, b3_ref,
                    o_ref, *, ep_dtype):
    # In-kernel bf16 cast of the activation stream (one VPU pass); the wrapper
    # no longer materializes a bf16 copy of x in HBM.
    x = x_ref[...].astype(jnp.bfloat16)

    # Layer 1: (tb, F)bf16 @ (F, 128)bf16 on the MXU, f32 accumulation.
    # Epilogue (bias + LeakyReLU) in ep_dtype: bf16 on v6e/v7x, f32 on v5e.
    h1 = jnp.dot(x, w1_ref[...], preferred_element_type=jnp.float32)
    h1 = _leaky_relu(h1.astype(ep_dtype) + b1_ref[...])

    # Layer 2 on the MXU (LHS already bf16 when ep_dtype is bf16).
    h2 = jnp.dot(h1.astype(jnp.bfloat16), w2_ref[...],
                 preferred_element_type=jnp.float32)
    h2 = _leaky_relu(h2.astype(ep_dtype) + b2_ref[...])

    # Layer 3 (64 -> 1): lane-dense tail.  Split the batch (sublane) axis so
    # each per-row dot product lands in a (tb//128, 128) lane-dense tile:
    # the bias add, sigmoid (EUP) and store touch tb/128 full vregs instead of
    # tb/8 one-lane-valid vregs + masked vst.msk stores.
    nb, nl = o_ref.shape                          # (tb // 128, 128)
    h2r = h2.reshape(nb, nl, h2.shape[-1])        # leading-dim split, layout-cheap
    h3 = jnp.sum(h2r * w3_ref[...], axis=-1)      # (nb, 128) f32, lane reduce (XLU)
    o_ref[...] = jax.nn.sigmoid(h3 + b3_ref[0, 0]).astype(o_ref.dtype)


def spam_detection_forward(x, params, *, block_batch=None):
    """x: (B, input_size), any float dtype. Returns (B, 1) float32 sigmoid outputs."""
    w1, b1, w2, b2, w3, b3 = params
    B, F = x.shape
    h1_dim = w1.shape[1]   # 128
    h2_dim = w2.shape[1]   # 64

    # Generation-specific knobs (trace-time, string-based; conservative defaults).
    kind = jax.devices()[0].device_kind.lower()
    is_v5_or_older = any(t in kind for t in ("v2", "v3", "v4", "v5"))
    dual_core = ("7" in kind) and not is_v5_or_older          # v7x: 2 TCs, 64 MiB VMEM
    ep_dtype = jnp.float32 if is_v5_or_older else jnp.bfloat16  # v5e VPU has no bf16

    # Batch tile: multiple of 1024 (so tb//128 is a multiple of 8 for the
    # lane-dense output block, and tb is a multiple of the MXU M-dim).
    GRAN = 1024
    if block_batch is None:
        block_batch = 4096 if is_v5_or_older else 8192
    block_batch = max(GRAN, _round_up(block_batch, GRAN))
    tb = min(block_batch, max(GRAN, (B // GRAN) * GRAN))
    # v7x: make sure a big single-tile grid is split so both TensorCores work.
    if dual_core and B > GRAN and pl.cdiv(B, tb) == 1:
        tb = max(GRAN, _round_up((B + 1) // 2, GRAN))
    num_tiles = pl.cdiv(B, tb)
    rows_pad = num_tiles * tb

    # Only tiny batches (< 1024 rows) get padded; larger ragged batches use a
    # partial final block (Pallas masks the DMA) -- no full-array copy.
    x_in = x
    if B < tb:
        x_in = jnp.pad(x, ((0, tb - B), (0, 0)))

    # Weights as bf16 for the MXU; biases in the epilogue dtype; fc3 weight as
    # a (1, 64) f32 row for the VPU/XLU tail.  All are tiny and VMEM-resident.
    w1_bf = w1.astype(jnp.bfloat16)
    w2_bf = w2.astype(jnp.bfloat16)
    b1_c = b1.astype(ep_dtype)
    b2_c = b2.astype(ep_dtype)
    w3_row = jnp.transpose(w3)                    # (1, 64) f32

    flops = 2 * rows_pad * (F * h1_dim + h1_dim * h2_dim + h2_dim)
    bytes_accessed = (
        x.size * x.dtype.itemsize + rows_pad * 4          # activation stream in/out
        + w1_bf.size * 2 + w2_bf.size * 2                 # bf16 weights (one fetch)
        + (b1.size + b2.size + w3_row.size + b3.size) * 4
    )

    out_dense = pl.pallas_call(
        functools.partial(spam_mlp_kernel, ep_dtype=ep_dtype),
        out_shape=jax.ShapeDtypeStruct((rows_pad // 128, 128), jnp.float32),
        grid=(num_tiles,),
        in_specs=[
            # activation stream: new block each grid step (double-buffered DMA);
            # the final block may be partial (masked) when tb does not divide B.
            pl.BlockSpec((tb, F), lambda i: (i, 0)),
            # weights / biases: constant block index -> VMEM-resident, no re-DMA
            pl.BlockSpec((F, h1_dim), lambda i: (0, 0)),
            pl.BlockSpec((1, h1_dim), lambda i: (0, 0)),
            pl.BlockSpec((h1_dim, h2_dim), lambda i: (0, 0)),
            pl.BlockSpec((1, h2_dim), lambda i: (0, 0)),
            pl.BlockSpec((1, h2_dim), lambda i: (0, 0)),
            # (1,1) fc3 bias: scalar in SMEM (no wasted padded VMEM tile)
            pl.BlockSpec(memory_space=pltpu.MemorySpace.SMEM),
        ],
        # lane-dense output: (tb//128, 128) per step, unmasked full-vreg stores
        out_specs=pl.BlockSpec((tb // 128, 128), lambda i: (i, 0)),
        compiler_params=pltpu.CompilerParams(
            dimension_semantics=("parallel",),
            vmem_limit_bytes=32 * 1024 * 1024,
        ),
        cost_estimate=pl.CostEstimate(
            flops=flops,
            transcendentals=rows_pad,   # one sigmoid per row
            bytes_accessed=bytes_accessed,
        ),
    )(x_in, w1_bf, b1_c, w2_bf, b2_c, w3_row, b3)

    # Row-major reshape preserves batch order; padded rows are sliced off.
    return out_dense.reshape(-1, 1)[:B]


def init_params(key, input_size):
    """Deterministic init mimicking nn.Linear default (U[-1/sqrt(fan_in), ...]).

    Weights stored pre-transposed as (in, out); biases as (1, out).
    """
    dims = [(input_size, 128), (128, 64), (64, 1)]
    params = []
    keys = jax.random.split(key, 2 * len(dims))
    for i, (fan_in, fan_out) in enumerate(dims):
        bound = 1.0 / (fan_in ** 0.5)
        w_t = jax.random.uniform(
            keys[2 * i], (fan_in, fan_out), jnp.float32, -bound, bound
        )
        b = jax.random.uniform(
            keys[2 * i + 1], (1, fan_out), jnp.float32, -bound, bound
        )
        params.extend([w_t, b])
    return tuple(params)


def _reference(x, params):
    w1, b1, w2, b2, w3, b3 = params
    h1 = _leaky_relu(x @ w1 + b1)
    h2 = _leaky_relu(h1 @ w2 + b2)
    return jax.nn.sigmoid(h2 @ w3 + b3)


if __name__ == "__main__":
    key = jax.random.PRNGKey(0)
    k_x, k_x2, k_p = jax.random.split(key, 3)

    input_size = 32  # number of spam features
    params = init_params(k_p, input_size)

    # Small batch (single tile, tiny pad path).
    x_small = jax.random.normal(k_x, (8, input_size), jnp.float32)
    out_small = jax.block_until_ready(spam_detection_forward(x_small, params))
    ref_small = _reference(x_small, params)
    assert out_small.shape == (8, 1)
    # bf16 matmuls (+ bf16 epilogue on v6e/v7x) -> relaxed tolerance vs f32 ref.
    assert jnp.allclose(out_small, ref_small, atol=3e-2, rtol=3e-2)

    # Larger, ragged batch: exercises multi-tile grid + partial final block
    # (no full-array padding copy) + output slicing.
    x_big = jax.random.normal(k_x2, (2500, input_size), jnp.float32)
    out_big = jax.block_until_ready(spam_detection_forward(x_big, params))
    ref_big = _reference(x_big, params)
    assert out_big.shape == (2500, 1)
    assert jnp.allclose(out_big, ref_big, atol=3e-2, rtol=3e-2)

    print("KERNEL_OK")
</pallas_src>

<mosaic_0001>
module attributes {stable_mosaic.version = 11 : i64} {
  func.func @spam_mlp_kernel(%arg0: i32, %arg1: memref<1024x32xf32, #tpu.memory_space<vmem>>, %arg2: memref<32x128xbf16, #tpu.memory_space<vmem>>, %arg3: memref<1x128xbf16, #tpu.memory_space<vmem>>, %arg4: memref<128x64xbf16, #tpu.memory_space<vmem>>, %arg5: memref<1x64xbf16, #tpu.memory_space<vmem>>, %arg6: memref<1x64xf32, #tpu.memory_space<vmem>>, %arg7: memref<1x1xf32, #tpu.memory_space<smem>>, %arg8: memref<8x128xf32, #tpu.memory_space<vmem>>) attributes {dimension_semantics = [#tpu.dimension_semantics<parallel>], iteration_bounds = array<i64: 1>, scalar_prefetch = 0 : i64, scratch_operands = 0 : i64, tpu.core_type = #tpu.core_type<tc>, window_params = [{transform_indices = @transform_0, window_bounds = array<i64: 1024, 32>}, {pipeline_mode = #tpu.pipeline_mode<synchronous>, transform_indices = @transform_1, window_bounds = array<i64: 32, 128>}, {pipeline_mode = #tpu.pipeline_mode<synchronous>, transform_indices = @transform_2, window_bounds = array<i64: 1, 128>}, {pipeline_mode = #tpu.pipeline_mode<synchronous>, transform_indices = @transform_3, window_bounds = array<i64: 128, 64>}, {pipeline_mode = #tpu.pipeline_mode<synchronous>, transform_indices = @transform_4, window_bounds = array<i64: 1, 64>}, {pipeline_mode = #tpu.pipeline_mode<synchronous>, transform_indices = @transform_5, window_bounds = array<i64: 1, 64>}, {transform_indices = @transform_6, window_bounds = array<i64: 1, 1>}, {transform_indices = @transform_7, window_bounds = array<i64: 8, 128>}]} {
    %c0 = arith.constant 0 : index
    %c0_0 = arith.constant 0 : index
    %0 = vector.load %arg1[%c0, %c0_0] : memref<1024x32xf32, #tpu.memory_space<vmem>>, vector<1024x32xf32>
    %1 = arith.truncf %0 : vector<1024x32xf32> to vector<1024x32xbf16>
    %c0_1 = arith.constant 0 : index
    %c0_2 = arith.constant 0 : index
    %2 = vector.load %arg2[%c0_1, %c0_2] : memref<32x128xbf16, #tpu.memory_space<vmem>>, vector<32x128xbf16>
    %cst = arith.constant dense<0.000000e+00> : vector<1024x128xf32>
    %3 = tpu.matmul %1, %2, %cst {dimension_numbers = #tpu.dot_dimension_numbers<[1], [0], [0], [1], [0, 0, 1, 1], [], []>} : vector<1024x32xbf16>, vector<32x128xbf16>, vector<1024x128xf32> -> vector<1024x128xf32>
    %4 = arith.truncf %3 : vector<1024x128xf32> to vector<1024x128xbf16>
    %c0_3 = arith.constant 0 : index
    %c0_4 = arith.constant 0 : index
    %5 = vector.load %arg3[%c0_3, %c0_4] : memref<1x128xbf16, #tpu.memory_space<vmem>>, vector<1x128xbf16>
    %6 = vector.broadcast %5 : vector<1x128xbf16> to vector<1024x128xbf16>
    %7 = arith.addf %4, %6 : vector<1024x128xbf16>
    %cst_5 = arith.constant 0.000000e+00 : bf16
    %8 = vector.broadcast %cst_5 : bf16 to vector<1024x128xbf16>
    %9 = arith.cmpf oge, %7, %8 : vector<1024x128xbf16>
    %cst_6 = arith.constant 1.000980e-02 : bf16
    %10 = vector.broadcast %cst_6 : bf16 to vector<1024x128xbf16>
    %11 = arith.mulf %10, %7 : vector<1024x128xbf16>
    %12 = arith.select %9, %7, %11 : vector<1024x128xi1>, vector<1024x128xbf16>
    %c0_7 = arith.constant 0 : index
    %c0_8 = arith.constant 0 : index
    %13 = vector.load %arg4[%c0_7, %c0_8] : memref<128x64xbf16, #tpu.memory_space<vmem>>, vector<128x64xbf16>
    %cst_9 = arith.constant dense<0.000000e+00> : vector<1024x64xf32>
    %14 = tpu.matmul %12, %13, %cst_9 {dimension_numbers = #tpu.dot_dimension_numbers<[1], [0], [0], [1], [0, 0, 1, 1], [], []>} : vector<1024x128xbf16>, vector<128x64xbf16>, vector<1024x64xf32> -> vector<1024x64xf32>
    %15 = arith.truncf %14 : vector<1024x64xf32> to vector<1024x64xbf16>
    %c0_10 = arith.constant 0 : index
    %c0_11 = arith.constant 0 : index
    %16 = vector.load %arg5[%c0_10, %c0_11] : memref<1x64xbf16, #tpu.memory_space<vmem>>, vector<1x64xbf16>
    %17 = vector.broadcast %16 : vector<1x64xbf16> to vector<1024x64xbf16>
    %18 = arith.addf %15, %17 : vector<1024x64xbf16>
    %cst_12 = arith.constant 0.000000e+00 : bf16
    %19 = vector.broadcast %cst_12 : bf16 to vector<1024x64xbf16>
    %20 = arith.cmpf oge, %18, %19 : vector<1024x64xbf16>
    %cst_13 = arith.constant 1.000980e-02 : bf16
    %21 = vector.broadcast %cst_13 : bf16 to vector<1024x64xbf16>
    %22 = arith.mulf %21, %18 : vector<1024x64xbf16>
    %23 = arith.select %20, %18, %22 : vector<1024x64xi1>, vector<1024x64xbf16>
    %24 = vector.shape_cast %23 : vector<1024x64xbf16> to vector<8x128x64xbf16>
    %c0_14 = arith.constant 0 : index
    %c0_15 = arith.constant 0 : index
    %25 = vector.load %arg6[%c0_14, %c0_15] : memref<1x64xf32, #tpu.memory_space<vmem>>, vector<1x64xf32>
    %26 = arith.extf %24 : vector<8x128x64xbf16> to vector<8x128x64xf32>
    %27 = vector.shape_cast %25 : vector<1x64xf32> to vector<1x1x64xf32>
    %28 = vector.broadcast %27 : vector<1x1x64xf32> to vector<8x128x64xf32>
    %29 = arith.mulf %26, %28 : vector<8x128x64xf32>
    %cst_16 = arith.constant dense<0.000000e+00> : vector<8x128xf32>
    %30 = vector.multi_reduction <add>, %29, %cst_16 [2] : vector<8x128x64xf32> to vector<8x128xf32>
    %c0_17 = arith.constant 0 : index
    %c0_18 = arith.constant 0 : index
    %31 = memref.load %arg7[%c0_17, %c0_18] : memref<1x1xf32, #tpu.memory_space<smem>>
    %32 = vector.broadcast %31 : f32 to vector<8x128xf32>
    %33 = arith.addf %30, %32 : vector<8x128xf32>
    %34 = arith.negf %33 : vector<8x128xf32>
    %35 = math.exp %34 : vector<8x128xf32>
    %cst_19 = arith.constant 1.000000e+00 : f32
    %36 = vector.broadcast %cst_19 : f32 to vector<8x128xf32>
    %37 = arith.addf %36, %35 : vector<8x128xf32>
    %38 = arith.divf %36, %37 : vector<8x128xf32>
    %c0_20 = arith.constant 0 : index
    %c0_21 = arith.constant 0 : index
    %39 = vector.load %arg8[%c0_20, %c0_21] : memref<8x128xf32, #tpu.memory_space<vmem>>, vector<8x128xf32>
    tpu.vector_store %arg8[%c0_20, %c0_21], %38 {strides = array<i32>} : memref<8x128xf32, #tpu.memory_space<vmem>>, vector<8x128xf32>,
    return
  }
  func.func @transform_0(%arg0: i32) -> (i32, i32) {
    %c0_i32 = arith.constant 0 : i32
    %c0_i32_0 = arith.constant 0 : i32
    return %arg0, %c0_i32 : i32, i32
  }
  func.func @transform_1(%arg0: i32) -> (i32, i32) {
    %c0_i32 = arith.constant 0 : i32
    %c0_i32_0 = arith.constant 0 : i32
    %c0_i32_1 = arith.constant 0 : i32
    return %c0_i32, %c0_i32_0 : i32, i32
  }
  func.func @transform_2(%arg0: i32) -> (i32, i32) {
    %c0_i32 = arith.constant 0 : i32
    %c0_i32_0 = arith.constant 0 : i32
    %c0_i32_1 = arith.constant 0 : i32
    return %c0_i32, %c0_i32_0 : i32, i32
  }
  func.func @transform_3(%arg0: i32) -> (i32, i32) {
    %c0_i32 = arith.constant 0 : i32
    %c0_i32_0 = arith.constant 0 : i32
    %c0_i32_1 = arith.constant 0 : i32
    return %c0_i32, %c0_i32_0 : i32, i32
  }
  func.func @transform_4(%arg0: i32) -> (i32, i32) {
    %c0_i32 = arith.constant 0 : i32
    %c0_i32_0 = arith.constant 0 : i32
    %c0_i32_1 = arith.constant 0 : i32
    return %c0_i32, %c0_i32_0 : i32, i32
  }
  func.func @transform_5(%arg0: i32) -> (i32, i32) {
    %c0_i32 = arith.constant 0 : i32
    %c0_i32_0 = arith.constant 0 : i32
    %c0_i32_1 = arith.constant 0 : i32
    return %c0_i32, %c0_i32_0 : i32, i32
  }
  func.func @transform_6(%arg0: i32) -> (i32, i32) {
    %c0_i32 = arith.constant 0 : i32
    %c0_i32_0 = arith.constant 0 : i32
    %c0_i32_1 = arith.constant 0 : i32
    return %c0_i32, %c0_i32_0 : i32, i32
  }
  func.func @transform_7(%arg0: i32) -> (i32, i32) {
    %c0_i32 = arith.constant 0 : i32
    %c0_i32_0 = arith.constant 0 : i32
    return %arg0, %c0_i32 : i32, i32
  }
}

</mosaic_0001>

<bundles_post_ra>
// kernel: tpu_custom_call.1
= control target key start
LH: loop header
LB: loop body
LE: loop exit
PB: predicated region body
PF: predicated region fallthrough
CT: control target
= control target key end

     0   :  { %s15465_s0 = inlined_call_operand.vmem [shape: f32[1024,32], index: 0, kind: input, shape index: {}]   ;;  %s15466_s1 = inlined_call_operand.vmem [shape: bf16[32,128], index: 1, kind: input, shape index: {}]   ;;  %s15467_s2 = inlined_call_operand.vmem [shape: bf16[1,128], index: 2, kind: input, shape index: {}]   ;;  %s15468_s3 = inlined_call_operand.vmem [shape: bf16[128,64], index: 3, kind: input, shape index: {}]   ;;  %s15469_s4 = inlined_call_operand.vmem [shape: bf16[1,64], index: 4, kind: input, shape index: {}]   ;;  %s15470_s5 = inlined_call_operand.vmem [shape: f32[1,64], index: 5, kind: input, shape index: {}]   ;;  %s15471_s6 = inlined_call_operand.<no memory space> [shape: f32[1,1], index: 6, kind: input, shape index: {}]   ;;  %s15472_s7 = inlined_call_operand.hbm [shape: f32[8,128], index: 7, kind: output, shape index: {}]  }
   0x1   :  { %v7988_v0 = vld [vmem:[%s15466_s1 + $0x8] sm:$0xff]  ;;  %v7987_v1 = vld [vmem:[%s15466_s1] sm:$0xff] }
   0x2   :  { %436 = vmatpush.bf16.msra.mxu0 %v7988_v0  ;;  %v29_v2 = vld [vmem:[%s15465_s0] sm:$0xff]  ;;  %v30_v3 = vld [vmem:[%s15465_s0 + $0x8] sm:$0xff]  ;;  %7997 = vmatpush.bf16.msra.mxu3 %v7988_v0 }
   0x3   :  { %13 = vsyncpa [#allocation4], 0  ;;  %v157_v4 = vpack.c.bf16 %v30_v3, %v29_v2  ;;  %vm237_vm0 = vcmask 261120   ;;  %v31_v5 = vld [vmem:[%s15465_s0 + $0x10] sm:$0xff]  ;;  %v32_v6 = vld [vmem:[%s15465_s0 + $0x18] sm:$0xff]  ;;  %s7746_s10 = sshll.u32 %s15472_s7, 4  ;;  %s7747_s10 = int_to_ptr.hbm [resolvable:$true] %s7746_s10 }
   0x4   :  { %v158_v7 = vpack.c.bf16 %v32_v6, %v31_v5  ;;  %v33_v8 = vld [vmem:[%s15465_s0 + $0x20] sm:$0xff]  ;;  %v34_v9 = vld [vmem:[%s15465_s0 + $0x28] sm:$0xff]  ;;  %v35_v11 = vld [vmem:[%s15465_s0 + $0x30] sm:$0xff] }
   0x5   :  { %v159_v10 = vpack.c.bf16 %v34_v9, %v33_v8  ;;  %v36_v12 = vld [vmem:[%s15465_s0 + $0x38] sm:$0xff]  ;;  %v37_v14 = vld [vmem:[%s15465_s0 + $0x40] sm:$0xff]  ;;  %v38_v15 = vld [vmem:[%s15465_s0 + $0x48] sm:$0xff] }
   0x6   :  { %437 = vmatpush.bf16.msra.mxu0 %v7987_v1  ;;  %7998 = vmatpush.bf16.msra.mxu3 %v7987_v1  ;;  %v160_v13 = vpack.c.bf16 %v36_v12, %v35_v11  ;;  %v161_v16 = vpack.c.bf16 %v38_v15, %v37_v14  ;;  %v39_v17 = vld [vmem:[%s15465_s0 + $0x50] sm:$0xff]  ;;  %v40_v18 = vld [vmem:[%s15465_s0 + $0x58] sm:$0xff]  ;;  %v41_v21 = vld [vmem:[%s15465_s0 + $0x60] sm:$0xff] }
   0x7   :  { %v162_v19 = vpack.c.bf16 %v40_v18, %v39_v17  ;;  %v7996_v20 = vld [vmem:[%s15468_s3 + $0x38] sm:$0xff]  ;;  %v42_v22 = vld [vmem:[%s15465_s0 + $0x68] sm:$0xff]  ;;  %v7995_v24 = vld [vmem:[%s15468_s3 + $0x30] sm:$0xff] }
   0x8   :  { %2493 = vmatpush.bf16.msra.mxu1 %v7996_v20  ;;  %7999 = vmatpush.bf16.msra.mxu2 %v7996_v20  ;;  %v163_v23 = vpack.c.bf16 %v42_v22, %v41_v21  ;;  %v7994_v25 = vld [vmem:[%s15468_s3 + $0x28] sm:$0xff]  ;;  %v7993_v26 = vld [vmem:[%s15468_s3 + $0x20] sm:$0xff]  ;;  %v7992_v27 = vld [vmem:[%s15468_s3 + $0x18] sm:$0xff] }
   0x9   :  { %7763 = vmatmul.msk.bf16.vlgmr.msra.gmra.mxu0 %vm237_vm0, %v157_v4  ;;  %v43_v28 = vld [vmem:[%s15465_s0 + $0x70] sm:$0xff]  ;;  %v44_v29 = vld [vmem:[%s15465_s0 + $0x78] sm:$0xff]  ;;  %v7990_v32 = vld [vmem:[%s15468_s3 + $0x8] sm:$0xff] }
   0xa   :  { %v164_v30 = vpack.c.bf16 %v44_v29, %v43_v28  ;;  %v7991_v31 = vld [vmem:[%s15468_s3 + $0x10] sm:$0xff]  ;;  %v887_v33 = vld [vmem:[%s15467_s2] sm:$0x1]  ;;  %v46_v37 = vld [vmem:[%s15465_s0 + $0x88] sm:$0xff] }
   0xb   :  { %v7989_v34 = vld [vmem:[%s15468_s3] sm:$0xff]  ;;  %v889_v35 = vpack.i.b16 %v887_v33, %v887_v33  ;;  %v47_v50 = vld [vmem:[%s15465_s0 + $0x90] sm:$0xff]  ;;  %v48_v51 = vld [vmem:[%s15465_s0 + $0x98] sm:$0xff] }
   0xc   :  { %2494 = vmatpush.bf16.msra.mxu1 %v7995_v24  ;;  %8000 = vmatpush.bf16.msra.mxu2 %v7995_v24  ;;  %v45_v36 = vld [vmem:[%s15465_s0 + $0x80] sm:$0xff]  ;;  %v166_v55 = vpack.c.bf16 %v48_v51, %v47_v50  ;;  %v50_v11 = vld [vmem:[%s15465_s0 + $0xa8] sm:$0xff] }
   0xd   :  { %v891_v38 = vperm.slane %v889_v35, 0  ;;  %v165_v39 = vpack.c.bf16 %v46_v37, %v45_v36  ;;  %v52_v35 = vld [vmem:[%s15465_s0 + $0xb8] sm:$0xff] }
   0xf   :  { %v8693_v42 = vunpack.c.l.bf16 %v891_v38 }
  0x10   :  { %2495 = vmatpush.bf16.msra.mxu1 %v7994_v25  ;;  %8001 = vmatpush.bf16.msra.mxu2 %v7994_v25 }
  0x14   :  { %2496 = vmatpush.bf16.msra.mxu1 %v7993_v26  ;;  %8002 = vmatpush.bf16.msra.mxu2 %v7993_v26 }
  0x18   :  { %2497 = vmatpush.bf16.msra.mxu1 %v7992_v27  ;;  %8003 = vmatpush.bf16.msra.mxu2 %v7992_v27 }
  0x19   :  { %7764 = vmatmul.msk.bf16.gmra.mxu0 %vm237_vm0, %v158_v7 }
  0x1c   :  { %2498 = vmatpush.bf16.msra.mxu1 %v7991_v31  ;;  %8004 = vmatpush.bf16.msra.mxu2 %v7991_v31 }
  0x20   :  { %2499 = vmatpush.bf16.msra.mxu1 %v7990_v32  ;;  %8005 = vmatpush.bf16.msra.mxu2 %v7990_v32 }
  0x24   :  { %2500 = vmatpush.bf16.msra.mxu1 %v7989_v34  ;;  %8006 = vmatpush.bf16.msra.mxu2 %v7989_v34  ;;  %v51_v34 = vld [vmem:[%s15465_s0 + $0xb0] sm:$0xff] }
  0x29   :  { %7765 = vmatmul.msk.bf16.gmra.mxu0 %vm237_vm0, %v159_v10  ;;  %v49_v10 = vld [vmem:[%s15465_s0 + $0xa0] sm:$0xff] }
  0x2a   :  { %v167_v15 = vpack.c.bf16 %v50_v11, %v49_v10 }
  0x39   :  { %7766 = vmatmul.msk.bf16.gmra.mxu0 %vm237_vm0, %v160_v13 }
  0x49   :  { %7767 = vmatmul.msk.bf16.gmra.mxu0 %vm237_vm0, %v161_v16 }
  0x59   :  { %7768 = vmatmul.msk.bf16.gmra.mxu0 %vm237_vm0, %v162_v19 }
  0x69   :  { %7769 = vmatmul.msk.bf16.gmra.mxu0 %vm237_vm0, %v163_v23 }
  0x79   :  { %7770 = vmatmul.msk.bf16.gmra.mxu0 %vm237_vm0, %v164_v30 }
  0x86   :  { %v439_v40 = vpop.f32.mrf.mxu0 }
  0x87   :  { %v759_v41 = vpack.c.bf16 %v439_v40, %v439_v40 }
  0x89   :  { %v892_v43 = vunpack.c.l.bf16 %v759_v41  ;;  %7771 = vmatmul.msk.bf16.gmra.mxu0 %vm237_vm0, %v165_v39  ;;  %v168_v39 = vpack.c.bf16 %v52_v35, %v51_v34 }
  0x8b   :  { %v1021_v44 = vadd.f32 %v8693_v42, %v892_v43 }
  0x8d   :  { %v1149_v45 = vpack.c.bf16 %v1021_v44, %v1021_v44 }
  0x8e   :  { %v441_v46 = vpop.f32.mrf.mxu0 }
  0x8f   :  { %v1277_v47 = vunpack.c.l.bf16 %v1149_v45  ;;  %v760_v48 = vpack.c.bf16 %v441_v46, %v441_v46 }
  0x91   :  { %v893_v49 = vunpack.c.l.bf16 %v760_v48  ;;  %v1533_v52 = vmul.f32 0.010009766, %v1277_v47  ;;  %vm1405_vm1 = vcmp.ge.f32.partialorder %v1277_v47, 0.0 }
  0x92   :  { %vm1789_vm3 = vmpackc.low %vm1405_vm1, %vm1405_vm1 }
  0x93   :  { %v1022_v53 = vadd.f32 %v8693_v42, %v893_v49  ;;  %v1661_v57 = vpack.c.bf16 %v1533_v52, %v1533_v52 }
  0x95   :  { %v1150_v54 = vpack.c.bf16 %v1022_v53, %v1022_v53  ;;  %v1917_v0 = vsel %vm1789_vm3, %v1149_v45, %v1661_v57 }
  0x96   :  { %v444_v56 = vpop.f32.mrf.mxu0  ;;  %v2189_v4 = vunpack.c.l.b16 %v1917_v0 }
  0x97   :  { %v1278_v58 = vunpack.c.l.bf16 %v1150_v54  ;;  %v761_v59 = vpack.c.bf16 %v444_v56, %v444_v56 }
  0x99   :  { %v894_v60 = vunpack.c.l.bf16 %v761_v59  ;;  %7772 = vmatmul.msk.bf16.gmra.mxu0 %vm237_vm0, %v166_v55  ;;  %vm1406_vm2 = vcmp.ge.f32.partialorder %v1278_v58, 0.0  ;;  %v1534_v61 = vmul.f32 0.010009766, %v1278_v58  ;;  %v53_v59 = vld [vmem:[%s15465_s0 + $0xc0] sm:$0xff] }
  0x9a   :  { %vm1790_vm4 = vmpackc.low %vm1406_vm2, %vm1406_vm2 }
  0x9b   :  { %v1023_v62 = vadd.f32 %v8693_v42, %v894_v60  ;;  %v1662_v63 = vpack.c.bf16 %v1534_v61, %v1534_v61  ;;  %v54_v60 = vld [vmem:[%s15465_s0 + $0xc8] sm:$0xff] }
  0x9c   :  { %v169_v0 = vpack.c.bf16 %v54_v60, %v53_v59 }
  0x9d   :  { %v1151_v1 = vpack.c.bf16 %v1023_v62, %v1023_v62  ;;  %v1918_v2 = vsel %vm1790_vm4, %v1150_v54, %v1662_v63 }
  0x9e   :  { %v446_v3 = vpop.f32.mrf.mxu0  ;;  %v2190_v5 = vunpack.c.l.b16 %v1918_v2 }
  0x9f   :  { %v1279_v6 = vunpack.c.l.bf16 %v1151_v1  ;;  %v762_v7 = vpack.c.bf16 %v446_v3, %v446_v3 }
  0xa0   :  { %v2317_v8 = vpack.c.b16 %v2190_v5, %v2189_v4 }
  0xa1   :  { %v895_v9 = vunpack.c.l.bf16 %v762_v7  ;;  %v1535_v12 = vmul.f32 0.010009766, %v1279_v6  ;;  %vm1407_vm5 = vcmp.ge.f32.partialorder %v1279_v6, 0.0 }
  0xa2   :  { %2501 = vmatmul.bf16.vlgmr.msra.gmra.mxu1 %v2317_v8  ;;  %vm1791_vm7 = vmpackc.low %vm1407_vm5, %vm1407_vm5 }
  0xa3   :  { %v1024_v13 = vadd.f32 %v8693_v42, %v895_v9  ;;  %v1663_v17 = vpack.c.bf16 %v1535_v12, %v1535_v12 }
  0xa5   :  { %v1152_v14 = vpack.c.bf16 %v1024_v13, %v1024_v13  ;;  %v1919_v24 = vsel %vm1791_vm7, %v1151_v1, %v1663_v17 }
  0xa6   :  { %v449_v16 = vpop.f32.mrf.mxu0  ;;  %v2191_v28 = vunpack.c.l.b16 %v1919_v24 }
  0xa7   :  { %v1280_v18 = vunpack.c.l.bf16 %v1152_v14  ;;  %v763_v19 = vpack.c.bf16 %v449_v16, %v449_v16 }
  0xa9   :  { %v896_v20 = vunpack.c.l.bf16 %v763_v19  ;;  %7773 = vmatmul.msk.bf16.gmra.mxu0 %vm237_vm0, %v167_v15  ;;  %vm1408_vm6 = vcmp.ge.f32.partialorder %v1280_v18, 0.0  ;;  %v1536_v21 = vmul.f32 0.010009766, %v1280_v18  ;;  %v55_v19 = vld [vmem:[%s15465_s0 + $0xd0] sm:$0xff] }
  0xaa   :  { %vm1792_vm8 = vmpackc.low %vm1408_vm6, %vm1408_vm6 }
  0xab   :  { %v1025_v22 = vadd.f32 %v8693_v42, %v896_v20  ;;  %v1664_v23 = vpack.c.bf16 %v1536_v21, %v1536_v21  ;;  %v56_v20 = vld [vmem:[%s15465_s0 + $0xd8] sm:$0xff] }
  0xac   :  { %v170_v24 = vpack.c.bf16 %v56_v20, %v55_v19 }
  0xad   :  { %v1153_v25 = vpack.c.bf16 %v1025_v22, %v1025_v22  ;;  %v1920_v26 = vsel %vm1792_vm8, %v1152_v14, %v1664_v23 }
  0xae   :  { %v451_v27 = vpop.f32.mrf.mxu0  ;;  %v2192_v29 = vunpack.c.l.b16 %v1920_v26 }
  0xaf   :  { %v1281_v30 = vunpack.c.l.bf16 %v1153_v25  ;;  %v764_v31 = vpack.c.bf16 %v451_v27, %v451_v27 }
  0xb0   :  { %v2318_v32 = vpack.c.b16 %v2192_v29, %v2191_v28 }
  0xb1   :  { %v897_v33 = vunpack.c.l.bf16 %v764_v31  ;;  %v1537_v36 = vmul.f32 0.010009766, %v1281_v30  ;;  %vm1409_vm9 = vcmp.ge.f32.partialorder %v1281_v30, 0.0 }
  0xb2   :  { %2506 = vmatmul.bf16.gmra.mxu1 %v2318_v32  ;;  %vm1793_vm11 = vmpackc.low %vm1409_vm9, %vm1409_vm9 }
  0xb3   :  { %v1026_v37 = vadd.f32 %v8693_v42, %v897_v33  ;;  %v1665_v41 = vpack.c.bf16 %v1537_v36, %v1537_v36 }
  0xb5   :  { %v1154_v38 = vpack.c.bf16 %v1026_v37, %v1026_v37  ;;  %v1921_v49 = vsel %vm1793_vm11, %v1153_v25, %v1665_v41 }
  0xb6   :  { %v454_v40 = vpop.f32.mrf.mxu0  ;;  %v2193_v53 = vunpack.c.l.b16 %v1921_v49 }
  0xb7   :  { %v1282_v43 = vunpack.c.l.bf16 %v1154_v38  ;;  %v765_v44 = vpack.c.bf16 %v454_v40, %v454_v40 }
  0xb9   :  { %v898_v45 = vunpack.c.l.bf16 %v765_v44  ;;  %7774 = vmatmul.msk.bf16.gmra.mxu0 %vm237_vm0, %v168_v39  ;;  %vm1410_vm10 = vcmp.ge.f32.partialorder %v1282_v43, 0.0  ;;  %v1538_v46 = vmul.f32 0.010009766, %v1282_v43  ;;  %v57_v44 = vld [vmem:[%s15465_s0 + $0xe0] sm:$0xff] }
  0xba   :  { %vm1794_vm12 = vmpackc.low %vm1410_vm10, %vm1410_vm10 }
  0xbb   :  { %v1027_v47 = vadd.f32 %v8693_v42, %v898_v45  ;;  %v1666_v48 = vpack.c.bf16 %v1538_v46, %v1538_v46  ;;  %v58_v45 = vld [vmem:[%s15465_s0 + $0xe8] sm:$0xff] }
  0xbc   :  { %v171_v49 = vpack.c.bf16 %v58_v45, %v57_v44 }
  0xbd   :  { %v1155_v50 = vpack.c.bf16 %v1027_v47, %v1027_v47  ;;  %v1922_v51 = vsel %vm1794_vm12, %v1154_v38, %v1666_v48 }
  0xbe   :  { %v456_v52 = vpop.f32.mrf.mxu0  ;;  %v2194_v54 = vunpack.c.l.b16 %v1922_v51 }
  0xbf   :  { %v1283_v55 = vunpack.c.l.bf16 %v1155_v50  ;;  %v766_v56 = vpack.c.bf16 %v456_v52, %v456_v52 }
  0xc0   :  { %v2319_v57 = vpack.c.b16 %v2194_v54, %v2193_v53 }
  0xc1   :  { %v899_v58 = vunpack.c.l.bf16 %v766_v56  ;;  %v1539_v61 = vmul.f32 0.010009766, %v1283_v55  ;;  %vm1411_vm13 = vcmp.ge.f32.partialorder %v1283_v55, 0.0 }
  0xc2   :  { %2511 = vmatmul.bf16.gmra.mxu1 %v2319_v57  ;;  %vm1795_vm15 = vmpackc.low %vm1411_vm13, %vm1411_vm13 }
  0xc3   :  { %v1028_v62 = vadd.f32 %v8693_v42, %v899_v58  ;;  %v1667_v2 = vpack.c.bf16 %v1539_v61, %v1539_v61 }
  0xc5   :  { %v1156_v63 = vpack.c.bf16 %v1028_v62, %v1028_v62  ;;  %v1923_v9 = vsel %vm1795_vm15, %v1155_v50, %v1667_v2 }
  0xc6   :  { %v459_v1 = vpop.f32.mrf.mxu0  ;;  %v2195_v13 = vunpack.c.l.b16 %v1923_v9 }
  0xc7   :  { %v1284_v3 = vunpack.c.l.bf16 %v1156_v63  ;;  %v767_v4 = vpack.c.bf16 %v459_v1, %v459_v1 }
  0xc9   :  { %v900_v5 = vunpack.c.l.bf16 %v767_v4  ;;  %7775 = vmatmul.msk.bf16.gmra.mxu0 %vm237_vm0, %v169_v0  ;;  %vm1412_vm14 = vcmp.ge.f32.partialorder %v1284_v3, 0.0  ;;  %v1540_v6 = vmul.f32 0.010009766, %v1284_v3  ;;  %v59_v4 = vld [vmem:[%s15465_s0 + $0xf0] sm:$0xff] }
  0xca   :  { %vm1796_vm1 = vmpackc.low %vm1412_vm14, %vm1412_vm14 }
  0xcb   :  { %v1029_v7 = vadd.f32 %v8693_v42, %v900_v5  ;;  %v1668_v8 = vpack.c.bf16 %v1540_v6, %v1540_v6  ;;  %v60_v5 = vld [vmem:[%s15465_s0 + $0xf8] sm:$0xff] }
  0xcc   :  { %v172_v9 = vpack.c.bf16 %v60_v5, %v59_v4 }
  0xcd   :  { %v1157_v10 = vpack.c.bf16 %v1029_v7, %v1029_v7  ;;  %v1924_v11 = vsel %vm1796_vm1, %v1156_v63, %v1668_v8 }
  0xce   :  { %v461_v12 = vpop.f32.mrf.mxu0  ;;  %v2196_v14 = vunpack.c.l.b16 %v1924_v11 }
  0xcf   :  { %v1285_v15 = vunpack.c.l.bf16 %v1157_v10  ;;  %v768_v16 = vpack.c.bf16 %v461_v12, %v461_v12 }
  0xd0   :  { %v2320_v17 = vpack.c.b16 %v2196_v14, %v2195_v13 }
  0xd1   :  { %v901_v18 = vunpack.c.l.bf16 %v768_v16  ;;  %v1541_v21 = vmul.f32 0.010009766, %v1285_v15  ;;  %vm1413_vm2 = vcmp.ge.f32.partialorder %v1285_v15, 0.0 }
  0xd2   :  { %2516 = vmatmul.bf16.gmra.mxu1 %v2320_v17  ;;  %vm1797_vm4 = vmpackc.low %vm1413_vm2, %vm1413_vm2 }
  0xd3   :  { %v1030_v22 = vadd.f32 %v8693_v42, %v901_v18  ;;  %v1669_v26 = vpack.c.bf16 %v1541_v21, %v1541_v21 }
  0xd5   :  { %v1158_v23 = vpack.c.bf16 %v1030_v22, %v1030_v22  ;;  %v1925_v33 = vsel %vm1797_vm4, %v1157_v10, %v1669_v26 }
  0xd6   :  { %v464_v25 = vpop.f32.mrf.mxu0  ;;  %v2197_v37 = vunpack.c.l.b16 %v1925_v33 }
  0xd7   :  { %v1286_v27 = vunpack.c.l.bf16 %v1158_v23  ;;  %v769_v28 = vpack.c.bf16 %v464_v25, %v464_v25 }
  0xd9   :  { %v902_v29 = vunpack.c.l.bf16 %v769_v28  ;;  %7776 = vmatmul.msk.bf16.gmra.mxu0 %vm237_vm0, %v170_v24  ;;  %vm1414_vm3 = vcmp.ge.f32.partialorder %v1286_v27, 0.0  ;;  %v1542_v30 = vmul.f32 0.010009766, %v1286_v27  ;;  %v61_v28 = vld [vmem:[%s15465_s0 + $0x100] sm:$0xff] }
  0xda   :  { %vm1798_vm5 = vmpackc.low %vm1414_vm3, %vm1414_vm3 }
  0xdb   :  { %v1031_v31 = vadd.f32 %v8693_v42, %v902_v29  ;;  %v1670_v32 = vpack.c.bf16 %v1542_v30, %v1542_v30  ;;  %v62_v29 = vld [vmem:[%s15465_s0 + $0x108] sm:$0xff] }
  0xdc   :  { %v173_v33 = vpack.c.bf16 %v62_v29, %v61_v28 }
  0xdd   :  { %v1159_v34 = vpack.c.bf16 %v1031_v31, %v1031_v31  ;;  %v1926_v35 = vsel %vm1798_vm5, %v1158_v23, %v1670_v32 }
  0xde   :  { %v466_v36 = vpop.f32.mrf.mxu0  ;;  %v2198_v38 = vunpack.c.l.b16 %v1926_v35 }
  0xdf   :  { %v1287_v39 = vunpack.c.l.bf16 %v1159_v34  ;;  %v770_v40 = vpack.c.bf16 %v466_v36, %v466_v36 }
  0xe0   :  { %v2321_v41 = vpack.c.b16 %v2198_v38, %v2197_v37 }
  0xe1   :  { %v903_v43 = vunpack.c.l.bf16 %v770_v40  ;;  %v1543_v46 = vmul.f32 0.010009766, %v1287_v39  ;;  %vm1415_vm6 = vcmp.ge.f32.partialorder %v1287_v39, 0.0 }
  0xe2   :  { %2521 = vmatmul.bf16.gmra.mxu1 %v2321_v41  ;;  %vm1799_vm8 = vmpackc.low %vm1415_vm6, %vm1415_vm6 }
  0xe3   :  { %v1032_v47 = vadd.f32 %v8693_v42, %v903_v43  ;;  %v1671_v51 = vpack.c.bf16 %v1543_v46, %v1543_v46 }
  0xe5   :  { %v1160_v48 = vpack.c.bf16 %v1032_v47, %v1032_v47  ;;  %v1927_v58 = vsel %vm1799_vm8, %v1159_v34, %v1671_v51 }
  0xe6   :  { %v469_v50 = vpop.f32.mrf.mxu0  ;;  %v2199_v62 = vunpack.c.l.b16 %v1927_v58 }
  0xe7   :  { %v1288_v52 = vunpack.c.l.bf16 %v1160_v48  ;;  %v771_v53 = vpack.c.bf16 %v469_v50, %v469_v50 }
  0xe9   :  { %v904_v54 = vunpack.c.l.bf16 %v771_v53  ;;  %7777 = vmatmul.msk.bf16.gmra.mxu0 %vm237_vm0, %v171_v49  ;;  %vm1416_vm7 = vcmp.ge.f32.partialorder %v1288_v52, 0.0  ;;  %v1544_v55 = vmul.f32 0.010009766, %v1288_v52  ;;  %v63_v53 = vld [vmem:[%s15465_s0 + $0x110] sm:$0xff] }
  0xea   :  { %vm1800_vm9 = vmpackc.low %vm1416_vm7, %vm1416_vm7 }
  0xeb   :  { %v1033_v56 = vadd.f32 %v8693_v42, %v904_v54  ;;  %v1672_v57 = vpack.c.bf16 %v1544_v55, %v1544_v55  ;;  %v64_v54 = vld [vmem:[%s15465_s0 + $0x118] sm:$0xff] }
  0xec   :  { %v174_v58 = vpack.c.bf16 %v64_v54, %v63_v53 }
  0xed   :  { %v1161_v59 = vpack.c.bf16 %v1033_v56, %v1033_v56  ;;  %v1928_v60 = vsel %vm1800_vm9, %v1160_v48, %v1672_v57 }
  0xee   :  { %v471_v61 = vpop.f32.mrf.mxu0  ;;  %v2200_v63 = vunpack.c.l.b16 %v1928_v60 }
  0xef   :  { %v1289_v0 = vunpack.c.l.bf16 %v1161_v59  ;;  %v772_v1 = vpack.c.bf16 %v471_v61, %v471_v61 }
  0xf0   :  { %v2322_v2 = vpack.c.b16 %v2200_v63, %v2199_v62 }
  0xf1   :  { %v905_v3 = vunpack.c.l.bf16 %v772_v1  ;;  %v1545_v6 = vmul.f32 0.010009766, %v1289_v0  ;;  %vm1417_vm10 = vcmp.ge.f32.partialorder %v1289_v0, 0.0 }
  0xf2   :  { %2526 = vmatmul.bf16.gmra.mxu1 %v2322_v2  ;;  %vm1801_vm12 = vmpackc.low %vm1417_vm10, %vm1417_vm10 }
  0xf3   :  { %v1034_v7 = vadd.f32 %v8693_v42, %v905_v3  ;;  %v1673_v11 = vpack.c.bf16 %v1545_v6, %v1545_v6 }
  0xf5   :  { %v1162_v8 = vpack.c.bf16 %v1034_v7, %v1034_v7  ;;  %v1929_v18 = vsel %vm1801_vm12, %v1161_v59, %v1673_v11  ;;  %v2950_v59 = vld [vmem:[%s15469_s4] sm:$0x1] }
  0xf6   :  { %v474_v10 = vpop.f32.mrf.mxu0  ;;  %v2201_v22 = vunpack.c.l.b16 %v1929_v18  ;;  %v2952_v0 = vpack.i.b16 %v2950_v59, %v2950_v59 }
  0xf7   :  { %v1290_v12 = vunpack.c.l.bf16 %v1162_v8  ;;  %v773_v13 = vpack.c.bf16 %v474_v10, %v474_v10 }
  0xf8   :  { %v2954_v6 = vperm.slane %v2952_v0, 0 }
  0xf9   :  { %v906_v14 = vunpack.c.l.bf16 %v773_v13  ;;  %7778 = vmatmul.msk.bf16.gmra.mxu0 %vm237_vm0, %v172_v9  ;;  %vm1418_vm11 = vcmp.ge.f32.partialorder %v1290_v12, 0.0  ;;  %v1546_v15 = vmul.f32 0.010009766, %v1290_v12 }
  0xfa   :  { %vm1802_vm13 = vmpackc.low %vm1418_vm11, %vm1418_vm11 }
  0xfb   :  { %v1035_v16 = vadd.f32 %v8693_v42, %v906_v14  ;;  %v1674_v17 = vpack.c.bf16 %v1546_v15, %v1546_v15 }
  0xfd   :  { %v1163_v19 = vpack.c.bf16 %v1035_v16, %v1035_v16  ;;  %v1930_v20 = vsel %vm1802_vm13, %v1162_v8, %v1674_v17  ;;  %v8781_v16 = vunpack.c.l.bf16 %v2954_v6  ;;  %vm4368_vm13 = vcmask 523264  }
  0xfe   :  { %v476_v21 = vpop.f32.mrf.mxu0  ;;  %v2202_v23 = vunpack.c.l.b16 %v1930_v20  ;;  %v65_v20 = vld [vmem:[%s15465_s0 + $0x120] sm:$0xff] }
  0xff   :  { %v1291_v24 = vunpack.c.l.bf16 %v1163_v19  ;;  %v774_v25 = vpack.c.bf16 %v476_v21, %v476_v21  ;;  %v66_v21 = vld [vmem:[%s15465_s0 + $0x128] sm:$0xff] }
 0x100   :  { %v2323_v26 = vpack.c.b16 %v2202_v23, %v2201_v22 }
 0x101   :  { %v907_v27 = vunpack.c.l.bf16 %v774_v25  ;;  %v1547_v30 = vmul.f32 0.010009766, %v1291_v24  ;;  %vm1419_vm14 = vcmp.ge.f32.partialorder %v1291_v24, 0.0 }
 0x102   :  { %2531 = vmatmul.bf16.gmra.mxu1 %v2323_v26  ;;  %vm1803_vm1 = vmpackc.low %vm1419_vm14, %vm1419_vm14  ;;  %v175_v26 = vpack.c.bf16 %v66_v21, %v65_v20 }
 0x103   :  { %v1036_v31 = vadd.f32 %v8693_v42, %v907_v27  ;;  %v1675_v35 = vpack.c.bf16 %v1547_v30, %v1547_v30 }
 0x105   :  { %v1164_v32 = vpack.c.bf16 %v1036_v31, %v1036_v31  ;;  %v1931_v43 = vsel %vm1803_vm1, %v1163_v19, %v1675_v35 }
 0x106   :  { %v479_v34 = vpop.f32.mrf.mxu0  ;;  %v2203_v47 = vunpack.c.l.b16 %v1931_v43 }
 0x107   :  { %v1292_v36 = vunpack.c.l.bf16 %v1164_v32  ;;  %v775_v37 = vpack.c.bf16 %v479_v34, %v479_v34 }
 0x109   :  { %v908_v38 = vunpack.c.l.bf16 %v775_v37  ;;  %7779 = vmatmul.msk.bf16.gmra.mxu0 %vm237_vm0, %v173_v33  ;;  %vm1420_vm15 = vcmp.ge.f32.partialorder %v1292_v36, 0.0  ;;  %v1548_v39 = vmul.f32 0.010009766, %v1292_v36 }
 0x10a   :  { %vm1804_vm2 = vmpackc.low %vm1420_vm15, %vm1420_vm15 }
 0x10b   :  { %v1037_v40 = vadd.f32 %v8693_v42, %v908_v38  ;;  %v1676_v41 = vpack.c.bf16 %v1548_v39, %v1548_v39 }
 0x10d   :  { %v1165_v44 = vpack.c.bf16 %v1037_v40, %v1037_v40  ;;  %v1932_v45 = vsel %vm1804_vm2, %v1164_v32, %v1676_v41 }
 0x10e   :  { %v481_v46 = vpop.f32.mrf.mxu0  ;;  %v2204_v48 = vunpack.c.l.b16 %v1932_v45 }
 0x10f   :  { %v1293_v49 = vunpack.c.l.bf16 %v1165_v44  ;;  %v776_v50 = vpack.c.bf16 %v481_v46, %v481_v46 }
 0x110   :  { %v2324_v51 = vpack.c.b16 %v2204_v48, %v2203_v47  ;;  %v8804_v48 = vld [vmem:[%s15470_s5] ss:$0 sm:$0xff] }
 0x111   :  { %v909_v52 = vunpack.c.l.bf16 %v776_v50  ;;  %v1549_v55 = vmul.f32 0.010009766, %v1293_v49  ;;  %vm1421_vm3 = vcmp.ge.f32.partialorder %v1293_v49, 0.0 }
 0x112   :  { %2536 = vmatmul.bf16.gmra.mxu1 %v2324_v51  ;;  %vm1805_vm5 = vmpackc.low %vm1421_vm3, %vm1421_vm3 }
 0x113   :  { %v1038_v56 = vadd.f32 %v8693_v42, %v909_v52  ;;  %v1677_v61 = vpack.c.bf16 %v1549_v55, %v1549_v55 }
 0x115   :  { %v1166_v57 = vpack.c.bf16 %v1038_v56, %v1038_v56  ;;  %v1933_v5 = vsel %vm1805_vm5, %v1165_v44, %v1677_v61 }
 0x116   :  { %v484_v60 = vpop.f32.mrf.mxu0  ;;  %v2205_v10 = vunpack.c.l.b16 %v1933_v5 }
 0x117   :  { %v1294_v62 = vunpack.c.l.bf16 %v1166_v57  ;;  %v777_v63 = vpack.c.bf16 %v484_v60, %v484_v60 }
 0x119   :  { %v910_v1 = vunpack.c.l.bf16 %v777_v63  ;;  %7780 = vmatmul.msk.bf16.gmra.mxu0 %vm237_vm0, %v174_v58  ;;  %vm1422_vm4 = vcmp.ge.f32.partialorder %v1294_v62, 0.0  ;;  %v1550_v2 = vmul.f32 0.010009766, %v1294_v62 }
 0x11a   :  { %vm1806_vm6 = vmpackc.low %vm1422_vm4, %vm1422_vm4 }
 0x11b   :  { %v1039_v3 = vadd.f32 %v8693_v42, %v910_v1  ;;  %v1678_v4 = vpack.c.bf16 %v1550_v2, %v1550_v2  ;;  %v67_v1 = vld [vmem:[%s15465_s0 + $0x130] sm:$0xff]  ;;  %v68_v2 = vld [vmem:[%s15465_s0 + $0x138] sm:$0xff] }
 0x11d   :  { %v1167_v7 = vpack.c.bf16 %v1039_v3, %v1039_v3  ;;  %v1934_v8 = vsel %vm1806_vm6, %v1166_v57, %v1678_v4 }
 0x11e   :  { %v486_v9 = vpop.f32.mrf.mxu0  ;;  %v2206_v11 = vunpack.c.l.b16 %v1934_v8 }
 0x11f   :  { %v1295_v12 = vunpack.c.l.bf16 %v1167_v7  ;;  %v778_v13 = vpack.c.bf16 %v486_v9, %v486_v9  ;;  %v2502_v14 = vpop.f32.mrf.mxu1  ;;  %v176_v9 = vpack.c.bf16 %v68_v2, %v67_v1 }
 0x120   :  { %v2822_v15 = vpack.c.bf16 %v2502_v14, %v2502_v14  ;;  %v2325_v17 = vpack.c.b16 %v2206_v11, %v2205_v10 }
 0x121   :  { %v911_v18 = vunpack.c.l.bf16 %v778_v13  ;;  %v1551_v22 = vmul.f32 0.010009766, %v1295_v12  ;;  %vm1423_vm7 = vcmp.ge.f32.partialorder %v1295_v12, 0.0 }
 0x122   :  { %v2955_v19 = vunpack.c.l.bf16 %v2822_v15  ;;  %2541 = vmatmul.bf16.gmra.mxu1 %v2325_v17  ;;  %vm1807_vm9 = vmpackc.low %vm1423_vm7, %vm1423_vm7 }
 0x123   :  { %v1040_v23 = vadd.f32 %v8693_v42, %v911_v18  ;;  %v1679_v29 = vpack.c.bf16 %v1551_v22, %v1551_v22 }
 0x124   :  { %v3084_v24 = vadd.f32 %v8781_v16, %v2955_v19 }
 0x125   :  { %v1168_v25 = vpack.c.bf16 %v1040_v23, %v1040_v23  ;;  %v1935_v43 = vsel %vm1807_vm9, %v1167_v7, %v1679_v29 }
 0x126   :  { %v3212_v27 = vpack.c.bf16 %v3084_v24, %v3084_v24  ;;  %v489_v28 = vpop.f32.mrf.mxu0  ;;  %v2207_v51 = vunpack.c.l.b16 %v1935_v43 }
 0x127   :  { %v1296_v30 = vunpack.c.l.bf16 %v1168_v25  ;;  %v779_v31 = vpack.c.bf16 %v489_v28, %v489_v28  ;;  %v2504_v32 = vpop.f32.mrf.mxu1 }
 0x128   :  { %v3340_v33 = vunpack.c.l.bf16 %v3212_v27  ;;  %v2823_v34 = vpack.c.bf16 %v2504_v32, %v2504_v32 }
 0x129   :  { %v912_v35 = vunpack.c.l.bf16 %v779_v31  ;;  %7781 = vmatmul.msk.bf16.gmra.mxu0 %vm237_vm0, %v175_v26  ;;  %vm1424_vm8 = vcmp.ge.f32.partialorder %v1296_v30, 0.0  ;;  %v1552_v36 = vmul.f32 0.010009766, %v1296_v30 }
 0x12a   :  { %v3596_v37 = vmul.f32 0.010009766, %v3340_v33  ;;  %v2956_v38 = vunpack.c.l.bf16 %v2823_v34  ;;  %vm8792_vm10 = vcmp.ge.f32.partialorder %v3340_v33, 0.0  ;;  %vm1808_vm11 = vmpackc.low %vm1424_vm8, %vm1424_vm8 }
 0x12b   :  { %v1041_v40 = vadd.f32 %v8693_v42, %v912_v35  ;;  %v1680_v41 = vpack.c.bf16 %v1552_v36, %v1552_v36  ;;  %vm3852_vm12 = vmpackc.low %vm8792_vm10, %vm8792_vm10 }
 0x12c   :  { %v3724_v44 = vpack.c.bf16 %v3596_v37, %v3596_v37  ;;  %v3085_v45 = vadd.f32 %v8781_v16, %v2956_v38 }
 0x12d   :  { %v1169_v46 = vpack.c.bf16 %v1041_v40, %v1041_v40  ;;  %v1936_v47 = vsel %vm1808_vm11, %v1168_v25, %v1680_v41 }
 0x12e   :  { %v3213_v49 = vpack.c.bf16 %v3085_v45, %v3085_v45  ;;  %v491_v50 = vpop.f32.mrf.mxu0  ;;  %v2208_v52 = vunpack.c.l.b16 %v1936_v47  ;;  %v3980_v53 = vsel %vm3852_vm12, %v3212_v27, %v3724_v44 }
 0x12f   :  { %v1297_v54 = vunpack.c.l.bf16 %v1169_v46  ;;  %v780_v55 = vpack.c.bf16 %v491_v50, %v491_v50  ;;  %v2507_v56 = vpop.f32.mrf.mxu1  ;;  %v4109_v57 = vunpack.c.l.bf16 %v3980_v53 }
 0x130   :  { %v3341_v58 = vunpack.c.l.bf16 %v3213_v49  ;;  %v2824_v59 = vpack.c.bf16 %v2507_v56, %v2507_v56  ;;  %v2326_v60 = vpack.c.b16 %v2208_v52, %v2207_v51  ;;  %v70_v56 = vld [vmem:[%s15465_s0 + $0x148] sm:$0xff] }
 0x131   :  { %v913_v61 = vunpack.c.l.bf16 %v780_v55  ;;  %v4240_v62 = vmul.f32 %v8804_v48, %v4109_v57  ;;  %v1553_v3 = vmul.f32 0.010009766, %v1297_v54  ;;  %vm8816_vm1 = vcmp.ge.f32.partialorder %v1297_v54, 0.0  ;;  %v69_v55 = vld [vmem:[%s15465_s0 + $0x140] sm:$0xff] }
 0x132   :  { %v3597_v63 = vmul.f32 0.010009766, %v3341_v58  ;;  %v2957_v0 = vunpack.c.l.bf16 %v2824_v59  ;;  %2546 = vmatmul.bf16.gmra.mxu1 %v2326_v60  ;;  %vm3469_vm14 = vcmp.ge.f32.partialorder %v3341_v58, 0.0  ;;  %vm1809_vm3 = vmpackc.low %vm8816_vm1, %vm8816_vm1 }
 0x133   :  { %v1042_v4 = vadd.f32 %v8693_v42, %v913_v61  ;;  %v4369_v5 = vsel %vm4368_vm13, %v4240_v62, 0.0  ;;  %vm3853_vm15 = vmpackc.low %vm3469_vm14, %vm3469_vm14  ;;  %v1681_v14 = vpack.c.bf16 %v1553_v3, %v1553_v3 }
 0x134   :  { %v3086_v6 = vadd.f32 %v8781_v16, %v2957_v0  ;;  %4370 = vadd.xlane.f32.xlu0 %v4369_v5  ;;  %v3725_v7 = vpack.c.bf16 %v3597_v63, %v3597_v63  ;;  %v177_v63 = vpack.c.bf16 %v70_v56, %v69_v55 }
 0x135   :  { %v1170_v8 = vpack.c.bf16 %v1042_v4, %v1042_v4  ;;  %v1937_v32 = vsel %vm1809_vm3, %v1169_v46, %v1681_v14 }
 0x136   :  { %v3214_v10 = vpack.c.bf16 %v3086_v6, %v3086_v6  ;;  %v494_v11 = vpop.f32.mrf.mxu0  ;;  %v3981_v12 = vsel %vm3853_vm15, %v3213_v49, %v3725_v7  ;;  %v2209_v39 = vunpack.c.l.b16 %v1937_v32 }
 0x137   :  { %v1298_v15 = vunpack.c.l.bf16 %v1170_v8  ;;  %v781_v17 = vpack.c.bf16 %v494_v11, %v494_v11  ;;  %v2509_v18 = vpop.f32.mrf.mxu1  ;;  %v4110_v19 = vunpack.c.l.bf16 %v3981_v12 }
 0x138   :  { %v3342_v20 = vunpack.c.l.bf16 %v3214_v10  ;;  %v2825_v21 = vpack.c.bf16 %v2509_v18, %v2509_v18 }
 0x139   :  { %v914_v22 = vunpack.c.l.bf16 %v781_v17  ;;  %7782 = vmatmul.msk.bf16.gmra.mxu0 %vm237_vm0, %v176_v9  ;;  %v4241_v23 = vmul.f32 %v8804_v48, %v4110_v19  ;;  %vm8822_vm2 = vcmp.ge.f32.partialorder %v1298_v15, 0.0  ;;  %v1554_v25 = vmul.f32 0.010009766, %v1298_v15 }
 0x13a   :  { %v3598_v26 = vmul.f32 0.010009766, %v3342_v20  ;;  %v2958_v27 = vunpack.c.l.bf16 %v2825_v21  ;;  %vm8829_vm4 = vcmp.ge.f32.partialorder %v3342_v20, 0.0  ;;  %vm1810_vm5 = vmpackc.low %vm8822_vm2, %vm8822_vm2 }
 0x13b   :  { %v1043_v29 = vadd.f32 %v8693_v42, %v914_v22  ;;  %v4372_v30 = vsel %vm4368_vm13, %v4241_v23, 0.0  ;;  %v1682_v31 = vpack.c.bf16 %v1554_v25, %v1554_v25  ;;  %vm3854_vm6 = vmpackc.low %vm8829_vm4, %vm8829_vm4 }
 0x13c   :  { %v3726_v33 = vpack.c.bf16 %v3598_v26, %v3598_v26  ;;  %v3087_v34 = vadd.f32 %v8781_v16, %v2958_v27  ;;  %4373 = vadd.xlane.f32.xlu0 %v4372_v30 }
 0x13d   :  { %v1171_v35 = vpack.c.bf16 %v1043_v29, %v1043_v29  ;;  %v1938_v36 = vsel %vm1810_vm5, %v1170_v8, %v1682_v31 }
 0x13e   :  { %v3215_v37 = vpack.c.bf16 %v3087_v34, %v3087_v34  ;;  %v496_v38 = vpop.f32.mrf.mxu0  ;;  %v2210_v40 = vunpack.c.l.b16 %v1938_v36  ;;  %v3982_v41 = vsel %vm3854_vm6, %v3214_v10, %v3726_v33 }
 0x13f   :  { %v1299_v43 = vunpack.c.l.bf16 %v1171_v35  ;;  %v782_v44 = vpack.c.bf16 %v496_v38, %v496_v38  ;;  %v2512_v45 = vpop.f32.mrf.mxu1  ;;  %v4111_v46 = vunpack.c.l.bf16 %v3982_v41 }
 0x140   :  { %v3343_v47 = vunpack.c.l.bf16 %v3215_v37  ;;  %v2826_v49 = vpack.c.bf16 %v2512_v45, %v2512_v45  ;;  %v2327_v50 = vpack.c.b16 %v2210_v40, %v2209_v39  ;;  %v72_v45 = vld [vmem:[%s15465_s0 + $0x158] sm:$0xff] }
 0x141   :  { %v915_v51 = vunpack.c.l.bf16 %v782_v44  ;;  %v4242_v52 = vmul.f32 %v8804_v48, %v4111_v46  ;;  %v1555_v57 = vmul.f32 0.010009766, %v1299_v43  ;;  %vm8852_vm9 = vcmp.ge.f32.partialorder %v1299_v43, 0.0  ;;  %v71_v44 = vld [vmem:[%s15465_s0 + $0x150] sm:$0xff] }
 0x142   :  { %v3599_v53 = vmul.f32 0.010009766, %v3343_v47  ;;  %v2959_v54 = vunpack.c.l.bf16 %v2826_v49  ;;  %2551 = vmatmul.bf16.gmra.mxu1 %v2327_v50  ;;  %vm3471_vm7 = vcmp.ge.f32.partialorder %v3343_v47, 0.0  ;;  %vm1811_vm11 = vmpackc.low %vm8852_vm9, %vm8852_vm9 }
 0x143   :  { %v1044_v58 = vadd.f32 %v8693_v42, %v915_v51  ;;  %v4375_v59 = vsel %vm4368_vm13, %v4242_v52, 0.0  ;;  %vm3855_vm8 = vmpackc.low %vm3471_vm7, %vm3471_vm7  ;;  %v1683_v4 = vpack.c.bf16 %v1555_v57, %v1555_v57 }
 0x144   :  { %v3088_v60 = vadd.f32 %v8781_v16, %v2959_v54  ;;  %4376 = vadd.xlane.f32.xlu1 %v4375_v59  ;;  %v3727_v61 = vpack.c.bf16 %v3599_v53, %v3599_v53  ;;  %v178_v53 = vpack.c.bf16 %v72_v45, %v71_v44 }
 0x145   :  { %v1172_v62 = vpack.c.bf16 %v1044_v58, %v1044_v58  ;;  %v1939_v22 = vsel %vm1811_vm11, %v1171_v35, %v1683_v4 }
 0x146   :  { %v3216_v0 = vpack.c.bf16 %v3088_v60, %v3088_v60  ;;  %v499_v1 = vpop.f32.mrf.mxu0  ;;  %v3983_v2 = vsel %vm3855_vm8, %v3215_v37, %v3727_v61  ;;  %v2211_v29 = vunpack.c.l.b16 %v1939_v22 }
 0x147   :  { %v1300_v5 = vunpack.c.l.bf16 %v1172_v62  ;;  %v783_v6 = vpack.c.bf16 %v499_v1, %v499_v1  ;;  %v2514_v7 = vpop.f32.mrf.mxu1  ;;  %v4112_v8 = vunpack.c.l.bf16 %v3983_v2 }
 0x148   :  { %v3344_v9 = vunpack.c.l.bf16 %v3216_v0  ;;  %v2827_v10 = vpack.c.bf16 %v2514_v7, %v2514_v7 }
 0x149   :  { %v916_v11 = vunpack.c.l.bf16 %v783_v6  ;;  %7783 = vmatmul.msk.bf16.gmra.mxu0 %vm237_vm0, %v177_v63  ;;  %v4243_v12 = vmul.f32 %v8804_v48, %v4112_v8  ;;  %vm8858_vm10 = vcmp.ge.f32.partialorder %v1300_v5, 0.0  ;;  %v1556_v14 = vmul.f32 0.010009766, %v1300_v5 }
 0x14a   :  { %v3600_v15 = vmul.f32 0.010009766, %v3344_v9  ;;  %v2960_v17 = vunpack.c.l.bf16 %v2827_v10  ;;  %vm8865_vm12 = vcmp.ge.f32.partialorder %v3344_v9, 0.0  ;;  %vm1812_vm14 = vmpackc.low %vm8858_vm10, %vm8858_vm10 }
 0x14b   :  { %v1045_v19 = vadd.f32 %v8693_v42, %v916_v11  ;;  %v4378_v20 = vsel %vm4368_vm13, %v4243_v12, 0.0  ;;  %v1684_v21 = vpack.c.bf16 %v1556_v14, %v1556_v14  ;;  %vm3856_vm15 = vmpackc.low %vm8865_vm12, %vm8865_vm12 }
 0x14c   :  { %v3728_v23 = vpack.c.bf16 %v3600_v15, %v3600_v15  ;;  %v3089_v24 = vadd.f32 %v8781_v16, %v2960_v17  ;;  %4379 = vadd.xlane.f32.xlu1 %v4378_v20 }
 0x14d   :  { %v1173_v25 = vpack.c.bf16 %v1045_v19, %v1045_v19  ;;  %v1940_v26 = vsel %vm1812_vm14, %v1172_v62, %v1684_v21 }
 0x14e   :  { %v3217_v27 = vpack.c.bf16 %v3089_v24, %v3089_v24  ;;  %v501_v28 = vpop.f32.mrf.mxu0  ;;  %v2212_v30 = vunpack.c.l.b16 %v1940_v26  ;;  %v3984_v31 = vsel %vm3856_vm15, %v3216_v0, %v3728_v23 }
 0x14f   :  { %v1301_v32 = vunpack.c.l.bf16 %v1173_v25  ;;  %v784_v33 = vpack.c.bf16 %v501_v28, %v501_v28  ;;  %v2517_v34 = vpop.f32.mrf.mxu1  ;;  %v4113_v35 = vunpack.c.l.bf16 %v3984_v31 }
 0x150   :  { %v3345_v36 = vunpack.c.l.bf16 %v3217_v27  ;;  %v2828_v37 = vpack.c.bf16 %v2517_v34, %v2517_v34  ;;  %v2328_v38 = vpack.c.b16 %v2212_v30, %v2211_v29 }
 0x151   :  { %v917_v39 = vunpack.c.l.bf16 %v784_v33  ;;  %v4244_v40 = vmul.f32 %v8804_v48, %v4113_v35  ;;  %v1557_v46 = vmul.f32 0.010009766, %v1301_v32  ;;  %vm8888_vm3 = vcmp.ge.f32.partialorder %v1301_v32, 0.0  ;;  %v73_v32 = vld [vmem:[%s15465_s0 + $0x160] sm:$0xff]  ;;  %v74_v33 = vld [vmem:[%s15465_s0 + $0x168] sm:$0xff] }
 0x152   :  { %v3601_v41 = vmul.f32 0.010009766, %v3345_v36  ;;  %v2961_v43 = vunpack.c.l.bf16 %v2828_v37  ;;  %2556 = vmatmul.bf16.gmra.mxu1 %v2328_v38  ;;  %vm3473_vm1 = vcmp.ge.f32.partialorder %v3345_v36, 0.0  ;;  %vm1813_vm5 = vmpackc.low %vm8888_vm3, %vm8888_vm3 }
 0x153   :  { %v1046_v47 = vadd.f32 %v8693_v42, %v917_v39  ;;  %v4381_v49 = vsel %vm4368_vm13, %v4244_v40, 0.0  ;;  %vm3857_vm2 = vmpackc.low %vm3473_vm1, %vm3473_vm1  ;;  %v1685_v58 = vpack.c.bf16 %v1557_v46, %v1557_v46  ;;  %v179_v40 = vpack.c.bf16 %v74_v33, %v73_v32 }
 0x154   :  { %v3090_v50 = vadd.f32 %v8781_v16, %v2961_v43  ;;  %4382 = vadd.xlane.f32.xlu2 %v4381_v49  ;;  %v3729_v51 = vpack.c.bf16 %v3601_v41, %v3601_v41 }
 0x155   :  { %v1174_v52 = vpack.c.bf16 %v1046_v47, %v1046_v47  ;;  %v1941_v10 = vsel %vm1813_vm5, %v1173_v25, %v1685_v58 }
 0x156   :  { %v3218_v55 = vpack.c.bf16 %v3090_v50, %v3090_v50  ;;  %v504_v56 = vpop.f32.mrf.mxu0  ;;  %v3985_v57 = vsel %vm3857_vm2, %v3217_v27, %v3729_v51  ;;  %v2213_v18 = vunpack.c.l.b16 %v1941_v10 }
 0x157   :  { %v1302_v59 = vunpack.c.l.bf16 %v1174_v52  ;;  %v785_v60 = vpack.c.bf16 %v504_v56, %v504_v56  ;;  %v2519_v61 = vpop.f32.mrf.mxu1  ;;  %v4114_v62 = vunpack.c.l.bf16 %v3985_v57 }
 0x158   :  { %v3346_v63 = vunpack.c.l.bf16 %v3218_v55  ;;  %v2829_v0 = vpack.c.bf16 %v2519_v61, %v2519_v61 }
 0x159   :  { %v1558_v1 = vmul.f32 0.010009766, %v1302_v59  ;;  %v918_v2 = vunpack.c.l.bf16 %v785_v60  ;;  %7784 = vmatmul.msk.bf16.gmra.mxu0 %vm237_vm0, %v178_v53  ;;  %v4245_v3 = vmul.f32 %v8804_v48, %v4114_v62  ;;  %vm1430_vm4 = vcmp.ge.f32.partialorder %v1302_v59, 0.0 }
 0x15a   :  { %v3602_v4 = vmul.f32 0.010009766, %v3346_v63  ;;  %v2962_v5 = vunpack.c.l.bf16 %v2829_v0  ;;  %vm8897_vm6 = vcmp.ge.f32.partialorder %v3346_v63, 0.0  ;;  %vm1814_vm7 = vmpackc.low %vm1430_vm4, %vm1430_vm4 }
 0x15b   :  { %v1686_v7 = vpack.c.bf16 %v1558_v1, %v1558_v1  ;;  %v1047_v8 = vadd.f32 %v8693_v42, %v918_v2  ;;  %v4384_v9 = vsel %vm4368_vm13, %v4245_v3, 0.0  ;;  %vm3858_vm8 = vmpackc.low %vm8897_vm6, %vm8897_vm6 }
 0x15c   :  { %v3730_v11 = vpack.c.bf16 %v3602_v4, %v3602_v4  ;;  %v3091_v12 = vadd.f32 %v8781_v16, %v2962_v5  ;;  %4385 = vadd.xlane.f32.xlu2 %v4384_v9 }
 0x15d   :  { %v1175_v13 = vpack.c.bf16 %v1047_v8, %v1047_v8  ;;  %v1942_v14 = vsel %vm1814_vm7, %v1174_v52, %v1686_v7 }
 0x15e   :  { %v3219_v15 = vpack.c.bf16 %v3091_v12, %v3091_v12  ;;  %v506_v17 = vpop.f32.mrf.mxu0  ;;  %v2214_v19 = vunpack.c.l.b16 %v1942_v14  ;;  %v3986_v20 = vsel %vm3858_vm8, %v3218_v55, %v3730_v11 }
 0x15f   :  { %v1303_v21 = vunpack.c.l.bf16 %v1175_v13  ;;  %v786_v22 = vpack.c.bf16 %v506_v17, %v506_v17  ;;  %v2522_v23 = vpop.f32.mrf.mxu1  ;;  %v4115_v24 = vunpack.c.l.bf16 %v3986_v20 }
 0x160   :  { %v3347_v25 = vunpack.c.l.bf16 %v3219_v15  ;;  %v2830_v26 = vpack.c.bf16 %v2522_v23, %v2522_v23  ;;  %v2329_v27 = vpack.c.b16 %v2214_v19, %v2213_v18 }
 0x161   :  { %v919_v28 = vunpack.c.l.bf16 %v786_v22  ;;  %v4246_v29 = vmul.f32 %v8804_v48, %v4115_v24  ;;  %v1559_v34 = vmul.f32 0.010009766, %v1303_v21  ;;  %vm8917_vm11 = vcmp.ge.f32.partialorder %v1303_v21, 0.0  ;;  %v75_v21 = vld [vmem:[%s15465_s0 + $0x170] sm:$0xff]  ;;  %v76_v22 = vld [vmem:[%s15465_s0 + $0x178] sm:$0xff] }
 0x162   :  { %v3603_v30 = vmul.f32 0.010009766, %v3347_v25  ;;  %v2963_v31 = vunpack.c.l.bf16 %v2830_v26  ;;  %2561 = vmatmul.bf16.gmra.mxu1 %v2329_v27  ;;  %vm3475_vm9 = vcmp.ge.f32.partialorder %v3347_v25, 0.0  ;;  %vm1815_vm14 = vmpackc.low %vm8917_vm11, %vm8917_vm11 }
 0x163   :  { %v1048_v35 = vadd.f32 %v8693_v42, %v919_v28  ;;  %v4387_v36 = vsel %vm4368_vm13, %v4246_v29, 0.0  ;;  %vm3859_vm10 = vmpackc.low %vm3475_vm9, %vm3475_vm9  ;;  %v1687_v46 = vpack.c.bf16 %v1559_v34, %v1559_v34  ;;  %v180_v29 = vpack.c.bf16 %v76_v22, %v75_v21 }
 0x164   :  { %v3092_v37 = vadd.f32 %v8781_v16, %v2963_v31  ;;  %4388 = vadd.xlane.f32.xlu0 %v4387_v36  ;;  %v3731_v38 = vpack.c.bf16 %v3603_v30, %v3603_v30 }
 0x165   :  { %v1176_v39 = vpack.c.bf16 %v1048_v35, %v1048_v35  ;;  %v1943_v63 = vsel %vm1815_vm14, %v1175_v13, %v1687_v46 }
 0x166   :  { %v3220_v43 = vpack.c.bf16 %v3092_v37, %v3092_v37  ;;  %v509_v44 = vpop.f32.mrf.mxu0  ;;  %v3987_v45 = vsel %vm3859_vm10, %v3219_v15, %v3731_v38  ;;  %v2215_v6 = vunpack.c.l.b16 %v1943_v63 }
 0x167   :  { %v1304_v47 = vunpack.c.l.bf16 %v1176_v39  ;;  %v787_v49 = vpack.c.bf16 %v509_v44, %v509_v44  ;;  %v2524_v50 = vpop.f32.mrf.mxu1  ;;  %v4116_v51 = vunpack.c.l.bf16 %v3987_v45 }
 0x168   :  { %v3348_v52 = vunpack.c.l.bf16 %v3220_v43  ;;  %v2831_v53 = vpack.c.bf16 %v2524_v50, %v2524_v50 }
 0x169   :  { %v1560_v54 = vmul.f32 0.010009766, %v1304_v47  ;;  %v920_v55 = vunpack.c.l.bf16 %v787_v49  ;;  %7785 = vmatmul.msk.bf16.gmra.mxu0 %vm237_vm0, %v179_v40  ;;  %v4247_v56 = vmul.f32 %v8804_v48, %v4116_v51  ;;  %vm1432_vm12 = vcmp.ge.f32.partialorder %v1304_v47, 0.0 }
 0x16a   :  { %v3604_v57 = vmul.f32 0.010009766, %v3348_v52  ;;  %v2964_v58 = vunpack.c.l.bf16 %v2831_v53  ;;  %vm8926_vm15 = vcmp.ge.f32.partialorder %v3348_v52, 0.0  ;;  %vm1816_vm1 = vmpackc.low %vm1432_vm12, %vm1432_vm12 }
 0x16b   :  { %v1688_v60 = vpack.c.bf16 %v1560_v54, %v1560_v54  ;;  %v1049_v61 = vadd.f32 %v8693_v42, %v920_v55  ;;  %v4390_v62 = vsel %vm4368_vm13, %v4247_v56, 0.0  ;;  %vm3860_vm2 = vmpackc.low %vm8926_vm15, %vm8926_vm15 }
 0x16c   :  { %v3732_v0 = vpack.c.bf16 %v3604_v57, %v3604_v57  ;;  %v3093_v1 = vadd.f32 %v8781_v16, %v2964_v58  ;;  %4391 = vadd.xlane.f32.xlu1 %v4390_v62 }
 0x16d   :  { %v1177_v2 = vpack.c.bf16 %v1049_v61, %v1049_v61  ;;  %v1944_v3 = vsel %vm1816_vm1, %v1176_v39, %v1688_v60 }
 0x16e   :  { %v3221_v4 = vpack.c.bf16 %v3093_v1, %v3093_v1  ;;  %v511_v5 = vpop.f32.mrf.mxu0  ;;  %v2216_v7 = vunpack.c.l.b16 %v1944_v3  ;;  %v3988_v8 = vsel %vm3860_vm2, %v3220_v43, %v3732_v0 }
 0x16f   :  { %v1305_v9 = vunpack.c.l.bf16 %v1177_v2  ;;  %v788_v10 = vpack.c.bf16 %v511_v5, %v511_v5  ;;  %v2527_v11 = vpop.f32.mrf.mxu1  ;;  %v4117_v12 = vunpack.c.l.bf16 %v3988_v8 }
 0x170   :  { %v3349_v13 = vunpack.c.l.bf16 %v3221_v4  ;;  %v2832_v14 = vpack.c.bf16 %v2527_v11, %v2527_v11  ;;  %v2330_v15 = vpack.c.b16 %v2216_v7, %v2215_v6 }
 0x171   :  { %v921_v17 = vunpack.c.l.bf16 %v788_v10  ;;  %v4248_v18 = vmul.f32 %v8804_v48, %v4117_v12  ;;  %v1561_v23 = vmul.f32 0.010009766, %v1305_v9  ;;  %vm8946_vm5 = vcmp.ge.f32.partialorder %v1305_v9, 0.0  ;;  %v77_v9 = vld [vmem:[%s15465_s0 + $0x180] sm:$0xff]  ;;  %v78_v10 = vld [vmem:[%s15465_s0 + $0x188] sm:$0xff] }
 0x172   :  { %v3605_v19 = vmul.f32 0.010009766, %v3349_v13  ;;  %v2965_v20 = vunpack.c.l.bf16 %v2832_v14  ;;  %2566 = vmatmul.bf16.gmra.mxu1 %v2330_v15  ;;  %vm3477_vm3 = vcmp.ge.f32.partialorder %v3349_v13, 0.0  ;;  %vm1817_vm7 = vmpackc.low %vm8946_vm5, %vm8946_vm5 }
 0x173   :  { %v1050_v24 = vadd.f32 %v8693_v42, %v921_v17  ;;  %v4393_v25 = vsel %vm4368_vm13, %v4248_v18, 0.0  ;;  %vm3861_vm4 = vmpackc.low %vm3477_vm3, %vm3477_vm3  ;;  %v1689_v34 = vpack.c.bf16 %v1561_v23, %v1561_v23  ;;  %v181_v18 = vpack.c.bf16 %v78_v10, %v77_v9 }
 0x174   :  { %v3094_v26 = vadd.f32 %v8781_v16, %v2965_v20  ;;  %4394 = vadd.xlane.f32.xlu2 %v4393_v25  ;;  %v3733_v27 = vpack.c.bf16 %v3605_v19, %v3605_v19 }
 0x175   :  { %v1178_v28 = vpack.c.bf16 %v1050_v24, %v1050_v24  ;;  %v1945_v52 = vsel %vm1817_vm7, %v1177_v2, %v1689_v34 }
 0x176   :  { %v3222_v31 = vpack.c.bf16 %v3094_v26, %v3094_v26  ;;  %v514_v32 = vpop.f32.mrf.mxu0  ;;  %v3989_v33 = vsel %vm3861_vm4, %v3221_v4, %v3733_v27  ;;  %v2217_v59 = vunpack.c.l.b16 %v1945_v52 }
 0x177   :  { %v1306_v35 = vunpack.c.l.bf16 %v1178_v28  ;;  %v789_v36 = vpack.c.bf16 %v514_v32, %v514_v32  ;;  %v2529_v37 = vpop.f32.mrf.mxu1  ;;  %v4118_v38 = vunpack.c.l.bf16 %v3989_v33 }
 0x178   :  { %v3350_v39 = vunpack.c.l.bf16 %v3222_v31  ;;  %v2833_v40 = vpack.c.bf16 %v2529_v37, %v2529_v37 }
 0x179   :  { %v1562_v41 = vmul.f32 0.010009766, %v1306_v35  ;;  %v922_v43 = vunpack.c.l.bf16 %v789_v36  ;;  %7786 = vmatmul.msk.bf16.gmra.mxu0 %vm237_vm0, %v180_v29  ;;  %v4249_v44 = vmul.f32 %v8804_v48, %v4118_v38  ;;  %vm1434_vm6 = vcmp.ge.f32.partialorder %v1306_v35, 0.0 }
 0x17a   :  { %v3606_v45 = vmul.f32 0.010009766, %v3350_v39  ;;  %v2966_v46 = vunpack.c.l.bf16 %v2833_v40  ;;  %vm8955_vm8 = vcmp.ge.f32.partialorder %v3350_v39, 0.0  ;;  %vm1818_vm9 = vmpackc.low %vm1434_vm6, %vm1434_vm6 }
 0x17b   :  { %v1690_v49 = vpack.c.bf16 %v1562_v41, %v1562_v41  ;;  %v1051_v50 = vadd.f32 %v8693_v42, %v922_v43  ;;  %v4396_v51 = vsel %vm4368_vm13, %v4249_v44, 0.0  ;;  %vm3862_vm10 = vmpackc.low %vm8955_vm8, %vm8955_vm8 }
 0x17c   :  { %v3734_v53 = vpack.c.bf16 %v3606_v45, %v3606_v45  ;;  %v3095_v54 = vadd.f32 %v8781_v16, %v2966_v46  ;;  %4397 = vadd.xlane.f32.xlu0 %v4396_v51 }
 0x17d   :  { %v1179_v55 = vpack.c.bf16 %v1051_v50, %v1051_v50  ;;  %v1946_v56 = vsel %vm1818_vm9, %v1178_v28, %v1690_v49 }
 0x17e   :  { %v3223_v57 = vpack.c.bf16 %v3095_v54, %v3095_v54  ;;  %v516_v58 = vpop.f32.mrf.mxu0  ;;  %v2218_v60 = vunpack.c.l.b16 %v1946_v56  ;;  %v3990_v61 = vsel %vm3862_vm10, %v3222_v31, %v3734_v53 }
 0x17f   :  { %v1307_v62 = vunpack.c.l.bf16 %v1179_v55  ;;  %v790_v63 = vpack.c.bf16 %v516_v58, %v516_v58  ;;  %v2532_v0 = vpop.f32.mrf.mxu1  ;;  %v4119_v1 = vunpack.c.l.bf16 %v3990_v61 }
 0x180   :  { %v3351_v2 = vunpack.c.l.bf16 %v3223_v57  ;;  %v2834_v3 = vpack.c.bf16 %v2532_v0, %v2532_v0  ;;  %v2331_v4 = vpack.c.b16 %v2218_v60, %v2217_v59 }
 0x181   :  { %v923_v5 = vunpack.c.l.bf16 %v790_v63  ;;  %v4250_v6 = vmul.f32 %v8804_v48, %v4119_v1  ;;  %v1563_v11 = vmul.f32 0.010009766, %v1307_v62  ;;  %vm8975_vm14 = vcmp.ge.f32.partialorder %v1307_v62, 0.0  ;;  %v79_v62 = vld [vmem:[%s15465_s0 + $0x190] sm:$0xff]  ;;  %v80_v63 = vld [vmem:[%s15465_s0 + $0x198] sm:$0xff] }
 0x182   :  { %v3607_v7 = vmul.f32 0.010009766, %v3351_v2  ;;  %v2967_v8 = vunpack.c.l.bf16 %v2834_v3  ;;  %2571 = vmatmul.bf16.gmra.mxu1 %v2331_v4  ;;  %vm3479_vm11 = vcmp.ge.f32.partialorder %v3351_v2, 0.0  ;;  %vm1819_vm1 = vmpackc.low %vm8975_vm14, %vm8975_vm14 }
 0x183   :  { %v1052_v12 = vadd.f32 %v8693_v42, %v923_v5  ;;  %v4399_v13 = vsel %vm4368_vm13, %v4250_v6, 0.0  ;;  %vm3863_vm12 = vmpackc.low %vm3479_vm11, %vm3479_vm11  ;;  %v1691_v23 = vpack.c.bf16 %v1563_v11, %v1563_v11  ;;  %v182_v6 = vpack.c.bf16 %v80_v63, %v79_v62 }
 0x184   :  { %v3096_v14 = vadd.f32 %v8781_v16, %v2967_v8  ;;  %4400 = vadd.xlane.f32.xlu1 %v4399_v13  ;;  %v3735_v15 = vpack.c.bf16 %v3607_v7, %v3607_v7 }
 0x185   :  { %v1180_v17 = vpack.c.bf16 %v1052_v12, %v1052_v12  ;;  %v1947_v39 = vsel %vm1819_vm1, %v1179_v55, %v1691_v23 }
 0x186   :  { %v3224_v20 = vpack.c.bf16 %v3096_v14, %v3096_v14  ;;  %v519_v21 = vpop.f32.mrf.mxu0  ;;  %v3991_v22 = vsel %vm3863_vm12, %v3223_v57, %v3735_v15  ;;  %v2219_v47 = vunpack.c.l.b16 %v1947_v39 }
 0x187   :  { %v1308_v24 = vunpack.c.l.bf16 %v1180_v17  ;;  %v791_v25 = vpack.c.bf16 %v519_v21, %v519_v21  ;;  %v2534_v26 = vpop.f32.mrf.mxu1  ;;  %v4120_v27 = vunpack.c.l.bf16 %v3991_v22 }
 0x188   :  { %v3352_v28 = vunpack.c.l.bf16 %v3224_v20  ;;  %v2835_v29 = vpack.c.bf16 %v2534_v26, %v2534_v26 }
 0x189   :  { %v1564_v30 = vmul.f32 0.010009766, %v1308_v24  ;;  %v924_v31 = vunpack.c.l.bf16 %v791_v25  ;;  %7787 = vmatmul.msk.bf16.gmra.mxu0 %vm237_vm0, %v181_v18  ;;  %v4251_v32 = vmul.f32 %v8804_v48, %v4120_v27  ;;  %vm1436_vm15 = vcmp.ge.f32.partialorder %v1308_v24, 0.0 }
 0x18a   :  { %v3608_v33 = vmul.f32 0.010009766, %v3352_v28  ;;  %v2968_v34 = vunpack.c.l.bf16 %v2835_v29  ;;  %vm8984_vm2 = vcmp.ge.f32.partialorder %v3352_v28, 0.0  ;;  %vm1820_vm3 = vmpackc.low %vm1436_vm15, %vm1436_vm15 }
 0x18b   :  { %v1692_v36 = vpack.c.bf16 %v1564_v30, %v1564_v30  ;;  %v1053_v37 = vadd.f32 %v8693_v42, %v924_v31  ;;  %v4402_v38 = vsel %vm4368_vm13, %v4251_v32, 0.0  ;;  %vm3864_vm4 = vmpackc.low %vm8984_vm2, %vm8984_vm2 }
 0x18c   :  { %v3736_v40 = vpack.c.bf16 %v3608_v33, %v3608_v33  ;;  %v3097_v41 = vadd.f32 %v8781_v16, %v2968_v34  ;;  %4403 = vadd.xlane.f32.xlu2 %v4402_v38 }
 0x18d   :  { %v1181_v43 = vpack.c.bf16 %v1053_v37, %v1053_v37  ;;  %v1948_v44 = vsel %vm1820_vm3, %v1180_v17, %v1692_v36 }
 0x18e   :  { %v3225_v45 = vpack.c.bf16 %v3097_v41, %v3097_v41  ;;  %v521_v46 = vpop.f32.mrf.mxu0  ;;  %v2220_v49 = vunpack.c.l.b16 %v1948_v44  ;;  %v3992_v50 = vsel %vm3864_vm4, %v3224_v20, %v3736_v40 }
 0x18f   :  { %v1309_v51 = vunpack.c.l.bf16 %v1181_v43  ;;  %v792_v52 = vpack.c.bf16 %v521_v46, %v521_v46  ;;  %v2537_v53 = vpop.f32.mrf.mxu1  ;;  %v4121_v54 = vunpack.c.l.bf16 %v3992_v50 }
 0x190   :  { %v3353_v55 = vunpack.c.l.bf16 %v3225_v45  ;;  %v2836_v56 = vpack.c.bf16 %v2537_v53, %v2537_v53  ;;  %v2332_v57 = vpack.c.b16 %v2220_v49, %v2219_v47 }
 0x191   :  { %v925_v58 = vunpack.c.l.bf16 %v792_v52  ;;  %v4252_v59 = vmul.f32 %v8804_v48, %v4121_v54  ;;  %v1565_v0 = vmul.f32 0.010009766, %v1309_v51  ;;  %vm9004_vm7 = vcmp.ge.f32.partialorder %v1309_v51, 0.0  ;;  %v81_v51 = vld [vmem:[%s15465_s0 + $0x1a0] sm:$0xff]  ;;  %v82_v52 = vld [vmem:[%s15465_s0 + $0x1a8] sm:$0xff] }
 0x192   :  { %v3609_v60 = vmul.f32 0.010009766, %v3353_v55  ;;  %v2969_v61 = vunpack.c.l.bf16 %v2836_v56  ;;  %2576 = vmatmul.bf16.gmra.mxu1 %v2332_v57  ;;  %vm3481_vm5 = vcmp.ge.f32.partialorder %v3353_v55, 0.0  ;;  %vm1821_vm9 = vmpackc.low %vm9004_vm7, %vm9004_vm7 }
 0x193   :  { %v1054_v1 = vadd.f32 %v8693_v42, %v925_v58  ;;  %v4405_v2 = vsel %vm4368_vm13, %v4252_v59, 0.0  ;;  %vm3865_vm6 = vmpackc.low %vm3481_vm5, %vm3481_vm5  ;;  %v1693_v11 = vpack.c.bf16 %v1565_v0, %v1565_v0  ;;  %v9036_v59 = vstv %s15471_s6 }
 0x194   :  { %v3098_v3 = vadd.f32 %v8781_v16, %v2969_v61  ;;  %4406 = vadd.xlane.f32.xlu0 %v4405_v2  ;;  %v3737_v4 = vpack.c.bf16 %v3609_v60, %v3609_v60  ;;  %v183_v60 = vpack.c.bf16 %v82_v52, %v81_v51 }
 0x195   :  { %v1182_v5 = vpack.c.bf16 %v1054_v1, %v1054_v1  ;;  %v1949_v28 = vsel %vm1821_vm9, %v1181_v43, %v1693_v11 }
 0x196   :  { %v3226_v8 = vpack.c.bf16 %v3098_v3, %v3098_v3  ;;  %v524_v9 = vpop.f32.mrf.mxu0  ;;  %v3993_v10 = vsel %vm3865_vm6, %v3225_v45, %v3737_v4  ;;  %v2221_v35 = vunpack.c.l.b16 %v1949_v28 }
 0x197   :  { %v1310_v12 = vunpack.c.l.bf16 %v1182_v5  ;;  %v793_v13 = vpack.c.bf16 %v524_v9, %v524_v9  ;;  %v2539_v14 = vpop.f32.mrf.mxu1  ;;  %v4122_v15 = vunpack.c.l.bf16 %v3993_v10 }
 0x198   :  { %v3354_v17 = vunpack.c.l.bf16 %v3226_v8  ;;  %v2837_v18 = vpack.c.bf16 %v2539_v14, %v2539_v14 }
 0x199   :  { %v1566_v19 = vmul.f32 0.010009766, %v1310_v12  ;;  %v926_v20 = vunpack.c.l.bf16 %v793_v13  ;;  %7788 = vmatmul.msk.bf16.gmra.mxu0 %vm237_vm0, %v182_v6  ;;  %v4253_v21 = vmul.f32 %v8804_v48, %v4122_v15  ;;  %vm1438_vm8 = vcmp.ge.f32.partialorder %v1310_v12, 0.0 }
 0x19a   :  { %v3610_v22 = vmul.f32 0.010009766, %v3354_v17  ;;  %v2970_v23 = vunpack.c.l.bf16 %v2837_v18  ;;  %vm9013_vm10 = vcmp.ge.f32.partialorder %v3354_v17, 0.0  ;;  %vm1822_vm11 = vmpackc.low %vm1438_vm8, %vm1438_vm8 }
 0x19b   :  { %v1694_v25 = vpack.c.bf16 %v1566_v19, %v1566_v19  ;;  %v1055_v26 = vadd.f32 %v8693_v42, %v926_v20  ;;  %v4408_v27 = vsel %vm4368_vm13, %v4253_v21, 0.0  ;;  %vm3866_vm12 = vmpackc.low %vm9013_vm10, %vm9013_vm10 }
 0x19c   :  { %v3738_v29 = vpack.c.bf16 %v3610_v22, %v3610_v22  ;;  %v3099_v30 = vadd.f32 %v8781_v16, %v2970_v23  ;;  %4409 = vadd.xlane.f32.xlu1 %v4408_v27 }
 0x19d   :  { %v1183_v31 = vpack.c.bf16 %v1055_v26, %v1055_v26  ;;  %v1950_v32 = vsel %vm1822_vm11, %v1182_v5, %v1694_v25 }
 0x19e   :  { %v3227_v33 = vpack.c.bf16 %v3099_v30, %v3099_v30  ;;  %v526_v34 = vpop.f32.mrf.mxu0  ;;  %v2222_v36 = vunpack.c.l.b16 %v1950_v32  ;;  %v3994_v37 = vsel %vm3866_vm12, %v3226_v8, %v3738_v29 }
 0x19f   :  { %v1311_v38 = vunpack.c.l.bf16 %v1183_v31  ;;  %v794_v39 = vpack.c.bf16 %v526_v34, %v526_v34  ;;  %v2542_v40 = vpop.f32.mrf.mxu1  ;;  %v4123_v41 = vunpack.c.l.bf16 %v3994_v37 }
 0x1a0   :  { %v3355_v43 = vunpack.c.l.bf16 %v3227_v33  ;;  %v2838_v44 = vpack.c.bf16 %v2542_v40, %v2542_v40  ;;  %v2333_v45 = vpack.c.b16 %v2222_v36, %v2221_v35 }
 0x1a1   :  { %v927_v46 = vunpack.c.l.bf16 %v794_v39  ;;  %v4254_v47 = vmul.f32 %v8804_v48, %v4123_v41  ;;  %v1567_v53 = vmul.f32 0.010009766, %v1311_v38  ;;  %vm9038_vm1 = vcmp.ge.f32.partialorder %v1311_v38, 0.0 }
 0x1a2   :  { %v3611_v49 = vmul.f32 0.010009766, %v3355_v43  ;;  %v2971_v50 = vunpack.c.l.bf16 %v2838_v44  ;;  %2581 = vmatmul.bf16.gmra.mxu1 %v2333_v45  ;;  %vm3483_vm14 = vcmp.ge.f32.partialorder %v3355_v43, 0.0  ;;  %vm1823_vm3 = vmpackc.low %vm9038_vm1, %vm9038_vm1  ;;  %vm7448_vm1 = vcmask 130112  }
 0x1a3   :  { %v1056_v54 = vadd.f32 %v8693_v42, %v927_v46  ;;  %v4411_v55 = vsel %vm4368_vm13, %v4254_v47, 0.0  ;;  %vm3867_vm15 = vmpackc.low %vm3483_vm14, %vm3483_vm14  ;;  %v1695_v1 = vpack.c.bf16 %v1567_v53, %v1567_v53  ;;  %v83_v47 = vld [vmem:[%s15465_s0 + $0x1b0] sm:$0xff] }
 0x1a4   :  { %v3100_v56 = vadd.f32 %v8781_v16, %v2971_v50  ;;  %4412 = vadd.xlane.f32.xlu2 %v4411_v55  ;;  %v3739_v57 = vpack.c.bf16 %v3611_v49, %v3611_v49  ;;  %v84_v49 = vld [vmem:[%s15465_s0 + $0x1b8] sm:$0xff] }
 0x1a5   :  { %v1184_v58 = vpack.c.bf16 %v1056_v54, %v1056_v54  ;;  %v1951_v22 = vsel %vm1823_vm3, %v1183_v31, %v1695_v1  ;;  %v184_v53 = vpack.c.bf16 %v84_v49, %v83_v47  ;;  %v7443_v54 = vlaneseq }
 0x1a6   :  { %v3228_v62 = vpack.c.bf16 %v3100_v56, %v3100_v56  ;;  %v529_v63 = vpop.f32.mrf.mxu0  ;;  %v3995_v0 = vsel %vm3867_vm15, %v3227_v33, %v3739_v57  ;;  %v2223_v28 = vunpack.c.l.b16 %v1951_v22 }
 0x1a7   :  { %v1312_v2 = vunpack.c.l.bf16 %v1184_v58  ;;  %v795_v3 = vpack.c.bf16 %v529_v63, %v529_v63  ;;  %v4371_v4 = vpop.xlane.xlu0 %4370  ;;  %v2544_v5 = vpop.f32.mrf.mxu1  ;;  %v4124_v6 = vunpack.c.l.bf16 %v3995_v0 }
 0x1a8   :  { %v3356_v7 = vunpack.c.l.bf16 %v3228_v62  ;;  %v4755_v8 = vadd.f32 %v9036_v59, %v4371_v4  ;;  %v2839_v9 = vpack.c.bf16 %v2544_v5, %v2544_v5  ;;  %v9086_v4 = vand.u32 127, %v7443_v54 }
 0x1a9   :  { %v1568_v10 = vmul.f32 0.010009766, %v1312_v2  ;;  %v928_v11 = vunpack.c.l.bf16 %v795_v3  ;;  %7789 = vmatmul.msk.bf16.gmra.mxu0 %vm237_vm0, %v183_v60  ;;  %v4255_v12 = vmul.f32 %v8804_v48, %v4124_v6  ;;  %vm9045_vm2 = vcmp.ge.f32.partialorder %v1312_v2, 0.0 }
 0x1aa   :  { %v3612_v14 = vmul.f32 0.010009766, %v3356_v7  ;;  %v7859_v15 = vmul.f32 -1.442695, %v4755_v8  ;;  %v2972_v17 = vunpack.c.l.bf16 %v2839_v9  ;;  %vm9052_vm4 = vcmp.ge.f32.partialorder %v3356_v7, 0.0  ;;  %vm1824_vm5 = vmpackc.low %vm9045_vm2, %vm9045_vm2  ;;  %15577 = vst [vmem:[#allocation6_spill] sm:$0xff] %v9086_v4 }
 0x1ab   :  { %v1696_v19 = vpack.c.bf16 %v1568_v10, %v1568_v10  ;;  %v1057_v20 = vadd.f32 %v8693_v42, %v928_v11  ;;  %v4414_v21 = vsel %vm4368_vm13, %v4255_v12, 0.0  ;;  %vm3868_vm6 = vmpackc.low %vm9052_vm4, %vm9052_vm4 }
 0x1ac   :  { %v3740_v23 = vpack.c.bf16 %v3612_v14, %v3612_v14  ;;  %8009 = vpow2.f32 %v7859_v15  ;;  %v3101_v24 = vadd.f32 %v8781_v16, %v2972_v17  ;;  %4415 = vadd.xlane.f32.xlu0 %v4414_v21 }
 0x1ad   :  { %v1952_v25 = vsel %vm1824_vm5, %v1184_v58, %v1696_v19  ;;  %v9065_v31 = vpack.c.bf16 %v1057_v20, %v1057_v20  ;;  %v9105_v19 = vadd.s32 4294967288, %v9086_v4  ;;  %v9109_v20 = vadd.s32 4294967280, %v9086_v4 }
 0x1ae   :  { %v3229_v26 = vpack.c.bf16 %v3101_v24, %v3101_v24  ;;  %v531_v27 = vpop.f32.mrf.mxu0  ;;  %v2224_v29 = vunpack.c.l.b16 %v1952_v25  ;;  %v3996_v30 = vsel %vm3868_vm6, %v3228_v62, %v3740_v23  ;;  %v9119_v25 = vld [vmem:[%s15470_s5] ss:$0 sm:$0xff] }
 0x1af   :  { %v796_v32 = vpack.c.bf16 %v531_v27, %v531_v27  ;;  %v4374_v33 = vpop.xlane.xlu0 %4373  ;;  %v2547_v34 = vpop.f32.mrf.mxu1  ;;  %v4125_v35 = vunpack.c.l.bf16 %v3996_v30  ;;  %v1313_v50 = vunpack.c.l.bf16 %v9065_v31  ;;  %15580 = vst [vmem:[#allocation7_spill] sm:$0xff] %v9105_v19 }
 0x1b0   :  { %v3357_v36 = vunpack.c.l.bf16 %v3229_v26  ;;  %v4756_v37 = vadd.f32 %v9036_v59, %v4374_v33  ;;  %v2840_v38 = vpack.c.bf16 %v2547_v34, %v2547_v34  ;;  %v2334_v39 = vpack.c.b16 %v2224_v29, %v2223_v28  ;;  %15581 = vst [vmem:[#allocation8_spill] sm:$0xff] %v9109_v20  ;;  %v86_v33 = vld [vmem:[%s15465_s0 + $0x1c8] sm:$0xff] }
 0x1b1   :  { %v929_v40 = vunpack.c.l.bf16 %v796_v32  ;;  %v4256_v41 = vmul.f32 %v8804_v48, %v4125_v35  ;;  %v1569_v58 = vmul.f32 0.010009766, %v1313_v50  ;;  %vm9092_vm9 = vcmp.ge.f32.partialorder %v1313_v50, 0.0  ;;  %v85_v32 = vld [vmem:[%s15465_s0 + $0x1c0] sm:$0xff] }
 0x1b2   :  { %v8010_v43 = vpop.eup %8009  ;;  %v3613_v44 = vmul.f32 0.010009766, %v3357_v36  ;;  %v7860_v45 = vmul.f32 -1.442695, %v4756_v37  ;;  %v2973_v46 = vunpack.c.l.bf16 %v2840_v38  ;;  %2586 = vmatmul.bf16.gmra.mxu1 %v2334_v39  ;;  %vm3485_vm7 = vcmp.ge.f32.partialorder %v3357_v36, 0.0  ;;  %vm1825_vm10 = vmpackc.low %vm9092_vm9, %vm9092_vm9 }
 0x1b3   :  { %v9076_v51 = vadd.f32 1.0, %v8010_v43  ;;  %v4417_v52 = vsel %vm4368_vm13, %v4256_v41, 0.0  ;;  %v1058_v48 = vadd.f32 %v8693_v42, %v929_v40  ;;  %vm3869_vm8 = vmpackc.low %vm3485_vm7, %vm3485_vm7  ;;  %v1697_v10 = vpack.c.bf16 %v1569_v58, %v1569_v58 }
 0x1b4   :  { %8011 = vpow2.f32 %v7860_v45  ;;  %4418 = vadd.xlane.f32.xlu1 %v4417_v52  ;;  %v3102_v55 = vadd.f32 %v8781_v16, %v2973_v46  ;;  %v3741_v57 = vpack.c.bf16 %v3613_v44, %v3613_v44  ;;  %v185_v46 = vpack.c.bf16 %v86_v33, %v85_v32 }
 0x1b5   :  { %8013 = vrcp.f32 %v9076_v51  ;;  %v9082_v63 = vpack.c.bf16 %v1058_v48, %v1058_v48  ;;  %v5406_v14 = vand.u32 2147483648, %v9076_v51  ;;  %v5404_v18 = vand.u32 2147483647, %v9076_v51 }
 0x1b6   :  { %v534_v56 = vpop.f32.mrf.mxu0  ;;  %v3997_v2 = vsel %vm3869_vm8, %v3229_v26, %v3741_v57  ;;  %v9088_v5 = vpack.c.bf16 %v3102_v55, %v3102_v55  ;;  %vm5400_vm11 = vweird.f32 %v9076_v51  ;;  %v1953_v30 = vsel %vm1825_vm10, %v9065_v31, %v1697_v10 }
 0x1b7   :  { %v797_v60 = vpack.c.bf16 %v534_v56, %v534_v56  ;;  %v4377_v61 = vpop.xlane.xlu1 %4376  ;;  %v2549_v62 = vpop.f32.mrf.mxu1  ;;  %v4126_v12 = vunpack.c.l.bf16 %v3997_v2  ;;  %v1314_v15 = vunpack.c.l.bf16 %v9082_v63  ;;  %v5407_v35 = vor.u32 1.1754944e-38, %v5406_v14 }
 0x1b8   :  { %v4757_v0 = vadd.f32 %v9036_v59, %v4377_v61  ;;  %v2841_v7 = vpack.c.bf16 %v2549_v62, %v2549_v62  ;;  %v3358_v22 = vunpack.c.l.bf16 %v9088_v5  ;;  %vm9134_vm12 = vcmp.eq.f32.partialorder %v5404_v18, 8.507059e+37 }
 0x1b9   :  { %v930_v1 = vunpack.c.l.bf16 %v797_v60  ;;  %7790 = vmatmul.msk.bf16.gmra.mxu0 %vm237_vm0, %v184_v53  ;;  %v4257_v26 = vmul.f32 %v9119_v25, %v4126_v12  ;;  %v1570_v36 = vmul.f32 0.010009766, %v1314_v15  ;;  %v2225_v45 = vunpack.c.l.b16 %v1953_v30 }
 0x1ba   :  { %v8012_v3 = vpop.eup %8011  ;;  %v7861_v6 = vmul.f32 -1.442695, %v4757_v0  ;;  %v2974_v23 = vunpack.c.l.bf16 %v2841_v7  ;;  %v3614_v43 = vmul.f32 0.010009766, %v3358_v22  ;;  %vm9143_vm15 = vcmp.ge.f32.partialorder %v1314_v15, 0.0 }
 0x1bb   :  { %v9090_v8 = vpop.eup %8013  ;;  %v9096_v11 = vadd.f32 1.0, %v8012_v3  ;;  %v1059_v17 = vadd.f32 %v8693_v42, %v930_v1  ;;  %v4420_v38 = vsel %vm4368_vm13, %v4257_v26, 0.0  ;;  %v1698_v53 = vpack.c.bf16 %v1570_v36, %v1570_v36  ;;  %vm1826_vm3 = vmpackc.low %vm9143_vm15, %vm9143_vm15 }
 0x1bc   :  { %v5396_v13 = vmul.f32 %v9090_v8, %v9076_v51  ;;  %v3103_v44 = vadd.f32 %v8781_v16, %v2974_v23  ;;  %4421 = vadd.xlane.f32.xlu2 %v4420_v38  ;;  %vm5401_vm14 = vweird.f32 %v9090_v8  ;;  %v9152_v61 = vadd.s32 4294967272, %v9086_v4 }
 0x1bd   :  { %8015 = vrcp.f32 %v9096_v11  ;;  %v9130_v37 = vpack.c.bf16 %v1059_v17, %v1059_v17  ;;  %v5421_v57 = vand.u32 2147483648, %v9096_v11  ;;  %vm9156_vm2 = vmor %vm5400_vm11, %vm5401_vm14  ;;  %v5419_v7 = vand.u32 2147483647, %v9096_v11 }
 0x1be   :  { %v5397_v21 = vsub.f32 1.0, %v5396_v13  ;;  %8017 = vpow2.f32 %v7861_v6  ;;  %v536_v24 = vpop.f32.mrf.mxu0  ;;  %v9160_v1 = vpack.c.bf16 %v3103_v44, %v3103_v44  ;;  %v3742_v9 = vpack.c.bf16 %v3614_v43, %v3614_v43 }
 0x1bf   :  { %v798_v27 = vpack.c.bf16 %v536_v24, %v536_v24  ;;  %v4380_v28 = vpop.xlane.xlu1 %4379  ;;  %v2552_v29 = vpop.f32.mrf.mxu1  ;;  %v1315_v58 = vunpack.c.l.bf16 %v9130_v37  ;;  %v1954_v12 = vsel %vm1826_vm3, %v9082_v63, %v1698_v53  ;;  %vm5415_vm5 = vweird.f32 %v9096_v11 }
 0x1c0   :  { %v5398_v34 = vmul.f32 %v9090_v8, %v5397_v21  ;;  %v4758_v40 = vadd.f32 %v9036_v59, %v4380_v28  ;;  %v2842_v31 = vpack.c.bf16 %v2552_v29, %v2552_v29  ;;  %vm3486_vm6 = vcmp.ge.f32.partialorder %v3358_v22, 0.0 }
 0x1c1   :  { %v931_v39 = vunpack.c.l.bf16 %v798_v27  ;;  %v5422_v17 = vor.u32 1.1754944e-38, %v5421_v57  ;;  %v9178_v18 = vmul.f32 0.010009766, %v1315_v58  ;;  %v3359_v21 = vunpack.c.l.bf16 %v9160_v1  ;;  %vm3870_vm7 = vmpackc.low %vm3486_vm6, %vm3486_vm6 }
 0x1c2   :  { %v5399_v49 = vadd.f32 %v9090_v8, %v5398_v34  ;;  %v7862_v50 = vmul.f32 -1.442695, %v4758_v40  ;;  %v2975_v52 = vunpack.c.l.bf16 %v2842_v31  ;;  %vm5420_vm9 = vcmp.eq.f32.partialorder %v5419_v7, 8.507059e+37 }
 0x1c3   :  { %v8016_v47 = vpop.eup %8015  ;;  %v1060_v55 = vadd.f32 %v8693_v42, %v931_v39  ;;  %v1699_v38 = vpack.c.bf16 %v9178_v18, %v9178_v18  ;;  %vm15512_vm10 = vcmask 195712   ;;  %v3615_v31 = vmul.f32 0.010009766, %v3359_v21 }
 0x1c4   :  { %v8018_v48 = vpop.eup %8017  ;;  %v5411_v54 = vmul.f32 %v8016_v47, %v9096_v11  ;;  %8019 = vpow2.f32 %v7862_v50  ;;  %v3104_v2 = vadd.f32 %v8781_v16, %v2975_v52  ;;  %v5403_v6 = vsel %vm9156_vm2, %v9090_v8, %v5399_v49 }
 0x1c5   :  { %v9149_v60 = vadd.f32 1.0, %v8018_v48  ;;  %vm5416_vm4 = vweird.f32 %v8016_v47  ;;  %v9171_v10 = vpack.c.bf16 %v1060_v55, %v1060_v55  ;;  %v2226_v8 = vunpack.c.l.b16 %v1954_v12 }
 0x1c6   :  { %v5412_v0 = vsub.f32 1.0, %v5411_v54  ;;  %v539_v3 = vpop.f32.mrf.mxu0  ;;  %v9175_v14 = vpack.c.bf16 %v3104_v2, %v3104_v2  ;;  %v5408_v23 = vsel %vm9134_vm12, %v5407_v35, %v5403_v6  ;;  %vm5417_vm8 = vmor %vm5415_vm5, %vm5416_vm4  ;;  %v3998_v11 = vsel %vm3870_vm7, %v9088_v5, %v3742_v9 }
 0x1c7   :  { %8021 = vrcp.f32 %v9149_v60  ;;  %v4383_v13 = vpop.xlane.xlu2 %4382  ;;  %v2335_v63 = vpack.c.b16 %v2226_v8, %v2225_v45  ;;  %v799_v24 = vpack.c.bf16 %v539_v3, %v539_v3  ;;  %v1316_v27 = vunpack.c.l.bf16 %v9171_v10  ;;  %v2554_v29 = vpop.f32.mrf.mxu1 }
 0x1c8   :  { %v5413_v51 = vmul.f32 %v8016_v47, %v5412_v0  ;;  %v4127_v28 = vunpack.c.l.bf16 %v3998_v11  ;;  %v3360_v34 = vunpack.c.l.bf16 %v9175_v14  ;;  %v4759_v35 = vadd.f32 %v9036_v59, %v4383_v13 }
 0x1c9   :  { %7791 = vmatmul.msk.bf16.gmra.mxu0 %vm237_vm0, %v185_v46  ;;  %2591 = vmatmul.bf16.gmra.mxu1 %v2335_v63  ;;  %v7445_v36 = vperm.slane %v5408_v23, %v9086_v4  ;;  %v5434_v40 = vand.u32 2147483647, %v9149_v60  ;;  %v932_v41 = vunpack.c.l.bf16 %v799_v24  ;;  %v5436_v45 = vand.u32 2147483648, %v9149_v60 }
 0x1ca   :  { %v5414_v15 = vadd.f32 %v8016_v47, %v5413_v51  ;;  %v8020_v26 = vpop.eup %8019  ;;  %v4258_v46 = vmul.f32 %v9119_v25, %v4127_v28  ;;  %vm9200_vm11 = vcmp.ge.f32.partialorder %v1315_v58, 0.0  ;;  %v9206_v50 = vmul.f32 0.010009766, %v1316_v27 }
 0x1cb   :  { %v9186_v33 = vadd.f32 1.0, %v8020_v26  ;;  %v9210_v52 = vmul.f32 0.010009766, %v3360_v34  ;;  %v7863_v48 = vmul.f32 -1.442695, %v4759_v35  ;;  %v2843_v53 = vpack.c.bf16 %v2554_v29, %v2554_v29  ;;  %vm1827_vm6 = vmpackc.low %vm9200_vm11, %vm9200_vm11 }
 0x1cc   :  { %v5418_v22 = vsel %vm5417_vm8, %v8016_v47, %v5414_v15  ;;  %v4423_v55 = vsel %vm4368_vm13, %v4258_v46, 0.0  ;;  %vm9213_vm14 = vcmp.ge.f32.partialorder %v3359_v21, 0.0  ;;  %v1061_v58 = vadd.f32 %v8693_v42, %v932_v41 }
 0x1cd   :  { %v8022_v30 = vpop.eup %8021  ;;  %v5423_v32 = vsel %vm5420_vm9, %v5422_v17, %v5418_v22  ;;  %8023 = vrcp.f32 %v9186_v33  ;;  %4424 = vadd.xlane.f32.xlu0 %v4423_v55  ;;  %v3743_v62 = vpack.c.bf16 %v3615_v31, %v3615_v31  ;;  %vm5430_vm15 = vweird.f32 %v9149_v60  ;;  %vm3871_vm3 = vmpackc.low %vm9213_vm14, %vm9213_vm14 }
 0x1ce   :  { %v7447_v5 = vperm.slane %v5423_v32, %v9105_v19  ;;  %v5426_v39 = vmul.f32 %v8022_v30, %v9149_v60  ;;  %v541_v47 = vpop.f32.mrf.mxu0  ;;  %vm5431_vm12 = vweird.f32 %v8022_v30  ;;  %8025 = vpow2.f32 %v7863_v48 }
 0x1cf   :  { %v4386_v57 = vpop.xlane.xlu2 %4385  ;;  %v800_v0 = vpack.c.bf16 %v541_v47, %v541_v47  ;;  %vm5435_vm2 = vcmp.eq.f32.partialorder %v5434_v40, 8.507059e+37  ;;  %v2976_v3 = vunpack.c.l.bf16 %v2843_v53  ;;  %vm5432_vm4 = vmor %vm5430_vm15, %vm5431_vm12  ;;  %v5437_v7 = vor.u32 1.1754944e-38, %v5436_v45  ;;  %v2557_v17 = vpop.f32.mrf.mxu1 }
 0x1d0   :  { %v7449_v43 = vsel %vm7448_vm1, %v7447_v5, %v7445_v36  ;;  %v5427_v44 = vsub.f32 1.0, %v5426_v39  ;;  %v3999_v9 = vsel %vm3871_vm3, %v9160_v1, %v3743_v62  ;;  %v4760_v12 = vadd.f32 %v9036_v59, %v4386_v57 }
 0x1d1   :  { %v933_v51 = vunpack.c.l.bf16 %v800_v0  ;;  %v1700_v8 = vpack.c.bf16 %v9206_v50, %v9206_v50  ;;  %v3744_v15 = vpack.c.bf16 %v9210_v52, %v9210_v52  ;;  %v5449_v23 = vand.u32 2147483647, %v9186_v33 }
 0x1d2   :  { %v5428_v54 = vmul.f32 %v8022_v30, %v5427_v44  ;;  %v9231_v63 = vpack.c.bf16 %v1061_v58, %v1061_v58  ;;  %v4128_v11 = vunpack.c.l.bf16 %v3999_v9  ;;  %v3105_v26 = vadd.f32 %v8781_v16, %v2976_v3 }
 0x1d3   :  { %v8024_v6 = vpop.eup %8023  ;;  %v7864_v22 = vmul.f32 -1.442695, %v4760_v12  ;;  %v5451_v29 = vand.u32 2147483648, %v9186_v33  ;;  %v1062_v32 = vadd.f32 %v8693_v42, %v933_v51  ;;  %v2844_v35 = vpack.c.bf16 %v2557_v17, %v2557_v17  ;;  %v87_v17 = vld [vmem:[%s15465_s0 + $0x1d0] sm:$0xff] }
 0x1d4   :  { %v5429_v2 = vadd.f32 %v8022_v30, %v5428_v54  ;;  %v5441_v60 = vmul.f32 %v8024_v6, %v9186_v33  ;;  %v8026_v28 = vpop.eup %8025  ;;  %vm5446_vm5 = vweird.f32 %v8024_v6  ;;  %v1317_v40 = vunpack.c.l.bf16 %v9231_v63 }
 0x1d5   :  { %v9239_v39 = vadd.f32 1.0, %v8026_v28  ;;  %8027 = vpow2.f32 %v7864_v22  ;;  %v2977_v41 = vunpack.c.l.bf16 %v2844_v35  ;;  %vm5445_vm7 = vweird.f32 %v9186_v33 }
 0x1d6   :  { %v5433_v13 = vsel %vm5432_vm4, %v8022_v30, %v5429_v2  ;;  %v5442_v24 = vsub.f32 1.0, %v5441_v60  ;;  %v4259_v30 = vmul.f32 %v9119_v25, %v4128_v11  ;;  %v544_v45 = vpop.f32.mrf.mxu0  ;;  %vm5447_vm8 = vmor %vm5445_vm7, %vm5446_vm5  ;;  %vm5450_vm9 = vcmp.eq.f32.partialorder %v5449_v23, 8.507059e+37 }
 0x1d7   :  { %v5438_v21 = vsel %vm5435_vm2, %v5437_v7, %v5433_v13  ;;  %8029 = vrcp.f32 %v9239_v39  ;;  %v5452_v46 = vor.u32 1.1754944e-38, %v5451_v29  ;;  %v9250_v47 = vpack.c.bf16 %v1062_v32, %v1062_v32  ;;  %v2559_v3 = vpop.f32.mrf.mxu1  ;;  %v4389_v7 = vpop.xlane.xlu0 %4388 }
 0x1d8   :  { %v7451_v1 = vperm.slane %v5438_v21, %v9109_v20  ;;  %v5443_v5 = vmul.f32 %v8024_v6, %v5442_v24  ;;  %v4426_v31 = vsel %vm4368_vm13, %v4259_v30, 0.0  ;;  %vm1444_vm12 = vcmp.ge.f32.partialorder %v1316_v27, 0.0  ;;  %v88_v21 = vld [vmem:[%s15465_s0 + $0x1d8] sm:$0xff] }
 0x1d9   :  { %4427 = vadd.xlane.f32.xlu1 %v4426_v31  ;;  %v3106_v52 = vadd.f32 %v8781_v16, %v2977_v41  ;;  %vm1828_vm14 = vmpackc.low %vm1444_vm12, %vm1444_vm12  ;;  %v1955_v33 = vsel %vm1827_vm6, %v9130_v37, %v1699_v38  ;;  %vm3488_vm15 = vcmp.ge.f32.partialorder %v3360_v34, 0.0  ;;  %vm15511_vm2 = vcmask 261312  }
 0x1da   :  { %v7453_v36 = vsel %vm15512_vm10, %v7451_v1, %v7449_v43  ;;  %v5444_v44 = vadd.f32 %v8024_v6, %v5443_v5  ;;  %v9248_v43 = vpack.c.bf16 %v3105_v26, %v3105_v26  ;;  %v9266_v27 = vmul.f32 0.010009766, %v1317_v40  ;;  %vm3872_vm3 = vmpackc.low %vm3488_vm15, %vm3488_vm15 }
 0x1db   :  { %v1956_v18 = vsel %vm1828_vm14, %v9171_v10, %v1700_v8  ;;  %v4000_v55 = vsel %vm3872_vm3, %v9175_v14, %v3744_v15  ;;  %v8028_v56 = vpop.eup %8027  ;;  %v1318_v49 = vunpack.c.l.bf16 %v9250_v47  ;;  %v2227_v37 = vunpack.c.l.b16 %v1955_v33 }
 0x1dc   :  { %v5448_v50 = vsel %vm5447_vm8, %v8024_v6, %v5444_v44  ;;  %v3361_v54 = vunpack.c.l.bf16 %v9248_v43  ;;  %v2228_v38 = vunpack.c.l.b16 %v1956_v18  ;;  %v4129_v57 = vunpack.c.l.bf16 %v4000_v55 }
 0x1dd   :  { %v5453_v48 = vsel %vm5450_vm9, %v5452_v46, %v5448_v50  ;;  %v8030_v34 = vpop.eup %8029  ;;  %v9276_v62 = vadd.f32 1.0, %v8028_v56  ;;  %v9278_v0 = vpack.c.bf16 %v3106_v52, %v3106_v52  ;;  %v801_v2 = vpack.c.bf16 %v544_v45, %v544_v45 }
 0x1de   :  { %v7455_v53 = vperm.slane %v5453_v48, %v9152_v61  ;;  %v9281_v10 = vadd.s32 4294967264, %v9086_v4  ;;  %v5456_v14 = vmul.f32 %v8030_v34, %v9239_v39  ;;  %v2336_v6 = vpack.c.b16 %v2228_v38, %v2227_v37  ;;  %v546_v22 = vpop.f32.mrf.mxu0 }
 0x1df   :  { %v1701_v9 = vpack.c.bf16 %v9266_v27, %v9266_v27  ;;  %vm15510_vm11 = vcmask 326912   ;;  %v3617_v51 = vmul.f32 0.010009766, %v3361_v54  ;;  %v9287_v12 = vadd.s32 4294967256, %v9086_v4  ;;  %v4392_v33 = vpop.xlane.xlu1 %4391  ;;  %v2562_v55 = vpop.f32.mrf.mxu1 }
 0x1e0   :  { %v9274_v58 = vsel %vm15511_vm2, %v7455_v53, %v7453_v36  ;;  %8031 = vrcp.f32 %v9276_v62  ;;  %v5457_v13 = vsub.f32 1.0, %v5456_v14  ;;  %v5464_v8 = vand.u32 2147483647, %v9239_v39  ;;  %2596 = vmatmul.bf16.gmra.mxu1 %v2336_v6 }
 0x1e1   :  { %v5466_v60 = vand.u32 2147483648, %v9239_v39  ;;  %v4260_v15 = vmul.f32 %v9119_v25, %v4129_v57  ;;  %vm9299_vm4 = vcmp.ge.f32.partialorder %v1317_v40, 0.0  ;;  %v9305_v11 = vmul.f32 0.010009766, %v1318_v49 }
 0x1e2   :  { %v3362_v1 = vunpack.c.l.bf16 %v9278_v0  ;;  %v934_v24 = vunpack.c.l.bf16 %v801_v2  ;;  %v4761_v26 = vadd.f32 %v9036_v59, %v4389_v7  ;;  %v5458_v28 = vmul.f32 %v8030_v34, %v5457_v13 }
 0x1e3   :  { %vm5461_vm5 = vweird.f32 %v8030_v34  ;;  %v4429_v29 = vsel %vm4368_vm13, %v4260_v15, 0.0  ;;  %v2845_v30 = vpack.c.bf16 %v2559_v3, %v2559_v3  ;;  %v186_v35 = vpack.c.bf16 %v88_v21, %v87_v17 }
 0x1e4   :  { %4430 = vadd.xlane.f32.xlu2 %v4429_v29  ;;  %v7865_v32 = vmul.f32 -1.442695, %v4761_v26  ;;  %vm3489_vm6 = vcmp.ge.f32.partialorder %v3361_v54, 0.0  ;;  %v3745_v36 = vpack.c.bf16 %v3617_v51, %v3617_v51  ;;  %v5459_v5 = vadd.f32 %v8030_v34, %v5458_v28 }
 0x1e5   :  { %vm5460_vm7 = vweird.f32 %v9239_v39  ;;  %v5467_v40 = vor.u32 1.1754944e-38, %v5466_v60  ;;  %vm3873_vm8 = vmpackc.low %vm3489_vm6, %vm3489_vm6  ;;  %v802_v31 = vpack.c.bf16 %v546_v22, %v546_v22  ;;  %v1063_v44 = vadd.f32 %v8693_v42, %v934_v24  ;;  %7792 = vmatmul.msk.bf16.gmra.mxu0 %vm237_vm0, %v186_v35 }
 0x1e6   :  { %v8032_v41 = vpop.eup %8031  ;;  %vm5462_vm9 = vmor %vm5460_vm7, %vm5461_vm5  ;;  %8033 = vpow2.f32 %v7865_v32  ;;  %v2978_v45 = vunpack.c.l.bf16 %v2845_v30  ;;  %v4001_v46 = vsel %vm3873_vm8, %v9248_v43, %v3745_v36  ;;  %vm5465_vm12 = vcmp.eq.f32.partialorder %v5464_v8, 8.507059e+37 }
 0x1e7   :  { %v5463_v50 = vsel %vm5462_vm9, %v8030_v34, %v5459_v5  ;;  %v1702_v52 = vpack.c.bf16 %v9305_v11, %v9305_v11  ;;  %v5471_v39 = vmul.f32 %v8032_v41, %v9276_v62  ;;  %v5479_v53 = vand.u32 2147483647, %v9276_v62  ;;  %vm1829_vm5 = vmpackc.low %vm9299_vm4, %vm9299_vm4  ;;  %v4395_v27 = vpop.xlane.xlu2 %4394 }
 0x1e8   :  { %v5468_v48 = vsel %vm5465_vm12, %v5467_v40, %v5463_v50  ;;  %v3618_v54 = vmul.f32 0.010009766, %v3362_v1  ;;  %v4130_v18 = vunpack.c.l.bf16 %v4001_v46  ;;  %v5481_v43 = vand.u32 2147483648, %v9276_v62 }
 0x1e9   :  { %v7459_v56 = vperm.slane %v5468_v48, %v9281_v10  ;;  %v5472_v37 = vsub.f32 1.0, %v5471_v39  ;;  %v935_v38 = vunpack.c.l.bf16 %v802_v31  ;;  %v9322_v57 = vpack.c.bf16 %v1063_v44, %v1063_v44 }
 0x1ea   :  { %v3107_v34 = vadd.f32 %v8781_v16, %v2978_v45  ;;  %v4261_v2 = vmul.f32 %v9119_v25, %v4130_v18  ;;  %v4762_v3 = vadd.f32 %v9036_v59, %v4392_v33  ;;  %vm5476_vm14 = vweird.f32 %v8032_v41 }
 0x1eb   :  { %v7461_v14 = vsel %vm15510_vm11, %v7459_v56, %v9274_v58  ;;  %v5473_v6 = vmul.f32 %v8032_v41, %v5472_v37  ;;  %v2846_v7 = vpack.c.bf16 %v2562_v55, %v2562_v55  ;;  %vm5475_vm15 = vweird.f32 %v9276_v62 }
 0x1ec   :  { %v8034_v51 = vpop.eup %8033  ;;  %vm9330_vm3 = vcmp.eq.f32.partialorder %v5479_v53, 8.507059e+37  ;;  %v4432_v8 = vsel %vm4368_vm13, %v4261_v2, 0.0  ;;  %v7866_v60 = vmul.f32 -1.442695, %v4762_v3  ;;  %v1064_v58 = vadd.f32 %v8693_v42, %v935_v38  ;;  %vm5477_vm7 = vmor %vm5475_vm15, %vm5476_vm14  ;;  %v90_v2 = vld [vmem:[%s15465_s0 + $0x1e8] sm:$0xff] }
 0x1ed   :  { %v5474_v15 = vadd.f32 %v8032_v41, %v5473_v6  ;;  %v9338_v17 = vadd.f32 1.0, %v8034_v51  ;;  %4433 = vadd.xlane.f32.xlu0 %v4432_v8  ;;  %vm9343_vm6 = vcmp.ge.f32.partialorder %v1318_v49, 0.0  ;;  %v5482_v21 = vor.u32 1.1754944e-38, %v5481_v43  ;;  %v9355_v49 = vpop.f32.mrf.mxu0 }
 0x1ee   :  { %v1319_v11 = vunpack.c.l.bf16 %v9322_v57  ;;  %v9348_v24 = vpack.c.bf16 %v3107_v34, %v3107_v34  ;;  %8035 = vpow2.f32 %v7866_v60  ;;  %v2979_v26 = vunpack.c.l.bf16 %v2846_v7  ;;  %vm1830_vm8 = vmpackc.low %vm9343_vm6, %vm9343_vm6  ;;  %v89_v34 = vld [vmem:[%s15465_s0 + $0x1e0] sm:$0xff] }
 0x1ef   :  { %v5478_v23 = vsel %vm5477_vm7, %v8032_v41, %v5474_v15  ;;  %8037 = vrcp.f32 %v9338_v17  ;;  %v1957_v22 = vsel %vm1829_vm5, %v9231_v63, %v1701_v9  ;;  %vm15509_vm4 = vcmask 392512   ;;  %v4398_v60 = vpop.xlane.xlu0 %4397 }
 0x1f0   :  { %v5483_v28 = vsel %vm9330_vm3, %v5482_v21, %v5478_v23  ;;  %v3746_v30 = vpack.c.bf16 %v3618_v54, %v3618_v54  ;;  %v9363_v32 = vpack.c.bf16 %v1064_v58, %v1064_v58  ;;  %v1958_v35 = vsel %vm1830_vm8, %v9250_v47, %v1702_v52  ;;  %v2564_v54 = vpop.f32.mrf.mxu1 }
 0x1f1   :  { %v7463_v29 = vperm.slane %v5483_v28, %v9287_v12  ;;  %v9366_v36 = vmul.f32 0.010009766, %v1319_v11  ;;  %v2229_v63 = vunpack.c.l.b16 %v1957_v22  ;;  %v2230_v9 = vunpack.c.l.b16 %v1958_v35 }
 0x1f2   :  { %v3363_v40 = vunpack.c.l.bf16 %v9348_v24  ;;  %v3108_v31 = vadd.f32 %v8781_v16, %v2979_v26  ;;  %vm3490_vm9 = vcmp.ge.f32.partialorder %v3362_v1, 0.0  ;;  %v4763_v47 = vadd.f32 %v9036_v59, %v4395_v27 }
 0x1f3   :  { %v9369_v5 = vsel %vm15509_vm4, %v7463_v29, %v7461_v14  ;;  %v2337_v44 = vpack.c.b16 %v2230_v9, %v2229_v63  ;;  %vm3874_vm12 = vmpackc.low %vm3490_vm9, %vm3490_vm9  ;;  %v9377_v46 = vadd.s32 4294967248, %v9086_v4  ;;  %v1320_v50 = vunpack.c.l.bf16 %v9363_v32 }
 0x1f4   :  { %v8036_v41 = vpop.eup %8035  ;;  %v4002_v39 = vsel %vm3874_vm12, %v9278_v0, %v3746_v30  ;;  %v1703_v33 = vpack.c.bf16 %v9366_v36, %v9366_v36  ;;  %v7867_v53 = vmul.f32 -1.442695, %v4763_v47  ;;  %vm15479_vm14 = vcmask 458112  }
 0x1f5   :  { %v8038_v45 = vpop.eup %8037  ;;  %v9380_v52 = vadd.f32 1.0, %v8036_v41  ;;  %2601 = vmatmul.bf16.gmra.mxu1 %v2337_v44  ;;  %v4131_v48 = vunpack.c.l.bf16 %v4002_v39  ;;  %vm5490_vm15 = vweird.f32 %v9338_v17  ;;  %v3619_v18 = vmul.f32 0.010009766, %v3363_v40  ;;  %v551_v7 = vpop.f32.mrf.mxu0 }
 0x1f6   :  { %v5486_v1 = vmul.f32 %v8038_v45, %v9338_v17  ;;  %v9388_v55 = vpack.c.bf16 %v3108_v31, %v3108_v31  ;;  %vm9390_vm3 = vcmp.ge.f32.partialorder %v1319_v11, 0.0  ;;  %v5494_v37 = vand.u32 2147483647, %v9338_v17 }
 0x1f7   :  { %8039 = vrcp.f32 %v9380_v52  ;;  %v5496_v43 = vand.u32 2147483648, %v9338_v17  ;;  %v4262_v38 = vmul.f32 %v9119_v25, %v4131_v48  ;;  %vm9403_vm5 = vcmp.ge.f32.partialorder %v1320_v50, 0.0 }
 0x1f8   :  { %v5487_v0 = vsub.f32 1.0, %v5486_v1  ;;  %v803_v14 = vpack.c.bf16 %v9355_v49, %v9355_v49  ;;  %8041 = vpow2.f32 %v7867_v53  ;;  %v2847_v6 = vpack.c.bf16 %v2564_v54, %v2564_v54 }
 0x1f9   :  { %vm5491_vm6 = vweird.f32 %v8038_v45  ;;  %v1576_v13 = vmul.f32 0.010009766, %v1320_v50  ;;  %v4435_v8 = vsel %vm4368_vm13, %v4262_v38, 0.0  ;;  %v3364_v15 = vunpack.c.l.bf16 %v9388_v55 }
 0x1fa   :  { %v5488_v51 = vmul.f32 %v8038_v45, %v5487_v0  ;;  %4436 = vadd.xlane.f32.xlu1 %v4435_v8  ;;  %v187_v58 = vpack.c.bf16 %v90_v2, %v89_v34  ;;  %vm3491_vm7 = vcmp.ge.f32.partialorder %v3363_v40, 0.0  ;;  %v3747_v62 = vpack.c.bf16 %v3619_v18, %v3619_v18  ;;  %vm5492_vm12 = vmor %vm5490_vm15, %vm5491_vm6 }
 0x1fb   :  { %vm9411_vm8 = vcmp.eq.f32.partialorder %v5494_v37, 8.507059e+37  ;;  %v5497_v23 = vor.u32 1.1754944e-38, %v5496_v43  ;;  %vm3875_vm9 = vmpackc.low %vm3491_vm7, %vm3491_vm7  ;;  %v804_v26 = vpack.c.bf16 %v551_v7, %v551_v7  ;;  %v936_v49 = vunpack.c.l.bf16 %v803_v14 }
 0x1fc   :  { %v5489_v21 = vadd.f32 %v8038_v45, %v5488_v51  ;;  %v2980_v28 = vunpack.c.l.bf16 %v2847_v6  ;;  %7793 = vmatmul.msk.bf16.gmra.mxu0 %vm237_vm0, %v187_v58  ;;  %v4003_v29 = vsel %vm3875_vm9, %v9348_v24, %v3747_v62  ;;  %v4764_v30 = vadd.f32 %v9036_v59, %v4398_v60  ;;  %vm1831_vm6 = vmpackc.low %vm9390_vm3, %vm9390_vm3 }
 0x1fd   :  { %v8040_v22 = vpop.eup %8039  ;;  %v1704_v27 = vpack.c.bf16 %v1576_v13, %v1576_v13  ;;  %v5509_v9 = vand.u32 2147483647, %v9380_v52  ;;  %v5511_v17 = vand.u32 2147483648, %v9380_v52  ;;  %v3620_v41 = vmul.f32 0.010009766, %v3364_v15  ;;  %vm1832_vm9 = vmpackc.low %vm9403_vm5, %vm9403_vm5  ;;  %v554_v51 = vpop.f32.mrf.mxu0 }
 0x1fe   :  { %v5493_v35 = vsel %vm5492_vm12, %v8038_v45, %v5489_v21  ;;  %v5501_v63 = vmul.f32 %v8040_v22, %v9380_v52  ;;  %v8042_v40 = vpop.eup %8041  ;;  %v4132_v44 = vunpack.c.l.bf16 %v4003_v29  ;;  %v937_v39 = vunpack.c.l.bf16 %v804_v26  ;;  %v2567_v45 = vpop.f32.mrf.mxu1 }
 0x1ff   :  { %v5498_v31 = vsel %vm9411_vm8, %v5497_v23, %v5493_v35  ;;  %v9427_v24 = vadd.f32 1.0, %v8042_v40  ;;  %v1065_v1 = vadd.f32 %v8693_v42, %v936_v49  ;;  %v3109_v48 = vadd.f32 %v8781_v16, %v2980_v28  ;;  %v4401_v23 = vpop.xlane.xlu1 %4400 }
 0x200   :  { %v7467_v47 = vperm.slane %v5498_v31, %v9377_v46  ;;  %v5502_v50 = vsub.f32 1.0, %v5501_v63  ;;  %v4263_v53 = vmul.f32 %v9119_v25, %v4132_v44  ;;  %v7868_v54 = vmul.f32 -1.442695, %v4764_v30 }
 0x201   :  { %vm5506_vm15 = vweird.f32 %v8040_v22  ;;  %8043 = vrcp.f32 %v9427_v24  ;;  %v9439_v37 = vadd.s32 4294967240, %v9086_v4  ;;  %vm15477_vm7 = vcmask 523712  }
 0x202   :  { %v7469_v18 = vsel %vm15479_vm14, %v7467_v47, %v9369_v5  ;;  %v5503_v0 = vmul.f32 %v8040_v22, %v5502_v50  ;;  %vm5505_vm8 = vweird.f32 %v9380_v52  ;;  %v4438_v43 = vsel %vm4368_vm13, %v4263_v53, 0.0 }
 0x203   :  { %v5512_v38 = vor.u32 1.1754944e-38, %v5511_v17  ;;  %4439 = vadd.xlane.f32.xlu2 %v4438_v43  ;;  %v1066_v34 = vadd.f32 %v8693_v42, %v937_v39  ;;  %8045 = vpow2.f32 %v7868_v54  ;;  %vm5507_vm12 = vmor %vm5505_vm8, %vm5506_vm15  ;;  %v3748_v56 = vpack.c.bf16 %v3620_v41, %v3620_v41  ;;  %v91_v39 = vld [vmem:[%s15465_s0 + $0x1f0] sm:$0xff] }
 0x204   :  { %v5504_v5 = vadd.f32 %v8040_v22, %v5503_v0  ;;  %v2848_v2 = vpack.c.bf16 %v2567_v45, %v2567_v45  ;;  %v1959_v52 = vsel %vm1831_vm6, %v9322_v57, %v1703_v33  ;;  %v1960_v14 = vsel %vm1832_vm9, %v9363_v32, %v1704_v27  ;;  %v92_v45 = vld [vmem:[%s15465_s0 + $0x1f8] sm:$0xff] }
 0x205   :  { %vm5510_vm3 = vcmp.eq.f32.partialorder %v5509_v9, 8.507059e+37  ;;  %v9452_v3 = vpack.c.bf16 %v1065_v1, %v1065_v1  ;;  %v9454_v7 = vpack.c.bf16 %v3109_v48, %v3109_v48  ;;  %v2231_v8 = vunpack.c.l.b16 %v1959_v52  ;;  %v556_v43 = vpop.f32.mrf.mxu0 }
 0x206   :  { %v5508_v6 = vsel %vm5507_vm12, %v8040_v22, %v5504_v5  ;;  %v2232_v60 = vunpack.c.l.b16 %v1960_v14  ;;  %vm3492_vm5 = vcmp.ge.f32.partialorder %v3364_v15, 0.0  ;;  %v9458_v36 = vadd.s32 4294967232, %v9086_v4  ;;  %v2569_v28 = vpop.f32.mrf.mxu1 }
 0x207   :  { %v5513_v13 = vsel %vm5510_vm3, %v5512_v38, %v5508_v6  ;;  %v8044_v58 = vpop.eup %8043  ;;  %v9460_v57 = vpack.c.bf16 %v1066_v34, %v1066_v34  ;;  %vm3876_vm15 = vmpackc.low %vm3492_vm5, %vm3492_vm5  ;;  %v2981_v33 = vunpack.c.l.bf16 %v2848_v2  ;;  %v1321_v15 = vunpack.c.l.bf16 %v9452_v3 }
 0x208   :  { %v7471_v62 = vperm.slane %v5513_v13, %v9439_v37  ;;  %v5516_v32 = vmul.f32 %v8044_v58, %v9427_v24  ;;  %v2338_v21 = vpack.c.b16 %v2232_v60, %v2231_v8  ;;  %v4004_v11 = vsel %vm3876_vm15, %v9388_v55, %v3748_v56 }
 0x209   :  { %v8046_v26 = vpop.eup %8045  ;;  %vm15473_vm6 = vcmask 589312   ;;  %v3365_v49 = vunpack.c.l.bf16 %v9454_v7  ;;  %v9468_v30 = vadd.s32 4294967224, %v9086_v4  ;;  %v4133_v27 = vunpack.c.l.bf16 %v4004_v11 }
 0x20a   :  { %v7473_v22 = vsel %vm15477_vm7, %v7471_v62, %v7469_v18  ;;  %v5517_v29 = vsub.f32 1.0, %v5516_v32  ;;  %v9470_v35 = vadd.f32 1.0, %v8046_v26  ;;  %2606 = vmatmul.bf16.gmra.mxu1 %v2338_v21  ;;  %v5524_v55 = vand.u32 2147483647, %v9427_v24 }
 0x20b   :  { %15604 = vst [vmem:[#allocation9_spill] sm:$0xff] %v9468_v30  ;;  %v5526_v63 = vand.u32 2147483648, %v9427_v24  ;;  %v1322_v9 = vunpack.c.l.bf16 %v9460_v57  ;;  %v4765_v40 = vadd.f32 %v9036_v59, %v4401_v23  ;;  %vm5521_vm8 = vweird.f32 %v8044_v58 }
 0x20c   :  { %v5518_v31 = vmul.f32 %v8044_v58, %v5517_v29  ;;  %8047 = vrcp.f32 %v9470_v35  ;;  %v3110_v17 = vadd.f32 %v8781_v16, %v2981_v33  ;;  %v9478_v41 = vmul.f32 0.010009766, %v1321_v15  ;;  %v4404_v33 = vpop.xlane.xlu2 %4403 }
 0x20d   :  { %v3621_v44 = vmul.f32 0.010009766, %v3365_v49  ;;  %v4264_v47 = vmul.f32 %v9119_v25, %v4133_v27  ;;  %v805_v50 = vpack.c.bf16 %v554_v51, %v554_v51  ;;  %vm5520_vm9 = vweird.f32 %v9427_v24 }
 0x20e   :  { %v5519_v1 = vadd.f32 %v8044_v58, %v5518_v31  ;;  %v7869_v48 = vmul.f32 -1.442695, %v4765_v40  ;;  %v2849_v53 = vpack.c.bf16 %v2569_v28, %v2569_v28  ;;  %vm5522_vm12 = vmor %vm5520_vm9, %vm5521_vm8  ;;  %vm5525_vm3 = vcmp.eq.f32.partialorder %v5524_v55, 8.507059e+37  ;;  %v2572_v21 = vpop.f32.mrf.mxu1 }
 0x20f   :  { %v5527_v54 = vor.u32 1.1754944e-38, %v5526_v63  ;;  %v9488_v18 = vmul.f32 0.010009766, %v1322_v9  ;;  %v4441_v0 = vsel %vm4368_vm13, %v4264_v47, 0.0  ;;  %v9491_v38 = vpack.c.bf16 %v3110_v17, %v3110_v17 }
 0x210   :  { %v5523_v5 = vsel %vm5522_vm12, %v8044_v58, %v5519_v1  ;;  %4442 = vadd.xlane.f32.xlu0 %v4441_v0  ;;  %8049 = vpow2.f32 %v7869_v48  ;;  %v188_v34 = vpack.c.bf16 %v92_v45, %v91_v39  ;;  %v938_v2 = vunpack.c.l.bf16 %v805_v50  ;;  %v96_v0 = vld [vmem:[%s15465_s0 + $0x218] sm:$0xff]  ;;  %v4407_v58 = vpop.xlane.xlu0 %4406 }
 0x211   :  { %v5528_v56 = vsel %vm5525_vm3, %v5527_v54, %v5523_v5  ;;  %vm9493_vm5 = vcmp.ge.f32.partialorder %v3365_v49, 0.0  ;;  %v3749_v52 = vpack.c.bf16 %v3621_v44, %v3621_v44  ;;  %vm9497_vm15 = vcmp.ge.f32.partialorder %v1321_v15, 0.0 }
 0x212   :  { %v8048_v14 = vpop.eup %8047  ;;  %v7475_v51 = vperm.slane %v5528_v56, %v9458_v36  ;;  %v2982_v13 = vunpack.c.l.bf16 %v2849_v53  ;;  %7794 = vmatmul.msk.bf16.gmra.mxu0 %vm237_vm0, %v188_v34  ;;  %v806_v8 = vpack.c.bf16 %v556_v43, %v556_v43  ;;  %v1705_v60 = vpack.c.bf16 %v9478_v41, %v9478_v41  ;;  %vm3877_vm9 = vmpackc.low %vm9493_vm5, %vm9493_vm5  ;;  %v559_v43 = vpop.f32.mrf.mxu0 }
 0x213   :  { %vm9505_vm8 = vcmp.ge.f32.partialorder %v1322_v9, 0.0  ;;  %v1706_v62 = vpack.c.bf16 %v9488_v18, %v9488_v18  ;;  %v5531_v32 = vmul.f32 %v8048_v14, %v9470_v35  ;;  %v5541_v23 = vand.u32 2147483648, %v9470_v35  ;;  %vm1833_vm3 = vmpackc.low %vm9497_vm15, %vm9497_vm15  ;;  %v95_v18 = vld [vmem:[%s15465_s0 + $0x210] sm:$0xff] }
 0x214   :  { %v7477_v11 = vsel %vm15473_vm6, %v7475_v51, %v7473_v22  ;;  %v3366_v26 = vunpack.c.l.bf16 %v9491_v38  ;;  %v4005_v15 = vsel %vm3877_vm9, %v9454_v7, %v3749_v52  ;;  %v1067_v28 = vadd.f32 %v8693_v42, %v938_v2  ;;  %vm1834_vm9 = vmpackc.low %vm9505_vm8, %vm9505_vm8 }
 0x215   :  { %v5532_v49 = vsub.f32 1.0, %v5531_v32  ;;  %v4134_v29 = vunpack.c.l.bf16 %v4005_v15  ;;  %v939_v27 = vunpack.c.l.bf16 %v806_v8  ;;  %v5539_v63 = vand.u32 2147483647, %v9470_v35 }
 0x216   :  { %v8050_v55 = vpop.eup %8049  ;;  %v3111_v9 = vadd.f32 %v8781_v16, %v2982_v13  ;;  %v4766_v40 = vadd.f32 %v9036_v59, %v4404_v33  ;;  %v2850_v31 = vpack.c.bf16 %v2572_v21, %v2572_v21  ;;  %vm5536_vm12 = vweird.f32 %v8048_v14  ;;  %v2574_v6 = vpop.f32.mrf.mxu1 }
 0x217   :  { %v5533_v22 = vmul.f32 %v8048_v14, %v5532_v49  ;;  %v9523_v17 = vadd.f32 1.0, %v8050_v55  ;;  %v4265_v41 = vmul.f32 %v9119_v25, %v4134_v29  ;;  %vm5535_vm5 = vweird.f32 %v9470_v35 }
 0x218   :  { %v5542_v7 = vor.u32 1.1754944e-38, %v5541_v23  ;;  %v3622_v44 = vmul.f32 0.010009766, %v3366_v26  ;;  %v7870_v47 = vmul.f32 -1.442695, %v4766_v40  ;;  %v9533_v39 = vpack.c.bf16 %v1067_v28, %v1067_v28  ;;  %vm5537_vm6 = vmor %vm5535_vm5, %vm5536_vm12  ;;  %v94_v40 = vld [vmem:[%s15465_s0 + $0x208] sm:$0xff] }
 0x219   :  { %v5534_v50 = vadd.f32 %v8048_v14, %v5533_v22  ;;  %8051 = vrcp.f32 %v9523_v17  ;;  %v1068_v25 = vadd.f32 %v8693_v42, %v939_v27  ;;  %v4444_v45 = vsel %vm4368_vm13, %v4265_v41, 0.0  ;;  %v9583_v22 = vld [vmem:[%s15470_s5] ss:$0 sm:$0xff] }
 0x21a   :  { %8053 = vpow2.f32 %v7870_v47  ;;  %v2983_v1 = vunpack.c.l.bf16 %v2850_v31  ;;  %v1961_v35 = vsel %vm1833_vm3, %v9452_v3, %v1705_v60  ;;  %vm5540_vm15 = vcmp.eq.f32.partialorder %v5539_v63, 8.507059e+37  ;;  %4445 = vadd.xlane.f32.xlu1 %v4444_v45 }
 0x21b   :  { %v5538_v48 = vsel %vm5537_vm6, %v8048_v14, %v5534_v50  ;;  %v9539_v53 = vpack.c.bf16 %v3111_v9, %v3111_v9  ;;  %v1962_v54 = vsel %vm1834_vm9, %v9460_v57, %v1706_v62  ;;  %vm15474_vm8 = vcmask 654912   ;;  %v93_v9 = vld [vmem:[%s15465_s0 + $0x200] sm:$0xff] }
 0x21c   :  { %v5543_v5 = vsel %vm5540_vm15, %v5542_v7, %v5538_v48  ;;  %v3750_v34 = vpack.c.bf16 %v3622_v44, %v3622_v44  ;;  %v9549_v56 = vpack.c.bf16 %v1068_v25, %v1068_v25  ;;  %v2233_v2 = vunpack.c.l.b16 %v1961_v35  ;;  %v561_v25 = vpop.f32.mrf.mxu0 }
 0x21d   :  { %v7479_v3 = vperm.slane %v5543_v5, %v9468_v30  ;;  %v2234_v24 = vunpack.c.l.b16 %v1962_v54  ;;  %v1323_v57 = vunpack.c.l.bf16 %v9533_v39  ;;  %v3112_v52 = vadd.f32 %v8781_v16, %v2983_v1 }
 0x21e   :  { %vm3494_vm6 = vcmp.ge.f32.partialorder %v3366_v26, 0.0  ;;  %v190_v14 = vpack.c.bf16 %v96_v0, %v95_v18  ;;  %v3367_v8 = vunpack.c.l.bf16 %v9539_v53  ;;  %v9558_v32 = vadd.s32 4294967216, %v9086_v4 }
 0x21f   :  { %v8052_v51 = vpop.eup %8051  ;;  %v9554_v13 = vsel %vm15474_vm8, %v7479_v3, %v7477_v11  ;;  %v2339_v60 = vpack.c.b16 %v2234_v24, %v2233_v2  ;;  %vm3878_vm12 = vmpackc.low %vm3494_vm6, %vm3494_vm6  ;;  %vm15475_vm3 = vcmask 720512   ;;  %v5556_v23 = vand.u32 2147483648, %v9523_v17 }
 0x220   :  { %v8054_v62 = vpop.eup %8053  ;;  %15611 = vst [vmem:[#allocation10_spill] sm:$0xff] %v9558_v32  ;;  %v5546_v33 = vmul.f32 %v8052_v51, %v9523_v17  ;;  %v4006_v21 = vsel %vm3878_vm12, %v9491_v38, %v3750_v34  ;;  %7796 = vmatmul.msk.bf16.vlgmr.msra.gmra.mxu3 %vm237_vm0, %v190_v14  ;;  %v1324_v11 = vunpack.c.l.bf16 %v9549_v56  ;;  %v9567_v49 = vmul.f32 0.010009766, %v1323_v57  ;;  %v2577_v34 = vpop.f32.mrf.mxu1 }
 0x221   :  { %v9565_v26 = vadd.f32 1.0, %v8054_v62  ;;  %2611 = vmatmul.bf16.gmra.mxu1 %v2339_v60  ;;  %v4135_v15 = vunpack.c.l.bf16 %v4006_v21  ;;  %v9569_v29 = vpack.c.bf16 %v3112_v52, %v3112_v52  ;;  %v4767_v27 = vadd.f32 %v9036_v59, %v4407_v58 }
 0x222   :  { %v5547_v28 = vsub.f32 1.0, %v5546_v33  ;;  %v5554_v38 = vand.u32 2147483647, %v9523_v17  ;;  %v3623_v55 = vmul.f32 0.010009766, %v3367_v8  ;;  %v807_v63 = vpack.c.bf16 %v559_v43, %v559_v43 }
 0x223   :  { %8055 = vrcp.f32 %v9565_v26  ;;  %vm5551_vm5 = vweird.f32 %v8052_v51  ;;  %v4266_v41 = vmul.f32 %v9583_v22, %v4135_v15  ;;  %v2851_v7 = vpack.c.bf16 %v2574_v6, %v2574_v6 }
 0x224   :  { %v5548_v31 = vmul.f32 %v8052_v51, %v5547_v28  ;;  %vm5550_vm9 = vweird.f32 %v9523_v17  ;;  %v5557_v44 = vor.u32 1.1754944e-38, %v5556_v23  ;;  %v1580_v47 = vmul.f32 0.010009766, %v1324_v11 }
 0x225   :  { %v7871_v50 = vmul.f32 -1.442695, %v4767_v27  ;;  %v3368_v1 = vunpack.c.l.bf16 %v9569_v29  ;;  %v4447_v35 = vsel %vm4368_vm13, %v4266_v41, 0.0  ;;  %v189_v48 = vpack.c.bf16 %v94_v40, %v93_v9  ;;  %vm9589_vm15 = vmor %vm5550_vm9, %vm5551_vm5  ;;  %v97_v41 = vld [vmem:[%s15465_s0 + $0x220] sm:$0xff] }
 0x226   :  { %v5549_v45 = vadd.f32 %v8052_v51, %v5548_v31  ;;  %4448 = vadd.xlane.f32.xlu2 %v4447_v35  ;;  %v940_v18 = vunpack.c.l.bf16 %v807_v63  ;;  %vm3495_vm6 = vcmp.ge.f32.partialorder %v3367_v8, 0.0  ;;  %v3751_v0 = vpack.c.bf16 %v3623_v55, %v3623_v55 }
 0x227   :  { %8057 = vpow2.f32 %v7871_v50  ;;  %vm5555_vm12 = vcmp.eq.f32.partialorder %v5554_v38, 8.507059e+37  ;;  %v9596_v43 = vadd.s32 4294967208, %v9086_v4  ;;  %v2984_v5 = vunpack.c.l.bf16 %v2851_v7  ;;  %7795 = vmatmul.msk.bf16.gmra.mxu0 %vm237_vm0, %v189_v48  ;;  %vm3879_vm8 = vmpackc.low %vm3495_vm6, %vm3495_vm6  ;;  %v98_v7 = vld [vmem:[%s15465_s0 + $0x228] sm:$0xff] }
 0x228   :  { %v5553_v17 = vsel %vm9589_vm15, %v8052_v51, %v5549_v45  ;;  %vm9599_vm5 = vcmp.ge.f32.partialorder %v1323_v57, 0.0  ;;  %v4007_v52 = vsel %vm3879_vm8, %v9539_v53, %v3751_v0  ;;  %v808_v14 = vpack.c.bf16 %v561_v25, %v561_v25  ;;  %v2579_v54 = vpop.f32.mrf.mxu1 }
 0x229   :  { %15614 = vst [vmem:[#allocation11_spill] sm:$0xff] %v9596_v43  ;;  %v8056_v3 = vpop.eup %8055  ;;  %v5558_v24 = vsel %vm5555_vm12, %v5557_v44, %v5553_v17  ;;  %vm9605_vm9 = vcmp.ge.f32.partialorder %v1324_v11, 0.0  ;;  %v1708_v8 = vpack.c.bf16 %v1580_v47, %v1580_v47  ;;  %v1707_v58 = vpack.c.bf16 %v9567_v49, %v9567_v49  ;;  %vm1835_vm15 = vmpackc.low %vm9599_vm5, %vm9599_vm5  ;;  %v9639_v44 = vpop.f32.mrf.mxu0 }
 0x22a   :  { %v7483_v6 = vperm.slane %v5558_v24, %v9558_v32  ;;  %v5561_v60 = vmul.f32 %v8056_v3, %v9565_v26  ;;  %v3624_v57 = vmul.f32 0.010009766, %v3368_v1  ;;  %v1069_v62 = vadd.f32 %v8693_v42, %v940_v18  ;;  %vm1836_vm8 = vmpackc.low %vm9605_vm9, %vm9605_vm9 }
 0x22b   :  { %v4136_v33 = vunpack.c.l.bf16 %v4007_v52  ;;  %v5569_v23 = vand.u32 2147483647, %v9565_v26  ;;  %v3113_v11 = vadd.f32 %v8781_v16, %v2984_v5  ;;  %v5571_v49 = vand.u32 2147483648, %v9565_v26 }
 0x22c   :  { %v7485_v53 = vsel %vm15475_vm3, %v7483_v6, %v9554_v13  ;;  %v5562_v21 = vsub.f32 1.0, %v5561_v60  ;;  %v941_v27 = vunpack.c.l.bf16 %v808_v14  ;;  %v2852_v38 = vpack.c.bf16 %v2577_v34, %v2577_v34 }
 0x22d   :  { %v8058_v15 = vpop.eup %8057  ;;  %v4267_v28 = vmul.f32 %v9583_v22, %v4136_v33  ;;  %vm5566_vm6 = vweird.f32 %v8056_v3  ;;  %v1964_v63 = vsel %vm1836_vm8, %v9549_v56, %v1708_v8  ;;  %vm5565_vm12 = vweird.f32 %v9565_v26 }
 0x22e   :  { %v5563_v13 = vmul.f32 %v8056_v3, %v5562_v21  ;;  %v9627_v55 = vadd.f32 1.0, %v8058_v15  ;;  %v3752_v9 = vpack.c.bf16 %v3624_v57, %v3624_v57  ;;  %v1963_v31 = vsel %vm1835_vm15, %v9533_v39, %v1707_v58  ;;  %vm5567_vm9 = vmor %vm5565_vm12, %vm5566_vm6 }
 0x22f   :  { %v4450_v40 = vsel %vm4368_vm13, %v4267_v28, 0.0  ;;  %vm5570_vm5 = vcmp.eq.f32.partialorder %v5569_v23, 8.507059e+37  ;;  %v3241_v56 = vpack.c.bf16 %v3113_v11, %v3113_v11  ;;  %v5572_v26 = vor.u32 1.1754944e-38, %v5571_v49 }
 0x230   :  { %v5564_v47 = vadd.f32 %v8056_v3, %v5563_v13  ;;  %8059 = vrcp.f32 %v9627_v55  ;;  %4451 = vadd.xlane.f32.xlu0 %v4450_v40  ;;  %v1070_v39 = vadd.f32 %v8693_v42, %v941_v27  ;;  %v2985_v50 = vunpack.c.l.bf16 %v2852_v38  ;;  %v2582_v27 = vpop.f32.mrf.mxu1 }
 0x231   :  { %v2236_v25 = vunpack.c.l.b16 %v1964_v63  ;;  %v2235_v35 = vunpack.c.l.b16 %v1963_v31  ;;  %vm3496_vm8 = vcmp.ge.f32.partialorder %v3368_v1, 0.0  ;;  %v191_v48 = vpack.c.bf16 %v98_v7, %v97_v41 }
 0x232   :  { %v5568_v45 = vsel %vm5567_vm9, %v8056_v3, %v5564_v47  ;;  %vm15476_vm15 = vcmask 786112   ;;  %vm3880_vm3 = vmpackc.low %vm3496_vm8, %vm3496_vm8  ;;  %v3369_v17 = vunpack.c.l.bf16 %v3241_v56  ;;  %v9649_v2 = vpack.c.bf16 %v1069_v62, %v1069_v62  ;;  %v566_v62 = vpop.f32.mrf.mxu0 }
 0x233   :  { %v5573_v18 = vsel %vm5570_vm5, %v5572_v26, %v5568_v45  ;;  %v2340_v5 = vpack.c.b16 %v2236_v25, %v2235_v35  ;;  %v4008_v34 = vsel %vm3880_vm3, %v9569_v29, %v3752_v9  ;;  %7797 = vmatmul.msk.bf16.gmra.mxu3 %vm237_vm0, %v191_v48  ;;  %v9652_v1 = vpack.c.bf16 %v1070_v39, %v1070_v39  ;;  %v9671_v39 = vpop.xlane.xlu1 %4409 }
 0x234   :  { %v7487_v0 = vperm.slane %v5573_v18, %v9596_v43  ;;  %v4137_v3 = vunpack.c.l.bf16 %v4008_v34  ;;  %v3114_v14 = vadd.f32 %v8781_v16, %v2985_v50  ;;  %v3625_v8 = vmul.f32 0.010009766, %v3369_v17 }
 0x235   :  { %2616 = vmatmul.bf16.gmra.mxu1 %v2340_v5  ;;  %v1325_v29 = vunpack.c.l.bf16 %v9649_v2  ;;  %v5584_v58 = vand.u32 2147483647, %v9627_v55  ;;  %v5586_v33 = vand.u32 2147483648, %v9627_v55  ;;  %v2853_v23 = vpack.c.bf16 %v2579_v54, %v2579_v54 }
 0x236   :  { %v8060_v24 = vpop.eup %8059  ;;  %v7489_v52 = vsel %vm15476_vm15, %v7487_v0, %v7485_v53  ;;  %v4268_v51 = vmul.f32 %v9583_v22, %v4137_v3  ;;  %v1326_v53 = vunpack.c.l.bf16 %v9652_v1  ;;  %v9662_v21 = vpack.c.bf16 %v3114_v14, %v3114_v14 }
 0x237   :  { %v5576_v6 = vmul.f32 %v8060_v24, %v9627_v55  ;;  %vm5581_vm3 = vweird.f32 %v8060_v24  ;;  %v809_v15 = vpack.c.bf16 %v9639_v44, %v9639_v44  ;;  %vm3497_vm6 = vcmp.ge.f32.partialorder %v3369_v17, 0.0 }
 0x238   :  { %v4453_v57 = vsel %vm4368_vm13, %v4268_v51, 0.0  ;;  %v3753_v49 = vpack.c.bf16 %v3625_v8, %v3625_v8  ;;  %v810_v28 = vpack.c.bf16 %v566_v62, %v566_v62  ;;  %v9667_v38 = vadd.s32 4294967200, %v9086_v4  ;;  %vm3881_vm5 = vmpackc.low %vm3497_vm6, %vm3497_vm6  ;;  %v2584_v8 = vpop.f32.mrf.mxu1  ;;  %v99_v62 = vld [vmem:[%s15465_s0 + $0x230] sm:$0xff] }
 0x239   :  { %v5577_v60 = vsub.f32 1.0, %v5576_v6  ;;  %4454 = vadd.xlane.f32.xlu1 %v4453_v57  ;;  %vm5580_vm12 = vweird.f32 %v9627_v55  ;;  %v2986_v63 = vunpack.c.l.bf16 %v2853_v23  ;;  %v1581_v9 = vmul.f32 0.010009766, %v1325_v29 }
 0x23a   :  { %15619 = vst [vmem:[#allocation12_spill] sm:$0xff] %v9667_v38  ;;  %vm5582_vm9 = vmor %vm5580_vm12, %vm5581_vm3  ;;  %vm5585_vm8 = vcmp.eq.f32.partialorder %v5584_v58, 8.507059e+37  ;;  %v5587_v40 = vor.u32 1.1754944e-38, %v5586_v33  ;;  %v4009_v31 = vsel %vm3881_vm5, %v3241_v56, %v3753_v49  ;;  %v1582_v7 = vmul.f32 0.010009766, %v1326_v53  ;;  %v569_v14 = vpop.f32.mrf.mxu0  ;;  %v9699_v58 = vpop.xlane.xlu2 %4412  ;;  %v100_v33 = vld [vmem:[%s15465_s0 + $0x238] sm:$0xff] }
 0x23b   :  { %v5578_v11 = vmul.f32 %v8060_v24, %v5577_v60  ;;  %v3370_v44 = vunpack.c.l.bf16 %v9662_v21  ;;  %v942_v47 = vunpack.c.l.bf16 %v809_v15  ;;  %vm15478_vm15 = vcmask 851712   ;;  %v4419_v23 = vpop.xlane.xlu1 %4418 }
 0x23c   :  { %v4138_v50 = vunpack.c.l.bf16 %v4009_v31  ;;  %v943_v25 = vunpack.c.l.bf16 %v810_v28  ;;  %vm9673_vm7 = vcmp.ge.f32.partialorder %v1325_v29, 0.0  ;;  %v3115_v35 = vadd.f32 %v8781_v16, %v2986_v63 }
 0x23d   :  { %v5579_v13 = vadd.f32 %v8060_v24, %v5578_v11  ;;  %v1709_v56 = vpack.c.bf16 %v1581_v9, %v1581_v9  ;;  %vm9679_vm3 = vcmp.ge.f32.partialorder %v1326_v53, 0.0  ;;  %v2854_v18 = vpack.c.bf16 %v2582_v27, %v2582_v27  ;;  %vm1837_vm6 = vmpackc.low %vm9673_vm7, %vm9673_vm7 }
 0x23e   :  { %v4269_v54 = vmul.f32 %v9583_v22, %v4138_v50  ;;  %v1710_v17 = vpack.c.bf16 %v1582_v7, %v1582_v7  ;;  %v3626_v5 = vmul.f32 0.010009766, %v3370_v44  ;;  %v1071_v34 = vadd.f32 %v8693_v42, %v942_v47  ;;  %vm1838_vm12 = vmpackc.low %vm9679_vm3, %vm9679_vm3 }
 0x23f   :  { %v5583_v41 = vsel %vm5582_vm9, %v8060_v24, %v5579_v13  ;;  %v1072_v24 = vadd.f32 %v8693_v42, %v943_v25  ;;  %v3243_v6 = vpack.c.bf16 %v3115_v35, %v3115_v35  ;;  %v1965_v51 = vsel %vm1837_vm6, %v9649_v2, %v1709_v56 }
 0x240   :  { %v5588_v26 = vsel %vm5585_vm8, %v5587_v40, %v5583_v41  ;;  %v4456_v3 = vsel %vm4368_vm13, %v4269_v54, 0.0  ;;  %v3754_v29 = vpack.c.bf16 %v3626_v5, %v3626_v5  ;;  %v9697_v60 = vpack.c.bf16 %v1071_v34, %v1071_v34  ;;  %v2587_v48 = vpop.f32.mrf.mxu1 }
 0x241   :  { %v7491_v45 = vperm.slane %v5588_v26, %v9667_v38  ;;  %4457 = vadd.xlane.f32.xlu2 %v4456_v3  ;;  %v1966_v57 = vsel %vm1838_vm12, %v9652_v1, %v1710_v17  ;;  %v9708_v53 = vpack.c.bf16 %v1072_v24, %v1072_v24  ;;  %v3371_v2 = vunpack.c.l.bf16 %v3243_v6 }
 0x242   :  { %v2237_v11 = vunpack.c.l.b16 %v1965_v51  ;;  %v2238_v15 = vunpack.c.l.b16 %v1966_v57  ;;  %vm3498_vm7 = vcmp.ge.f32.partialorder %v3370_v44, 0.0  ;;  %v192_v28 = vpack.c.bf16 %v100_v33, %v99_v62  ;;  %v571_v26 = vpop.f32.mrf.mxu0  ;;  %v9733_v62 = vpop.xlane.xlu0 %4415 }
 0x243   :  { %v9685_v0 = vsel %vm15478_vm15, %v7491_v45, %v7489_v52  ;;  %v2987_v52 = vunpack.c.l.bf16 %v2854_v18  ;;  %vm3882_vm5 = vmpackc.low %vm3498_vm7, %vm3498_vm7  ;;  %v811_v1 = vpack.c.bf16 %v569_v14, %v569_v14  ;;  %v1327_v27 = vunpack.c.l.bf16 %v9697_v60  ;;  %v4422_v45 = vpop.xlane.xlu2 %4421 }
 0x244   :  { %15624 = vst [vmem:[#allocation13_spill] sm:$0xff] %v9685_v0  ;;  %v2341_v13 = vpack.c.b16 %v2238_v15, %v2237_v11  ;;  %v4010_v63 = vsel %vm3882_vm5, %v9662_v21, %v3754_v29  ;;  %v4771_v9 = vadd.f32 %v9036_v59, %v4419_v23  ;;  %v1328_v40 = vunpack.c.l.bf16 %v9708_v53  ;;  %7798 = vmatmul.msk.bf16.gmra.mxu3 %vm237_vm0, %v192_v28 }
 0x245   :  { %v3116_v49 = vadd.f32 %v8781_v16, %v2987_v52  ;;  %v4139_v31 = vunpack.c.l.bf16 %v4010_v63  ;;  %v944_v41 = vunpack.c.l.bf16 %v811_v1  ;;  %v3627_v7 = vmul.f32 0.010009766, %v3371_v2 }
 0x246   :  { %2621 = vmatmul.bf16.gmra.mxu1 %v2341_v13  ;;  %v1583_v50 = vmul.f32 0.010009766, %v1327_v27  ;;  %v7875_v25 = vmul.f32 -1.442695, %v4771_v9  ;;  %v2855_v55 = vpack.c.bf16 %v2584_v8, %v2584_v8  ;;  %v1584_v21 = vmul.f32 0.010009766, %v1328_v40 }
 0x247   :  { %v9716_v44 = vpack.c.bf16 %v3116_v49, %v3116_v49  ;;  %v4270_v47 = vmul.f32 %v9583_v22, %v4139_v31  ;;  %v1073_v56 = vadd.f32 %v8693_v42, %v944_v41  ;;  %vm3499_vm9 = vcmp.ge.f32.partialorder %v3371_v2, 0.0 }
 0x248   :  { %8061 = vpow2.f32 %v7875_v25  ;;  %v2988_v54 = vunpack.c.l.bf16 %v2855_v55  ;;  %v3755_v18 = vpack.c.bf16 %v3627_v7, %v3627_v7  ;;  %v812_v17 = vpack.c.bf16 %v571_v26, %v571_v26  ;;  %vm3883_vm8 = vmpackc.low %vm3499_vm9, %vm3499_vm9  ;;  %v2589_v26 = vpop.f32.mrf.mxu1  ;;  %v101_v55 = vld [vmem:[%s15465_s0 + $0x240] sm:$0xff] }
 0x249   :  { %v4459_v35 = vsel %vm4368_vm13, %v4270_v47, 0.0  ;;  %v3372_v5 = vunpack.c.l.bf16 %v9716_v44  ;;  %v4772_v34 = vadd.f32 %v9036_v59, %v4422_v45  ;;  %v2856_v14 = vpack.c.bf16 %v2587_v48, %v2587_v48 }
 0x24a   :  { %4460 = vadd.xlane.f32.xlu0 %v4459_v35  ;;  %v4011_v3 = vsel %vm3883_vm8, %v3243_v6, %v3755_v18  ;;  %v945_v24 = vunpack.c.l.bf16 %v812_v17  ;;  %vm9723_vm3 = vcmp.ge.f32.partialorder %v1327_v27, 0.0  ;;  %v1711_v51 = vpack.c.bf16 %v1583_v50, %v1583_v50  ;;  %v574_v31 = vpop.f32.mrf.mxu0 }
 0x24b   :  { %v9727_v8 = vpack.c.bf16 %v1073_v56, %v1073_v56  ;;  %vm9729_vm6 = vcmp.ge.f32.partialorder %v1328_v40, 0.0  ;;  %v1712_v57 = vpack.c.bf16 %v1584_v21, %v1584_v21  ;;  %v3117_v33 = vadd.f32 %v8781_v16, %v2988_v54  ;;  %vm1839_vm12 = vmpackc.low %vm9723_vm3, %vm9723_vm3  ;;  %v4425_v21 = vpop.xlane.xlu0 %4424 }
 0x24c   :  { %v4140_v23 = vunpack.c.l.bf16 %v4011_v3  ;;  %v3628_v6 = vmul.f32 0.010009766, %v3372_v5  ;;  %v1074_v2 = vadd.f32 %v8693_v42, %v945_v24  ;;  %v7876_v11 = vmul.f32 -1.442695, %v4772_v34  ;;  %vm1840_vm7 = vmpackc.low %vm9729_vm6, %vm9729_vm6 }
 0x24d   :  { %v2989_v28 = vunpack.c.l.bf16 %v2856_v14  ;;  %v1329_v1 = vunpack.c.l.bf16 %v9727_v8  ;;  %v9747_v13 = vpack.c.bf16 %v3117_v33, %v3117_v33  ;;  %v1967_v9 = vsel %vm1839_vm12, %v9697_v60, %v1711_v51  ;;  %v102_v60 = vld [vmem:[%s15465_s0 + $0x248] sm:$0xff] }
 0x24e   :  { %v8062_v15 = vpop.eup %8061  ;;  %v4271_v49 = vmul.f32 %v9583_v22, %v4140_v23  ;;  %8063 = vpow2.f32 %v7876_v11  ;;  %v1968_v40 = vsel %vm1840_vm7, %v9708_v53, %v1712_v57  ;;  %v3756_v41 = vpack.c.bf16 %v3628_v6, %v3628_v6 }
 0x24f   :  { %v9745_v27 = vadd.f32 1.0, %v8062_v15  ;;  %v9753_v7 = vpack.c.bf16 %v1074_v2, %v1074_v2  ;;  %v3118_v47 = vadd.f32 %v8781_v16, %v2989_v28  ;;  %v2239_v50 = vunpack.c.l.b16 %v1967_v9  ;;  %v4428_v9 = vpop.xlane.xlu1 %4427 }
 0x250   :  { %v4462_v63 = vsel %vm4368_vm13, %v4271_v49, 0.0  ;;  %v2240_v25 = vunpack.c.l.b16 %v1968_v40  ;;  %vm3500_vm5 = vcmp.ge.f32.partialorder %v3372_v5, 0.0  ;;  %v9762_v53 = vmul.f32 0.010009766, %v1329_v1 }
 0x251   :  { %8065 = vrcp.f32 %v9745_v27  ;;  %4463 = vadd.xlane.f32.xlu1 %v4462_v63  ;;  %v3373_v45 = vunpack.c.l.bf16 %v9747_v13  ;;  %vm3884_vm9 = vmpackc.low %vm3500_vm5, %vm3500_vm5  ;;  %v1330_v56 = vunpack.c.l.bf16 %v9753_v7  ;;  %v9766_v48 = vpack.c.bf16 %v3118_v47, %v3118_v47 }
 0x252   :  { %v2342_v54 = vpack.c.b16 %v2240_v25, %v2239_v50  ;;  %v4012_v18 = vsel %vm3884_vm9, %v9716_v44, %v3756_v41  ;;  %vm9769_vm8 = vcmp.ge.f32.partialorder %v1329_v1, 0.0  ;;  %v193_v3 = vpack.c.bf16 %v102_v60, %v101_v55  ;;  %v576_v63 = vpop.f32.mrf.mxu0  ;;  %v2592_v55 = vpop.f32.mrf.mxu1 }
 0x253   :  { %v4141_v34 = vunpack.c.l.bf16 %v4012_v18  ;;  %v5646_v14 = vand.u32 2147483648, %v9745_v27  ;;  %v813_v52 = vpack.c.bf16 %v574_v31, %v574_v31  ;;  %v4773_v51 = vadd.f32 %v9036_v59, %v4425_v21  ;;  %vm1841_vm14 = vmpackc.low %vm9769_vm8, %vm9769_vm8 }
 0x254   :  { %v8064_v35 = vpop.eup %8063  ;;  %v2857_v29 = vpack.c.bf16 %v2589_v26, %v2589_v26  ;;  %v1713_v44 = vpack.c.bf16 %v9762_v53, %v9762_v53  ;;  %v5644_v33 = vand.u32 2147483647, %v9745_v27  ;;  %7799 = vmatmul.msk.bf16.gmra.mxu3 %vm237_vm0, %v193_v3  ;;  %v3629_v23 = vmul.f32 0.010009766, %v3373_v45 }
 0x255   :  { %v9773_v5 = vadd.f32 1.0, %v8064_v35  ;;  %v1586_v6 = vmul.f32 0.010009766, %v1330_v56  ;;  %v3374_v2 = vunpack.c.l.bf16 %v9766_v48  ;;  %v4272_v11 = vmul.f32 %v9583_v22, %v4141_v34 }
 0x256   :  { %2626 = vmatmul.bf16.gmra.mxu1 %v2342_v54  ;;  %v946_v49 = vunpack.c.l.bf16 %v813_v52  ;;  %v7877_v28 = vmul.f32 -1.442695, %v4773_v51  ;;  %v2990_v1 = vunpack.c.l.bf16 %v2857_v29  ;;  %vm5640_vm3 = vweird.f32 %v9745_v27 }
 0x257   :  { %v9775_v24 = vpop.eup %8065  ;;  %8067 = vrcp.f32 %v9773_v5  ;;  %v5647_v40 = vor.u32 1.1754944e-38, %v5646_v14  ;;  %v4465_v31 = vsel %vm4368_vm13, %v4272_v11, 0.0  ;;  %vm9790_vm6 = vcmp.ge.f32.partialorder %v3373_v45, 0.0 }
 0x258   :  { %v5636_v57 = vmul.f32 %v9775_v24, %v9745_v27  ;;  %vm9795_vm12 = vcmp.eq.f32.partialorder %v5644_v33, 8.507059e+37  ;;  %vm9799_vm7 = vcmp.ge.f32.partialorder %v1330_v56, 0.0  ;;  %4466 = vadd.xlane.f32.xlu2 %v4465_v31  ;;  %v1075_v25 = vadd.f32 %v8693_v42, %v946_v49  ;;  %vm3885_vm9 = vmpackc.low %vm9790_vm6, %vm9790_vm6 }
 0x259   :  { %8069 = vpow2.f32 %v7877_v28  ;;  %v9806_v60 = vmul.f32 0.010009766, %v3374_v2  ;;  %v3757_v53 = vpack.c.bf16 %v3629_v23, %v3629_v23  ;;  %v814_v45 = vpack.c.bf16 %v576_v63, %v576_v63  ;;  %vm1842_vm8 = vmpackc.low %vm9799_vm7, %vm9799_vm7 }
 0x25a   :  { %v5637_v15 = vsub.f32 1.0, %v5636_v57  ;;  %v4774_v21 = vadd.f32 %v9036_v59, %v4428_v9  ;;  %vm5641_vm5 = vweird.f32 %v9775_v24  ;;  %v1714_v56 = vpack.c.bf16 %v1586_v6, %v1586_v6  ;;  %v579_v50 = vpop.f32.mrf.mxu0  ;;  %v2594_v26 = vpop.f32.mrf.mxu1 }
 0x25b   :  { %v3119_v18 = vadd.f32 %v8781_v16, %v2990_v1  ;;  %vm5655_vm15 = vweird.f32 %v9773_v5  ;;  %v4013_v3 = vsel %vm3885_vm9, %v9747_v13, %v3757_v53  ;;  %v947_v14 = vunpack.c.l.bf16 %v814_v45  ;;  %vm9826_vm6 = vmor %vm5640_vm3, %vm5641_vm5 }
 0x25c   :  { %v5638_v47 = vmul.f32 %v9775_v24, %v5637_v15  ;;  %v5659_v52 = vand.u32 2147483647, %v9773_v5  ;;  %v9822_v51 = vpack.c.bf16 %v1075_v25, %v1075_v25  ;;  %v4142_v29 = vunpack.c.l.bf16 %v4013_v3  ;;  %v4431_v3 = vpop.xlane.xlu2 %4430 }
 0x25d   :  { %v8068_v35 = vpop.eup %8067  ;;  %v2858_v57 = vpack.c.bf16 %v2592_v55, %v2592_v55  ;;  %v5661_v13 = vand.u32 2147483648, %v9773_v5  ;;  %v3758_v17 = vpack.c.bf16 %v9806_v60, %v9806_v60  ;;  %v7878_v6 = vmul.f32 -1.442695, %v4774_v21 }
 0x25e   :  { %v5639_v54 = vadd.f32 %v9775_v24, %v5638_v47  ;;  %v5651_v34 = vmul.f32 %v8068_v35, %v9773_v5  ;;  %v9836_v49 = vpack.c.bf16 %v3119_v18, %v3119_v18  ;;  %v1076_v27 = vadd.f32 %v8693_v42, %v947_v14  ;;  %v104_v5 = vld [vmem:[%s15465_s0 + $0x258] sm:$0xff] }
 0x25f   :  { %v8070_v11 = vpop.eup %8069  ;;  %v1969_v28 = vsel %vm1841_vm14, %v9727_v8, %v1713_v44  ;;  %vm5656_vm3 = vweird.f32 %v8068_v35  ;;  %v4273_v9 = vmul.f32 %v9583_v22, %v4142_v29  ;;  %v1331_v31 = vunpack.c.l.bf16 %v9822_v51 }
 0x260   :  { %v5652_v23 = vsub.f32 1.0, %v5651_v34  ;;  %v5643_v15 = vsel %vm9826_vm6, %v9775_v24, %v5639_v54  ;;  %v9843_v63 = vadd.f32 1.0, %v8070_v11  ;;  %8071 = vpow2.f32 %v7878_v6  ;;  %vm5657_vm7 = vmor %vm5655_vm15, %vm5656_vm3  ;;  %v103_v54 = vld [vmem:[%s15465_s0 + $0x250] sm:$0xff] }
 0x261   :  { %v2991_v24 = vunpack.c.l.bf16 %v2858_v57  ;;  %v1970_v41 = vsel %vm1842_vm8, %v9753_v7, %v1714_v56  ;;  %v5648_v47 = vsel %vm9795_vm12, %v5647_v40, %v5643_v15  ;;  %vm9850_vm14 = vcmp.eq.f32.partialorder %v5659_v52, 8.507059e+37 }
 0x262   :  { %v5653_v1 = vmul.f32 %v8068_v35, %v5652_v23  ;;  %8073 = vrcp.f32 %v9843_v63  ;;  %v5662_v25 = vor.u32 1.1754944e-38, %v5661_v13  ;;  %v4468_v55 = vsel %vm4368_vm13, %v4273_v9, 0.0 }
 0x263   :  { %v9858_v60 = vpack.c.bf16 %v1076_v27, %v1076_v27  ;;  %v3120_v7 = vadd.f32 %v8781_v16, %v2991_v24  ;;  %v3375_v53 = vunpack.c.l.bf16 %v9836_v49  ;;  %4469 = vadd.xlane.f32.xlu0 %v4468_v55  ;;  %v2241_v45 = vunpack.c.l.b16 %v1969_v28 }
 0x264   :  { %v5654_v8 = vadd.f32 %v8068_v35, %v5653_v1  ;;  %v2242_v21 = vunpack.c.l.b16 %v1970_v41  ;;  %v7506_v56 = vperm.slane %v5648_v47, %v9086_v4  ;;  %v9871_v34 = vmul.f32 0.010009766, %v1331_v31 }
 0x265   :  { %v5676_v52 = vand.u32 2147483648, %v9843_v63  ;;  %vm3502_vm15 = vcmp.ge.f32.partialorder %v3374_v2, 0.0  ;;  %v1332_v33 = vunpack.c.l.bf16 %v9858_v60  ;;  %v9879_v23 = vpack.c.bf16 %v3120_v7, %v3120_v7 }
 0x266   :  { %v5658_v40 = vsel %vm5657_vm7, %v8068_v35, %v5654_v8  ;;  %v5674_v35 = vand.u32 2147483647, %v9843_v63  ;;  %v2343_v29 = vpack.c.b16 %v2242_v21, %v2241_v45  ;;  %v8072_v57 = vpop.eup %8071  ;;  %vm3886_vm12 = vmpackc.low %vm3502_vm15, %vm3502_vm15  ;;  %v194_v13 = vpack.c.bf16 %v104_v5, %v103_v54  ;;  %v581_v45 = vpop.f32.mrf.mxu0 }
 0x267   :  { %v5663_v18 = vsel %vm9850_vm14, %v5662_v25, %v5658_v40  ;;  %v815_v6 = vpack.c.bf16 %v579_v50, %v579_v50  ;;  %vm9884_vm5 = vcmp.ge.f32.partialorder %v1331_v31, 0.0  ;;  %v9888_v28 = vadd.f32 1.0, %v8072_v57  ;;  %v4434_v21 = vpop.xlane.xlu0 %4433 }
 0x268   :  { %v7507_v14 = vperm.slane %v5663_v18, %v9105_v19  ;;  %v8074_v11 = vpop.eup %8073  ;;  %2631 = vmatmul.bf16.gmra.mxu1 %v2343_v29  ;;  %v4014_v2 = vsel %vm3886_vm12, %v9766_v48, %v3758_v17  ;;  %v4775_v1 = vadd.f32 %v9036_v59, %v4431_v3  ;;  %v3631_v24 = vmul.f32 0.010009766, %v3375_v53  ;;  %7800 = vmatmul.msk.bf16.gmra.mxu3 %vm237_vm0, %v194_v13  ;;  %v2597_v18 = vpop.f32.mrf.mxu1  ;;  %vm1843_vm12 = vmpackc.low %vm9884_vm5, %vm9884_vm5 }
 0x269   :  { %v5666_v9 = vmul.f32 %v8074_v11, %v9843_v63  ;;  %v4143_v41 = vunpack.c.l.bf16 %v4014_v2  ;;  %v948_v47 = vunpack.c.l.bf16 %v815_v6  ;;  %v1715_v31 = vpack.c.bf16 %v9871_v34, %v9871_v34 }
 0x26a   :  { %v9882_v15 = vsel %vm7448_vm1, %v7507_v14, %v7506_v56  ;;  %vm5670_vm9 = vweird.f32 %v9843_v63  ;;  %vm9897_vm6 = vcmp.eq.f32.partialorder %v5674_v35, 8.507059e+37  ;;  %8075 = vrcp.f32 %v9888_v28 }
 0x26b   :  { %v5667_v48 = vsub.f32 1.0, %v5666_v9  ;;  %v5677_v17 = vor.u32 1.1754944e-38, %v5676_v52  ;;  %v4274_v44 = vmul.f32 %v9583_v22, %v4143_v41  ;;  %v1077_v50 = vadd.f32 %v8693_v42, %v948_v47 }
 0x26c   :  { %v9904_v25 = vmul.f32 0.010009766, %v1332_v33  ;;  %v3376_v55 = vunpack.c.l.bf16 %v9879_v23  ;;  %v7879_v7 = vmul.f32 -1.442695, %v4775_v1  ;;  %v2859_v40 = vpack.c.bf16 %v2594_v26, %v2594_v26 }
 0x26d   :  { %v5668_v54 = vmul.f32 %v8074_v11, %v5667_v48  ;;  %vm5671_vm8 = vweird.f32 %v8074_v11  ;;  %v4471_v5 = vsel %vm4368_vm13, %v4274_v44, 0.0  ;;  %v9908_v56 = vpack.c.bf16 %v1077_v50, %v1077_v50 }
 0x26e   :  { %4472 = vadd.xlane.f32.xlu1 %v4471_v5  ;;  %8077 = vpow2.f32 %v7879_v7  ;;  %v2992_v34 = vunpack.c.l.bf16 %v2859_v40  ;;  %vm3503_vm3 = vcmp.ge.f32.partialorder %v3375_v53, 0.0  ;;  %v3759_v35 = vpack.c.bf16 %v3631_v24, %v3631_v24  ;;  %vm5672_vm15 = vmor %vm5670_vm9, %vm5671_vm8 }
 0x26f   :  { %v5669_v3 = vadd.f32 %v8074_v11, %v5668_v54  ;;  %vm9910_vm14 = vcmp.ge.f32.partialorder %v1332_v33, 0.0  ;;  %vm3887_vm7 = vmpackc.low %vm3503_vm3, %vm3503_vm3  ;;  %v816_v26 = vpack.c.bf16 %v581_v45, %v581_v45  ;;  %v4776_v52 = vadd.f32 %v9036_v59, %v4434_v21 }
 0x270   :  { %v8076_v29 = vpop.eup %8075  ;;  %v1716_v57 = vpack.c.bf16 %v9904_v25, %v9904_v25  ;;  %v5689_v53 = vand.u32 2147483647, %v9888_v28  ;;  %v4015_v13 = vsel %vm3887_vm7, %v9836_v49, %v3759_v35  ;;  %v2860_v33 = vpack.c.bf16 %v2597_v18, %v2597_v18  ;;  %v584_v18 = vpop.f32.mrf.mxu0  ;;  %vm1844_vm5 = vmpackc.low %vm9910_vm14, %vm9910_vm14 }
 0x271   :  { %v5673_v6 = vsel %vm5672_vm15, %v8074_v11, %v5669_v3  ;;  %v5681_v2 = vmul.f32 %v8076_v29, %v9888_v28  ;;  %v5691_v1 = vand.u32 2147483648, %v9888_v28  ;;  %v3632_v9 = vmul.f32 0.010009766, %v3376_v55  ;;  %v105_v3 = vld [vmem:[%s15465_s0 + $0x260] sm:$0xff] }
 0x272   :  { %v5678_v63 = vsel %vm9897_vm6, %v5677_v17, %v5673_v6  ;;  %v1333_v24 = vunpack.c.l.bf16 %v9908_v56  ;;  %v3121_v41 = vadd.f32 %v8781_v16, %v2992_v34  ;;  %v4144_v47 = vunpack.c.l.bf16 %v4015_v13  ;;  %v4437_v6 = vpop.xlane.xlu1 %4436 }
 0x273   :  { %v7509_v49 = vperm.slane %v5678_v63, %v9109_v20  ;;  %v5682_v11 = vsub.f32 1.0, %v5681_v2  ;;  %v949_v48 = vunpack.c.l.bf16 %v816_v26  ;;  %v7880_v44 = vmul.f32 -1.442695, %v4776_v52 }
 0x274   :  { %v8078_v50 = vpop.eup %8077  ;;  %vm5686_vm9 = vweird.f32 %v8076_v29  ;;  %v4275_v25 = vmul.f32 %v9583_v22, %v4144_v47  ;;  %v2993_v8 = vunpack.c.l.bf16 %v2860_v33  ;;  %v1971_v17 = vsel %vm1843_vm12, %v9822_v51, %v1715_v31  ;;  %v2599_v47 = vpop.f32.mrf.mxu1 }
 0x275   :  { %v7510_v7 = vsel %vm15512_vm10, %v7509_v49, %v9882_v15  ;;  %v5683_v40 = vmul.f32 %v8076_v29, %v5682_v11  ;;  %v9938_v45 = vadd.f32 1.0, %v8078_v50  ;;  %v1078_v27 = vadd.f32 %v8693_v42, %v949_v48 }
 0x276   :  { %v9941_v21 = vpack.c.bf16 %v3121_v41, %v3121_v41  ;;  %v4474_v54 = vsel %vm4368_vm13, %v4275_v25, 0.0  ;;  %8079 = vpow2.f32 %v7880_v44  ;;  %v3122_v5 = vadd.f32 %v8781_v16, %v2993_v8 }
 0x277   :  { %v5684_v51 = vadd.f32 %v8076_v29, %v5683_v40  ;;  %vm5685_vm6 = vweird.f32 %v9888_v28  ;;  %vm5690_vm8 = vcmp.eq.f32.partialorder %v5689_v53, 8.507059e+37  ;;  %8081 = vrcp.f32 %v9938_v45  ;;  %4475 = vadd.xlane.f32.xlu2 %v4474_v54  ;;  %v106_v28 = vld [vmem:[%s15465_s0 + $0x268] sm:$0xff] }
 0x278   :  { %vm5687_vm3 = vmor %vm5685_vm6, %vm5686_vm9  ;;  %v5692_v15 = vor.u32 1.1754944e-38, %v5691_v1  ;;  %v3760_v31 = vpack.c.bf16 %v3632_v9, %v3632_v9  ;;  %v9951_v34 = vpack.c.bf16 %v1078_v27, %v1078_v27  ;;  %v1972_v35 = vsel %vm1844_vm5, %v9858_v60, %v1716_v57 }
 0x279   :  { %v5688_v14 = vsel %vm5687_vm3, %v8076_v29, %v5684_v51  ;;  %v9962_v26 = vmul.f32 0.010009766, %v1333_v24  ;;  %v2243_v52 = vunpack.c.l.b16 %v1971_v17  ;;  %v2244_v53 = vunpack.c.l.b16 %v1972_v35  ;;  %v586_v51 = vpop.f32.mrf.mxu0  ;;  %v10041_v17 = vld [vmem:[%s15470_s5] ss:$0 sm:$0xff] }
 0x27a   :  { %v5693_v13 = vsel %vm5690_vm8, %v5692_v15, %v5688_v14  ;;  %v5704_v33 = vand.u32 2147483647, %v9938_v45  ;;  %v3377_v60 = vunpack.c.l.bf16 %v9941_v21  ;;  %v9966_v57 = vpack.c.bf16 %v3122_v5, %v3122_v5  ;;  %v4440_v15 = vpop.xlane.xlu2 %4439 }
 0x27b   :  { %v7511_v2 = vperm.slane %v5693_v13, %v9152_v61  ;;  %v2344_v1 = vpack.c.b16 %v2244_v53, %v2243_v52  ;;  %vm3504_vm14 = vcmp.ge.f32.partialorder %v3376_v55, 0.0  ;;  %v195_v29 = vpack.c.bf16 %v106_v28, %v105_v3 }
 0x27c   :  { %v8080_v9 = vpop.eup %8079  ;;  %v1334_v63 = vunpack.c.l.bf16 %v9951_v34  ;;  %vm3888_vm7 = vmpackc.low %vm3504_vm14, %vm3504_vm14  ;;  %v817_v41 = vpack.c.bf16 %v584_v18, %v584_v18  ;;  %v4777_v55 = vadd.f32 %v9036_v59, %v4437_v6  ;;  %v1717_v50 = vpack.c.bf16 %v9962_v26, %v9962_v26 }
 0x27d   :  { %v8082_v49 = vpop.eup %8081  ;;  %v9973_v11 = vsel %vm15511_vm2, %v7511_v2, %v7510_v7  ;;  %v9975_v48 = vadd.f32 1.0, %v8080_v9  ;;  %2636 = vmatmul.bf16.gmra.mxu1 %v2344_v1  ;;  %v4016_v44 = vsel %vm3888_vm7, %v9879_v23, %v3760_v31  ;;  %7801 = vmatmul.msk.bf16.gmra.mxu3 %vm237_vm0, %v195_v29  ;;  %vm5700_vm15 = vweird.f32 %v9938_v45 }
 0x27e   :  { %v5696_v25 = vmul.f32 %v8082_v49, %v9938_v45  ;;  %v3633_v8 = vmul.f32 0.010009766, %v3377_v60  ;;  %vm9984_vm12 = vcmp.eq.f32.partialorder %v5704_v33, 8.507059e+37  ;;  %v5706_v7 = vand.u32 2147483648, %v9938_v45 }
 0x27f   :  { %8083 = vrcp.f32 %v9975_v48  ;;  %v3378_v23 = vunpack.c.l.bf16 %v9966_v57  ;;  %vm9993_vm9 = vcmp.ge.f32.partialorder %v1333_v24, 0.0  ;;  %v4145_v54 = vunpack.c.l.bf16 %v4016_v44 }
 0x280   :  { %v5697_v27 = vsub.f32 1.0, %v5696_v25  ;;  %v950_v5 = vunpack.c.l.bf16 %v817_v41  ;;  %v7881_v18 = vmul.f32 -1.442695, %v4777_v55  ;;  %vm5701_vm5 = vweird.f32 %v8082_v49 }
 0x281   :  { %v9997_v31 = vmul.f32 0.010009766, %v1334_v63  ;;  %v2861_v35 = vpack.c.bf16 %v2599_v47, %v2599_v47  ;;  %vm9999_vm6 = vcmp.ge.f32.partialorder %v3377_v60, 0.0  ;;  %v4276_v24 = vmul.f32 %v9583_v22, %v4145_v54  ;;  %vm5702_vm14 = vmor %vm5700_vm15, %vm5701_vm5 }
 0x282   :  { %v5698_v28 = vmul.f32 %v8082_v49, %v5697_v27  ;;  %v1079_v14 = vadd.f32 %v8693_v42, %v950_v5  ;;  %8085 = vpow2.f32 %v7881_v18  ;;  %v3761_v53 = vpack.c.bf16 %v3633_v8, %v3633_v8  ;;  %vm3889_vm3 = vmpackc.low %vm9999_vm6, %vm9999_vm6  ;;  %v2602_v8 = vpop.f32.mrf.mxu1 }
 0x283   :  { %v2994_v52 = vunpack.c.l.bf16 %v2861_v35  ;;  %v818_v13 = vpack.c.bf16 %v586_v51, %v586_v51  ;;  %v4778_v33 = vadd.f32 %v9036_v59, %v4440_v15  ;;  %v5707_v2 = vor.u32 1.1754944e-38, %v5706_v7  ;;  %vm1845_vm15 = vmpackc.low %vm9993_vm9, %vm9993_vm9 }
 0x284   :  { %v5699_v6 = vadd.f32 %v8082_v49, %v5698_v28  ;;  %vm10006_vm8 = vcmp.ge.f32.partialorder %v1334_v63, 0.0  ;;  %v4477_v60 = vsel %vm4368_vm13, %v4276_v24, 0.0  ;;  %v10019_v29 = vmul.f32 0.010009766, %v3378_v23 }
 0x285   :  { %v8084_v22 = vpop.eup %8083  ;;  %4478 = vadd.xlane.f32.xlu0 %v4477_v60  ;;  %v10021_v9 = vpack.c.bf16 %v1079_v14, %v1079_v14  ;;  %v3123_v63 = vadd.f32 %v8781_v16, %v2994_v52  ;;  %v4017_v41 = vsel %vm3889_vm3, %v9941_v21, %v3761_v53  ;;  %v951_v55 = vunpack.c.l.bf16 %v818_v13  ;;  %v589_v13 = vpop.f32.mrf.mxu0 }
 0x286   :  { %v5703_v47 = vsel %vm5702_vm14, %v8082_v49, %v5699_v6  ;;  %v5711_v44 = vmul.f32 %v8084_v22, %v9975_v48  ;;  %v7882_v25 = vmul.f32 -1.442695, %v4778_v33  ;;  %v1718_v7 = vpack.c.bf16 %v9997_v31, %v9997_v31 }
 0x287   :  { %v5708_v45 = vsel %vm9984_vm12, %v5707_v2, %v5703_v47  ;;  %v5719_v27 = vand.u32 2147483647, %v9975_v48  ;;  %v4146_v54 = vunpack.c.l.bf16 %v4017_v41  ;;  %vm5716_vm7 = vweird.f32 %v8084_v22  ;;  %vm1846_vm12 = vmpackc.low %vm10006_vm8, %vm10006_vm8  ;;  %v108_v2 = vld [vmem:[%s15465_s0 + $0x278] sm:$0xff] }
 0x288   :  { %v8086_v5 = vpop.eup %8085  ;;  %v7513_v18 = vperm.slane %v5708_v45, %v9281_v10  ;;  %v5712_v51 = vsub.f32 1.0, %v5711_v44  ;;  %v5721_v21 = vand.u32 2147483648, %v9975_v48  ;;  %v1335_v49 = vunpack.c.l.bf16 %v10021_v9 }
 0x289   :  { %v10034_v15 = vadd.f32 1.0, %v8086_v5  ;;  %v10036_v35 = vpack.c.bf16 %v3123_v63, %v3123_v63  ;;  %v4277_v31 = vmul.f32 %v10041_v17, %v4146_v54  ;;  %v1080_v24 = vadd.f32 %v8693_v42, %v951_v55 }
 0x28a   :  { %v7514_v3 = vsel %vm15510_vm11, %v7513_v18, %v9973_v11  ;;  %v5713_v28 = vmul.f32 %v8084_v22, %v5712_v51  ;;  %8087 = vpow2.f32 %v7882_v25  ;;  %v2862_v14 = vpack.c.bf16 %v2602_v8, %v2602_v8  ;;  %v2604_v8 = vpop.f32.mrf.mxu1 }
 0x28b   :  { %8089 = vrcp.f32 %v10034_v15  ;;  %vm5715_vm5 = vweird.f32 %v9975_v48  ;;  %v3762_v11 = vpack.c.bf16 %v10019_v29, %v10019_v29  ;;  %v4480_v53 = vsel %vm4368_vm13, %v4277_v31, 0.0  ;;  %v107_v48 = vld [vmem:[%s15465_s0 + $0x270] sm:$0xff] }
 0x28c   :  { %v5714_v52 = vadd.f32 %v8084_v22, %v5713_v28  ;;  %vm5717_vm6 = vmor %vm5715_vm5, %vm5716_vm7  ;;  %vm5720_vm3 = vcmp.eq.f32.partialorder %v5719_v27, 8.507059e+37  ;;  %v5722_v40 = vor.u32 1.1754944e-38, %v5721_v21  ;;  %v10059_v33 = vmul.f32 0.010009766, %v1335_v49  ;;  %4481 = vadd.xlane.f32.xlu1 %v4480_v53 }
 0x28d   :  { %v1973_v6 = vsel %vm1845_vm15, %v9908_v56, %v1717_v50  ;;  %v3379_v29 = vunpack.c.l.bf16 %v10036_v35  ;;  %v10072_v63 = vpack.c.bf16 %v1080_v24, %v1080_v24  ;;  %v1974_v56 = vsel %vm1846_vm12, %v9951_v34, %v1718_v7 }
 0x28e   :  { %v5718_v60 = vsel %vm5717_vm6, %v8084_v22, %v5714_v52  ;;  %v2995_v50 = vunpack.c.l.bf16 %v2862_v14  ;;  %v2245_v41 = vunpack.c.l.b16 %v1973_v6  ;;  %v2246_v47 = vunpack.c.l.b16 %v1974_v56 }
 0x28f   :  { %v5723_v26 = vsel %vm5720_vm3, %v5722_v40, %v5718_v60  ;;  %v5734_v22 = vand.u32 2147483647, %v10034_v15  ;;  %vm3506_vm9 = vcmp.ge.f32.partialorder %v3378_v23, 0.0  ;;  %v196_v25 = vpack.c.bf16 %v108_v2, %v107_v48  ;;  %v4443_v23 = vpop.xlane.xlu0 %4442  ;;  %v591_v48 = vpop.f32.mrf.mxu0 }
 0x290   :  { %v8088_v44 = vpop.eup %8087  ;;  %v7515_v55 = vperm.slane %v5723_v26, %v9287_v12  ;;  %v5736_v27 = vand.u32 2147483648, %v10034_v15  ;;  %v2345_v34 = vpack.c.b16 %v2246_v47, %v2245_v41  ;;  %vm3890_vm8 = vmpackc.low %vm3506_vm9, %vm3506_vm9  ;;  %v819_v7 = vpack.c.bf16 %v589_v13, %v589_v13 }
 0x291   :  { %v8090_v45 = vpop.eup %8089  ;;  %v10085_v1 = vadd.f32 1.0, %v8088_v44  ;;  %v1336_v18 = vunpack.c.l.bf16 %v10072_v63  ;;  %v4018_v51 = vsel %vm3890_vm8, %v9966_v57, %v3762_v11  ;;  %7802 = vmatmul.msk.bf16.gmra.mxu3 %vm237_vm0, %v196_v25  ;;  %v1719_v21 = vpack.c.bf16 %v10059_v33, %v10059_v33  ;;  %v110_v33 = vld [vmem:[%s15465_s0 + $0x288] sm:$0xff] }
 0x292   :  { %v7516_v54 = vsel %vm15509_vm4, %v7515_v55, %v7514_v3  ;;  %v5726_v5 = vmul.f32 %v8090_v45, %v10034_v15  ;;  %v3635_v31 = vmul.f32 0.010009766, %v3379_v29  ;;  %v3124_v28 = vadd.f32 %v8781_v16, %v2995_v50  ;;  %2641 = vmatmul.bf16.gmra.mxu1 %v2345_v34  ;;  %v4446_v34 = vpop.xlane.xlu1 %4445 }
 0x293   :  { %8091 = vrcp.f32 %v10085_v1  ;;  %vm10096_vm14 = vcmp.ge.f32.partialorder %v1335_v49, 0.0  ;;  %vm5730_vm7 = vweird.f32 %v10034_v15  ;;  %vm10101_vm15 = vcmp.eq.f32.partialorder %v5734_v22, 8.507059e+37 }
 0x294   :  { %v5727_v24 = vsub.f32 1.0, %v5726_v5  ;;  %v4147_v14 = vunpack.c.l.bf16 %v4018_v51  ;;  %v5737_v52 = vor.u32 1.1754944e-38, %v5736_v27  ;;  %v952_v11 = vunpack.c.l.bf16 %v819_v7  ;;  %v2607_v7 = vpop.f32.mrf.mxu1 }
 0x295   :  { %v4779_v53 = vadd.f32 %v9036_v59, %v4443_v23  ;;  %v2863_v13 = vpack.c.bf16 %v2604_v8, %v2604_v8  ;;  %vm5731_vm12 = vweird.f32 %v8090_v45  ;;  %v10106_v6 = vmul.f32 0.010009766, %v1336_v18 }
 0x296   :  { %v5728_v40 = vmul.f32 %v8090_v45, %v5727_v24  ;;  %v4278_v49 = vmul.f32 %v10041_v17, %v4147_v14  ;;  %v10109_v2 = vpack.c.bf16 %v3124_v28, %v3124_v28  ;;  %vm3507_vm5 = vcmp.ge.f32.partialorder %v3379_v29, 0.0  ;;  %vm5732_vm9 = vmor %vm5730_vm7, %vm5731_vm12 }
 0x297   :  { %v7883_v60 = vmul.f32 -1.442695, %v4779_v53  ;;  %v3763_v56 = vpack.c.bf16 %v3635_v31, %v3635_v31  ;;  %vm10111_vm6 = vcmp.ge.f32.partialorder %v1336_v18, 0.0  ;;  %v2996_v47 = vunpack.c.l.bf16 %v2863_v13  ;;  %vm3891_vm3 = vmpackc.low %vm3507_vm5, %vm3507_vm5 }
 0x298   :  { %v5729_v26 = vadd.f32 %v8090_v45, %v5728_v40  ;;  %v4483_v41 = vsel %vm4368_vm13, %v4278_v49, 0.0  ;;  %v1081_v55 = vadd.f32 %v8693_v42, %v952_v11  ;;  %v820_v22 = vpack.c.bf16 %v591_v48, %v591_v48  ;;  %vm1847_vm12 = vmpackc.low %vm10096_vm14, %vm10096_vm14 }
 0x299   :  { %v8092_v44 = vpop.eup %8091  ;;  %4484 = vadd.xlane.f32.xlu2 %v4483_v41  ;;  %8093 = vpow2.f32 %v7883_v60  ;;  %v4019_v29 = vsel %vm3891_vm3, %v10036_v35, %v3763_v56  ;;  %v1720_v8 = vpack.c.bf16 %v10106_v6, %v10106_v6  ;;  %vm5745_vm8 = vweird.f32 %v10085_v1  ;;  %vm1848_vm3 = vmpackc.low %vm10111_vm6, %vm10111_vm6 }
 0x29a   :  { %v5733_v25 = vsel %vm5732_vm9, %v8090_v45, %v5729_v26  ;;  %v5741_v27 = vmul.f32 %v8092_v44, %v10085_v1  ;;  %v5749_v5 = vand.u32 2147483647, %v10085_v1  ;;  %v3380_v18 = vunpack.c.l.bf16 %v10109_v2 }
 0x29b   :  { %v5738_v15 = vsel %vm10101_vm15, %v5737_v52, %v5733_v25  ;;  %v4148_v51 = vunpack.c.l.bf16 %v4019_v29  ;;  %v3125_v23 = vadd.f32 %v8781_v16, %v2996_v47  ;;  %v953_v31 = vunpack.c.l.bf16 %v820_v22 }
 0x29c   :  { %v7517_v35 = vperm.slane %v5738_v15, %v9377_v46  ;;  %v5742_v45 = vsub.f32 1.0, %v5741_v27  ;;  %v5751_v28 = vand.u32 2147483648, %v10085_v1  ;;  %v10131_v24 = vpack.c.bf16 %v1081_v55, %v1081_v55  ;;  %v10174_v27 = vpop.f32.mrf.mxu0 }
 0x29d   :  { %v4279_v14 = vmul.f32 %v10041_v17, %v4148_v51  ;;  %v4780_v57 = vadd.f32 %v9036_v59, %v4446_v34  ;;  %vm15661_vm7 = vcmask 458112   ;;  %vm5746_vm15 = vweird.f32 %v8092_v44 }
 0x29e   :  { %v7518_v52 = vsel %vm15661_vm7, %v7517_v35, %v7516_v54  ;;  %v5743_v11 = vmul.f32 %v8092_v44, %v5742_v45  ;;  %v2864_v53 = vpack.c.bf16 %v2607_v7, %v2607_v7  ;;  %vm10139_vm5 = vcmp.eq.f32.partialorder %v5749_v5, 8.507059e+37  ;;  %vm5747_vm9 = vmor %vm5745_vm8, %vm5746_vm15 }
 0x29f   :  { %v8094_v13 = vpop.eup %8093  ;;  %v3636_v6 = vmul.f32 0.010009766, %v3380_v18  ;;  %v4486_v49 = vsel %vm4368_vm13, %v4279_v14, 0.0  ;;  %v7884_v48 = vmul.f32 -1.442695, %v4780_v57  ;;  %v10149_v56 = vpack.c.bf16 %v3125_v23, %v3125_v23 }
 0x2a0   :  { %v5744_v54 = vadd.f32 %v8092_v44, %v5743_v11  ;;  %v10147_v60 = vadd.f32 1.0, %v8094_v13  ;;  %4487 = vadd.xlane.f32.xlu0 %v4486_v49  ;;  %v1082_v26 = vadd.f32 %v8693_v42, %v953_v31  ;;  %v5752_v41 = vor.u32 1.1754944e-38, %v5751_v28 }
 0x2a1   :  { %v1337_v47 = vunpack.c.l.bf16 %v10131_v24  ;;  %8095 = vpow2.f32 %v7884_v48  ;;  %v2997_v55 = vunpack.c.l.bf16 %v2864_v53  ;;  %v1975_v50 = vsel %vm1847_vm12, %v10021_v9, %v1719_v21 }
 0x2a2   :  { %v5748_v29 = vsel %vm5747_vm9, %v8092_v44, %v5744_v54  ;;  %8097 = vrcp.f32 %v10147_v60  ;;  %v1976_v1 = vsel %vm1848_vm3, %v10072_v63, %v1720_v8  ;;  %v3764_v25 = vpack.c.bf16 %v3636_v6, %v3636_v6  ;;  %v109_v44 = vld [vmem:[%s15465_s0 + $0x280] sm:$0xff]  ;;  %v4449_v63 = vpop.xlane.xlu2 %4448  ;;  %v2609_v8 = vpop.f32.mrf.mxu1 }
 0x2a3   :  { %v5753_v22 = vsel %vm10139_vm5, %v5752_v41, %v5748_v29  ;;  %v3381_v9 = vunpack.c.l.bf16 %v10149_v56  ;;  %v10178_v21 = vpack.c.bf16 %v1082_v26, %v1082_v26  ;;  %v2247_v34 = vunpack.c.l.b16 %v1975_v50 }
 0x2a4   :  { %v7519_v3 = vperm.slane %v5753_v22, %v9439_v37  ;;  %v2248_v7 = vunpack.c.l.b16 %v1976_v1  ;;  %vm3508_vm14 = vcmp.ge.f32.partialorder %v3380_v18, 0.0  ;;  %vm15664_vm6 = vcmask 523712  }
 0x2a5   :  { %v10183_v5 = vmul.f32 0.010009766, %v1337_v47  ;;  %v3126_v51 = vadd.f32 %v8781_v16, %v2997_v55  ;;  %vm3892_vm8 = vmpackc.low %vm3508_vm14, %vm3508_vm14  ;;  %v197_v35 = vpack.c.bf16 %v110_v33, %v109_v44  ;;  %v4781_v28 = vadd.f32 %v9036_v59, %v4449_v63  ;;  %v4452_v55 = vpop.xlane.xlu0 %4451  ;;  %v596_v44 = vpop.f32.mrf.mxu0 }
 0x2a6   :  { %v10181_v15 = vsel %vm15664_vm6, %v7519_v3, %v7518_v52  ;;  %v2346_v23 = vpack.c.b16 %v2248_v7, %v2247_v34  ;;  %v4020_v31 = vsel %vm3892_vm8, %v10109_v2, %v3764_v25  ;;  %v2865_v14 = vpack.c.bf16 %v2609_v8, %v2609_v8 }
 0x2a7   :  { %v8096_v45 = vpop.eup %8095  ;;  %v3637_v11 = vmul.f32 0.010009766, %v3381_v9  ;;  %v1338_v18 = vunpack.c.l.bf16 %v10178_v21  ;;  %v4149_v52 = vunpack.c.l.bf16 %v4020_v31  ;;  %7803 = vmatmul.msk.bf16.gmra.mxu3 %vm237_vm0, %v197_v35  ;;  %vm10192_vm7 = vcmp.ge.f32.partialorder %v1337_v47, 0.0 }
 0x2a8   :  { %v8098_v57 = vpop.eup %8097  ;;  %v10189_v53 = vadd.f32 1.0, %v8096_v45  ;;  %2646 = vmatmul.bf16.gmra.mxu1 %v2346_v23  ;;  %v7885_v2 = vmul.f32 -1.442695, %v4781_v28  ;;  %v1721_v6 = vpack.c.bf16 %v10183_v5, %v10183_v5  ;;  %v5764_v49 = vand.u32 2147483647, %v10147_v60  ;;  %vm1849_vm8 = vmpackc.low %vm10192_vm7, %vm10192_vm7 }
 0x2a9   :  { %v5756_v40 = vmul.f32 %v8098_v57, %v10147_v60  ;;  %v10201_v48 = vpack.c.bf16 %v3126_v51, %v3126_v51  ;;  %v5766_v26 = vand.u32 2147483648, %v10147_v60  ;;  %v4280_v41 = vmul.f32 %v10041_v17, %v4149_v52 }
 0x2aa   :  { %8099 = vrcp.f32 %v10189_v53  ;;  %v2998_v47 = vunpack.c.l.bf16 %v2865_v14  ;;  %vm5760_vm15 = vweird.f32 %v10147_v60  ;;  %v3765_v29 = vpack.c.bf16 %v3637_v11, %v3637_v11  ;;  %v2612_v11 = vpop.f32.mrf.mxu1 }
 0x2ab   :  { %v5757_v54 = vsub.f32 1.0, %v5756_v40  ;;  %v1594_v50 = vmul.f32 0.010009766, %v1338_v18  ;;  %8101 = vpow2.f32 %v7885_v2  ;;  %vm5761_vm12 = vweird.f32 %v8098_v57 }
 0x2ac   :  { %v4489_v22 = vsel %vm4368_vm13, %v4280_v41, 0.0  ;;  %v821_v25 = vpack.c.bf16 %v10174_v27, %v10174_v27  ;;  %vm10209_vm5 = vcmp.ge.f32.partialorder %v1338_v18, 0.0  ;;  %v3382_v3 = vunpack.c.l.bf16 %v10201_v48  ;;  %vm5762_vm6 = vmor %vm5760_vm15, %vm5761_vm12 }
 0x2ad   :  { %v5758_v1 = vmul.f32 %v8098_v57, %v5757_v54  ;;  %4490 = vadd.xlane.f32.xlu1 %v4489_v22  ;;  %vm3509_vm3 = vcmp.ge.f32.partialorder %v3381_v9, 0.0  ;;  %v4782_v63 = vadd.f32 %v9036_v59, %v4452_v55  ;;  %vm10215_vm9 = vcmp.eq.f32.partialorder %v5764_v49, 8.507059e+37  ;;  %vm1850_vm7 = vmpackc.low %vm10209_vm5, %vm10209_vm5 }
 0x2ae   :  { %v5767_v7 = vor.u32 1.1754944e-38, %v5766_v26  ;;  %v3127_v5 = vadd.f32 %v8781_v16, %v2998_v47  ;;  %vm3893_vm14 = vmpackc.low %vm3509_vm3, %vm3509_vm3  ;;  %v1722_v51 = vpack.c.bf16 %v1594_v50, %v1594_v50  ;;  %v822_v9 = vpack.c.bf16 %v596_v44, %v596_v44 }
 0x2af   :  { %v5759_v8 = vadd.f32 %v8098_v57, %v5758_v1  ;;  %v4021_v35 = vsel %vm3893_vm14, %v10149_v56, %v3765_v29  ;;  %v7886_v45 = vmul.f32 -1.442695, %v4782_v63  ;;  %v5779_v28 = vand.u32 2147483647, %v10189_v53 }
 0x2b0   :  { %v8100_v27 = vpop.eup %8099  ;;  %v954_v14 = vunpack.c.l.bf16 %v821_v25  ;;  %v5781_v40 = vand.u32 2147483648, %v10189_v53  ;;  %v3638_v60 = vmul.f32 0.010009766, %v3382_v3  ;;  %v4150_v2 = vunpack.c.l.bf16 %v4021_v35 }
 0x2b1   :  { %v5763_v23 = vsel %vm5762_vm6, %v8098_v57, %v5759_v8  ;;  %v5771_v31 = vmul.f32 %v8100_v27, %v10189_v53  ;;  %v8102_v18 = vpop.eup %8101  ;;  %v10235_v54 = vpack.c.bf16 %v3127_v5, %v3127_v5  ;;  %v955_v41 = vunpack.c.l.bf16 %v822_v9 }
 0x2b2   :  { %v5768_v52 = vsel %vm10215_vm9, %v5767_v7, %v5763_v23  ;;  %v10233_v49 = vadd.f32 1.0, %v8102_v18  ;;  %v4281_v26 = vmul.f32 %v10041_v17, %v4150_v2  ;;  %8103 = vpow2.f32 %v7886_v45  ;;  %v10263_v23 = vpop.f32.mrf.mxu0 }
 0x2b3   :  { %v7521_v56 = vperm.slane %v5768_v52, %v9458_v36  ;;  %v5772_v57 = vsub.f32 1.0, %v5771_v31  ;;  %v1977_v47 = vsel %vm1849_vm8, %v10131_v24, %v1721_v6  ;;  %vm15671_vm15 = vcmask 589312   ;;  %v112_v6 = vld [vmem:[%s15465_s0 + $0x298] sm:$0xff]  ;;  %v4455_v52 = vpop.xlane.xlu1 %4454 }
 0x2b4   :  { %vm5776_vm12 = vweird.f32 %v8100_v27  ;;  %8105 = vrcp.f32 %v10233_v49  ;;  %vm5775_vm3 = vweird.f32 %v10189_v53  ;;  %vm10246_vm9 = vcmp.eq.f32.partialorder %v5779_v28, 8.507059e+37 }
 0x2b5   :  { %v7522_v55 = vsel %vm15671_vm15, %v7521_v56, %v10181_v15  ;;  %v5773_v29 = vmul.f32 %v8100_v27, %v5772_v57  ;;  %v1083_v50 = vadd.f32 %v8693_v42, %v954_v14  ;;  %v4492_v24 = vsel %vm4368_vm13, %v4281_v26, 0.0  ;;  %v111_v15 = vld [vmem:[%s15465_s0 + $0x290] sm:$0xff]  ;;  %vm5777_vm5 = vmor %vm5775_vm3, %vm5776_vm12 }
 0x2b6   :  { %v3766_v22 = vpack.c.bf16 %v3638_v60, %v3638_v60  ;;  %4493 = vadd.xlane.f32.xlu2 %v4492_v24  ;;  %v2866_v53 = vpack.c.bf16 %v2612_v11, %v2612_v11  ;;  %v1978_v25 = vsel %vm1850_vm7, %v10178_v21, %v1722_v51  ;;  %v5782_v44 = vor.u32 1.1754944e-38, %v5781_v40 }
 0x2b7   :  { %v5774_v1 = vadd.f32 %v8100_v27, %v5773_v29  ;;  %v3383_v33 = vunpack.c.l.bf16 %v10235_v54  ;;  %v2249_v63 = vunpack.c.l.b16 %v1977_v47  ;;  %v2250_v8 = vunpack.c.l.b16 %v1978_v25 }
 0x2b8   :  { %v1084_v7 = vadd.f32 %v8693_v42, %v955_v41  ;;  %vm3510_vm14 = vcmp.ge.f32.partialorder %v3382_v3, 0.0  ;;  %v198_v5 = vpack.c.bf16 %v112_v6, %v111_v15  ;;  %v8104_v35 = vpop.eup %8103  ;;  %v2999_v28 = vunpack.c.l.bf16 %v2866_v53  ;;  %v2614_v3 = vpop.f32.mrf.mxu1 }
 0x2b9   :  { %v5778_v34 = vsel %vm5777_vm5, %v8100_v27, %v5774_v1  ;;  %v2347_v45 = vpack.c.b16 %v2250_v8, %v2249_v63  ;;  %vm3894_vm6 = vmpackc.low %vm3510_vm14, %vm3510_vm14  ;;  %v10266_v31 = vadd.f32 1.0, %v8104_v35  ;;  %v3639_v11 = vmul.f32 0.010009766, %v3383_v33  ;;  %v10292_v8 = vpop.f32.mrf.mxu3 }
 0x2ba   :  { %v5783_v9 = vsel %vm10246_vm9, %v5782_v44, %v5778_v34  ;;  %v8106_v21 = vpop.eup %8105  ;;  %v4022_v27 = vsel %vm3894_vm6, %v10201_v48, %v3766_v22  ;;  %7804 = vmatmul.msk.bf16.gmra.mxu3 %vm237_vm0, %v198_v5  ;;  %vm15674_vm8 = vcmask 654912   ;;  %v10272_v60 = vpack.c.bf16 %v1083_v50, %v1083_v50  ;;  %v601_v5 = vpop.f32.mrf.mxu0 }
 0x2bb   :  { %v7523_v51 = vperm.slane %v5783_v9, %v9468_v30  ;;  %v5786_v14 = vmul.f32 %v8106_v21, %v10233_v49  ;;  %2651 = vmatmul.bf16.gmra.mxu1 %v2347_v45  ;;  %v4151_v18 = vunpack.c.l.bf16 %v4022_v27  ;;  %v10274_v2 = vpack.c.bf16 %v1084_v7, %v1084_v7 }
 0x2bc   :  { %8107 = vrcp.f32 %v10266_v31  ;;  %v5796_v48 = vand.u32 2147483648, %v10233_v49  ;;  %vm5791_vm15 = vweird.f32 %v8106_v21  ;;  %v3128_v26 = vadd.f32 %v8781_v16, %v2999_v28 }
 0x2bd   :  { %v7524_v40 = vsel %vm15674_vm8, %v7523_v51, %v7522_v55  ;;  %v5787_v56 = vsub.f32 1.0, %v5786_v14  ;;  %v4282_v57 = vmul.f32 %v10041_v17, %v4151_v18  ;;  %v4783_v41 = vadd.f32 %v9036_v59, %v4455_v52 }
 0x2be   :  { %v2867_v47 = vpack.c.bf16 %v2614_v3, %v2614_v3  ;;  %v5794_v55 = vand.u32 2147483647, %v10233_v49  ;;  %v3767_v13 = vpack.c.bf16 %v3639_v11, %v3639_v11  ;;  %v1339_v24 = vunpack.c.l.bf16 %v10272_v60 }
 0x2bf   :  { %v5788_v29 = vmul.f32 %v8106_v21, %v5787_v56  ;;  %v4495_v50 = vsel %vm4368_vm13, %v4282_v57, 0.0  ;;  %vm5790_vm12 = vweird.f32 %v10233_v49  ;;  %v1340_v15 = vunpack.c.l.bf16 %v10274_v2 }
 0x2c0   :  { %4496 = vadd.xlane.f32.xlu0 %v4495_v50  ;;  %v7887_v6 = vmul.f32 -1.442695, %v4783_v41  ;;  %vm10286_vm7 = vmor %vm5790_vm12, %vm5791_vm15  ;;  %v3000_v53 = vunpack.c.l.bf16 %v2867_v47  ;;  %vm3511_vm3 = vcmp.ge.f32.partialorder %v3383_v33, 0.0  ;;  %v5797_v44 = vor.u32 1.1754944e-38, %v5796_v48  ;;  %v2617_v51 = vpop.f32.mrf.mxu1 }
 0x2c1   :  { %v5789_v1 = vadd.f32 %v8106_v21, %v5788_v29  ;;  %v10290_v63 = vpack.c.bf16 %v3128_v26, %v3128_v26  ;;  %vm3895_vm9 = vmpackc.low %vm3511_vm3, %vm3511_vm3  ;;  %vm5795_vm5 = vcmp.eq.f32.partialorder %v5794_v55, 8.507059e+37  ;;  %v1595_v35 = vmul.f32 0.010009766, %v1339_v24  ;;  %v10325_v22 = vpop.f32.mrf.mxu3 }
 0x2c2   :  { %v8108_v25 = vpop.eup %8107  ;;  %8109 = vpow2.f32 %v7887_v6  ;;  %v4023_v7 = vsel %vm3895_vm9, %v10235_v54, %v3767_v13  ;;  %v1596_v33 = vmul.f32 0.010009766, %v1340_v15  ;;  %v5809_v45 = vand.u32 2147483647, %v10266_v31 }
 0x2c3   :  { %v5793_v49 = vsel %vm10286_vm7, %v8106_v21, %v5789_v1  ;;  %v5801_v34 = vmul.f32 %v8108_v25, %v10266_v31  ;;  %v3129_v3 = vadd.f32 %v8781_v16, %v3000_v53  ;;  %v4152_v14 = vunpack.c.l.bf16 %v4023_v7 }
 0x2c4   :  { %v5798_v9 = vsel %vm5795_vm5, %v5797_v44, %v5793_v49  ;;  %v5811_v21 = vand.u32 2147483648, %v10266_v31  ;;  %v3384_v11 = vunpack.c.l.bf16 %v10290_v63  ;;  %v823_v54 = vpack.c.bf16 %v10263_v23, %v10263_v23  ;;  %v113_v49 = vld [vmem:[%s15465_s0 + $0x2a0] sm:$0xff] }
 0x2c5   :  { %v7525_v28 = vperm.slane %v5798_v9, %v9558_v32  ;;  %v5802_v27 = vsub.f32 1.0, %v5801_v34  ;;  %v824_v18 = vpack.c.bf16 %v601_v5, %v601_v5  ;;  %vm15677_vm14 = vcmask 720512   ;;  %v114_v34 = vld [vmem:[%s15465_s0 + $0x2a8] sm:$0xff] }
 0x2c6   :  { %vm5806_vm6 = vweird.f32 %v8108_v25  ;;  %v4283_v48 = vmul.f32 %v10041_v17, %v4152_v14  ;;  %vm10307_vm8 = vcmp.ge.f32.partialorder %v1339_v24, 0.0  ;;  %v1723_v41 = vpack.c.bf16 %v1595_v35, %v1595_v35 }
 0x2c7   :  { %v7526_v52 = vsel %vm15677_vm14, %v7525_v28, %v7524_v40  ;;  %v5803_v56 = vmul.f32 %v8108_v25, %v5802_v27  ;;  %vm10311_vm15 = vcmp.ge.f32.partialorder %v1340_v15, 0.0  ;;  %vm5805_vm12 = vweird.f32 %v10266_v31  ;;  %vm1851_vm9 = vmpackc.low %vm10307_vm8, %vm10307_vm8 }
 0x2c8   :  { %v8110_v57 = vpop.eup %8109  ;;  %v10318_v40 = vpack.c.bf16 %v3129_v3, %v3129_v3  ;;  %v4498_v55 = vsel %vm4368_vm13, %v4283_v48, 0.0  ;;  %v1724_v13 = vpack.c.bf16 %v1596_v33, %v1596_v33  ;;  %vm5807_vm7 = vmor %vm5805_vm12, %vm5806_vm6  ;;  %vm5810_vm3 = vcmp.eq.f32.partialorder %v5809_v45, 8.507059e+37  ;;  %v2619_v9 = vpop.f32.mrf.mxu1 }
 0x2c9   :  { %v5804_v23 = vadd.f32 %v8108_v25, %v5803_v56  ;;  %v10316_v29 = vadd.f32 1.0, %v8110_v57  ;;  %v5812_v50 = vor.u32 1.1754944e-38, %v5811_v21  ;;  %v3640_v24 = vmul.f32 0.010009766, %v3384_v11  ;;  %4499 = vadd.xlane.f32.xlu1 %v4498_v55  ;;  %vm1852_vm5 = vmpackc.low %vm10311_vm15, %vm10311_vm15 }
 0x2ca   :  { %v956_v15 = vunpack.c.l.bf16 %v823_v54  ;;  %v957_v1 = vunpack.c.l.bf16 %v824_v18  ;;  %v3385_v44 = vunpack.c.l.bf16 %v10318_v40  ;;  %v1979_v5 = vsel %vm1851_vm9, %v10272_v60, %v1723_v41 }
 0x2cb   :  { %v5808_v6 = vsel %vm5807_vm7, %v8108_v25, %v5804_v23  ;;  %8111 = vrcp.f32 %v10316_v29  ;;  %v2868_v25 = vpack.c.bf16 %v2617_v51, %v2617_v51  ;;  %v3768_v7 = vpack.c.bf16 %v3640_v24, %v3640_v24 }
 0x2cc   :  { %v5813_v31 = vsel %vm5810_vm3, %v5812_v50, %v5808_v6  ;;  %v1980_v35 = vsel %vm1852_vm5, %v10274_v2, %v1724_v13  ;;  %vm15682_vm14 = vcmask 786112   ;;  %v1085_v45 = vadd.f32 %v8693_v42, %v956_v15  ;;  %v609_v13 = vpop.f32.mrf.mxu3 }
 0x2cd   :  { %v7527_v53 = vperm.slane %v5813_v31, %v9596_v43  ;;  %v1086_v51 = vadd.f32 %v8693_v42, %v957_v1  ;;  %v2251_v28 = vunpack.c.l.b16 %v1979_v5  ;;  %v2252_v27 = vunpack.c.l.b16 %v1980_v35 }
 0x2ce   :  { %vm3512_vm6 = vcmp.ge.f32.partialorder %v3384_v11, 0.0  ;;  %v199_v3 = vpack.c.bf16 %v114_v34, %v113_v49  ;;  %v3641_v21 = vmul.f32 0.010009766, %v3385_v44  ;;  %v3001_v54 = vunpack.c.l.bf16 %v2868_v25 }
 0x2cf   :  { %v7528_v33 = vsel %vm15682_vm14, %v7527_v53, %v7526_v52  ;;  %vm3896_vm8 = vmpackc.low %vm3512_vm6, %vm3512_vm6  ;;  %v2348_v60 = vpack.c.b16 %v2252_v27, %v2251_v28  ;;  %v10346_v52 = vpack.c.bf16 %v1085_v45, %v1085_v45  ;;  %v10348_v48 = vpack.c.bf16 %v1086_v51, %v1086_v51 }
 0x2d0   :  { %v4024_v2 = vsel %vm3896_vm8, %v10290_v63, %v3768_v7  ;;  %7805 = vmatmul.msk.bf16.gmra.mxu3 %vm237_vm0, %v199_v3  ;;  %v5826_v11 = vand.u32 2147483648, %v10316_v29  ;;  %v3769_v26 = vpack.c.bf16 %v3641_v21, %v3641_v21  ;;  %v3130_v41 = vadd.f32 %v8781_v16, %v3001_v54  ;;  %v2622_v15 = vpop.f32.mrf.mxu1 }
 0x2d1   :  { %v8112_v14 = vpop.eup %8111  ;;  %2656 = vmatmul.bf16.gmra.mxu1 %v2348_v60  ;;  %v4153_v57 = vunpack.c.l.bf16 %v4024_v2  ;;  %v2869_v47 = vpack.c.bf16 %v2619_v9, %v2619_v9  ;;  %v5824_v55 = vand.u32 2147483647, %v10316_v29  ;;  %vm3513_vm12 = vcmp.ge.f32.partialorder %v3385_v44, 0.0 }
 0x2d2   :  { %v5816_v18 = vmul.f32 %v8112_v14, %v10316_v29  ;;  %vm5821_vm15 = vweird.f32 %v8112_v14  ;;  %vm5820_vm7 = vweird.f32 %v10316_v29  ;;  %vm3897_vm3 = vmpackc.low %vm3513_vm12, %vm3513_vm12  ;;  %v5827_v1 = vor.u32 1.1754944e-38, %v5826_v11  ;;  %v10360_v29 = vpop.xlane.xlu2 %4457 }
 0x2d3   :  { %v4284_v63 = vmul.f32 %v10041_v17, %v4153_v57  ;;  %v3002_v50 = vunpack.c.l.bf16 %v2869_v47  ;;  %vm5822_vm9 = vmor %vm5820_vm7, %vm5821_vm15  ;;  %v3258_v31 = vpack.c.bf16 %v3130_v41, %v3130_v41  ;;  %v4025_v25 = vsel %vm3897_vm3, %v10318_v40, %v3769_v26 }
 0x2d4   :  { %v5817_v56 = vsub.f32 1.0, %v5816_v18  ;;  %v1341_v49 = vunpack.c.l.bf16 %v10346_v52  ;;  %vm5825_vm5 = vcmp.eq.f32.partialorder %v5824_v55, 8.507059e+37  ;;  %v1342_v44 = vunpack.c.l.bf16 %v10348_v48  ;;  %v611_v60 = vpop.f32.mrf.mxu3  ;;  %v116_v55 = vld [vmem:[%s15465_s0 + $0x2b8] sm:$0xff] }
 0x2d5   :  { %v4501_v6 = vsel %vm4368_vm13, %v4284_v63, 0.0  ;;  %v3131_v53 = vadd.f32 %v8781_v16, %v3002_v50  ;;  %v4154_v5 = vunpack.c.l.bf16 %v4025_v25  ;;  %v825_v9 = vpack.c.bf16 %v10292_v8, %v10292_v8 }
 0x2d6   :  { %v5818_v23 = vmul.f32 %v8112_v14, %v5817_v56  ;;  %4502 = vadd.xlane.f32.xlu2 %v4501_v6  ;;  %v3386_v45 = vunpack.c.l.bf16 %v3258_v31  ;;  %v827_v28 = vpack.c.bf16 %v609_v13, %v609_v13  ;;  %v1597_v27 = vmul.f32 0.010009766, %v1341_v49  ;;  %v10372_v56 = vpop.xlane.xlu0 %4460 }
 0x2d7   :  { %v10365_v51 = vpack.c.bf16 %v3131_v53, %v3131_v53  ;;  %v4285_v40 = vmul.f32 %v10041_v17, %v4154_v5  ;;  %vm15683_vm14 = vcmask 851712   ;;  %v2870_v54 = vpack.c.bf16 %v2622_v15, %v2622_v15 }
 0x2d8   :  { %v5819_v24 = vadd.f32 %v8112_v14, %v5818_v23  ;;  %v958_v18 = vunpack.c.l.bf16 %v825_v9  ;;  %v3642_v2 = vmul.f32 0.010009766, %v3386_v45  ;;  %v960_v57 = vunpack.c.l.bf16 %v827_v28  ;;  %v115_v23 = vld [vmem:[%s15465_s0 + $0x2b0] sm:$0xff] }
 0x2d9   :  { %v4504_v21 = vsel %vm4368_vm13, %v4285_v40, 0.0  ;;  %v3387_v8 = vunpack.c.l.bf16 %v10365_v51  ;;  %v1725_v11 = vpack.c.bf16 %v1597_v27, %v1597_v27  ;;  %vm10375_vm6 = vcmp.ge.f32.partialorder %v1341_v49, 0.0 }
 0x2da   :  { %v5823_v34 = vsel %vm5822_vm9, %v8112_v14, %v5819_v24  ;;  %v1598_v14 = vmul.f32 0.010009766, %v1342_v44  ;;  %4505 = vadd.xlane.f32.xlu0 %v4504_v21  ;;  %v3003_v47 = vunpack.c.l.bf16 %v2870_v54  ;;  %v4467_v63 = vpop.xlane.xlu2 %4466  ;;  %v1087_v13 = vadd.f32 %v8693_v42, %v958_v18  ;;  %vm1853_vm15 = vmpackc.low %vm10375_vm6, %vm10375_vm6 }
 0x2db   :  { %v5828_v7 = vsel %vm5825_vm5, %v5827_v1, %v5823_v34  ;;  %v826_v50 = vpack.c.bf16 %v10325_v22, %v10325_v22  ;;  %vm1470_vm8 = vcmp.ge.f32.partialorder %v1342_v44, 0.0  ;;  %v3770_v24 = vpack.c.bf16 %v3642_v2, %v3642_v2 }
 0x2dc   :  { %v7529_v35 = vperm.slane %v5828_v7, %v9667_v38  ;;  %v1726_v26 = vpack.c.bf16 %v1598_v14, %v1598_v14  ;;  %v3643_v6 = vmul.f32 0.010009766, %v3387_v8  ;;  %v1089_v15 = vadd.f32 %v8693_v42, %v960_v57  ;;  %vm1854_vm12 = vmpackc.low %vm1470_vm8, %vm1470_vm8  ;;  %v614_v14 = vpop.f32.mrf.mxu3 }
 0x2dd   :  { %vm3514_vm7 = vcmp.ge.f32.partialorder %v3386_v45, 0.0  ;;  %v1981_v1 = vsel %vm1853_vm15, %v10346_v52, %v1725_v11  ;;  %v200_v25 = vpack.c.bf16 %v116_v55, %v115_v23  ;;  %v4787_v49 = vadd.f32 %v9036_v59, %v4467_v63 }
 0x2de   :  { %v10369_v3 = vsel %vm15683_vm14, %v7529_v35, %v7528_v33  ;;  %v2624_v33 = vpop.f32.mrf.mxu1  ;;  %v1982_v53 = vsel %vm1854_vm12, %v10348_v48, %v1726_v26  ;;  %v3132_v22 = vadd.f32 %v8781_v16, %v3003_v47  ;;  %v10396_v34 = vpack.c.bf16 %v1087_v13, %v1087_v13  ;;  %vm3898_vm3 = vmpackc.low %vm3514_vm7, %vm3514_vm7  ;;  %v4470_v28 = vpop.xlane.xlu0 %4469 }
 0x2df   :  { %15684 = vst [vmem:[#allocation14_spill] sm:$0xff] %v10369_v3  ;;  %v959_v44 = vunpack.c.l.bf16 %v826_v50  ;;  %v828_v7 = vpack.c.bf16 %v611_v60, %v611_v60  ;;  %v2253_v5 = vunpack.c.l.b16 %v1981_v1  ;;  %v2254_v35 = vunpack.c.l.b16 %v1982_v53 }
 0x2e0   :  { %7806 = vmatmul.msk.bf16.gmra.mxu3 %vm237_vm0, %v200_v25  ;;  %v4026_v9 = vsel %vm3898_vm3, %v3258_v31, %v3770_v24  ;;  %v7891_v45 = vmul.f32 -1.442695, %v4787_v49  ;;  %v3771_v52 = vpack.c.bf16 %v3643_v6, %v3643_v6  ;;  %v10399_v40 = vpack.c.bf16 %v1089_v15, %v1089_v15 }
 0x2e1   :  { %v4155_v48 = vunpack.c.l.bf16 %v4026_v9  ;;  %v2871_v27 = vpack.c.bf16 %v2624_v33, %v2624_v33  ;;  %v10401_v21 = vpack.c.bf16 %v3132_v22, %v3132_v22  ;;  %v2349_v54 = vpack.c.b16 %v2254_v35, %v2253_v5 }
 0x2e2   :  { %8113 = vpow2.f32 %v7891_v45  ;;  %v829_v18 = vpack.c.bf16 %v614_v14, %v614_v14  ;;  %vm3515_vm9 = vcmp.ge.f32.partialorder %v3387_v8, 0.0  ;;  %v4788_v57 = vadd.f32 %v9036_v59, %v4470_v28 }
 0x2e3   :  { %v4286_v60 = vmul.f32 %v10041_v17, %v4155_v48  ;;  %v3004_v2 = vunpack.c.l.bf16 %v2871_v27  ;;  %v1088_v11 = vadd.f32 %v8693_v42, %v959_v44  ;;  %v961_v26 = vunpack.c.l.bf16 %v828_v7  ;;  %2661 = vmatmul.bf16.vlgmr.msra.gmra.mxu2 %v2349_v54  ;;  %vm3899_vm5 = vmpackc.low %vm3515_vm9, %vm3515_vm9  ;;  %v10423_v7 = vpop.xlane.xlu1 %4463 }
 0x2e4   :  { %v1343_v41 = vunpack.c.l.bf16 %v10396_v34  ;;  %v962_v23 = vunpack.c.l.bf16 %v829_v18  ;;  %v1345_v55 = vunpack.c.l.bf16 %v10399_v40  ;;  %v4027_v8 = vsel %vm3899_vm5, %v10365_v51, %v3771_v52  ;;  %v616_v45 = vpop.f32.mrf.mxu3 }
 0x2e5   :  { %v4507_v33 = vsel %vm4368_vm13, %v4286_v60, 0.0  ;;  %v3133_v47 = vadd.f32 %v8781_v16, %v3004_v2  ;;  %v7892_v63 = vmul.f32 -1.442695, %v4788_v57  ;;  %v3388_v50 = vunpack.c.l.bf16 %v10401_v21 }
 0x2e6   :  { %v2627_v31 = vpop.f32.mrf.mxu1  ;;  %4508 = vadd.xlane.f32.xlu1 %v4507_v33  ;;  %v4156_v6 = vunpack.c.l.bf16 %v4027_v8  ;;  %v1216_v1 = vpack.c.bf16 %v1088_v11, %v1088_v11  ;;  %v1090_v53 = vadd.f32 %v8693_v42, %v961_v26  ;;  %v1599_v25 = vmul.f32 0.010009766, %v1343_v41 }
 0x2e7   :  { %v2872_v13 = vpack.c.bf16 %v2627_v31, %v2627_v31  ;;  %v10412_v24 = vpack.c.bf16 %v3133_v47, %v3133_v47  ;;  %8115 = vpow2.f32 %v7892_v63  ;;  %v1091_v22 = vadd.f32 %v8693_v42, %v962_v23 }
 0x2e8   :  { %v8114_v15 = vpop.eup %8113  ;;  %v4287_v44 = vmul.f32 %v10041_v17, %v4156_v6  ;;  %v10421_v51 = vmul.f32 0.010009766, %v1345_v55  ;;  %v3644_v35 = vmul.f32 0.010009766, %v3388_v50  ;;  %vm10427_vm14 = vcmp.ge.f32.partialorder %v1343_v41, 0.0 }
 0x2e9   :  { %v10415_v49 = vadd.f32 1.0, %v8114_v15  ;;  %v3005_v5 = vunpack.c.l.bf16 %v2872_v13  ;;  %v3389_v9 = vunpack.c.l.bf16 %v10412_v24  ;;  %v1344_v52 = vunpack.c.l.bf16 %v1216_v1  ;;  %vm1855_vm6 = vmpackc.low %vm10427_vm14, %vm10427_vm14 }
 0x2ea   :  { %v10431_v48 = vpack.c.bf16 %v1090_v53, %v1090_v53  ;;  %v4510_v17 = vsel %vm4368_vm13, %v4287_v44, 0.0  ;;  %v1727_v27 = vpack.c.bf16 %v1599_v25, %v1599_v25  ;;  %v10434_v14 = vpack.c.bf16 %v1091_v22, %v1091_v22  ;;  %v117_v53 = vld [vmem:[%s15465_s0 + $0x2c0] sm:$0xff] }
 0x2eb   :  { %8117 = vrcp.f32 %v10415_v49  ;;  %4511 = vadd.xlane.f32.xlu2 %v4510_v17  ;;  %v3134_v2 = vadd.f32 %v8781_v16, %v3005_v5  ;;  %v830_v57 = vpack.c.bf16 %v616_v45, %v616_v45  ;;  %v3772_v31 = vpack.c.bf16 %v3644_v35, %v3644_v35 }
 0x2ec   :  { %v5886_v11 = vand.u32 2147483648, %v10415_v49  ;;  %v10443_v26 = vmul.f32 0.010009766, %v3389_v9  ;;  %v1346_v33 = vunpack.c.l.bf16 %v10431_v48  ;;  %vm10448_vm8 = vcmp.ge.f32.partialorder %v1344_v52, 0.0 }
 0x2ed   :  { %v8116_v18 = vpop.eup %8115  ;;  %v1600_v23 = vmul.f32 0.010009766, %v1344_v52  ;;  %vm10452_vm15 = vcmp.ge.f32.partialorder %v3388_v50, 0.0  ;;  %v5884_v13 = vand.u32 2147483647, %v10415_v49  ;;  %v1347_v6 = vunpack.c.l.bf16 %v10434_v14  ;;  %v118_v50 = vld [vmem:[%s15465_s0 + $0x2c8] sm:$0xff]  ;;  %vm1856_vm7 = vmpackc.low %vm10448_vm8, %vm10448_vm8 }
 0x2ee   :  { %v2629_v54 = vpop.f32.mrf.mxu1  ;;  %v10445_v41 = vadd.f32 1.0, %v8116_v18  ;;  %v1983_v15 = vsel %vm1855_vm6, %v10396_v34, %v1727_v27  ;;  %vm5880_vm12 = vweird.f32 %v10415_v49  ;;  %v10471_v22 = vpack.c.bf16 %v3134_v2, %v3134_v2  ;;  %v4473_v34 = vpop.xlane.xlu1 %4472  ;;  %vm3900_vm9 = vmpackc.low %vm10452_vm15, %vm10452_vm15 }
 0x2ef   :  { %v963_v44 = vunpack.c.l.bf16 %v830_v57  ;;  %v5887_v5 = vor.u32 1.1754944e-38, %v5886_v11  ;;  %v3773_v35 = vpack.c.bf16 %v10443_v26, %v10443_v26  ;;  %v1728_v45 = vpack.c.bf16 %v1600_v23, %v1600_v23  ;;  %v619_v26 = vpop.f32.mrf.mxu3  ;;  %v4476_v23 = vpop.xlane.xlu2 %4475 }
 0x2f0   :  { %8119 = vrcp.f32 %v10445_v41  ;;  %v2255_v52 = vunpack.c.l.b16 %v1983_v15  ;;  %v4028_v17 = vsel %vm3900_vm9, %v10401_v21, %v3772_v31  ;;  %v201_v27 = vpack.c.bf16 %v118_v50, %v117_v53 }
 0x2f1   :  { %v10456_v63 = vpop.eup %8117  ;;  %vm10483_vm5 = vcmp.eq.f32.partialorder %v5884_v13, 8.507059e+37  ;;  %v1984_v2 = vsel %vm1856_vm7, %v1216_v1, %v1728_v45  ;;  %v4157_v57 = vunpack.c.l.bf16 %v4028_v17  ;;  %v4789_v11 = vadd.f32 %v9036_v59, %v4473_v34  ;;  %v10497_v1 = vld [vmem:[%s15470_s5] ss:$0 sm:$0xff] }
 0x2f2   :  { %v5876_v25 = vmul.f32 %v10456_v63, %v10415_v49  ;;  %vm5881_vm3 = vweird.f32 %v10456_v63  ;;  %v2873_v47 = vpack.c.bf16 %v2629_v54, %v2629_v54  ;;  %v2256_v60 = vunpack.c.l.b16 %v1984_v2  ;;  %7807 = vmatmul.msk.bf16.gmra.mxu3 %vm237_vm0, %v201_v27 }
 0x2f3   :  { %v831_v15 = vpack.c.bf16 %v619_v26, %v619_v26  ;;  %vm10490_vm14 = vcmp.ge.f32.partialorder %v3389_v9, 0.0  ;;  %v4288_v54 = vmul.f32 %v10497_v1, %v4157_v57  ;;  %v7893_v13 = vmul.f32 -1.442695, %v4789_v11  ;;  %vm10513_vm8 = vmor %vm5880_vm12, %vm5881_vm3 }
 0x2f4   :  { %v5877_v28 = vsub.f32 1.0, %v5876_v25  ;;  %v3006_v53 = vunpack.c.l.bf16 %v2873_v47  ;;  %v4790_v50 = vadd.f32 %v9036_v59, %v4476_v23  ;;  %v5899_v45 = vand.u32 2147483647, %v10445_v41  ;;  %vm3901_vm6 = vmpackc.low %vm10490_vm14, %vm10490_vm14 }
 0x2f5   :  { %v4513_v17 = vsel %vm4368_vm13, %v4288_v54, 0.0  ;;  %8121 = vpow2.f32 %v7893_v13  ;;  %v964_v2 = vunpack.c.l.bf16 %v831_v15  ;;  %vm5895_vm12 = vweird.f32 %v10445_v41 }
 0x2f6   :  { %v5878_v8 = vmul.f32 %v10456_v63, %v5877_v28  ;;  %v8120_v31 = vpop.eup %8119  ;;  %v2632_v25 = vpop.f32.mrf.mxu1  ;;  %v2350_v28 = vpack.c.b16 %v2256_v60, %v2255_v52  ;;  %v3135_v27 = vadd.f32 %v8781_v16, %v3006_v53  ;;  %v5901_v60 = vand.u32 2147483648, %v10445_v41  ;;  %4514 = vadd.xlane.f32.xlu0 %v4513_v17 }
 0x2f7   :  { %v5891_v9 = vmul.f32 %v8120_v31, %v10445_v41  ;;  %v4029_v52 = vsel %vm3901_vm6, %v10412_v24, %v3773_v35  ;;  %v7894_v47 = vmul.f32 -1.442695, %v4790_v50  ;;  %v1093_v49 = vadd.f32 %v8693_v42, %v964_v2 }
 0x2f8   :  { %v5879_v34 = vadd.f32 %v10456_v63, %v5878_v8  ;;  %2666 = vmatmul.bf16.gmra.mxu2 %v2350_v28  ;;  %v10522_v23 = vpack.c.bf16 %v3135_v27, %v3135_v27  ;;  %v4158_v8 = vunpack.c.l.bf16 %v4029_v52  ;;  %vm5896_vm15 = vweird.f32 %v8120_v31  ;;  %v621_v28 = vpop.f32.mrf.mxu3 }
 0x2f9   :  { %v5892_v11 = vsub.f32 1.0, %v5891_v9  ;;  %8123 = vpow2.f32 %v7894_v47  ;;  %v2874_v21 = vpack.c.bf16 %v2632_v25, %v2632_v25  ;;  %v3390_v54 = vunpack.c.l.bf16 %v10471_v22  ;;  %vm5897_vm3 = vmor %vm5895_vm12, %vm5896_vm15 }
 0x2fa   :  { %v5883_v26 = vsel %vm10513_vm8, %v10456_v63, %v5879_v34  ;;  %v1092_v24 = vadd.f32 %v8693_v42, %v963_v44  ;;  %v4289_v35 = vmul.f32 %v10497_v1, %v4158_v8  ;;  %vm5900_vm7 = vcmp.eq.f32.partialorder %v5899_v45, 8.507059e+37 }
 0x2fb   :  { %v5893_v15 = vmul.f32 %v8120_v31, %v5892_v11  ;;  %v5888_v63 = vsel %vm10483_vm5, %v5887_v5, %v5883_v26  ;;  %v3391_v53 = vunpack.c.l.bf16 %v10522_v23  ;;  %v8122_v50 = vpop.eup %8121  ;;  %v5902_v34 = vor.u32 1.1754944e-38, %v5901_v60  ;;  %v4479_v5 = vpop.xlane.xlu0 %4478 }
 0x2fc   :  { %v10532_v9 = vpack.c.bf16 %v1093_v49, %v1093_v49  ;;  %v4516_v41 = vsel %vm4368_vm13, %v4289_v35, 0.0  ;;  %v3007_v25 = vunpack.c.l.bf16 %v2874_v21  ;;  %v10535_v44 = vadd.f32 1.0, %v8122_v50  ;;  %v120_v50 = vld [vmem:[%s15465_s0 + $0x2d8] sm:$0xff] }
 0x2fd   :  { %v5894_v13 = vadd.f32 %v8120_v31, %v5893_v15  ;;  %4517 = vadd.xlane.f32.xlu1 %v4516_v41  ;;  %vm10539_vm9 = vcmp.ge.f32.partialorder %v1345_v55, 0.0  ;;  %v1602_v18 = vmul.f32 0.010009766, %v1346_v33  ;;  %v7537_v45 = vperm.slane %v5888_v63, %v9086_v4 }
 0x2fe   :  { %v3646_v2 = vmul.f32 0.010009766, %v3390_v54  ;;  %vm10548_vm5 = vcmp.ge.f32.partialorder %v1346_v33, 0.0  ;;  %v2634_v57 = vpop.f32.mrf.mxu1  ;;  %8125 = vrcp.f32 %v10535_v44  ;;  %v3647_v60 = vmul.f32 0.010009766, %v3391_v53  ;;  %vm1857_vm14 = vmpackc.low %vm10539_vm9, %vm10539_vm9 }
 0x2ff   :  { %v5898_v17 = vsel %vm5897_vm3, %v8120_v31, %v5894_v13  ;;  %v8124_v11 = vpop.eup %8123  ;;  %v832_v52 = vpack.c.bf16 %v621_v28, %v621_v28  ;;  %v15480_v47 = vunpack.c.l.bf16 %v10532_v9  ;;  %v10564_v33 = vmul.f32 0.010009766, %v1347_v6  ;;  %vm1858_vm6 = vmpackc.low %vm10548_vm5, %vm10548_vm5  ;;  %v119_v13 = vld [vmem:[%s15465_s0 + $0x2d0] sm:$0xff] }
 0x300   :  { %v5903_v27 = vsel %vm5900_vm7, %v5902_v34, %v5898_v17  ;;  %v10557_v26 = vadd.f32 1.0, %v8124_v11  ;;  %v3136_v8 = vadd.f32 %v8781_v16, %v3007_v25  ;;  %v1730_v15 = vpack.c.bf16 %v1602_v18, %v1602_v18 }
 0x301   :  { %v7538_v55 = vperm.slane %v5903_v27, %v9105_v19  ;;  %v3774_v21 = vpack.c.bf16 %v3646_v2, %v3646_v2  ;;  %v5914_v35 = vand.u32 2147483647, %v10535_v44  ;;  %v5916_v63 = vand.u32 2147483648, %v10535_v44 }
 0x302   :  { %8127 = vrcp.f32 %v10557_v26  ;;  %v10582_v34 = vpack.c.bf16 %v1092_v24, %v1092_v24  ;;  %v3775_v41 = vpack.c.bf16 %v3647_v60, %v3647_v60  ;;  %v10584_v25 = vunpack.c.l.bf16 %v832_v52 }
 0x303   :  { %v10567_v49 = vsel %vm7448_vm1, %v7538_v55, %v7537_v45  ;;  %v15703_v28 = vpack.c.bf16 %v10421_v51, %v10421_v51  ;;  %v10592_v18 = vmul.f32 0.010009766, %v15480_v47  ;;  %v1986_v45 = vsel %vm1858_vm6, %v10431_v48, %v1730_v15 }
 0x304   :  { %vm3518_vm8 = vcmp.ge.f32.partialorder %v3390_v54, 0.0  ;;  %v8126_v2 = vpop.eup %8125  ;;  %vm5910_vm15 = vweird.f32 %v10535_v44  ;;  %v10596_v24 = vpack.c.bf16 %v3136_v8, %v3136_v8  ;;  %v2258_v31 = vunpack.c.l.b16 %v1986_v45 }
 0x305   :  { %v1985_v17 = vsel %vm1857_vm14, %v10399_v40, %v15703_v28  ;;  %vm3902_vm12 = vmpackc.low %vm3518_vm8, %vm3518_vm8  ;;  %v202_v11 = vpack.c.bf16 %v120_v50, %v119_v13  ;;  %v5906_v51 = vmul.f32 %v8126_v2, %v10535_v44  ;;  %vm10599_vm7 = vcmp.eq.f32.partialorder %v5914_v35, 8.507059e+37  ;;  %v624_v28 = vpop.f32.mrf.mxu3 }
 0x306   :  { %v2257_v27 = vunpack.c.l.b16 %v1985_v17  ;;  %v5917_v55 = vor.u32 1.1754944e-38, %v5916_v63  ;;  %v4030_v60 = vsel %vm3902_vm12, %v10471_v22, %v3774_v21  ;;  %v4791_v48 = vadd.f32 %v9036_v59, %v4479_v5  ;;  %v2637_v63 = vpop.f32.mrf.mxu1 }
 0x307   :  { %v5929_v54 = vand.u32 2147483647, %v10557_v26  ;;  %v4159_v15 = vunpack.c.l.bf16 %v4030_v60  ;;  %7808 = vmatmul.msk.bf16.gmra.mxu3 %vm237_vm0, %v202_v11  ;;  %v2875_v8 = vpack.c.bf16 %v2634_v57, %v2634_v57  ;;  %v5907_v50 = vsub.f32 1.0, %v5906_v51  ;;  %v4482_v57 = vpop.xlane.xlu1 %4481 }
 0x308   :  { %v2351_v52 = vpack.c.b16 %v2258_v31, %v2257_v27  ;;  %v8128_v13 = vpop.eup %8127  ;;  %v5931_v35 = vand.u32 2147483648, %v10557_v26  ;;  %v7895_v17 = vmul.f32 -1.442695, %v4791_v48  ;;  %vm3519_vm3 = vcmp.ge.f32.partialorder %v3391_v53, 0.0 }
 0x309   :  { %v5921_v22 = vmul.f32 %v8128_v13, %v10557_v26  ;;  %v3392_v21 = vunpack.c.l.bf16 %v10596_v24  ;;  %v4290_v5 = vmul.f32 %v10497_v1, %v4159_v15  ;;  %v3008_v45 = vunpack.c.l.bf16 %v2875_v8  ;;  %vm3903_vm9 = vmpackc.low %vm3519_vm3, %vm3519_vm3 }
 0x30a   :  { %2671 = vmatmul.bf16.gmra.mxu2 %v2351_v52  ;;  %v5908_v27 = vmul.f32 %v8126_v2, %v5907_v50  ;;  %vm5911_vm5 = vweird.f32 %v8126_v2  ;;  %8129 = vpow2.f32 %v7895_v17  ;;  %v4031_v31 = vsel %vm3903_vm9, %v10522_v23, %v3775_v41 }
 0x30b   :  { %v5922_v11 = vsub.f32 1.0, %v5921_v22  ;;  %v4519_v51 = vsel %vm4368_vm13, %v4290_v5, 0.0  ;;  %v3137_v53 = vadd.f32 %v8781_v16, %v3008_v45  ;;  %v4160_v60 = vunpack.c.l.bf16 %v4031_v31  ;;  %vm5912_vm14 = vmor %vm5910_vm15, %vm5911_vm5 }
 0x30c   :  { %v5909_v48 = vadd.f32 %v8126_v2, %v5908_v27  ;;  %4520 = vadd.xlane.f32.xlu2 %v4519_v51  ;;  %v833_v47 = vpack.c.bf16 %v624_v28, %v624_v28  ;;  %v4792_v52 = vadd.f32 %v9036_v59, %v4482_v57  ;;  %v2876_v15 = vpack.c.bf16 %v2637_v63, %v2637_v63 }
 0x30d   :  { %v5923_v8 = vmul.f32 %v8128_v13, %v5922_v11  ;;  %vm5926_vm6 = vweird.f32 %v8128_v13  ;;  %v10619_v50 = vpack.c.bf16 %v3137_v53, %v3137_v53  ;;  %v4291_v23 = vmul.f32 %v10497_v1, %v4160_v60 }
 0x30e   :  { %v5913_v41 = vsel %vm5912_vm14, %v8126_v2, %v5909_v48  ;;  %vm5925_vm8 = vweird.f32 %v10557_v26  ;;  %v7896_v17 = vmul.f32 -1.442695, %v4792_v52  ;;  %v3009_v22 = vunpack.c.l.bf16 %v2876_v15  ;;  %v2639_v60 = vpop.f32.mrf.mxu1 }
 0x30f   :  { %v5918_v28 = vsel %vm10599_vm7, %v5917_v55, %v5913_v41  ;;  %v5924_v5 = vadd.f32 %v8128_v13, %v5923_v8  ;;  %v5932_v45 = vor.u32 1.1754944e-38, %v5931_v35  ;;  %v4522_v63 = vsel %vm4368_vm13, %v4291_v23, 0.0  ;;  %vm5927_vm15 = vmor %vm5925_vm8, %vm5926_vm6  ;;  %v626_v55 = vpop.f32.mrf.mxu3  ;;  %v122_v41 = vld [vmem:[%s15465_s0 + $0x2e8] sm:$0xff] }
 0x310   :  { %v8130_v44 = vpop.eup %8129  ;;  %v7540_v57 = vperm.slane %v5918_v28, %v9109_v20  ;;  %v3648_v27 = vmul.f32 0.010009766, %v3392_v21  ;;  %v966_v31 = vunpack.c.l.bf16 %v833_v47  ;;  %4523 = vadd.xlane.f32.xlu0 %v4522_v63  ;;  %8131 = vpow2.f32 %v7896_v17 }
 0x311   :  { %v5928_v26 = vsel %vm5927_vm15, %v8128_v13, %v5924_v5  ;;  %vm5930_vm12 = vcmp.eq.f32.partialorder %v5929_v54, 8.507059e+37  ;;  %v10629_v2 = vadd.f32 1.0, %v8130_v44  ;;  %v3393_v40 = vunpack.c.l.bf16 %v10619_v50 }
 0x312   :  { %v1348_v35 = vunpack.c.l.bf16 %v10582_v34  ;;  %v7541_v11 = vsel %vm15512_vm10, %v7540_v57, %v10567_v49  ;;  %v5933_v51 = vsel %vm5930_vm12, %v5932_v45, %v5928_v26  ;;  %v3138_v53 = vadd.f32 %v8781_v16, %v3009_v22 }
 0x313   :  { %v1731_v47 = vpack.c.bf16 %v10564_v33, %v10564_v33  ;;  %v7542_v13 = vperm.slane %v5933_v51, %v9152_v61  ;;  %8133 = vrcp.f32 %v10629_v2  ;;  %v1733_v54 = vpack.c.bf16 %v10592_v18, %v10592_v18  ;;  %v121_v33 = vld [vmem:[%s15465_s0 + $0x2e0] sm:$0xff] }
 0x314   :  { %v3776_v48 = vpack.c.bf16 %v3648_v27, %v3648_v27  ;;  %v1094_v52 = vadd.f32 %v8693_v42, %v10584_v25  ;;  %v1095_v49 = vadd.f32 %v8693_v42, %v966_v31  ;;  %v3649_v8 = vmul.f32 0.010009766, %v3393_v40 }
 0x315   :  { %v10646_v15 = vsel %vm15511_vm2, %v7542_v13, %v7541_v11  ;;  %v834_v23 = vpack.c.bf16 %v626_v55, %v626_v55  ;;  %vm1475_vm7 = vcmp.ge.f32.partialorder %v1347_v6, 0.0  ;;  %v5944_v25 = vand.u32 2147483647, %v10629_v2  ;;  %v4488_v13 = vpop.xlane.xlu0 %4487 }
 0x316   :  { %v8132_v17 = vpop.eup %8131  ;;  %v10657_v22 = vpack.c.bf16 %v3138_v53, %v3138_v53  ;;  %vm10659_vm3 = vcmp.ge.f32.partialorder %v1348_v35, 0.0  ;;  %v1604_v5 = vmul.f32 0.010009766, %v1348_v35  ;;  %vm1859_vm9 = vmpackc.low %vm1475_vm7, %vm1475_vm7  ;;  %v5946_v6 = vand.u32 2147483648, %v10629_v2 }
 0x317   :  { %v10664_v45 = vadd.f32 1.0, %v8132_v17  ;;  %vm1860_vm5 = vmpackc.low %vm10659_vm3, %vm10659_vm3  ;;  %v1987_v63 = vsel %vm1859_vm9, %v10434_v14, %v1731_v47  ;;  %vm10672_vm14 = vcmp.ge.f32.partialorder %v3392_v21, 0.0  ;;  %v10676_v57 = vpack.c.bf16 %v1094_v52, %v1094_v52  ;;  %v4485_v14 = vpop.xlane.xlu2 %4484 }
 0x318   :  { %v10678_v27 = vpack.c.bf16 %v1095_v49, %v1095_v49  ;;  %v1732_v31 = vpack.c.bf16 %v1604_v5, %v1604_v5  ;;  %v203_v26 = vpack.c.bf16 %v122_v41, %v121_v33  ;;  %vm5940_vm6 = vweird.f32 %v10629_v2  ;;  %vm3904_vm8 = vmpackc.low %vm10672_vm14, %vm10672_vm14  ;;  %v629_v33 = vpop.f32.mrf.mxu3  ;;  %v2642_v5 = vpop.f32.mrf.mxu1 }
 0x319   :  { %v8134_v55 = vpop.eup %8133  ;;  %8135 = vrcp.f32 %v10664_v45  ;;  %v967_v35 = vunpack.c.l.bf16 %v834_v23  ;;  %v2259_v11 = vunpack.c.l.b16 %v1987_v63  ;;  %v3777_v21 = vpack.c.bf16 %v3649_v8, %v3649_v8 }
 0x31a   :  { %v5936_v51 = vmul.f32 %v8134_v55, %v10629_v2  ;;  %v3394_v53 = vunpack.c.l.bf16 %v10657_v22  ;;  %v1988_v47 = vsel %vm1860_vm5, %v10582_v34, %v1732_v31  ;;  %7809 = vmatmul.msk.bf16.gmra.mxu3 %vm237_vm0, %v203_v26  ;;  %vm10694_vm15 = vcmp.eq.f32.partialorder %v5944_v25, 8.507059e+37 }
 0x31b   :  { %v5947_v49 = vor.u32 1.1754944e-38, %v5946_v6  ;;  %v2260_v8 = vunpack.c.l.b16 %v1988_v47  ;;  %v4032_v23 = vsel %vm3904_vm8, %v10596_v24, %v3776_v48  ;;  %v4793_v34 = vadd.f32 %v9036_v59, %v4485_v14 }
 0x31c   :  { %v5937_v41 = vsub.f32 1.0, %v5936_v51  ;;  %v4161_v17 = vunpack.c.l.bf16 %v4032_v23  ;;  %v2877_v28 = vpack.c.bf16 %v2639_v60, %v2639_v60  ;;  %vm5941_vm12 = vweird.f32 %v8134_v55 }
 0x31d   :  { %v2352_v63 = vpack.c.b16 %v2260_v8, %v2259_v11  ;;  %vm3521_vm7 = vcmp.ge.f32.partialorder %v3393_v40, 0.0  ;;  %v4794_v44 = vadd.f32 %v9036_v59, %v4488_v13  ;;  %v7897_v26 = vmul.f32 -1.442695, %v4793_v34  ;;  %vm5942_vm9 = vmor %vm5940_vm6, %vm5941_vm12 }
 0x31e   :  { %v5938_v25 = vmul.f32 %v8134_v55, %v5937_v41  ;;  %v4292_v31 = vmul.f32 %v10497_v1, %v4161_v17  ;;  %v3010_v6 = vunpack.c.l.bf16 %v2877_v28  ;;  %vm3905_vm3 = vmpackc.low %vm3521_vm7, %vm3521_vm7  ;;  %v835_v24 = vpack.c.bf16 %v629_v33, %v629_v33 }
 0x31f   :  { %v8136_v47 = vpop.eup %8135  ;;  %2676 = vmatmul.bf16.gmra.mxu2 %v2352_v63  ;;  %v4033_v48 = vsel %vm3905_vm3, %v10619_v50, %v3777_v21  ;;  %v7898_v51 = vmul.f32 -1.442695, %v4794_v44  ;;  %v2878_v14 = vpack.c.bf16 %v2642_v5, %v2642_v5  ;;  %v5959_v40 = vand.u32 2147483647, %v10664_v45 }
 0x320   :  { %v5939_v60 = vadd.f32 %v8134_v55, %v5938_v25  ;;  %v5951_v23 = vmul.f32 %v8136_v47, %v10664_v45  ;;  %v4525_v11 = vsel %vm4368_vm13, %v4292_v31, 0.0  ;;  %v5961_v13 = vand.u32 2147483648, %v10664_v45 }
 0x321   :  { %4526 = vadd.xlane.f32.xlu1 %v4525_v11  ;;  %8137 = vpow2.f32 %v7897_v26  ;;  %v3139_v8 = vadd.f32 %v8781_v16, %v3010_v6  ;;  %v4162_v50 = vunpack.c.l.bf16 %v4033_v48  ;;  %v3011_v41 = vunpack.c.l.bf16 %v2878_v14 }
 0x322   :  { %v5943_v21 = vsel %vm5942_vm9, %v8134_v55, %v5939_v60  ;;  %v5952_v33 = vsub.f32 1.0, %v5951_v23  ;;  %8139 = vpow2.f32 %v7898_v51  ;;  %v968_v28 = vunpack.c.l.bf16 %v835_v24 }
 0x323   :  { %v5948_v17 = vsel %vm10694_vm15, %v5947_v49, %v5943_v21  ;;  %v10713_v34 = vpack.c.bf16 %v3139_v8, %v3139_v8  ;;  %v4293_v2 = vmul.f32 %v10497_v1, %v4162_v50  ;;  %v1350_v5 = vunpack.c.l.bf16 %v10676_v57  ;;  %v631_v49 = vpop.f32.mrf.mxu3 }
 0x324   :  { %v7544_v63 = vperm.slane %v5948_v17, %v9281_v10  ;;  %v5953_v44 = vmul.f32 %v8136_v47, %v5952_v33  ;;  %vm5956_vm5 = vweird.f32 %v8136_v47  ;;  %v1351_v25 = vunpack.c.l.bf16 %v10678_v27  ;;  %v2644_v33 = vpop.f32.mrf.mxu1 }
 0x325   :  { %vm5955_vm14 = vweird.f32 %v10664_v45  ;;  %v1096_v55 = vadd.f32 %v8693_v42, %v967_v35  ;;  %v4528_v52 = vsel %vm4368_vm13, %v4293_v2, 0.0  ;;  %v3395_v6 = vunpack.c.l.bf16 %v10713_v34 }
 0x326   :  { %v7545_v31 = vsel %vm15510_vm11, %v7544_v63, %v10646_v15  ;;  %v5954_v26 = vadd.f32 %v8136_v47, %v5953_v44  ;;  %4529 = vadd.xlane.f32.xlu2 %v4528_v52  ;;  %v3140_v24 = vadd.f32 %v8781_v16, %v3011_v41  ;;  %vm5957_vm6 = vmor %vm5955_vm14, %vm5956_vm5  ;;  %vm5960_vm8 = vcmp.eq.f32.partialorder %v5959_v40, 8.507059e+37  ;;  %v123_v63 = vld [vmem:[%s15465_s0 + $0x2f0] sm:$0xff]  ;;  %v124_v44 = vld [vmem:[%s15465_s0 + $0x2f8] sm:$0xff] }
 0x327   :  { %v8138_v48 = vpop.eup %8137  ;;  %v5962_v51 = vor.u32 1.1754944e-38, %v5961_v13  ;;  %v3650_v45 = vmul.f32 0.010009766, %v3394_v53  ;;  %v1097_v35 = vadd.f32 %v8693_v42, %v968_v28  ;;  %v836_v15 = vpack.c.bf16 %v631_v49, %v631_v49 }
 0x328   :  { %v8140_v14 = vpop.eup %8139  ;;  %v5958_v60 = vsel %vm5957_vm6, %v8136_v47, %v5954_v26  ;;  %v10729_v23 = vadd.f32 1.0, %v8138_v48  ;;  %v15712_v11 = vunpack.c.l.bf16 %v10532_v9  ;;  %vm10739_vm12 = vcmp.ge.f32.partialorder %v1350_v5, 0.0 }
 0x329   :  { %v5963_v50 = vsel %vm5960_vm8, %v5962_v51, %v5958_v60  ;;  %v10737_v21 = vadd.f32 1.0, %v8140_v14  ;;  %v1606_v13 = vmul.f32 0.010009766, %v1350_v5  ;;  %v3651_v41 = vmul.f32 0.010009766, %v3395_v6  ;;  %vm1862_vm3 = vmpackc.low %vm10739_vm12, %vm10739_vm12 }
 0x32a   :  { %vm10733_vm15 = vcmp.ge.f32.partialorder %v15712_v11, 0.0  ;;  %v7546_v47 = vperm.slane %v5963_v50, %v9287_v12  ;;  %8141 = vrcp.f32 %v10729_v23  ;;  %v10747_v17 = vpack.c.bf16 %v3140_v24, %v3140_v24  ;;  %v4491_v24 = vpop.xlane.xlu1 %4490 }
 0x32b   :  { %8143 = vrcp.f32 %v10737_v21  ;;  %vm1861_vm7 = vmpackc.low %vm10733_vm15, %vm10733_vm15  ;;  %v10755_v28 = vmul.f32 0.010009766, %v1351_v25  ;;  %v3778_v5 = vpack.c.bf16 %v3650_v45, %v3650_v45  ;;  %v10769_v52 = vpack.c.bf16 %v1096_v55, %v1096_v55 }
 0x32c   :  { %v10758_v2 = vsel %vm15509_vm4, %v7546_v47, %v7545_v31  ;;  %v10771_v49 = vpack.c.bf16 %v1097_v35, %v1097_v35  ;;  %v10773_v26 = vunpack.c.l.bf16 %v836_v15  ;;  %v1734_v31 = vpack.c.bf16 %v1606_v13, %v1606_v13  ;;  %v4494_v47 = vpop.xlane.xlu2 %4493 }
 0x32d   :  { %v3779_v48 = vpack.c.bf16 %v3651_v41, %v3651_v41  ;;  %v3396_v51 = vunpack.c.l.bf16 %v10747_v17  ;;  %v1989_v45 = vsel %vm1861_vm7, %v10532_v9, %v1733_v54  ;;  %vm3522_vm9 = vcmp.ge.f32.partialorder %v3394_v53, 0.0 }
 0x32e   :  { %vm5970_vm5 = vweird.f32 %v10729_v23  ;;  %v5974_v55 = vand.u32 2147483647, %v10729_v23  ;;  %v1990_v35 = vsel %vm1862_vm3, %v10676_v57, %v1734_v31  ;;  %v2261_v14 = vunpack.c.l.b16 %v1989_v45  ;;  %vm3906_vm14 = vmpackc.low %vm3522_vm9, %vm3522_vm9  ;;  %v634_v57 = vpop.f32.mrf.mxu3 }
 0x32f   :  { %v204_v60 = vpack.c.bf16 %v124_v44, %v123_v63  ;;  %v2262_v11 = vunpack.c.l.b16 %v1990_v35  ;;  %v4034_v8 = vsel %vm3906_vm14, %v10657_v22, %v3778_v5  ;;  %v4795_v18 = vadd.f32 %v9036_v59, %v4491_v24  ;;  %v2647_v24 = vpop.f32.mrf.mxu1 }
 0x330   :  { %v8142_v15 = vpop.eup %8141  ;;  %v2879_v50 = vpack.c.bf16 %v2644_v33, %v2644_v33  ;;  %v5976_v53 = vand.u32 2147483648, %v10729_v23  ;;  %v5989_v40 = vand.u32 2147483647, %v10737_v21  ;;  %v4163_v13 = vunpack.c.l.bf16 %v4034_v8 }
 0x331   :  { %v8144_v9 = vpop.eup %8143  ;;  %v5966_v54 = vmul.f32 %v8142_v15, %v10729_v23  ;;  %7810 = vmatmul.msk.bf16.gmra.mxu3 %vm237_vm0, %v204_v60  ;;  %v5991_v63 = vand.u32 2147483648, %v10737_v21  ;;  %v2353_v22 = vpack.c.b16 %v2262_v11, %v2261_v14  ;;  %v7899_v5 = vmul.f32 -1.442695, %v4795_v18 }
 0x332   :  { %v5981_v41 = vmul.f32 %v8144_v9, %v10737_v21  ;;  %vm5971_vm6 = vweird.f32 %v8142_v15  ;;  %v4294_v33 = vmul.f32 %v10497_v1, %v4163_v13  ;;  %v3012_v31 = vunpack.c.l.bf16 %v2879_v50 }
 0x333   :  { %v5967_v44 = vsub.f32 1.0, %v5966_v54  ;;  %2681 = vmatmul.bf16.gmra.mxu2 %v2353_v22  ;;  %8145 = vpow2.f32 %v7899_v5  ;;  %vm3523_vm8 = vcmp.ge.f32.partialorder %v3395_v6, 0.0  ;;  %v4796_v35 = vadd.f32 %v9036_v59, %v4494_v47  ;;  %vm5972_vm3 = vmor %vm5970_vm5, %vm5971_vm6 }
 0x334   :  { %v5982_v45 = vsub.f32 1.0, %v5981_v41  ;;  %vm5986_vm15 = vweird.f32 %v8144_v9  ;;  %v4531_v8 = vsel %vm4368_vm13, %v4294_v33, 0.0  ;;  %v3141_v14 = vadd.f32 %v8781_v16, %v3012_v31  ;;  %vm3907_vm12 = vmpackc.low %vm3523_vm8, %vm3523_vm8 }
 0x335   :  { %v5968_v60 = vmul.f32 %v8142_v15, %v5967_v44  ;;  %4532 = vadd.xlane.f32.xlu0 %v4531_v8  ;;  %v4035_v18 = vsel %vm3907_vm12, %v10713_v34, %v3779_v48  ;;  %v7900_v50 = vmul.f32 -1.442695, %v4796_v35  ;;  %v2880_v54 = vpack.c.bf16 %v2647_v24, %v2647_v24 }
 0x336   :  { %v5983_v11 = vmul.f32 %v8144_v9, %v5982_v45  ;;  %vm5985_vm7 = vweird.f32 %v10737_v21  ;;  %v10801_v41 = vpack.c.bf16 %v3141_v14, %v3141_v14  ;;  %v4164_v6 = vunpack.c.l.bf16 %v4035_v18 }
 0x337   :  { %v5969_v13 = vadd.f32 %v8142_v15, %v5968_v60  ;;  %vm5975_vm9 = vcmp.eq.f32.partialorder %v5974_v55, 8.507059e+37  ;;  %v5977_v47 = vor.u32 1.1754944e-38, %v5976_v53  ;;  %8147 = vpow2.f32 %v7900_v50  ;;  %vm5987_vm14 = vmor %vm5985_vm7, %vm5986_vm15  ;;  %v10812_v53 = vpop.f32.mrf.mxu3 }
 0x338   :  { %v5984_v22 = vadd.f32 %v8144_v9, %v5983_v11  ;;  %vm5990_vm8 = vcmp.eq.f32.partialorder %v5989_v40, 8.507059e+37  ;;  %v5992_v34 = vor.u32 1.1754944e-38, %v5991_v63  ;;  %v4295_v48 = vmul.f32 %v10497_v1, %v4164_v6 }
 0x339   :  { %v5973_v5 = vsel %vm5972_vm3, %v8142_v15, %v5969_v13  ;;  %v8146_v44 = vpop.eup %8145  ;;  %v837_v31 = vpack.c.bf16 %v634_v57, %v634_v57  ;;  %v3013_v24 = vunpack.c.l.bf16 %v2880_v54  ;;  %v3397_v55 = vunpack.c.l.bf16 %v10801_v41 }
 0x33a   :  { %v5978_v21 = vsel %vm5975_vm9, %v5977_v47, %v5973_v5  ;;  %v5988_v33 = vsel %vm5987_vm14, %v8144_v9, %v5984_v22  ;;  %v10809_v35 = vadd.f32 1.0, %v8146_v44  ;;  %v1352_v15 = vunpack.c.l.bf16 %v10769_v52  ;;  %v125_v44 = vld [vmem:[%s15465_s0 + $0x300] sm:$0xff] }
 0x33b   :  { %v7548_v45 = vperm.slane %v5978_v21, %v9377_v46  ;;  %v5993_v23 = vsel %vm5990_vm8, %v5992_v34, %v5988_v33  ;;  %v4534_v63 = vsel %vm4368_vm13, %v4295_v48, 0.0  ;;  %vm15717_vm5 = vcmask 458112   ;;  %v126_v21 = vld [vmem:[%s15465_s0 + $0x308] sm:$0xff]  ;;  %v4497_v33 = vpop.xlane.xlu0 %4496 }
 0x33c   :  { %v7550_v40 = vperm.slane %v5993_v23, %v9439_v37  ;;  %v15481_v57 = vunpack.c.l.bf16 %v10771_v49  ;;  %v3652_v60 = vmul.f32 0.010009766, %v3396_v51  ;;  %8149 = vrcp.f32 %v10809_v35  ;;  %4535 = vadd.xlane.f32.xlu1 %v4534_v63 }
 0x33d   :  { %v7549_v9 = vsel %vm15717_vm5, %v7548_v45, %v10758_v2  ;;  %v8148_v8 = vpop.eup %8147  ;;  %v1735_v14 = vpack.c.bf16 %v10755_v28, %v10755_v28  ;;  %vm15718_vm6 = vcmask 523712   ;;  %v1098_v18 = vadd.f32 %v8693_v42, %v10773_v26 }
 0x33e   :  { %v10826_v11 = vsel %vm15718_vm6, %v7550_v40, %v7549_v9  ;;  %v970_v50 = vunpack.c.l.bf16 %v837_v31  ;;  %v3653_v2 = vmul.f32 0.010009766, %v3397_v55  ;;  %v10830_v54 = vadd.f32 1.0, %v8148_v8 }
 0x33f   :  { %v3142_v13 = vadd.f32 %v8781_v16, %v3013_v24  ;;  %v6004_v6 = vand.u32 2147483647, %v10809_v35  ;;  %vm1479_vm15 = vcmp.ge.f32.partialorder %v1351_v25, 0.0  ;;  %vm10836_vm12 = vcmp.ge.f32.partialorder %v1352_v15, 0.0 }
 0x340   :  { %v1608_v28 = vmul.f32 0.010009766, %v1352_v15  ;;  %v10842_v22 = vmul.f32 0.010009766, %v15481_v57  ;;  %v3780_v26 = vpack.c.bf16 %v3652_v60, %v3652_v60  ;;  %8151 = vrcp.f32 %v10830_v54  ;;  %vm1863_vm7 = vmpackc.low %vm1479_vm15, %vm1479_vm15 }
 0x341   :  { %v10845_v5 = vpack.c.bf16 %v1098_v18, %v1098_v18  ;;  %v1099_v34 = vadd.f32 %v8693_v42, %v970_v50  ;;  %vm1864_vm3 = vmpackc.low %vm10836_vm12, %vm10836_vm12  ;;  %v1991_v25 = vsel %vm1863_vm7, %v10678_v27, %v1735_v14  ;;  %vm6000_vm9 = vweird.f32 %v10809_v35  ;;  %v2649_v27 = vpop.f32.mrf.mxu1  ;;  %v10877_v14 = vpop.f32.mrf.mxu3 }
 0x342   :  { %v1736_v48 = vpack.c.bf16 %v1608_v28, %v1608_v28  ;;  %v8150_v31 = vpop.eup %8149  ;;  %v6006_v24 = vand.u32 2147483648, %v10809_v35  ;;  %v10860_v45 = vpack.c.bf16 %v3142_v13, %v3142_v13  ;;  %vm3524_vm14 = vcmp.ge.f32.partialorder %v3396_v51, 0.0  ;;  %v4500_v18 = vpop.xlane.xlu1 %4499 }
 0x343   :  { %v5996_v23 = vmul.f32 %v8150_v31, %v10809_v35  ;;  %vm10865_vm8 = vcmp.eq.f32.partialorder %v6004_v6, 8.507059e+37  ;;  %v3781_v40 = vpack.c.bf16 %v3653_v2, %v3653_v2  ;;  %v2263_v63 = vunpack.c.l.b16 %v1991_v25  ;;  %vm3908_vm5 = vmpackc.low %vm3524_vm14, %vm3524_vm14 }
 0x344   :  { %v1992_v9 = vsel %vm1864_vm3, %v10769_v52, %v1736_v48  ;;  %v4036_v60 = vsel %vm3908_vm5, %v10747_v17, %v3780_v26  ;;  %v205_v51 = vpack.c.bf16 %v126_v21, %v125_v44  ;;  %v4797_v8 = vadd.f32 %v9036_v59, %v4497_v33 }
 0x345   :  { %v5997_v50 = vsub.f32 1.0, %v5996_v23  ;;  %v2264_v13 = vunpack.c.l.b16 %v1992_v9  ;;  %v4165_v2 = vunpack.c.l.bf16 %v4036_v60  ;;  %v2881_v6 = vpack.c.bf16 %v2649_v27, %v2649_v27 }
 0x346   :  { %v8152_v28 = vpop.eup %8151  ;;  %v6007_v25 = vor.u32 1.1754944e-38, %v6006_v24  ;;  %7811 = vmatmul.msk.bf16.gmra.mxu3 %vm237_vm0, %v205_v51  ;;  %v7901_v57 = vmul.f32 -1.442695, %v4797_v8  ;;  %vm3525_vm6 = vcmp.ge.f32.partialorder %v3397_v55, 0.0  ;;  %v4798_v52 = vadd.f32 %v9036_v59, %v4500_v18 }
 0x347   :  { %v5998_v47 = vmul.f32 %v8150_v31, %v5997_v50  ;;  %vm6001_vm15 = vweird.f32 %v8150_v31  ;;  %v6011_v17 = vmul.f32 %v8152_v28, %v10830_v54  ;;  %v2354_v26 = vpack.c.b16 %v2264_v13, %v2263_v63  ;;  %vm3909_vm12 = vmpackc.low %vm3525_vm6, %vm3525_vm6 }
 0x348   :  { %v6019_v48 = vand.u32 2147483647, %v10830_v54  ;;  %v4296_v44 = vmul.f32 %v10497_v1, %v4165_v2  ;;  %8153 = vpow2.f32 %v7901_v57  ;;  %v3014_v21 = vunpack.c.l.bf16 %v2881_v6  ;;  %vm6002_vm7 = vmor %vm6000_vm9, %vm6001_vm15 }
 0x349   :  { %v5999_v33 = vadd.f32 %v8150_v31, %v5998_v47  ;;  %v6012_v24 = vsub.f32 1.0, %v6011_v17  ;;  %2686 = vmatmul.bf16.gmra.mxu2 %v2354_v26  ;;  %v4037_v27 = vsel %vm3909_vm12, %v10801_v41, %v3781_v40  ;;  %v7902_v55 = vmul.f32 -1.442695, %v4798_v52  ;;  %v2652_v18 = vpop.f32.mrf.mxu1 }
 0x34a   :  { %v6021_v23 = vand.u32 2147483648, %v10830_v54  ;;  %v4537_v63 = vsel %vm4368_vm13, %v4296_v44, 0.0  ;;  %v3143_v9 = vadd.f32 %v8781_v16, %v3014_v21  ;;  %v4166_v60 = vunpack.c.l.bf16 %v4037_v27 }
 0x34b   :  { %v6003_v51 = vsel %vm6002_vm7, %v8150_v31, %v5999_v33  ;;  %v6013_v57 = vmul.f32 %v8152_v28, %v6012_v24  ;;  %vm6016_vm3 = vweird.f32 %v8152_v28  ;;  %4538 = vadd.xlane.f32.xlu2 %v4537_v63  ;;  %8155 = vpow2.f32 %v7902_v55 }
 0x34c   :  { %v6008_v8 = vsel %vm10865_vm8, %v6007_v25, %v6003_v51  ;;  %v10892_v41 = vpack.c.bf16 %v1099_v34, %v1099_v34  ;;  %v3398_v35 = vunpack.c.l.bf16 %v10860_v45  ;;  %v4297_v40 = vmul.f32 %v10497_v1, %v4166_v60  ;;  %v10903_v25 = vpop.f32.mrf.mxu3 }
 0x34d   :  { %v7552_v50 = vperm.slane %v6008_v8, %v9458_v36  ;;  %v6014_v13 = vadd.f32 %v8152_v28, %v6013_v57  ;;  %vm6015_vm9 = vweird.f32 %v10830_v54  ;;  %v838_v31 = vpack.c.bf16 %v10812_v53, %v10812_v53 }
 0x34e   :  { %v8154_v2 = vpop.eup %8153  ;;  %vm6017_vm14 = vmor %vm6015_vm9, %vm6016_vm3  ;;  %vm6020_vm5 = vcmp.eq.f32.partialorder %v6019_v48, 8.507059e+37  ;;  %v6022_v15 = vor.u32 1.1754944e-38, %v6021_v23  ;;  %v10900_v6 = vpack.c.bf16 %v3143_v9, %v3143_v9  ;;  %v4540_v34 = vsel %vm4368_vm13, %v4297_v40, 0.0  ;;  %v127_v40 = vld [vmem:[%s15465_s0 + $0x310] sm:$0xff] }
 0x34f   :  { %vm15723_vm8 = vcmask 589312   ;;  %v6018_v47 = vsel %vm6017_vm14, %v8152_v28, %v6014_v13  ;;  %v10907_v17 = vadd.f32 1.0, %v8154_v2  ;;  %4541 = vadd.xlane.f32.xlu0 %v4540_v34  ;;  %v2882_v54 = vpack.c.bf16 %v2652_v18, %v2652_v18  ;;  %v128_v18 = vld [vmem:[%s15465_s0 + $0x318] sm:$0xff] }
 0x350   :  { %v7553_v52 = vsel %vm15723_vm8, %v7552_v50, %v10826_v11  ;;  %v6023_v26 = vsel %vm6020_vm5, %v6022_v15, %v6018_v47  ;;  %v3654_v53 = vmul.f32 0.010009766, %v3398_v35  ;;  %v15724_v44 = vunpack.c.l.bf16 %v10771_v49 }
 0x351   :  { %v8156_v21 = vpop.eup %8155  ;;  %v7554_v33 = vperm.slane %v6023_v26, %v9468_v30  ;;  %8157 = vrcp.f32 %v10907_v17  ;;  %v1737_v11 = vpack.c.bf16 %v10842_v22, %v10842_v22  ;;  %v1354_v28 = vunpack.c.l.bf16 %v10845_v5 }
 0x352   :  { %vm10911_vm6 = vcmp.ge.f32.partialorder %v15724_v44, 0.0  ;;  %v3399_v24 = vunpack.c.l.bf16 %v10900_v6  ;;  %v10921_v27 = vadd.f32 1.0, %v8156_v21  ;;  %v1355_v55 = vunpack.c.l.bf16 %v10892_v41 }
 0x353   :  { %vm15727_vm15 = vcmask 654912   ;;  %v971_v63 = vunpack.c.l.bf16 %v838_v31  ;;  %v3015_v9 = vunpack.c.l.bf16 %v2882_v54  ;;  %vm1865_vm12 = vmpackc.low %vm10911_vm6, %vm10911_vm6  ;;  %v3782_v60 = vpack.c.bf16 %v3654_v53, %v3654_v53 }
 0x354   :  { %v10925_v23 = vsel %vm15727_vm15, %v7554_v33, %v7553_v52  ;;  %8159 = vrcp.f32 %v10921_v27  ;;  %vm10931_vm7 = vcmp.ge.f32.partialorder %v1354_v28, 0.0  ;;  %v3655_v51 = vmul.f32 0.010009766, %v3399_v24  ;;  %v10955_v47 = vpop.f32.mrf.mxu3 }
 0x355   :  { %v1610_v57 = vmul.f32 0.010009766, %v1354_v28  ;;  %vm1866_vm3 = vmpackc.low %vm10931_vm7, %vm10931_vm7  ;;  %v1993_v8 = vsel %vm1865_vm12, %v10771_v49, %v1737_v11  ;;  %vm3526_vm9 = vcmp.ge.f32.partialorder %v3398_v35, 0.0  ;;  %v10947_v13 = vmul.f32 0.010009766, %v1355_v55  ;;  %v2654_v35 = vpop.f32.mrf.mxu1 }
 0x356   :  { %v1100_v31 = vadd.f32 %v8693_v42, %v971_v63  ;;  %vm6030_vm14 = vweird.f32 %v10907_v17  ;;  %v3144_v49 = vadd.f32 %v8781_v16, %v3015_v9  ;;  %vm3910_vm5 = vmpackc.low %vm3526_vm9, %vm3526_vm9  ;;  %v6036_v15 = vand.u32 2147483648, %v10907_v17 }
 0x357   :  { %v8158_v50 = vpop.eup %8157  ;;  %v1738_v34 = vpack.c.bf16 %v1610_v57, %v1610_v57  ;;  %v4038_v52 = vsel %vm3910_vm5, %v10860_v45, %v3782_v60  ;;  %v6034_v54 = vand.u32 2147483647, %v10907_v17  ;;  %v2265_v26 = vunpack.c.l.b16 %v1993_v8 }
 0x358   :  { %v6026_v2 = vmul.f32 %v8158_v50, %v10907_v17  ;;  %v4167_v53 = vunpack.c.l.bf16 %v4038_v52  ;;  %v206_v44 = vpack.c.bf16 %v128_v18, %v127_v40  ;;  %v3783_v33 = vpack.c.bf16 %v3655_v51, %v3655_v51 }
 0x359   :  { %v1994_v11 = vsel %vm1866_vm3, %v10845_v5, %v1738_v34  ;;  %v2883_v28 = vpack.c.bf16 %v2654_v35, %v2654_v35  ;;  %v10965_v63 = vpack.c.bf16 %v3144_v49, %v3144_v49  ;;  %vm6031_vm8 = vweird.f32 %v8158_v50 }
 0x35a   :  { %v8160_v48 = vpop.eup %8159  ;;  %v6027_v21 = vsub.f32 1.0, %v6026_v2  ;;  %v2266_v9 = vunpack.c.l.b16 %v1994_v11  ;;  %v4298_v60 = vmul.f32 %v10497_v1, %v4167_v53  ;;  %7812 = vmatmul.msk.bf16.gmra.mxu3 %vm237_vm0, %v206_v44  ;;  %v6037_v51 = vor.u32 1.1754944e-38, %v6036_v15  ;;  %vm6032_vm12 = vmor %vm6030_vm14, %vm6031_vm8 }
 0x35b   :  { %v6041_v45 = vmul.f32 %v8160_v48, %v10921_v27  ;;  %v3016_v8 = vunpack.c.l.bf16 %v2883_v28  ;;  %vm3527_vm6 = vcmp.ge.f32.partialorder %v3399_v24, 0.0  ;;  %v6049_v35 = vand.u32 2147483647, %v10921_v27 }
 0x35c   :  { %v6028_v57 = vmul.f32 %v8158_v50, %v6027_v21  ;;  %v2355_v18 = vpack.c.b16 %v2266_v9, %v2265_v26  ;;  %v4543_v22 = vsel %vm4368_vm13, %v4298_v60, 0.0  ;;  %v6051_v49 = vand.u32 2147483648, %v10921_v27  ;;  %vm3911_vm15 = vmpackc.low %vm3527_vm6, %vm3527_vm6 }
 0x35d   :  { %v6042_v40 = vsub.f32 1.0, %v6041_v45  ;;  %4544 = vadd.xlane.f32.xlu1 %v4543_v22  ;;  %v3145_v2 = vadd.f32 %v8781_v16, %v3016_v8  ;;  %vm6046_vm7 = vweird.f32 %v8160_v48  ;;  %v3400_v15 = vunpack.c.l.bf16 %v10965_v63 }
 0x35e   :  { %v6029_v5 = vadd.f32 %v8158_v50, %v6028_v57  ;;  %2691 = vmatmul.bf16.gmra.mxu2 %v2355_v18  ;;  %v4039_v34 = vsel %vm3911_vm15, %v10900_v6, %v3783_v33  ;;  %vm6035_vm3 = vcmp.eq.f32.partialorder %v6034_v54, 8.507059e+37  ;;  %v839_v52 = vpack.c.bf16 %v10877_v14, %v10877_v14  ;;  %v10984_v6 = vld [vmem:[%s15470_s5] ss:$0 sm:$0xff]  ;;  %v2657_v54 = vpop.f32.mrf.mxu1  ;;  %v10987_v14 = vpop.f32.mrf.mxu3 }
 0x35f   :  { %v6043_v1 = vmul.f32 %v8160_v48, %v6042_v40  ;;  %v4168_v26 = vunpack.c.l.bf16 %v4039_v34  ;;  %v1228_v53 = vpack.c.bf16 %v1100_v31, %v1100_v31  ;;  %vm6045_vm9 = vweird.f32 %v10921_v27 }
 0x360   :  { %v6033_v24 = vsel %vm6032_vm12, %v8158_v50, %v6029_v5  ;;  %vm6047_vm14 = vmor %vm6045_vm9, %vm6046_vm7  ;;  %v6052_v11 = vor.u32 1.1754944e-38, %v6051_v49  ;;  %v3273_v28 = vpack.c.bf16 %v3145_v2, %v3145_v2  ;;  %vm6050_vm5 = vcmp.eq.f32.partialorder %v6049_v35, 8.507059e+37 }
 0x361   :  { %v6038_v44 = vsel %vm6035_vm3, %v6037_v51, %v6033_v24  ;;  %v6044_v21 = vadd.f32 %v8160_v48, %v6043_v1  ;;  %v4299_v50 = vmul.f32 %v10984_v6, %v4168_v26  ;;  %v3656_v33 = vmul.f32 0.010009766, %v3400_v15 }
 0x362   :  { %v7556_v17 = vperm.slane %v6038_v44, %v9558_v32  ;;  %vm15730_vm8 = vcmask 720512   ;;  %v972_v45 = vunpack.c.l.bf16 %v839_v52  ;;  %v840_v60 = vpack.c.bf16 %v10903_v25, %v10903_v25 }
 0x363   :  { %v6048_v31 = vsel %vm6047_vm14, %v8160_v48, %v6044_v21  ;;  %v1356_v57 = vunpack.c.l.bf16 %v1228_v53  ;;  %v4546_v8 = vsel %vm4368_vm13, %v4299_v50, 0.0  ;;  %v1739_v40 = vpack.c.bf16 %v10947_v13, %v10947_v13  ;;  %v129_v13 = vld [vmem:[%s15465_s0 + $0x320] sm:$0xff] }
 0x364   :  { %v7557_v27 = vsel %vm15730_vm8, %v7556_v17, %v10925_v23  ;;  %v6053_v9 = vsel %vm6050_vm5, %v6052_v11, %v6048_v31  ;;  %v3401_v18 = vunpack.c.l.bf16 %v3273_v28  ;;  %4547 = vadd.xlane.f32.xlu2 %v4546_v8  ;;  %v2884_v48 = vpack.c.bf16 %v2657_v54, %v2657_v54 }
 0x365   :  { %v7558_v51 = vperm.slane %v6053_v9, %v9596_v43  ;;  %vm1483_vm6 = vcmp.ge.f32.partialorder %v1355_v55, 0.0  ;;  %vm15731_vm15 = vcmask 786112   ;;  %v3784_v22 = vpack.c.bf16 %v3656_v33, %v3656_v33  ;;  %v130_v55 = vld [vmem:[%s15465_s0 + $0x328] sm:$0xff] }
 0x366   :  { %vm1867_vm12 = vmpackc.low %vm1483_vm6, %vm1483_vm6  ;;  %v1101_v25 = vadd.f32 %v8693_v42, %v972_v45  ;;  %v973_v5 = vunpack.c.l.bf16 %v840_v60  ;;  %vm11003_vm7 = vcmp.ge.f32.partialorder %v1356_v57, 0.0  ;;  %v1612_v49 = vmul.f32 0.010009766, %v1356_v57  ;;  %v2659_v17 = vpop.f32.mrf.mxu1  ;;  %v11019_v11 = vpop.f32.mrf.mxu3 }
 0x367   :  { %v11000_v23 = vsel %vm15731_vm15, %v7558_v51, %v7557_v27  ;;  %vm1868_vm3 = vmpackc.low %vm11003_vm7, %vm11003_vm7  ;;  %vm3528_vm9 = vcmp.ge.f32.partialorder %v3400_v15, 0.0  ;;  %v3657_v2 = vmul.f32 0.010009766, %v3401_v18  ;;  %v3017_v1 = vunpack.c.l.bf16 %v2884_v48 }
 0x368   :  { %15732 = vst [vmem:[#allocation15_spill] sm:$0xff] %v11000_v23  ;;  %v1995_v34 = vsel %vm1867_vm12, %v10892_v41, %v1739_v40  ;;  %vm3912_vm14 = vmpackc.low %vm3528_vm9, %vm3528_vm9  ;;  %v1740_v24 = vpack.c.bf16 %v1612_v49, %v1612_v49  ;;  %v207_v26 = vpack.c.bf16 %v130_v55, %v129_v13  ;;  %v1229_v44 = vpack.c.bf16 %v1101_v25, %v1101_v25  ;;  %v11028_v13 = vpop.xlane.xlu0 %4505 }
 0x369   :  { %v4040_v52 = vsel %vm3912_vm14, %v10965_v63, %v3784_v22  ;;  %v1102_v21 = vadd.f32 %v8693_v42, %v973_v5  ;;  %v2267_v54 = vunpack.c.l.b16 %v1995_v34  ;;  %v3785_v15 = vpack.c.bf16 %v3657_v2, %v3657_v2 }
 0x36a   :  { %v1996_v50 = vsel %vm1868_vm3, %v1228_v53, %v1740_v24  ;;  %v4169_v31 = vunpack.c.l.bf16 %v4040_v52  ;;  %7813 = vmatmul.msk.bf16.gmra.mxu3 %vm237_vm0, %v207_v26  ;;  %v3146_v33 = vadd.f32 %v8781_v16, %v3017_v1  ;;  %v2885_v45 = vpack.c.bf16 %v2659_v17, %v2659_v17  ;;  %v2662_v1 = vpop.f32.mrf.mxu2 }
 0x36b   :  { %v2268_v41 = vunpack.c.l.b16 %v1996_v50  ;;  %v1357_v63 = vunpack.c.l.bf16 %v1229_v44  ;;  %v1230_v9 = vpack.c.bf16 %v1102_v21, %v1102_v21  ;;  %vm3529_vm5 = vcmp.ge.f32.partialorder %v3401_v18, 0.0 }
 0x36c   :  { %v4300_v27 = vmul.f32 %v10984_v6, %v4169_v31  ;;  %v3018_v51 = vunpack.c.l.bf16 %v2885_v45  ;;  %vm3913_vm8 = vmpackc.low %vm3529_vm5, %vm3529_vm5  ;;  %v3274_v53 = vpack.c.bf16 %v3146_v33, %v3146_v33  ;;  %v841_v5 = vpack.c.bf16 %v10955_v47, %v10955_v47  ;;  %v11051_v33 = vpop.xlane.xlu1 %4508 }
 0x36d   :  { %v2356_v60 = vpack.c.b16 %v2268_v41, %v2267_v54  ;;  %v4041_v8 = vsel %vm3913_vm8, %v3273_v28, %v3785_v15  ;;  %v1613_v48 = vmul.f32 0.010009766, %v1357_v63  ;;  %v1358_v22 = vunpack.c.l.bf16 %v1230_v9 }
 0x36e   :  { %v4549_v57 = vsel %vm4368_vm13, %v4300_v27, 0.0  ;;  %v3147_v40 = vadd.f32 %v8781_v16, %v3018_v51  ;;  %v4170_v25 = vunpack.c.l.bf16 %v4041_v8  ;;  %v3402_v18 = vunpack.c.l.bf16 %v3274_v53  ;;  %v11031_v49 = vpop.f32.mrf.mxu3 }
 0x36f   :  { %4550 = vadd.xlane.f32.xlu0 %v4549_v57  ;;  %2696 = vmatmul.bf16.gmra.mxu2 %v2356_v60  ;;  %vm11033_vm6 = vcmp.ge.f32.partialorder %v1357_v63, 0.0  ;;  %v1741_v34 = vpack.c.bf16 %v1613_v48, %v1613_v48  ;;  %v1614_v52 = vmul.f32 0.010009766, %v1358_v22  ;;  %v974_v26 = vunpack.c.l.bf16 %v841_v5  ;;  %v11065_v57 = vpop.xlane.xlu2 %4502 }
 0x370   :  { %v3275_v35 = vpack.c.bf16 %v3147_v40, %v3147_v40  ;;  %v4301_v55 = vmul.f32 %v10984_v6, %v4170_v25  ;;  %vm11038_vm15 = vcmp.ge.f32.partialorder %v1358_v22, 0.0  ;;  %vm1869_vm12 = vmpackc.low %vm11033_vm6, %vm11033_vm6  ;;  %v3658_v21 = vmul.f32 0.010009766, %v3402_v18  ;;  %v4515_v60 = vpop.xlane.xlu0 %4514 }
 0x371   :  { %v1742_v50 = vpack.c.bf16 %v1614_v52, %v1614_v52  ;;  %v842_v54 = vpack.c.bf16 %v10987_v14, %v10987_v14  ;;  %vm1870_vm7 = vmpackc.low %vm11038_vm15, %vm11038_vm15  ;;  %v1997_v31 = vsel %vm1869_vm12, %v1229_v44, %v1741_v34  ;;  %v1103_v15 = vadd.f32 %v8693_v42, %v974_v26  ;;  %v131_v14 = vld [vmem:[%s15465_s0 + $0x330] sm:$0xff]  ;;  %v132_v44 = vld [vmem:[%s15465_s0 + $0x338] sm:$0xff] }
 0x372   :  { %v3403_v28 = vunpack.c.l.bf16 %v3275_v35  ;;  %v4552_v24 = vsel %vm4368_vm13, %v4301_v55, 0.0  ;;  %v3786_v27 = vpack.c.bf16 %v3658_v21, %v3658_v21  ;;  %v843_v63 = vpack.c.bf16 %v11019_v11, %v11019_v11  ;;  %v2664_v2 = vpop.f32.mrf.mxu2 }
 0x373   :  { %4553 = vadd.xlane.f32.xlu1 %v4552_v24  ;;  %v1998_v51 = vsel %vm1870_vm7, %v1230_v9, %v1742_v50  ;;  %v2269_v8 = vunpack.c.l.b16 %v1997_v31  ;;  %v975_v40 = vunpack.c.l.bf16 %v842_v54  ;;  %vm3530_vm9 = vcmp.ge.f32.partialorder %v3402_v18, 0.0 }
 0x374   :  { %v3659_v17 = vmul.f32 0.010009766, %v3403_v28  ;;  %vm11053_vm3 = vcmp.ge.f32.partialorder %v3403_v28, 0.0  ;;  %v2270_v48 = vunpack.c.l.b16 %v1998_v51  ;;  %v11070_v11 = vpack.c.bf16 %v1103_v15, %v1103_v15  ;;  %vm3914_vm5 = vmpackc.low %vm3530_vm9, %vm3530_vm9  ;;  %v4518_v31 = vpop.xlane.xlu1 %4517 }
 0x375   :  { %vm3915_vm14 = vmpackc.low %vm11053_vm3, %vm11053_vm3  ;;  %v208_v25 = vpack.c.bf16 %v132_v44, %v131_v14  ;;  %v2886_v5 = vpack.c.bf16 %v2662_v1, %v2662_v1  ;;  %v4803_v55 = vadd.f32 %v9036_v59, %v4515_v60  ;;  %v976_v28 = vunpack.c.l.bf16 %v843_v63 }
 0x376   :  { %v3787_v45 = vpack.c.bf16 %v3659_v17, %v3659_v17  ;;  %v654_v22 = vpop.f32.mrf.mxu3  ;;  %v2357_v34 = vpack.c.b16 %v2270_v48, %v2269_v8  ;;  %v4042_v9 = vsel %vm3914_vm5, %v3274_v53, %v3786_v27  ;;  %v1104_v47 = vadd.f32 %v8693_v42, %v975_v40 }
 0x377   :  { %v4171_v52 = vunpack.c.l.bf16 %v4042_v9  ;;  %v3019_v18 = vunpack.c.l.bf16 %v2886_v5  ;;  %v845_v26 = vpack.c.bf16 %v654_v22, %v654_v22  ;;  %v7907_v21 = vmul.f32 -1.442695, %v4803_v55 }
 0x378   :  { %v4043_v24 = vsel %vm3915_vm14, %v3275_v35, %v3787_v45  ;;  %v1359_v17 = vunpack.c.l.bf16 %v11070_v11  ;;  %v1105_v53 = vadd.f32 %v8693_v42, %v976_v28  ;;  %v11079_v35 = vpop.xlane.xlu2 %4511  ;;  %v1232_v63 = vpack.c.bf16 %v1104_v47, %v1104_v47  ;;  %v134_v47 = vld [vmem:[%s15465_s0 + $0x348] sm:$0xff] }
 0x379   :  { %v4302_v1 = vmul.f32 %v10984_v6, %v4171_v52  ;;  %v3148_v50 = vadd.f32 %v8781_v16, %v3019_v18  ;;  %v4172_v54 = vunpack.c.l.bf16 %v4043_v24  ;;  %8161 = vpow2.f32 %v7907_v21  ;;  %15741 = vst [vmem:[#allocation16_spill] sm:$0xff] %v11079_v35 }
 0x37a   :  { %7814 = vmatmul.msk.bf16.gmra.mxu3 %vm237_vm0, %v208_v25  ;;  %v978_v27 = vunpack.c.l.bf16 %v845_v26  ;;  %v4804_v14 = vadd.f32 %v9036_v59, %v4518_v31  ;;  %v1615_v44 = vmul.f32 0.010009766, %v1359_v17  ;;  %v844_v60 = vpack.c.bf16 %v11031_v49, %v11031_v49  ;;  %v133_v26 = vld [vmem:[%s15465_s0 + $0x340] sm:$0xff] }
 0x37b   :  { %v4555_v15 = vsel %vm4368_vm13, %v4302_v1, 0.0  ;;  %v11082_v41 = vpack.c.bf16 %v3148_v50, %v3148_v50  ;;  %v4303_v45 = vmul.f32 %v10984_v6, %v4172_v54  ;;  %v2887_v8 = vpack.c.bf16 %v2664_v2, %v2664_v2  ;;  %v2667_v28 = vpop.f32.mrf.mxu2 }
 0x37c   :  { %4556 = vadd.xlane.f32.xlu2 %v4555_v15  ;;  %v7908_v48 = vmul.f32 -1.442695, %v4804_v14  ;;  %v11092_v25 = vpack.c.bf16 %v1105_v53, %v1105_v53  ;;  %v1107_v5 = vadd.f32 %v8693_v42, %v978_v27  ;;  %vm11095_vm8 = vcmp.ge.f32.partialorder %v1359_v17, 0.0 }
 0x37d   :  { %v4558_v51 = vsel %vm4368_vm13, %v4303_v45, 0.0  ;;  %v3404_v40 = vunpack.c.l.bf16 %v11082_v41  ;;  %v1360_v49 = vunpack.c.l.bf16 %v1232_v63  ;;  %v1743_v9 = vpack.c.bf16 %v1615_v44, %v1615_v44  ;;  %vm1871_vm6 = vmpackc.low %vm11095_vm8, %vm11095_vm8 }
 0x37e   :  { %4559 = vadd.xlane.f32.xlu0 %v4558_v51  ;;  %v11090_v22 = vpop.f32.mrf.mxu3  ;;  %v977_v24 = vunpack.c.l.bf16 %v844_v60  ;;  %v3020_v52 = vunpack.c.l.bf16 %v2887_v8  ;;  %8163 = vpow2.f32 %v7908_v48  ;;  %v1361_v21 = vunpack.c.l.bf16 %v11092_v25 }
 0x37f   :  { %2701 = vmatmul.bf16.gmra.mxu2 %v2357_v34  ;;  %v8162_v34 = vpop.eup %8161  ;;  %v3660_v18 = vmul.f32 0.010009766, %v3404_v40  ;;  %v11112_v17 = vpack.c.bf16 %v1107_v5, %v1107_v5  ;;  %vm11114_vm15 = vcmp.ge.f32.partialorder %v1360_v49, 0.0  ;;  %v1616_v54 = vmul.f32 0.010009766, %v1360_v49 }
 0x380   :  { %v11099_v2 = vadd.f32 1.0, %v8162_v34  ;;  %v4521_v1 = vpop.xlane.xlu2 %4520  ;;  %v1106_v31 = vadd.f32 %v8693_v42, %v977_v24  ;;  %v3149_v53 = vadd.f32 %v8781_v16, %v3020_v52  ;;  %vm1872_vm12 = vmpackc.low %vm11114_vm15, %vm11114_vm15  ;;  %v1999_v15 = vsel %vm1871_vm6, %v11070_v11, %v1743_v9 }
 0x381   :  { %v209_v27 = vpack.c.bf16 %v134_v47, %v133_v26  ;;  %v3788_v45 = vpack.c.bf16 %v3660_v18, %v3660_v18  ;;  %v1744_v14 = vpack.c.bf16 %v1616_v54, %v1616_v54  ;;  %v2888_v44 = vpack.c.bf16 %v2667_v28, %v2667_v28 }
 0x382   :  { %8165 = vrcp.f32 %v11099_v2  ;;  %v4805_v60 = vadd.f32 %v9036_v59, %v4521_v1  ;;  %v11127_v8 = vmul.f32 0.010009766, %v1361_v21  ;;  %v15482_v48 = vunpack.c.l.bf16 %v11112_v17 }
 0x383   :  { %v4524_v51 = vpop.xlane.xlu0 %4523  ;;  %v846_v5 = vpack.c.bf16 %v11090_v22, %v11090_v22  ;;  %vm11133_vm7 = vcmp.ge.f32.partialorder %v3404_v40, 0.0  ;;  %v2000_v28 = vsel %vm1872_vm12, %v1232_v63, %v1744_v14  ;;  %v2271_v34 = vunpack.c.l.b16 %v1999_v15  ;;  %v2669_v40 = vpop.f32.mrf.mxu2 }
 0x384   :  { %v8164_v55 = vpop.eup %8163  ;;  %v3021_v49 = vunpack.c.l.bf16 %v2888_v44  ;;  %v7909_v9 = vmul.f32 -1.442695, %v4805_v60  ;;  %v11141_v18 = vpack.c.bf16 %v3149_v53, %v3149_v53  ;;  %v2272_v22 = vunpack.c.l.b16 %v2000_v28  ;;  %vm3916_vm3 = vmpackc.low %vm11133_vm7, %vm11133_vm7 }
 0x385   :  { %v11143_v26 = vadd.f32 1.0, %v8164_v55  ;;  %v4806_v47 = vadd.f32 %v9036_v59, %v4524_v51  ;;  %v4044_v50 = vsel %vm3916_vm3, %v11082_v41, %v3788_v45  ;;  %v11153_v54 = vpack.c.bf16 %v1106_v31, %v1106_v31 }
 0x386   :  { %v11137_v24 = vpop.f32.mrf.mxu3  ;;  %v3150_v1 = vadd.f32 %v8781_v16, %v3021_v49  ;;  %8167 = vpow2.f32 %v7909_v9  ;;  %v11157_v53 = vmul.f32 0.010009766, %v15482_v48  ;;  %v2889_v14 = vpack.c.bf16 %v2669_v40, %v2669_v40 }
 0x387   :  { %8169 = vrcp.f32 %v11143_v26  ;;  %v4173_v51 = vunpack.c.l.bf16 %v4044_v50  ;;  %v15483_v41 = vunpack.c.l.bf16 %v11141_v18  ;;  %v979_v31 = vunpack.c.l.bf16 %v846_v5 }
 0x388   :  { %v11139_v52 = vpop.eup %8165  ;;  %v11162_v60 = vpack.c.bf16 %v3150_v1, %v3150_v1  ;;  %v7910_v45 = vmul.f32 -1.442695, %v4806_v47  ;;  %v1362_v55 = vunpack.c.l.bf16 %v11153_v54  ;;  %v6124_v28 = vand.u32 2147483647, %v11099_v2 }
 0x389   :  { %v6116_v63 = vmul.f32 %v11139_v52, %v11099_v2  ;;  %v4304_v49 = vmul.f32 %v10984_v6, %v4173_v51  ;;  %vm6121_vm9 = vweird.f32 %v11139_v52  ;;  %v3022_v40 = vunpack.c.l.bf16 %v2889_v14 }
 0x38a   :  { %7815 = vmatmul.msk.bf16.gmra.mxu3 %vm237_vm0, %v209_v27  ;;  %v2358_v27 = vpack.c.b16 %v2272_v22, %v2271_v34  ;;  %v6126_v22 = vand.u32 2147483648, %v11099_v2  ;;  %8171 = vpow2.f32 %v7910_v45  ;;  %v15484_v47 = vunpack.c.l.bf16 %v11162_v60 }
 0x38b   :  { %v6117_v15 = vsub.f32 1.0, %v6116_v63  ;;  %v4561_v50 = vsel %vm4368_vm13, %v4304_v49, 0.0  ;;  %vm6120_vm14 = vweird.f32 %v11099_v2  ;;  %v11185_v14 = vadd.f32 %v8693_v42, %v979_v31 }
 0x38c   :  { %v8168_v9 = vpop.eup %8167  ;;  %4562 = vadd.xlane.f32.xlu1 %v4561_v50  ;;  %v847_v45 = vpack.c.bf16 %v11137_v24, %v11137_v24  ;;  %vm11193_vm5 = vcmp.ge.f32.partialorder %v1361_v21, 0.0  ;;  %vm11199_vm8 = vmor %vm6120_vm14, %vm6121_vm9  ;;  %vm11203_vm6 = vcmp.eq.f32.partialorder %v6124_v28, 8.507059e+37  ;;  %v6141_v24 = vand.u32 2147483648, %v11143_v26 }
 0x38d   :  { %v6118_v11 = vmul.f32 %v11139_v52, %v6117_v15  ;;  %v8170_v63 = vpop.eup %8169  ;;  %v11175_v1 = vadd.f32 1.0, %v8168_v9  ;;  %v11181_v15 = vmul.f32 0.010009766, %v15483_v41  ;;  %v6127_v9 = vor.u32 1.1754944e-38, %v6126_v22  ;;  %vm1873_vm7 = vmpackc.low %vm11193_vm5, %vm11193_vm5 }
 0x38e   :  { %v661_v51 = vpop.f32.mrf.mxu3  ;;  %v11213_v34 = vmul.f32 0.010009766, %v15484_v47  ;;  %v3151_v48 = vadd.f32 %v8781_v16, %v3022_v40  ;;  %vm6136_vm15 = vweird.f32 %v8170_v63  ;;  %vm11216_vm12 = vcmp.ge.f32.partialorder %v1362_v55, 0.0 }
 0x38f   :  { %2706 = vmatmul.bf16.gmra.mxu2 %v2358_v27  ;;  %v6119_v5 = vadd.f32 %v11139_v52, %v6118_v11  ;;  %v6131_v27 = vmul.f32 %v8170_v63, %v11143_v26  ;;  %v6139_v11 = vand.u32 2147483647, %v11143_v26  ;;  %8173 = vrcp.f32 %v11175_v1  ;;  %vm1874_vm14 = vmpackc.low %vm11216_vm12, %vm11216_vm12 }
 0x390   :  { %v848_v41 = vpack.c.bf16 %v661_v51, %v661_v51  ;;  %v8172_v44 = vpop.eup %8171  ;;  %v1618_v22 = vmul.f32 0.010009766, %v1362_v55  ;;  %vm6135_vm3 = vweird.f32 %v11143_v26  ;;  %v11228_v40 = vunpack.c.l.bf16 %v847_v45 }
 0x391   :  { %v6132_v50 = vsub.f32 1.0, %v6131_v27  ;;  %v6123_v21 = vsel %vm11199_vm8, %v11139_v52, %v6119_v5  ;;  %v2672_v52 = vpop.f32.mrf.mxu2  ;;  %vm11224_vm9 = vcmp.eq.f32.partialorder %v6139_v11, 8.507059e+37  ;;  %v11230_v27 = vadd.f32 1.0, %v8172_v44  ;;  %vm6137_vm8 = vmor %vm6135_vm3, %vm6136_vm15 }
 0x392   :  { %v6128_v51 = vsel %vm11203_vm6, %v6127_v9, %v6123_v21  ;;  %v6142_v55 = vor.u32 1.1754944e-38, %v6141_v24  ;;  %v11238_v26 = vpack.c.bf16 %v3151_v48, %v3151_v48  ;;  %v11241_v11 = vunpack.c.l.bf16 %v848_v41  ;;  %v135_v41 = vld [vmem:[%s15465_s0 + $0x350] sm:$0xff] }
 0x393   :  { %v6133_v28 = vmul.f32 %v8170_v63, %v6132_v50  ;;  %v1746_v50 = vpack.c.bf16 %v1618_v22, %v1618_v22  ;;  %8175 = vrcp.f32 %v11230_v27  ;;  %v15758_v44 = vpack.c.bf16 %v11127_v8, %v11127_v8  ;;  %v136_v8 = vld [vmem:[%s15465_s0 + $0x358] sm:$0xff] }
 0x394   :  { %v3790_v49 = vpack.c.bf16 %v11213_v34, %v11213_v34  ;;  %v6154_v9 = vand.u32 2147483647, %v11175_v1  ;;  %v7568_v2 = vperm.slane %v6128_v51, %v9086_v4  ;;  %v15759_v34 = vunpack.c.l.bf16 %v11141_v18  ;;  %v4527_v21 = vpop.xlane.xlu1 %4526 }
 0x395   :  { %v6134_v31 = vadd.f32 %v8170_v63, %v6133_v28  ;;  %v8174_v47 = vpop.eup %8173  ;;  %v2001_v23 = vsel %vm1873_vm7, %v11092_v25, %v15758_v44  ;;  %v3789_v5 = vpack.c.bf16 %v11181_v15, %v11181_v15  ;;  %v210_v51 = vpack.c.bf16 %v136_v8, %v135_v41 }
 0x396   :  { %v6146_v48 = vmul.f32 %v8174_v47, %v11175_v1  ;;  %vm11268_vm5 = vcmp.ge.f32.partialorder %v15759_v34, 0.0  ;;  %v2273_v44 = vunpack.c.l.b16 %v2001_v23  ;;  %vm6151_vm6 = vweird.f32 %v8174_v47 }
 0x397   :  { %v6138_v45 = vsel %vm6137_vm8, %v8170_v63, %v6134_v31  ;;  %v2002_v63 = vsel %vm1874_vm14, %v11153_v54, %v1746_v50  ;;  %v6156_v31 = vand.u32 2147483648, %v11175_v1  ;;  %vm3917_vm15 = vmpackc.low %vm11268_vm5, %vm11268_vm5  ;;  %vm6150_vm12 = vweird.f32 %v11175_v1 }
 0x398   :  { %v6143_v25 = vsel %vm11224_vm9, %v6142_v55, %v6138_v45  ;;  %v6147_v22 = vsub.f32 1.0, %v6146_v48  ;;  %v2274_v3 = vunpack.c.l.b16 %v2002_v63  ;;  %v2890_v55 = vpack.c.bf16 %v2672_v52, %v2672_v52  ;;  %v11281_v48 = vpop.f32.mrf.mxu3  ;;  %vm6152_vm3 = vmor %vm6150_vm12, %vm6151_vm6 }
 0x399   :  { %v7569_v28 = vperm.slane %v6143_v25, %v9105_v19  ;;  %v4807_v45 = vadd.f32 %v9036_v59, %v4527_v21  ;;  %v8176_v25 = vpop.eup %8175  ;;  %v4045_v15 = vsel %vm3917_vm15, %v11141_v18, %v3789_v5  ;;  %vm6155_vm7 = vcmp.eq.f32.partialorder %v6154_v9, 8.507059e+37  ;;  %v11287_v63 = vpop.f32.mrf.mxu2 }
 0x39a   :  { %v6148_v50 = vmul.f32 %v8174_v47, %v6147_v22  ;;  %v2359_v23 = vpack.c.b16 %v2274_v3, %v2273_v44  ;;  %7816 = vmatmul.msk.bf16.gmra.mxu3 %vm237_vm0, %v210_v51  ;;  %v3023_v52 = vunpack.c.l.bf16 %v2890_v55  ;;  %v6161_v8 = vmul.f32 %v8176_v25, %v11230_v27 }
 0x39b   :  { %v7570_v54 = vsel %vm7448_vm1, %v7569_v28, %v7568_v2  ;;  %v4174_v2 = vunpack.c.l.bf16 %v4045_v15  ;;  %v6157_v34 = vor.u32 1.1754944e-38, %v6156_v31  ;;  %v6169_v24 = vand.u32 2147483647, %v11230_v27  ;;  %v4530_v31 = vpop.xlane.xlu2 %4529 }
 0x39c   :  { %v6149_v41 = vadd.f32 %v8174_v47, %v6148_v50  ;;  %v7911_v1 = vmul.f32 -1.442695, %v4807_v45  ;;  %v15762_v3 = vunpack.c.l.bf16 %v11162_v60  ;;  %v6162_v21 = vsub.f32 1.0, %v6161_v8 }
 0x39d   :  { %v6171_v28 = vand.u32 2147483648, %v11230_v27  ;;  %v4305_v9 = vmul.f32 %v10984_v6, %v4174_v2  ;;  %vm6166_vm14 = vweird.f32 %v8176_v25  ;;  %v3152_v44 = vadd.f32 %v8781_v16, %v3023_v52 }
 0x39e   :  { %vm3534_vm9 = vcmp.ge.f32.partialorder %v15762_v3, 0.0  ;;  %v6153_v18 = vsel %vm6152_vm3, %v8174_v47, %v6149_v41  ;;  %8177 = vpow2.f32 %v7911_v1  ;;  %v6163_v51 = vmul.f32 %v8176_v25, %v6162_v21 }
 0x39f   :  { %2711 = vmatmul.bf16.gmra.mxu2 %v2359_v23  ;;  %v6158_v22 = vsel %vm6155_vm7, %v6157_v34, %v6153_v18  ;;  %vm3918_vm8 = vmpackc.low %vm3534_vm9, %vm3534_vm9  ;;  %v4564_v55 = vsel %vm4368_vm13, %v4305_v9, 0.0  ;;  %v1236_v47 = vpack.c.bf16 %v11185_v14, %v11185_v14  ;;  %v1109_v45 = vadd.f32 %v8693_v42, %v11228_v40 }
 0x3a0   :  { %v7571_v5 = vperm.slane %v6158_v22, %v9109_v20  ;;  %v4046_v50 = vsel %vm3918_vm8, %v11162_v60, %v3790_v49  ;;  %v3407_v23 = vunpack.c.l.bf16 %v11238_v26  ;;  %4565 = vadd.xlane.f32.xlu2 %v4564_v55  ;;  %v6164_v41 = vadd.f32 %v8176_v25, %v6163_v51  ;;  %v666_v1 = vpop.f32.mrf.mxu3 }
 0x3a1   :  { %v4175_v15 = vunpack.c.l.bf16 %v4046_v50  ;;  %vm6165_vm5 = vweird.f32 %v11230_v27  ;;  %v4808_v8 = vadd.f32 %v9036_v59, %v4530_v31  ;;  %v6172_v60 = vor.u32 1.1754944e-38, %v6171_v28 }
 0x3a2   :  { %v7572_v52 = vsel %vm15512_vm10, %v7571_v5, %v7570_v54  ;;  %vm6167_vm6 = vmor %vm6165_vm5, %vm6166_vm14  ;;  %v1110_v14 = vadd.f32 %v8693_v42, %v11241_v11  ;;  %v11310_v49 = vpack.c.bf16 %v3152_v44, %v3152_v44  ;;  %vm6170_vm15 = vcmp.eq.f32.partialorder %v6169_v24, 8.507059e+37  ;;  %v2677_v44 = vpop.f32.mrf.mxu2 }
 0x3a3   :  { %v4306_v40 = vmul.f32 %v10984_v6, %v4175_v15  ;;  %v6168_v2 = vsel %vm6167_vm6, %v8176_v25, %v6164_v41  ;;  %v7912_v34 = vmul.f32 -1.442695, %v4808_v8  ;;  %v15763_v54 = vunpack.c.l.bf16 %v11112_v17  ;;  %v138_v15 = vld [vmem:[%s15465_s0 + $0x368] sm:$0xff] }
 0x3a4   :  { %v8178_v3 = vpop.eup %8177  ;;  %v1364_v18 = vunpack.c.l.bf16 %v1236_v47  ;;  %v11319_v21 = vpack.c.bf16 %v1109_v45, %v1109_v45  ;;  %v3663_v28 = vmul.f32 0.010009766, %v3407_v23  ;;  %v6173_v11 = vsel %vm6170_vm15, %v6172_v60, %v6168_v2  ;;  %v137_v45 = vld [vmem:[%s15465_s0 + $0x360] sm:$0xff] }
 0x3a5   :  { %vm11315_vm12 = vcmp.ge.f32.partialorder %v15763_v54, 0.0  ;;  %v7573_v9 = vperm.slane %v6173_v11, %v9152_v61  ;;  %v11322_v22 = vadd.f32 1.0, %v8178_v3  ;;  %v849_v25 = vpack.c.bf16 %v11281_v48, %v11281_v48 }
 0x3a6   :  { %v4567_v24 = vsel %vm4368_vm13, %v4306_v40, 0.0  ;;  %v11327_v31 = vpack.c.bf16 %v1110_v14, %v1110_v14  ;;  %v3408_v5 = vunpack.c.l.bf16 %v11310_v49  ;;  %8179 = vpow2.f32 %v7912_v34  ;;  %vm1875_vm3 = vmpackc.low %vm11315_vm12, %vm11315_vm12 }
 0x3a7   :  { %4568 = vadd.xlane.f32.xlu0 %v4567_v24  ;;  %vm11330_vm7 = vcmp.ge.f32.partialorder %v1364_v18, 0.0  ;;  %v11338_v55 = vsel %vm15511_vm2, %v7573_v9, %v7572_v52  ;;  %8181 = vrcp.f32 %v11322_v22  ;;  %v2891_v48 = vpack.c.bf16 %v11287_v63, %v11287_v63 }
 0x3a8   :  { %v1620_v50 = vmul.f32 0.010009766, %v1364_v18  ;;  %v982_v41 = vunpack.c.l.bf16 %v849_v25  ;;  %vm1876_vm9 = vmpackc.low %vm11330_vm7, %vm11330_vm7  ;;  %v15768_v52 = vpack.c.bf16 %v11157_v53, %v11157_v53  ;;  %vm3535_vm14 = vcmp.ge.f32.partialorder %v3407_v23, 0.0  ;;  %v4533_v34 = vpop.xlane.xlu0 %4532 }
 0x3a9   :  { %v3791_v63 = vpack.c.bf16 %v3663_v28, %v3663_v28  ;;  %v1365_v60 = vunpack.c.l.bf16 %v11319_v21  ;;  %v1366_v14 = vunpack.c.l.bf16 %v11327_v31  ;;  %v3664_v40 = vmul.f32 0.010009766, %v3408_v5  ;;  %vm3919_vm8 = vmpackc.low %vm3535_vm14, %vm3535_vm14 }
 0x3aa   :  { %v2003_v8 = vsel %vm1875_vm3, %v11112_v17, %v15768_v52  ;;  %v1748_v2 = vpack.c.bf16 %v1620_v50, %v1620_v50  ;;  %v3024_v54 = vunpack.c.l.bf16 %v2891_v48  ;;  %v211_v3 = vpack.c.bf16 %v138_v15, %v137_v45  ;;  %v11373_v50 = vpop.f32.mrf.mxu3 }
 0x3ab   :  { %v4047_v27 = vsel %vm3919_vm8, %v11238_v26, %v3791_v63  ;;  %v2892_v18 = vpack.c.bf16 %v2677_v44, %v2677_v44  ;;  %vm11359_vm5 = vcmp.ge.f32.partialorder %v1365_v60, 0.0  ;;  %v850_v17 = vpack.c.bf16 %v666_v1, %v666_v1 }
 0x3ac   :  { %v8180_v11 = vpop.eup %8179  ;;  %v2004_v23 = vsel %vm1876_vm9, %v1236_v47, %v1748_v2  ;;  %v2275_v28 = vunpack.c.l.b16 %v2003_v8  ;;  %v4176_v9 = vunpack.c.l.bf16 %v4047_v27  ;;  %v1111_v24 = vadd.f32 %v8693_v42, %v982_v41  ;;  %7817 = vmatmul.msk.bf16.gmra.mxu3 %vm237_vm0, %v211_v3  ;;  %v11385_v8 = vpop.f32.mrf.mxu2  ;;  %vm1877_vm8 = vmpackc.low %vm11359_vm5, %vm11359_vm5 }
 0x3ad   :  { %v8182_v25 = vpop.eup %8181  ;;  %v11369_v26 = vadd.f32 1.0, %v8180_v11  ;;  %v2276_v44 = vunpack.c.l.b16 %v2004_v23  ;;  %v4809_v48 = vadd.f32 %v9036_v59, %v4533_v34  ;;  %v3792_v1 = vpack.c.bf16 %v3664_v40, %v3664_v40 }
 0x3ae   :  { %v6176_v45 = vmul.f32 %v8182_v25, %v11322_v22  ;;  %v4307_v51 = vmul.f32 %v10984_v6, %v4176_v9  ;;  %vm11377_vm6 = vcmp.ge.f32.partialorder %v3408_v5, 0.0  ;;  %v11381_v15 = vmul.f32 0.010009766, %v1365_v60 }
 0x3af   :  { %v3153_v41 = vadd.f32 %v8781_v16, %v3024_v54  ;;  %8183 = vrcp.f32 %v11369_v26  ;;  %v3025_v52 = vunpack.c.l.bf16 %v2892_v18  ;;  %v983_v2 = vunpack.c.l.bf16 %v850_v17  ;;  %v4536_v27 = vpop.xlane.xlu1 %4535  ;;  %vm3920_vm15 = vmpackc.low %vm11377_vm6, %vm11377_vm6 }
 0x3b0   :  { %v6177_v63 = vsub.f32 1.0, %v6176_v45  ;;  %v2360_v40 = vpack.c.b16 %v2276_v44, %v2275_v28  ;;  %v4570_v34 = vsel %vm4368_vm13, %v4307_v51, 0.0  ;;  %v1622_v3 = vmul.f32 0.010009766, %v1366_v14 }
 0x3b1   :  { %v6186_v5 = vand.u32 2147483648, %v11322_v22  ;;  %v11389_v11 = vpack.c.bf16 %v1111_v24, %v1111_v24  ;;  %4571 = vadd.xlane.f32.xlu1 %v4570_v34  ;;  %v7913_v60 = vmul.f32 -1.442695, %v4809_v48  ;;  %vm6181_vm12 = vweird.f32 %v8182_v25 }
 0x3b2   :  { %v6178_v54 = vmul.f32 %v8182_v25, %v6177_v63  ;;  %v6184_v18 = vand.u32 2147483647, %v11322_v22  ;;  %2716 = vmatmul.bf16.gmra.mxu2 %v2360_v40  ;;  %v4048_v17 = vsel %vm3920_vm15, %v11310_v49, %v3792_v1  ;;  %v3154_v23 = vadd.f32 %v8781_v16, %v3025_v52  ;;  %v11416_v34 = vpop.f32.mrf.mxu3 }
 0x3b3   :  { %8185 = vpow2.f32 %v7913_v60  ;;  %v4177_v28 = vunpack.c.l.bf16 %v4048_v17  ;;  %v4810_v9 = vadd.f32 %v9036_v59, %v4536_v27  ;;  %vm6180_vm7 = vweird.f32 %v11322_v22 }
 0x3b4   :  { %v6179_v24 = vadd.f32 %v8182_v25, %v6178_v54  ;;  %v11399_v44 = vpack.c.bf16 %v3153_v41, %v3153_v41  ;;  %v1112_v48 = vadd.f32 %v8693_v42, %v983_v2  ;;  %vm6182_vm3 = vmor %vm6180_vm7, %vm6181_vm12  ;;  %v6187_v51 = vor.u32 1.1754944e-38, %v6186_v5 }
 0x3b5   :  { %v8184_v45 = vpop.eup %8183  ;;  %v4308_v47 = vmul.f32 %v10984_v6, %v4177_v28  ;;  %v7914_v63 = vmul.f32 -1.442695, %v4810_v9  ;;  %vm11403_vm9 = vcmp.ge.f32.partialorder %v1366_v14, 0.0  ;;  %v1749_v1 = vpack.c.bf16 %v11381_v15, %v11381_v15 }
 0x3b6   :  { %v6183_v52 = vsel %vm6182_vm3, %v8182_v25, %v6179_v24  ;;  %vm6185_vm14 = vcmp.eq.f32.partialorder %v6184_v18, 8.507059e+37  ;;  %v6191_v22 = vmul.f32 %v8184_v45, %v11369_v26  ;;  %v1750_v41 = vpack.c.bf16 %v1622_v3, %v1622_v3  ;;  %vm1878_vm6 = vmpackc.low %vm11403_vm9, %vm11403_vm9  ;;  %v2682_v17 = vpop.f32.mrf.mxu2 }
 0x3b7   :  { %v6188_v2 = vsel %vm6185_vm14, %v6187_v51, %v6183_v52  ;;  %v11413_v40 = vpack.c.bf16 %v3154_v23, %v3154_v23  ;;  %v4573_v14 = vsel %vm4368_vm13, %v4308_v47, 0.0  ;;  %v3409_v15 = vunpack.c.l.bf16 %v11399_v44 }
 0x3b8   :  { %v7575_v27 = vperm.slane %v6188_v2, %v9281_v10  ;;  %v6192_v25 = vsub.f32 1.0, %v6191_v22  ;;  %4574 = vadd.xlane.f32.xlu2 %v4573_v14  ;;  %8187 = vpow2.f32 %v7914_v63  ;;  %v1367_v3 = vunpack.c.l.bf16 %v11389_v11 }
 0x3b9   :  { %v8186_v5 = vpop.eup %8185  ;;  %v6199_v60 = vand.u32 2147483647, %v11369_v26  ;;  %v6201_v54 = vand.u32 2147483648, %v11369_v26  ;;  %v11426_v18 = vpack.c.bf16 %v1112_v48, %v1112_v48  ;;  %vm6196_vm15 = vweird.f32 %v8184_v45 }
 0x3ba   :  { %v7576_v23 = vsel %vm15510_vm11, %v7575_v27, %v11338_v55  ;;  %v6193_v28 = vmul.f32 %v8184_v45, %v6192_v25  ;;  %v11430_v9 = vadd.f32 1.0, %v8186_v5  ;;  %v3410_v24 = vunpack.c.l.bf16 %v11413_v40  ;;  %v139_v27 = vld [vmem:[%s15465_s0 + $0x370] sm:$0xff]  ;;  %v140_v25 = vld [vmem:[%s15465_s0 + $0x378] sm:$0xff] }
 0x3bb   :  { %v2893_v51 = vpack.c.bf16 %v11385_v8, %v11385_v8  ;;  %v2005_v48 = vsel %vm1877_vm8, %v11319_v21, %v1749_v1  ;;  %v2006_v47 = vsel %vm1878_vm6, %v11327_v31, %v1750_v41  ;;  %v3665_v63 = vmul.f32 0.010009766, %v3409_v15 }
 0x3bc   :  { %v6194_v55 = vadd.f32 %v8184_v45, %v6193_v28  ;;  %vm6195_vm12 = vweird.f32 %v11369_v26  ;;  %8189 = vrcp.f32 %v11430_v9  ;;  %v11444_v49 = vmul.f32 0.010009766, %v1367_v3  ;;  %v11461_v28 = vpop.f32.mrf.mxu3 }
 0x3bd   :  { %vm6197_vm7 = vmor %vm6195_vm12, %vm6196_vm15  ;;  %vm6200_vm3 = vcmp.eq.f32.partialorder %v6199_v60, 8.507059e+37  ;;  %v6202_v8 = vor.u32 1.1754944e-38, %v6201_v54  ;;  %v1368_v52 = vunpack.c.l.bf16 %v11426_v18  ;;  %v851_v21 = vpack.c.bf16 %v11373_v50, %v11373_v50 }
 0x3be   :  { %v8188_v22 = vpop.eup %8187  ;;  %v6198_v2 = vsel %vm6197_vm7, %v8184_v45, %v6194_v55  ;;  %v2277_v53 = vunpack.c.l.b16 %v2005_v48  ;;  %v2278_v31 = vunpack.c.l.b16 %v2006_v47  ;;  %v3666_v41 = vmul.f32 0.010009766, %v3410_v24  ;;  %v4539_v54 = vpop.xlane.xlu2 %4538 }
 0x3bf   :  { %v6203_v1 = vsel %vm6200_vm3, %v6202_v8, %v6198_v2  ;;  %v3026_v14 = vunpack.c.l.bf16 %v2893_v51  ;;  %v11449_v26 = vadd.f32 1.0, %v8188_v22  ;;  %vm3537_vm5 = vcmp.ge.f32.partialorder %v3409_v15, 0.0 }
 0x3c0   :  { %v7577_v45 = vperm.slane %v6203_v1, %v9287_v12  ;;  %v2361_v5 = vpack.c.b16 %v2278_v31, %v2277_v53  ;;  %v3793_v50 = vpack.c.bf16 %v3665_v63, %v3665_v63  ;;  %vm3921_vm9 = vmpackc.low %vm3537_vm5, %vm3537_vm5  ;;  %v11468_v47 = vmul.f32 0.010009766, %v1368_v52 }
 0x3c1   :  { %8191 = vrcp.f32 %v11449_v26  ;;  %v212_v63 = vpack.c.bf16 %v140_v25, %v139_v27  ;;  %vm11471_vm14 = vcmp.ge.f32.partialorder %v1367_v3, 0.0  ;;  %v3794_v8 = vpack.c.bf16 %v3666_v41, %v3666_v41 }
 0x3c2   :  { %v8190_v51 = vpop.eup %8189  ;;  %v11464_v48 = vsel %vm15509_vm4, %v7577_v45, %v7576_v23  ;;  %2721 = vmatmul.bf16.gmra.mxu2 %v2361_v5  ;;  %v4049_v15 = vsel %vm3921_vm9, %v11399_v44, %v3793_v50  ;;  %v984_v2 = vunpack.c.l.bf16 %v851_v21  ;;  %v3155_v53 = vadd.f32 %v8781_v16, %v3026_v14  ;;  %v11477_v23 = vpop.f32.mrf.mxu2  ;;  %vm1879_vm9 = vmpackc.low %vm11471_vm14, %vm11471_vm14 }
 0x3c3   :  { %v6206_v22 = vmul.f32 %v8190_v51, %v11430_v9  ;;  %v4542_v31 = vpop.xlane.xlu0 %4541  ;;  %v852_v1 = vpack.c.bf16 %v11416_v34, %v11416_v34  ;;  %v4178_v45 = vunpack.c.l.bf16 %v4049_v15  ;;  %7818 = vmatmul.msk.bf16.gmra.mxu3 %vm237_vm0, %v212_v63  ;;  %v2894_v44 = vpack.c.bf16 %v2682_v17, %v2682_v17 }
 0x3c4   :  { %v4811_v3 = vadd.f32 %v9036_v59, %v4539_v54  ;;  %v6214_v41 = vand.u32 2147483647, %v11430_v9  ;;  %v6216_v25 = vand.u32 2147483648, %v11430_v9  ;;  %vm3538_vm8 = vcmp.ge.f32.partialorder %v3410_v24, 0.0 }
 0x3c5   :  { %v6207_v27 = vsub.f32 1.0, %v6206_v22  ;;  %v4309_v21 = vmul.f32 %v10984_v6, %v4178_v45  ;;  %v3027_v14 = vunpack.c.l.bf16 %v2894_v44  ;;  %vm3922_vm6 = vmpackc.low %vm3538_vm8, %vm3538_vm8  ;;  %v4812_v50 = vadd.f32 %v9036_v59, %v4542_v31 }
 0x3c6   :  { %v7915_v5 = vmul.f32 -1.442695, %v4811_v3  ;;  %vm6211_vm15 = vweird.f32 %v8190_v51  ;;  %v11487_v63 = vpack.c.bf16 %v3155_v53, %v3155_v53  ;;  %v4050_v17 = vsel %vm3922_vm6, %v11413_v40, %v3794_v8 }
 0x3c7   :  { %v8192_v34 = vpop.eup %8191  ;;  %v6208_v15 = vmul.f32 %v8190_v51, %v6207_v27  ;;  %v985_v22 = vunpack.c.l.bf16 %v852_v1  ;;  %v4576_v60 = vsel %vm4368_vm13, %v4309_v21, 0.0  ;;  %v3156_v24 = vadd.f32 %v8781_v16, %v3027_v14  ;;  %v11499_v1 = vld [vmem:[%s15470_s5] ss:$0 sm:$0xff] }
 0x3c8   :  { %v6221_v54 = vmul.f32 %v8192_v34, %v11449_v26  ;;  %vm6210_vm12 = vweird.f32 %v11430_v9  ;;  %4577 = vadd.xlane.f32.xlu0 %v4576_v60  ;;  %8193 = vpow2.f32 %v7915_v5  ;;  %v4179_v31 = vunpack.c.l.bf16 %v4050_v17  ;;  %v11502_v60 = vpop.f32.mrf.mxu3 }
 0x3c9   :  { %v6209_v6 = vadd.f32 %v8190_v51, %v6208_v15  ;;  %vm6212_vm7 = vmor %vm6210_vm12, %vm6211_vm15  ;;  %vm6215_vm3 = vcmp.eq.f32.partialorder %v6214_v41, 8.507059e+37  ;;  %v6217_v45 = vor.u32 1.1754944e-38, %v6216_v25  ;;  %v7916_v44 = vmul.f32 -1.442695, %v4812_v50 }
 0x3ca   :  { %v6222_v53 = vsub.f32 1.0, %v6221_v54  ;;  %v6229_v40 = vand.u32 2147483647, %v11449_v26  ;;  %v6231_v8 = vand.u32 2147483648, %v11449_v26  ;;  %v4310_v9 = vmul.f32 %v11499_v1, %v4179_v31 }
 0x3cb   :  { %v6213_v3 = vsel %vm6212_vm7, %v8190_v51, %v6209_v6  ;;  %vm6226_vm5 = vweird.f32 %v8192_v34  ;;  %v11504_v41 = vpack.c.bf16 %v3156_v24, %v3156_v24  ;;  %v3411_v25 = vunpack.c.l.bf16 %v11487_v63 }
 0x3cc   :  { %v6218_v27 = vsel %vm6215_vm3, %v6217_v45, %v6213_v3  ;;  %v6223_v21 = vmul.f32 %v8192_v34, %v6222_v53  ;;  %v4579_v14 = vsel %vm4368_vm13, %v4310_v9, 0.0  ;;  %8195 = vpow2.f32 %v7916_v44  ;;  %v2687_v5 = vpop.f32.mrf.mxu2 }
 0x3cd   :  { %v7579_v51 = vperm.slane %v6218_v27, %v9377_v46  ;;  %v1752_v50 = vpack.c.bf16 %v11468_v47, %v11468_v47  ;;  %v1113_v15 = vadd.f32 %v8693_v42, %v984_v2  ;;  %vm6225_vm8 = vweird.f32 %v11449_v26  ;;  %4580 = vadd.xlane.f32.xlu1 %v4579_v14 }
 0x3ce   :  { %v6224_v17 = vadd.f32 %v8192_v34, %v6223_v21  ;;  %v8194_v54 = vpop.eup %8193  ;;  %vm15777_vm6 = vcmask 458112   ;;  %vm6227_vm15 = vmor %vm6225_vm8, %vm6226_vm5  ;;  %v6232_v6 = vor.u32 1.1754944e-38, %v6231_v8  ;;  %v1114_v31 = vadd.f32 %v8693_v42, %v985_v22 }
 0x3cf   :  { %v7580_v24 = vsel %vm15777_vm6, %v7579_v51, %v11464_v48  ;;  %vm11522_vm12 = vcmp.ge.f32.partialorder %v1368_v52, 0.0  ;;  %vm6230_vm7 = vcmp.eq.f32.partialorder %v6229_v40, 8.507059e+37  ;;  %v3412_v26 = vunpack.c.l.bf16 %v11504_v41  ;;  %v141_v51 = vld [vmem:[%s15465_s0 + $0x380] sm:$0xff] }
 0x3d0   :  { %v6228_v47 = vsel %vm6227_vm15, %v8192_v34, %v6224_v17  ;;  %v11527_v2 = vadd.f32 1.0, %v8194_v54  ;;  %v3667_v53 = vmul.f32 0.010009766, %v3411_v25  ;;  %vm1880_vm3 = vmpackc.low %vm11522_vm12, %vm11522_vm12  ;;  %v15780_v48 = vpack.c.bf16 %v11444_v49, %v11444_v49  ;;  %v4545_v17 = vpop.xlane.xlu1 %4544 }
 0x3d1   :  { %v6233_v44 = vsel %vm6230_vm7, %v6232_v6, %v6228_v47  ;;  %v11541_v34 = vpack.c.bf16 %v1113_v15, %v1113_v15  ;;  %v2895_v3 = vpack.c.bf16 %v11477_v23, %v11477_v23  ;;  %v11547_v8 = vpack.c.bf16 %v1114_v31, %v1114_v31  ;;  %v142_v23 = vld [vmem:[%s15465_s0 + $0x388] sm:$0xff]  ;;  %v11561_v15 = vpop.f32.mrf.mxu3 }
 0x3d2   :  { %v2007_v52 = vsel %vm1879_vm9, %v11389_v11, %v15780_v48  ;;  %v7581_v22 = vperm.slane %v6233_v44, %v9439_v37  ;;  %8197 = vrcp.f32 %v11527_v2  ;;  %v8196_v40 = vpop.eup %8195  ;;  %v2008_v49 = vsel %vm1880_vm3, %v11426_v18, %v1752_v50 }
 0x3d3   :  { %v2279_v9 = vunpack.c.l.b16 %v2007_v52  ;;  %vm15781_vm5 = vcmask 523712   ;;  %v3668_v55 = vmul.f32 0.010009766, %v3412_v26  ;;  %v11553_v11 = vadd.f32 1.0, %v8196_v40 }
 0x3d4   :  { %v11551_v27 = vsel %vm15781_vm5, %v7581_v22, %v7580_v24  ;;  %v2280_v21 = vunpack.c.l.b16 %v2008_v49  ;;  %vm3539_vm14 = vcmp.ge.f32.partialorder %v3411_v25, 0.0  ;;  %v3795_v14 = vpack.c.bf16 %v3667_v53, %v3667_v53  ;;  %v11567_v45 = vpop.f32.mrf.mxu2 }
 0x3d5   :  { %v1369_v18 = vunpack.c.l.bf16 %v11541_v34  ;;  %v3028_v50 = vunpack.c.l.bf16 %v2895_v3  ;;  %8199 = vrcp.f32 %v11553_v11  ;;  %vm3923_vm9 = vmpackc.low %vm3539_vm14, %vm3539_vm14  ;;  %v1370_v54 = vunpack.c.l.bf16 %v11547_v8 }
 0x3d6   :  { %v2362_v24 = vpack.c.b16 %v2280_v21, %v2279_v9  ;;  %v4051_v6 = vsel %vm3923_vm9, %v11487_v63, %v3795_v14  ;;  %v213_v31 = vpack.c.bf16 %v142_v23, %v141_v51  ;;  %v3796_v25 = vpack.c.bf16 %v3668_v55, %v3668_v55 }
 0x3d7   :  { %v4180_v53 = vunpack.c.l.bf16 %v4051_v6  ;;  %v2896_v44 = vpack.c.bf16 %v2687_v5, %v2687_v5  ;;  %v853_v52 = vpack.c.bf16 %v11461_v28, %v11461_v28  ;;  %v4813_v22 = vadd.f32 %v9036_v59, %v4545_v17 }
 0x3d8   :  { %v8198_v47 = vpop.eup %8197  ;;  %2726 = vmatmul.bf16.gmra.mxu2 %v2362_v24  ;;  %7819 = vmatmul.msk.bf16.gmra.mxu3 %vm237_vm0, %v213_v31  ;;  %v3157_v3 = vadd.f32 %v8781_v16, %v3028_v50  ;;  %vm3540_vm8 = vcmp.ge.f32.partialorder %v3412_v26, 0.0  ;;  %vm11576_vm6 = vcmp.ge.f32.partialorder %v1369_v18, 0.0  ;;  %v11580_v5 = vmul.f32 0.010009766, %v1369_v18 }
 0x3d9   :  { %v6236_v48 = vmul.f32 %v8198_v47, %v11527_v2  ;;  %v4311_v63 = vmul.f32 %v11499_v1, %v4180_v53  ;;  %v3029_v40 = vunpack.c.l.bf16 %v2896_v44  ;;  %v11584_v28 = vmul.f32 0.010009766, %v1370_v54  ;;  %vm3924_vm15 = vmpackc.low %vm3540_vm8, %vm3540_vm8 }
 0x3da   :  { %v7917_v55 = vmul.f32 -1.442695, %v4813_v22  ;;  %v6244_v51 = vand.u32 2147483647, %v11527_v2  ;;  %v6246_v23 = vand.u32 2147483648, %v11527_v2  ;;  %v4052_v14 = vsel %vm3924_vm15, %v11504_v41, %v3796_v25  ;;  %v11597_v41 = vpop.f32.mrf.mxu3 }
 0x3db   :  { %v6237_v9 = vsub.f32 1.0, %v6236_v48  ;;  %v8200_v21 = vpop.eup %8199  ;;  %v4582_v26 = vsel %vm4368_vm13, %v4311_v63, 0.0  ;;  %vm6241_vm12 = vweird.f32 %v8198_v47  ;;  %v986_v17 = vunpack.c.l.bf16 %v853_v52 }
 0x3dc   :  { %v6251_v18 = vmul.f32 %v8200_v21, %v11553_v11  ;;  %4583 = vadd.xlane.f32.xlu2 %v4582_v26  ;;  %8201 = vpow2.f32 %v7917_v55  ;;  %v11591_v24 = vpack.c.bf16 %v3157_v3, %v3157_v3  ;;  %v3158_v6 = vadd.f32 %v8781_v16, %v3029_v40 }
 0x3dd   :  { %v6238_v50 = vmul.f32 %v8198_v47, %v6237_v9  ;;  %v4181_v31 = vunpack.c.l.bf16 %v4052_v14  ;;  %vm6240_vm7 = vweird.f32 %v11527_v2  ;;  %v854_v48 = vpack.c.bf16 %v11502_v60, %v11502_v60 }
 0x3de   :  { %v6252_v44 = vsub.f32 1.0, %v6251_v18  ;;  %vm6242_vm3 = vmor %vm6240_vm7, %vm6241_vm12  ;;  %vm6245_vm5 = vcmp.eq.f32.partialorder %v6244_v51, 8.507059e+37  ;;  %v6247_v25 = vor.u32 1.1754944e-38, %v6246_v23  ;;  %v6261_v22 = vand.u32 2147483648, %v11553_v11 }
 0x3df   :  { %v6239_v53 = vadd.f32 %v8198_v47, %v6238_v50  ;;  %v4312_v52 = vmul.f32 %v11499_v1, %v4181_v31  ;;  %vm6256_vm14 = vweird.f32 %v8200_v21  ;;  %v6259_v40 = vand.u32 2147483647, %v11553_v11  ;;  %vm1881_vm7 = vmpackc.low %vm11576_vm6, %vm11576_vm6 }
 0x3e0   :  { %v6253_v63 = vmul.f32 %v8200_v21, %v6252_v44  ;;  %v3413_v55 = vunpack.c.l.bf16 %v11591_v24  ;;  %v11605_v60 = vpack.c.bf16 %v3158_v6, %v3158_v6  ;;  %vm6255_vm9 = vweird.f32 %v11553_v11 }
 0x3e1   :  { %v6243_v3 = vsel %vm6242_vm3, %v8198_v47, %v6239_v53  ;;  %v11602_v9 = vpop.f32.mrf.mxu2  ;;  %v4585_v26 = vsel %vm4368_vm13, %v4312_v52, 0.0  ;;  %v987_v47 = vunpack.c.l.bf16 %v854_v48  ;;  %vm6257_vm8 = vmor %vm6255_vm9, %vm6256_vm14  ;;  %v6262_v50 = vor.u32 1.1754944e-38, %v6261_v22 }
 0x3e2   :  { %v6248_v2 = vsel %vm6245_vm5, %v6247_v25, %v6243_v3  ;;  %v8202_v51 = vpop.eup %8201  ;;  %v6254_v14 = vadd.f32 %v8200_v21, %v6253_v63  ;;  %4586 = vadd.xlane.f32.xlu0 %v4585_v26  ;;  %v1753_v31 = vpack.c.bf16 %v11580_v5, %v11580_v5  ;;  %vm15784_vm15 = vcmask 589312   ;;  %v11644_v3 = vpop.f32.mrf.mxu3 }
 0x3e3   :  { %v7583_v23 = vperm.slane %v6248_v2, %v9458_v36  ;;  %v11610_v18 = vadd.f32 1.0, %v8202_v51  ;;  %vm6260_vm12 = vcmp.eq.f32.partialorder %v6259_v40, 8.507059e+37  ;;  %v1115_v11 = vadd.f32 %v8693_v42, %v986_v17 }
 0x3e4   :  { %v6258_v53 = vsel %vm6257_vm8, %v8200_v21, %v6254_v14  ;;  %v3414_v48 = vunpack.c.l.bf16 %v11605_v60  ;;  %v1754_v25 = vpack.c.bf16 %v11584_v28, %v11584_v28  ;;  %v3669_v5 = vmul.f32 0.010009766, %v3413_v55  ;;  %v143_v28 = vld [vmem:[%s15465_s0 + $0x390] sm:$0xff] }
 0x3e5   :  { %v7584_v6 = vsel %vm15784_vm15, %v7583_v23, %v11551_v27  ;;  %v6263_v44 = vsel %vm6260_vm12, %v6262_v50, %v6258_v53  ;;  %8203 = vrcp.f32 %v11610_v18  ;;  %v1116_v27 = vadd.f32 %v8693_v42, %v987_v47 }
 0x3e6   :  { %v7585_v22 = vperm.slane %v6263_v44, %v9468_v30  ;;  %v2897_v49 = vpack.c.bf16 %v11567_v45, %v11567_v45  ;;  %vm1498_vm6 = vcmp.ge.f32.partialorder %v1370_v54, 0.0  ;;  %vm15785_vm3 = vcmask 654912   ;;  %v144_v45 = vld [vmem:[%s15465_s0 + $0x398] sm:$0xff] }
 0x3e7   :  { %vm1882_vm5 = vmpackc.low %vm1498_vm6, %vm1498_vm6  ;;  %v2009_v17 = vsel %vm1881_vm7, %v11541_v34, %v1753_v31  ;;  %vm11634_vm14 = vcmp.ge.f32.partialorder %v3413_v55, 0.0  ;;  %v11646_v54 = vpack.c.bf16 %v1115_v11, %v1115_v11  ;;  %v3670_v63 = vmul.f32 0.010009766, %v3414_v48 }
 0x3e8   :  { %v11631_v21 = vsel %vm15785_vm3, %v7585_v22, %v7584_v6  ;;  %v11648_v40 = vpack.c.bf16 %v1116_v27, %v1116_v27  ;;  %v2010_v34 = vsel %vm1882_vm5, %v11547_v8, %v1754_v25  ;;  %v2281_v2 = vunpack.c.l.b16 %v2009_v17  ;;  %vm3925_vm9 = vmpackc.low %vm11634_vm14, %vm11634_vm14 }
 0x3e9   :  { %v3797_v55 = vpack.c.bf16 %v3669_v5, %v3669_v5  ;;  %v11651_v26 = vpop.f32.mrf.mxu2  ;;  %v3030_v23 = vunpack.c.l.bf16 %v2897_v49  ;;  %v2282_v14 = vunpack.c.l.b16 %v2010_v34  ;;  %v214_v47 = vpack.c.bf16 %v144_v45, %v143_v28 }
 0x3ea   :  { %v3798_v6 = vpack.c.bf16 %v3670_v63, %v3670_v63  ;;  %v2898_v8 = vpack.c.bf16 %v11602_v9, %v11602_v9  ;;  %v1371_v44 = vunpack.c.l.bf16 %v11646_v54  ;;  %v1372_v25 = vunpack.c.l.bf16 %v11648_v40 }
 0x3eb   :  { %v8204_v51 = vpop.eup %8203  ;;  %v4053_v31 = vsel %vm3925_vm9, %v11591_v24, %v3797_v55  ;;  %v2363_v53 = vpack.c.b16 %v2282_v14, %v2281_v2  ;;  %7820 = vmatmul.msk.bf16.gmra.mxu3 %vm237_vm0, %v214_v47  ;;  %vm3542_vm8 = vcmp.ge.f32.partialorder %v3414_v48, 0.0  ;;  %v6276_v22 = vand.u32 2147483648, %v11610_v18  ;;  %v11673_v2 = vpop.f32.mrf.mxu3 }
 0x3ec   :  { %v6266_v50 = vmul.f32 %v8204_v51, %v11610_v18  ;;  %v4182_v11 = vunpack.c.l.bf16 %v4053_v31  ;;  %v3159_v27 = vadd.f32 %v8781_v16, %v3030_v23  ;;  %v3031_v49 = vunpack.c.l.bf16 %v2898_v8  ;;  %vm3926_vm12 = vmpackc.low %vm3542_vm8, %vm3542_vm8 }
 0x3ed   :  { %2731 = vmatmul.bf16.gmra.mxu2 %v2363_v53  ;;  %vm6271_vm15 = vweird.f32 %v8204_v51  ;;  %v6274_v52 = vand.u32 2147483647, %v11610_v18  ;;  %v4054_v45 = vsel %vm3926_vm12, %v11605_v60, %v3798_v6  ;;  %vm6270_vm7 = vweird.f32 %v11610_v18 }
 0x3ee   :  { %v6267_v5 = vsub.f32 1.0, %v6266_v50  ;;  %v4313_v24 = vmul.f32 %v11499_v1, %v4182_v11  ;;  %v3160_v28 = vadd.f32 %v8781_v16, %v3031_v49  ;;  %v855_v63 = vpack.c.bf16 %v11561_v15, %v11561_v15  ;;  %vm6272_vm6 = vmor %vm6270_vm7, %vm6271_vm15 }
 0x3ef   :  { %v4183_v34 = vunpack.c.l.bf16 %v4054_v45  ;;  %v1627_v55 = vmul.f32 0.010009766, %v1371_v44  ;;  %v1628_v23 = vmul.f32 0.010009766, %v1372_v25  ;;  %v6277_v14 = vor.u32 1.1754944e-38, %v6276_v22 }
 0x3f0   :  { %v6268_v17 = vmul.f32 %v8204_v51, %v6267_v5  ;;  %v4588_v9 = vsel %vm4368_vm13, %v4313_v24, 0.0  ;;  %v3287_v47 = vpack.c.bf16 %v3159_v27, %v3159_v27  ;;  %vm6275_vm3 = vcmp.eq.f32.partialorder %v6274_v52, 8.507059e+37 }
 0x3f1   :  { %4589 = vadd.xlane.f32.xlu1 %v4588_v9  ;;  %v856_v60 = vpack.c.bf16 %v11597_v41, %v11597_v41  ;;  %v4314_v31 = vmul.f32 %v11499_v1, %v4183_v34  ;;  %vm11678_vm5 = vcmp.ge.f32.partialorder %v1371_v44, 0.0  ;;  %v3288_v53 = vpack.c.bf16 %v3160_v28, %v3160_v28  ;;  %v145_v34 = vld [vmem:[%s15465_s0 + $0x3a0] sm:$0xff] }
 0x3f2   :  { %v6269_v48 = vadd.f32 %v8204_v51, %v6268_v17  ;;  %v2697_v18 = vpop.f32.mrf.mxu2  ;;  %v988_v8 = vunpack.c.l.bf16 %v855_v63  ;;  %v3415_v22 = vunpack.c.l.bf16 %v3287_v47  ;;  %vm1500_vm14 = vcmp.ge.f32.partialorder %v1372_v25, 0.0  ;;  %vm1883_vm9 = vmpackc.low %vm11678_vm5, %vm11678_vm5 }
 0x3f3   :  { %v4591_v5 = vsel %vm4368_vm13, %v4314_v31, 0.0  ;;  %v1756_v41 = vpack.c.bf16 %v1628_v23, %v1628_v23  ;;  %vm15790_vm8 = vcmask 720512   ;;  %v989_v27 = vunpack.c.l.bf16 %v856_v60  ;;  %vm1884_vm15 = vmpackc.low %vm1500_vm14, %vm1500_vm14  ;;  %v11697_v45 = vpop.f32.mrf.mxu3 }
 0x3f4   :  { %v6273_v50 = vsel %vm6272_vm6, %v8204_v51, %v6269_v48  ;;  %4592 = vadd.xlane.f32.xlu2 %v4591_v5  ;;  %v1755_v51 = vpack.c.bf16 %v1627_v55, %v1627_v55  ;;  %v3416_v24 = vunpack.c.l.bf16 %v3288_v53  ;;  %v1117_v49 = vadd.f32 %v8693_v42, %v988_v8 }
 0x3f5   :  { %v6278_v15 = vsel %vm6275_vm3, %v6277_v14, %v6273_v50  ;;  %v2899_v17 = vpack.c.bf16 %v11651_v26, %v11651_v26  ;;  %v3671_v52 = vmul.f32 0.010009766, %v3415_v22  ;;  %v1118_v25 = vadd.f32 %v8693_v42, %v989_v27  ;;  %v146_v26 = vld [vmem:[%s15465_s0 + $0x3a8] sm:$0xff] }
 0x3f6   :  { %v7587_v11 = vperm.slane %v6278_v15, %v9558_v32  ;;  %v2011_v9 = vsel %vm1883_vm9, %v11646_v54, %v1755_v51  ;;  %v2012_v28 = vsel %vm1884_vm15, %v11648_v40, %v1756_v41  ;;  %v3672_v48 = vmul.f32 0.010009766, %v3416_v24 }
 0x3f7   :  { %v2284_v63 = vunpack.c.l.b16 %v2012_v28  ;;  %v1245_v55 = vpack.c.bf16 %v1117_v49, %v1117_v49  ;;  %v3032_v23 = vunpack.c.l.bf16 %v2899_v17  ;;  %vm3543_vm12 = vcmp.ge.f32.partialorder %v3415_v22, 0.0 }
 0x3f8   :  { %v11689_v44 = vsel %vm15790_vm8, %v7587_v11, %v11631_v21  ;;  %v2283_v21 = vunpack.c.l.b16 %v2011_v9  ;;  %v3799_v54 = vpack.c.bf16 %v3671_v52, %v3671_v52  ;;  %v1246_v40 = vpack.c.bf16 %v1118_v25, %v1118_v25  ;;  %vm3927_vm7 = vmpackc.low %vm3543_vm12, %vm3543_vm12 }
 0x3f9   :  { %15791 = vst [vmem:[#allocation17_spill] sm:$0xff] %v11689_v44  ;;  %v215_v60 = vpack.c.bf16 %v146_v26, %v145_v34  ;;  %v2900_v31 = vpack.c.bf16 %v2697_v18, %v2697_v18  ;;  %v3800_v6 = vpack.c.bf16 %v3672_v48, %v3672_v48  ;;  %v857_v15 = vpack.c.bf16 %v11644_v3, %v11644_v3 }
 0x3fa   :  { %v2699_v14 = vpop.f32.mrf.mxu2  ;;  %v2364_v50 = vpack.c.b16 %v2284_v63, %v2283_v21  ;;  %v4055_v11 = vsel %vm3927_vm7, %v3287_v47, %v3799_v54  ;;  %v1373_v8 = vunpack.c.l.bf16 %v1245_v55  ;;  %v3161_v5 = vadd.f32 %v8781_v16, %v3032_v23 }
 0x3fb   :  { %v4184_v51 = vunpack.c.l.bf16 %v4055_v11  ;;  %7821 = vmatmul.msk.bf16.gmra.mxu3 %vm237_vm0, %v215_v60  ;;  %v3033_v41 = vunpack.c.l.bf16 %v2900_v31  ;;  %v858_v22 = vpack.c.bf16 %v11673_v2, %v11673_v2  ;;  %vm3544_vm6 = vcmp.ge.f32.partialorder %v3416_v24, 0.0  ;;  %v11714_v9 = vpop.f32.mrf.mxu3 }
 0x3fc   :  { %v1374_v27 = vunpack.c.l.bf16 %v1246_v40  ;;  %vm3928_vm3 = vmpackc.low %vm3544_vm6, %vm3544_vm6  ;;  %v990_v3 = vunpack.c.l.bf16 %v857_v15  ;;  %v1629_v47 = vmul.f32 0.010009766, %v1373_v8  ;;  %v3289_v52 = vpack.c.bf16 %v3161_v5, %v3161_v5 }
 0x3fd   :  { %2736 = vmatmul.bf16.gmra.mxu2 %v2364_v50  ;;  %v4315_v18 = vmul.f32 %v11499_v1, %v4184_v51  ;;  %v3162_v49 = vadd.f32 %v8781_v16, %v3033_v41  ;;  %v4056_v17 = vsel %vm3928_vm3, %v3288_v53, %v3800_v6  ;;  %v991_v28 = vunpack.c.l.bf16 %v858_v22  ;;  %v11722_v50 = vpop.xlane.xlu1 %4553 }
 0x3fe   :  { %v4185_v48 = vunpack.c.l.bf16 %v4056_v17  ;;  %vm11716_vm5 = vcmp.ge.f32.partialorder %v1373_v8, 0.0  ;;  %v1630_v24 = vmul.f32 0.010009766, %v1374_v27  ;;  %v1119_v34 = vadd.f32 %v8693_v42, %v990_v3  ;;  %15794 = vst [vmem:[#allocation18_spill] sm:$0xff] %v11722_v50 }
 0x3ff   :  { %v4594_v25 = vsel %vm4368_vm13, %v4315_v18, 0.0  ;;  %v3290_v21 = vpack.c.bf16 %v3162_v49, %v3162_v49  ;;  %v1757_v26 = vpack.c.bf16 %v1629_v47, %v1629_v47  ;;  %v3417_v23 = vunpack.c.l.bf16 %v3289_v52  ;;  %vm1885_vm14 = vmpackc.low %vm11716_vm5, %vm11716_vm5  ;;  %v147_v18 = vld [vmem:[%s15465_s0 + $0x3b0] sm:$0xff] }
 0x400   :  { %4595 = vadd.xlane.f32.xlu0 %v4594_v25  ;;  %v4316_v53 = vmul.f32 %v11499_v1, %v4185_v48  ;;  %v1120_v54 = vadd.f32 %v8693_v42, %v991_v28  ;;  %v2901_v31 = vpack.c.bf16 %v2699_v14, %v2699_v14  ;;  %v1758_v6 = vpack.c.bf16 %v1630_v24, %v1630_v24  ;;  %v148_v14 = vld [vmem:[%s15465_s0 + $0x3b8] sm:$0xff] }
 0x401   :  { %v3418_v15 = vunpack.c.l.bf16 %v3290_v21  ;;  %v11729_v11 = vpack.c.bf16 %v1119_v34, %v1119_v34  ;;  %v3673_v8 = vmul.f32 0.010009766, %v3417_v23  ;;  %v859_v5 = vpack.c.bf16 %v11697_v45, %v11697_v45 }
 0x402   :  { %v2702_v63 = vpop.f32.mrf.mxu2  ;;  %v4597_v60 = vsel %vm4368_vm13, %v4316_v53, 0.0  ;;  %vm1502_vm9 = vcmp.ge.f32.partialorder %v1374_v27, 0.0  ;;  %v2013_v51 = vsel %vm1885_vm14, %v1245_v55, %v1757_v26  ;;  %v11733_v41 = vpack.c.bf16 %v1120_v54, %v1120_v54 }
 0x403   :  { %4598 = vadd.xlane.f32.xlu1 %v4597_v60  ;;  %v3034_v22 = vunpack.c.l.bf16 %v2901_v31  ;;  %vm1886_vm8 = vmpackc.low %vm1502_vm9, %vm1502_vm9  ;;  %v3674_v49 = vmul.f32 0.010009766, %v3418_v15  ;;  %v694_v17 = vpop.f32.mrf.mxu3  ;;  %v2285_v47 = vunpack.c.l.b16 %v2013_v51  ;;  %vm11741_vm15 = vcmp.ge.f32.partialorder %v3417_v23, 0.0  ;;  %v11751_v23 = vpop.xlane.xlu2 %4547 }
 0x404   :  { %v2014_v3 = vsel %vm1886_vm8, %v1246_v40, %v1758_v6  ;;  %v1375_v55 = vunpack.c.l.bf16 %v11729_v11  ;;  %v992_v27 = vunpack.c.l.bf16 %v859_v5  ;;  %v3801_v28 = vpack.c.bf16 %v3673_v8, %v3673_v8  ;;  %vm3929_vm12 = vmpackc.low %vm11741_vm15, %vm11741_vm15  ;;  %15797 = vst [vmem:[#allocation19_spill] sm:$0xff] %v11751_v23  ;;  %v11756_v6 = vpop.xlane.xlu0 %4550 }
 0x405   :  { %v2286_v25 = vunpack.c.l.b16 %v2014_v3  ;;  %v216_v48 = vpack.c.bf16 %v148_v14, %v147_v18  ;;  %v4563_v2 = vpop.xlane.xlu1 %4562  ;;  %v1376_v34 = vunpack.c.l.bf16 %v11733_v41  ;;  %v3163_v53 = vadd.f32 %v8781_v16, %v3034_v22  ;;  %15798 = vst [vmem:[#allocation20_spill] sm:$0xff] %v11756_v6 }
 0x406   :  { %v2902_v40 = vpack.c.bf16 %v2702_v63, %v2702_v63  ;;  %v3802_v54 = vpack.c.bf16 %v3674_v49, %v3674_v49  ;;  %v860_v60 = vpack.c.bf16 %v11714_v9, %v11714_v9  ;;  %v4057_v31 = vsel %vm3929_vm12, %v3289_v52, %v3801_v28 }
 0x407   :  { %v2365_v26 = vpack.c.b16 %v2286_v25, %v2285_v47  ;;  %vm3546_vm7 = vcmp.ge.f32.partialorder %v3418_v15, 0.0  ;;  %v4819_v8 = vadd.f32 %v9036_v59, %v4563_v2  ;;  %v1121_v5 = vadd.f32 %v8693_v42, %v992_v27 }
 0x408   :  { %v4186_v51 = vunpack.c.l.bf16 %v4057_v31  ;;  %v1631_v22 = vmul.f32 0.010009766, %v1375_v55  ;;  %v11760_v63 = vpack.c.bf16 %v3163_v53, %v3163_v53  ;;  %v3035_v18 = vunpack.c.l.bf16 %v2902_v40  ;;  %vm3930_vm6 = vmpackc.low %vm3546_vm7, %vm3546_vm7 }
 0x409   :  { %v1632_v14 = vmul.f32 0.010009766, %v1376_v34  ;;  %v993_v49 = vunpack.c.l.bf16 %v860_v60  ;;  %v4058_v9 = vsel %vm3930_vm6, %v3290_v21, %v3802_v54  ;;  %v861_v3 = vpack.c.bf16 %v694_v17, %v694_v17 }
 0x40a   :  { %v2704_v24 = vpop.f32.mrf.mxu2  ;;  %v4317_v52 = vmul.f32 %v11499_v1, %v4186_v51  ;;  %v3164_v15 = vadd.f32 %v8781_v16, %v3035_v18  ;;  %v4187_v47 = vunpack.c.l.bf16 %v4058_v9  ;;  %v7923_v25 = vmul.f32 -1.442695, %v4819_v8 }
 0x40b   :  { %7822 = vmatmul.msk.bf16.gmra.mxu3 %vm237_vm0, %v216_v48  ;;  %vm11764_vm3 = vcmp.ge.f32.partialorder %v1375_v55, 0.0  ;;  %v11768_v27 = vpack.c.bf16 %v1121_v5, %v1121_v5  ;;  %v696_v48 = vpop.f32.mrf.mxu3  ;;  %v3419_v2 = vunpack.c.l.bf16 %v11760_v63  ;;  %v1759_v17 = vpack.c.bf16 %v1631_v22, %v1631_v22 }
 0x40c   :  { %v4600_v28 = vsel %vm4368_vm13, %v4317_v52, 0.0  ;;  %v11772_v53 = vpack.c.bf16 %v3164_v15, %v3164_v15  ;;  %v4318_v21 = vmul.f32 %v11499_v1, %v4187_v47  ;;  %8205 = vpow2.f32 %v7923_v25  ;;  %v11778_v60 = vpop.xlane.xlu0 %4559  ;;  %vm1887_vm5 = vmpackc.low %vm11764_vm3, %vm11764_vm3 }
 0x40d   :  { %2741 = vmatmul.bf16.gmra.mxu2 %v2365_v26  ;;  %4601 = vadd.xlane.f32.xlu2 %v4600_v28  ;;  %v11775_v26 = vpop.xlane.xlu2 %4556  ;;  %v1122_v55 = vadd.f32 %v8693_v42, %v993_v49  ;;  %v1760_v54 = vpack.c.bf16 %v1632_v14, %v1632_v14  ;;  %15802 = vst [vmem:[#allocation22_spill] sm:$0xff] %v11778_v60  ;;  %v994_v31 = vunpack.c.l.bf16 %v861_v3  ;;  %v1377_v51 = vunpack.c.l.bf16 %v11768_v27 }
 0x40e   :  { %15801 = vst [vmem:[#allocation21_spill] sm:$0xff] %v11775_v26  ;;  %v4603_v8 = vsel %vm4368_vm13, %v4318_v21, 0.0  ;;  %v2903_v5 = vpack.c.bf16 %v2704_v24, %v2704_v24  ;;  %v3420_v22 = vunpack.c.l.bf16 %v11772_v53  ;;  %v862_v18 = vpack.c.bf16 %v696_v48, %v696_v48 }
 0x40f   :  { %4604 = vadd.xlane.f32.xlu0 %v4603_v8  ;;  %vm1504_vm14 = vcmp.ge.f32.partialorder %v1376_v34, 0.0  ;;  %v3675_v49 = vmul.f32 0.010009766, %v3419_v2  ;;  %v11786_v14 = vpack.c.bf16 %v1122_v55, %v1122_v55  ;;  %v1123_v9 = vadd.f32 %v8693_v42, %v994_v31  ;;  %v149_v31 = vld [vmem:[%s15465_s0 + $0x3c0] sm:$0xff] }
 0x410   :  { %vm1888_vm9 = vmpackc.low %vm1504_vm14, %vm1504_vm14  ;;  %v3036_v15 = vunpack.c.l.bf16 %v2903_v5  ;;  %v2015_v24 = vsel %vm1887_vm5, %v11729_v11, %v1759_v17  ;;  %v11791_v47 = vmul.f32 0.010009766, %v1377_v51  ;;  %v3676_v25 = vmul.f32 0.010009766, %v3420_v22  ;;  %v150_v11 = vld [vmem:[%s15465_s0 + $0x3c8] sm:$0xff] }
 0x411   :  { %v2016_v3 = vsel %vm1888_vm9, %v11733_v41, %v1760_v54  ;;  %v995_v28 = vunpack.c.l.bf16 %v862_v18  ;;  %v2287_v48 = vunpack.c.l.b16 %v2015_v24  ;;  %vm11795_vm8 = vcmp.ge.f32.partialorder %v3419_v2, 0.0 }
 0x412   :  { %v2707_v40 = vpop.f32.mrf.mxu2  ;;  %v8206_v52 = vpop.eup %8205  ;;  %v2288_v34 = vunpack.c.l.b16 %v2016_v3  ;;  %v3803_v55 = vpack.c.bf16 %v3675_v49, %v3675_v49  ;;  %v1378_v41 = vunpack.c.l.bf16 %v11786_v14  ;;  %vm11807_vm15 = vcmp.ge.f32.partialorder %v1377_v51, 0.0  ;;  %vm3931_vm12 = vmpackc.low %vm11795_vm8, %vm11795_vm8 }
 0x413   :  { %v11793_v45 = vadd.f32 1.0, %v8206_v52  ;;  %v699_v54 = vpop.f32.mrf.mxu3  ;;  %v11811_v8 = vpack.c.bf16 %v1123_v9, %v1123_v9  ;;  %v3165_v5 = vadd.f32 %v8781_v16, %v3036_v15  ;;  %v3804_v49 = vpack.c.bf16 %v3676_v25, %v3676_v25  ;;  %vm1889_vm3 = vmpackc.low %vm11807_vm15, %vm11807_vm15 }
 0x414   :  { %v2366_v52 = vpack.c.b16 %v2288_v34, %v2287_v48  ;;  %v4059_v24 = vsel %vm3931_vm12, %v11760_v63, %v3803_v55  ;;  %v217_v3 = vpack.c.bf16 %v150_v11, %v149_v31  ;;  %v1761_v51 = vpack.c.bf16 %v11791_v47, %v11791_v47 }
 0x415   :  { %8207 = vrcp.f32 %v11793_v45  ;;  %v4566_v17 = vpop.xlane.xlu2 %4565  ;;  %v1124_v32 = vadd.f32 %v8693_v42, %v995_v28  ;;  %v4188_v9 = vunpack.c.l.bf16 %v4059_v24  ;;  %v1634_v15 = vmul.f32 0.010009766, %v1378_v41 }
 0x416   :  { %v4820_v43 = vadd.f32 %v9036_v59, %v4566_v17  ;;  %v2904_v21 = vpack.c.bf16 %v2707_v40, %v2707_v40  ;;  %vm3548_vm7 = vcmp.ge.f32.partialorder %v3420_v22, 0.0  ;;  %v15490_v63 = vunpack.c.l.bf16 %v11811_v8 }
 0x417   :  { %v4319_v48 = vmul.f32 %v11499_v1, %v4188_v9  ;;  %vm3932_vm6 = vmpackc.low %vm3548_vm7, %vm3548_vm7  ;;  %v11828_v28 = vpack.c.bf16 %v3165_v5, %v3165_v5  ;;  %v11833_v22 = vpack.c.bf16 %v1124_v32, %v1124_v32  ;;  %vm11840_vm5 = vcmp.ge.f32.partialorder %v1378_v41, 0.0 }
 0x418   :  { %v7924_v34 = vmul.f32 -1.442695, %v4820_v43  ;;  %v3037_v31 = vunpack.c.l.bf16 %v2904_v21  ;;  %v4060_v11 = vsel %vm3932_vm6, %v11772_v53, %v3804_v49  ;;  %v1762_v53 = vpack.c.bf16 %v1634_v15, %v1634_v15  ;;  %vm1890_vm14 = vmpackc.low %vm11840_vm5, %vm11840_vm5 }
 0x419   :  { %v3421_v41 = vunpack.c.l.bf16 %v11828_v28  ;;  %v15489_v21 = vunpack.c.l.bf16 %v11833_v22  ;;  %vm6360_vm9 = vweird.f32 %v11793_v45 }
 0x41a   :  { %v4569_v18 = vpop.xlane.xlu0 %4568  ;;  %v2709_v44 = vpop.f32.mrf.mxu2  ;;  %8209 = vpow2.f32 %v7924_v34  ;;  %v3166_v43 = vadd.f32 %v8781_v16, %v3037_v31 }
 0x41b   :  { %7823 = vmatmul.msk.bf16.gmra.mxu3 %vm237_vm0, %v217_v3  ;;  %v4821_v25 = vadd.f32 %v9036_v59, %v4569_v18  ;;  %v2905_v47 = vpack.c.bf16 %v2709_v44, %v2709_v44  ;;  %v11826_v55 = vpop.eup %8207  ;;  %v4606_v18 = vsel %vm4368_vm13, %v4319_v48, 0.0  ;;  %v863_v44 = vpack.c.bf16 %v699_v54, %v699_v54  ;;  %v701_v9 = vpop.f32.mrf.mxu3 }
 0x41c   :  { %v6356_v40 = vmul.f32 %v11826_v55, %v11793_v45  ;;  %4607 = vadd.xlane.f32.xlu1 %v4606_v18  ;;  %v11844_v32 = vpack.c.bf16 %v3166_v43, %v3166_v43  ;;  %v11852_v54 = vmul.f32 0.010009766, %v15490_v63  ;;  %vm6361_vm8 = vweird.f32 %v11826_v55 }
 0x41d   :  { %2746 = vmatmul.bf16.gmra.mxu2 %v2366_v52  ;;  %v7925_v17 = vmul.f32 -1.442695, %v4821_v25  ;;  %v4189_v52 = vunpack.c.l.bf16 %v4060_v11  ;;  %v3038_v49 = vunpack.c.l.bf16 %v2905_v47  ;;  %v6364_v25 = vand.u32 2147483647, %v11793_v45  ;;  %vm11884_vm15 = vmor %vm6360_vm9, %vm6361_vm8 }
 0x41e   :  { %v6357_v5 = vsub.f32 1.0, %v6356_v40  ;;  %v996_v48 = vunpack.c.l.bf16 %v863_v44  ;;  %v864_v11 = vpack.c.bf16 %v701_v9, %v701_v9  ;;  %v2018_v40 = vsel %vm1890_vm14, %v11786_v14, %v1762_v53 }
 0x41f   :  { %8211 = vpow2.f32 %v7925_v17  ;;  %v4320_v3 = vmul.f32 %v11499_v1, %v4189_v52  ;;  %v3167_v31 = vadd.f32 %v8781_v16, %v3038_v49  ;;  %v2017_v17 = vsel %vm1889_vm3, %v11768_v27, %v1761_v51 }
 0x420   :  { %v6358_v15 = vmul.f32 %v11826_v55, %v6357_v5  ;;  %v8210_v47 = vpop.eup %8209  ;;  %v3422_v52 = vunpack.c.l.bf16 %v11844_v32  ;;  %v6366_v5 = vand.u32 2147483648, %v11793_v45  ;;  %v3677_v49 = vmul.f32 0.010009766, %v3421_v41  ;;  %v152_v45 = vld [vmem:[%s15465_s0 + $0x3d8] sm:$0xff] }
 0x421   :  { %v4609_v34 = vsel %vm4368_vm13, %v4320_v3, 0.0  ;;  %v11870_v44 = vadd.f32 1.0, %v8210_v47  ;;  %v11876_v24 = vmul.f32 0.010009766, %v15489_v21  ;;  %v1125_v14 = vadd.f32 %v8693_v42, %v996_v48  ;;  %v151_v48 = vld [vmem:[%s15465_s0 + $0x3d0] sm:$0xff] }
 0x422   :  { %4610 = vadd.xlane.f32.xlu2 %v4609_v34  ;;  %v6359_v43 = vadd.f32 %v11826_v55, %v6358_v15  ;;  %v2712_v27 = vpop.f32.mrf.mxu2  ;;  %v2289_v51 = vunpack.c.l.b16 %v2017_v17  ;;  %v2290_v53 = vunpack.c.l.b16 %v2018_v40  ;;  %v11888_v9 = vpack.c.bf16 %v3167_v31, %v3167_v31 }
 0x423   :  { %8213 = vrcp.f32 %v11870_v44  ;;  %v997_v15 = vunpack.c.l.bf16 %v864_v11  ;;  %v3678_v47 = vmul.f32 0.010009766, %v3422_v52  ;;  %vm6365_vm12 = vcmp.eq.f32.partialorder %v6364_v25, 8.507059e+37 }
 0x424   :  { %v6363_v34 = vsel %vm11884_vm15, %v11826_v55, %v6359_v43  ;;  %v6367_v11 = vor.u32 1.1754944e-38, %v6366_v5  ;;  %v4572_v55 = vpop.xlane.xlu1 %4571  ;;  %v11904_v40 = vpack.c.bf16 %v1125_v14, %v1125_v14  ;;  %vm3549_vm7 = vcmp.ge.f32.partialorder %v3421_v41, 0.0 }
 0x425   :  { %v8212_v18 = vpop.eup %8211  ;;  %v3805_v43 = vpack.c.bf16 %v3677_v49, %v3677_v49  ;;  %v11910_v63 = vadd.f32 %v8693_v42, %v997_v15  ;;  %vm3933_vm6 = vmpackc.low %vm3549_vm7, %vm3549_vm7  ;;  %v218_v31 = vpack.c.bf16 %v152_v45, %v151_v48  ;;  %v3806_v5 = vpack.c.bf16 %v3678_v47, %v3678_v47 }
 0x426   :  { %v11878_v2 = vadd.f32 1.0, %v8212_v18  ;;  %v2367_v18 = vpack.c.b16 %v2290_v53, %v2289_v51  ;;  %v11906_v3 = vsel %vm6365_vm12, %v6367_v11, %v6363_v34  ;;  %v4822_v14 = vadd.f32 %v9036_v59, %v4572_v55  ;;  %v704_v51 = vpop.f32.mrf.mxu3 }
 0x427   :  { %v4061_v17 = vsel %vm3933_vm6, %v11828_v28, %v3805_v43  ;;  %v2906_v0 = vpack.c.bf16 %v2712_v27, %v2712_v27  ;;  %v15811_v41 = vunpack.c.l.bf16 %v11811_v8  ;;  %vm6375_vm5 = vweird.f32 %v11870_v44 }
 0x428   :  { %8215 = vrcp.f32 %v11878_v2  ;;  %v6379_v15 = vand.u32 2147483647, %v11870_v44  ;;  %v4190_v34 = vunpack.c.l.bf16 %v4061_v17  ;;  %v7599_v27 = vperm.slane %v11906_v3, %v9086_v4 }
 0x429   :  { %v8214_v25 = vpop.eup %8213  ;;  %vm11916_vm3 = vcmp.ge.f32.partialorder %v15811_v41, 0.0  ;;  %v7926_v47 = vmul.f32 -1.442695, %v4822_v14  ;;  %v3039_v48 = vunpack.c.l.bf16 %v2906_v0  ;;  %vm3550_vm14 = vcmp.ge.f32.partialorder %v3422_v52, 0.0 }
 0x42a   :  { %v6371_v53 = vmul.f32 %v8214_v25, %v11870_v44  ;;  %v6381_v11 = vand.u32 2147483648, %v11870_v44  ;;  %vm3934_vm9 = vmpackc.low %vm3550_vm14, %vm3550_vm14  ;;  %v2714_v41 = vpop.f32.mrf.mxu2  ;;  %vm6376_vm8 = vweird.f32 %v8214_v25  ;;  %v6396_v21 = vand.u32 2147483648, %v11878_v2 }
 0x42b   :  { %7824 = vmatmul.msk.bf16.gmra.mxu3 %vm237_vm0, %v218_v31  ;;  %v4575_v43 = vpop.xlane.xlu2 %4574  ;;  %8217 = vpow2.f32 %v7926_v47  ;;  %v3168_v31 = vadd.f32 %v8781_v16, %v3039_v48  ;;  %v4062_v17 = vsel %vm3934_vm9, %v11844_v32, %v3806_v5  ;;  %vm6377_vm12 = vmor %vm6375_vm5, %vm6376_vm8  ;;  %vm6380_vm7 = vcmp.eq.f32.partialorder %v6379_v15, 8.507059e+37 }
 0x42c   :  { %v6372_v45 = vsub.f32 1.0, %v6371_v53  ;;  %v4191_v52 = vunpack.c.l.bf16 %v4062_v17  ;;  %v6394_v53 = vand.u32 2147483647, %v11878_v2  ;;  %v4823_v60 = vadd.f32 %v9036_v59, %v4575_v43  ;;  %vm1891_vm5 = vmpackc.low %vm11916_vm3, %vm11916_vm3 }
 0x42d   :  { %2751 = vmatmul.bf16.gmra.mxu2 %v2367_v18  ;;  %v4321_v18 = vmul.f32 %v11499_v1, %v4190_v34  ;;  %v865_v34 = vpack.c.bf16 %v704_v51, %v704_v51  ;;  %v6382_v32 = vor.u32 1.1754944e-38, %v6381_v11  ;;  %vm6390_vm6 = vweird.f32 %v11878_v2 }
 0x42e   :  { %v8216_v28 = vpop.eup %8215  ;;  %v6373_v3 = vmul.f32 %v8214_v25, %v6372_v45  ;;  %v4322_v47 = vmul.f32 %v11499_v1, %v4191_v52  ;;  %v7927_v5 = vmul.f32 -1.442695, %v4823_v60  ;;  %vm6395_vm9 = vcmp.eq.f32.partialorder %v6394_v53, 8.507059e+37  ;;  %v706_v44 = vpop.f32.mrf.mxu3 }
 0x42f   :  { %v6386_v55 = vmul.f32 %v8216_v28, %v11878_v2  ;;  %v4612_v0 = vsel %vm4368_vm13, %v4321_v18, 0.0  ;;  %vm6391_vm15 = vweird.f32 %v8216_v28  ;;  %v6397_v1 = vor.u32 1.1754944e-38, %v6396_v21 }
 0x430   :  { %4613 = vadd.xlane.f32.xlu0 %v4612_v0  ;;  %v6374_v26 = vadd.f32 %v8214_v25, %v6373_v3  ;;  %v4615_v51 = vsel %vm4368_vm13, %v4322_v47, 0.0  ;;  %vm6392_vm14 = vmor %vm6390_vm6, %vm6391_vm15  ;;  %v998_v17 = vunpack.c.l.bf16 %v865_v34  ;;  %8219 = vpow2.f32 %v7927_v5  ;;  %v153_v0 = vld [vmem:[%s15465_s0 + $0x3e0] sm:$0xff] }
 0x431   :  { %v6387_v14 = vsub.f32 1.0, %v6386_v55  ;;  %v11940_v55 = vpack.c.bf16 %v3168_v31, %v3168_v31  ;;  %v8218_v18 = vpop.eup %8217  ;;  %4616 = vadd.xlane.f32.xlu1 %v4615_v51  ;;  %v11953_v21 = vpack.c.bf16 %v11910_v63, %v11910_v63  ;;  %v2907_v2 = vpack.c.bf16 %v2714_v41, %v2714_v41  ;;  %v154_v63 = vld [vmem:[%s15465_s0 + $0x3e8] sm:$0xff] }
 0x432   :  { %v6378_v48 = vsel %vm6377_vm12, %v8214_v25, %v6374_v26  ;;  %v11944_v3 = vadd.f32 1.0, %v8218_v18  ;;  %v15814_v26 = vunpack.c.l.bf16 %v11888_v9  ;;  %v15816_v52 = vpack.c.bf16 %v11852_v54, %v11852_v54 }
 0x433   :  { %v6388_v38 = vmul.f32 %v8216_v28, %v6387_v14  ;;  %v6383_v43 = vsel %vm6380_vm7, %v6382_v32, %v6378_v48  ;;  %v3424_v31 = vunpack.c.l.bf16 %v11940_v55  ;;  %v1127_v14 = vadd.f32 %v8693_v42, %v998_v17 }
 0x434   :  { %v7600_v15 = vperm.slane %v6383_v43, %v9105_v19  ;;  %v3679_v60 = vmul.f32 0.010009766, %v15814_v26  ;;  %8221 = vrcp.f32 %v11944_v3  ;;  %v2019_v53 = vsel %vm1891_vm5, %v11811_v8, %v15816_v52  ;;  %v155_v52 = vld [vmem:[%s15465_s0 + $0x3f0] sm:$0xff] }
 0x435   :  { %v6389_v45 = vadd.f32 %v8216_v28, %v6388_v38  ;;  %v2717_v49 = vpop.f32.mrf.mxu2  ;;  %v15817_v34 = vmov %v15814_v26  ;;  %v1381_v32 = vunpack.c.l.bf16 %v11904_v40  ;;  %v1382_v5 = vunpack.c.l.bf16 %v11953_v21 }
 0x436   :  { %v7601_v25 = vsel %vm7448_vm1, %v7600_v15, %v7599_v27  ;;  %v15815_v27 = vunpack.c.l.bf16 %v11833_v22  ;;  %vm11977_vm8 = vcmp.ge.f32.partialorder %v15817_v34, 0.0  ;;  %v3040_v48 = vunpack.c.l.bf16 %v2907_v2  ;;  %v8220_v18 = vpop.eup %8219 }
 0x437   :  { %v6393_v11 = vsel %vm6392_vm14, %v8216_v28, %v6389_v45  ;;  %v866_v45 = vpack.c.bf16 %v706_v44, %v706_v44  ;;  %v3680_v43 = vmul.f32 0.010009766, %v3424_v31  ;;  %v15820_v54 = vpack.c.bf16 %v11876_v24, %v11876_v24  ;;  %vm3935_vm12 = vmpackc.low %vm11977_vm8, %vm11977_vm8 }
 0x438   :  { %v6398_v38 = vsel %vm6395_vm9, %v6397_v1, %v6393_v11  ;;  %vm1508_vm3 = vcmp.ge.f32.partialorder %v15815_v27, 0.0  ;;  %v3807_v1 = vpack.c.bf16 %v3679_v60, %v3679_v60  ;;  %v219_v17 = vpack.c.bf16 %v154_v63, %v153_v0  ;;  %v12003_v0 = vpop.f32.mrf.mxu3 }
 0x439   :  { %v7602_v28 = vperm.slane %v6398_v38, %v9109_v20  ;;  %vm1892_vm15 = vmpackc.low %vm1508_vm3, %vm1508_vm3  ;;  %v11987_v15 = vadd.f32 1.0, %v8220_v18  ;;  %v2291_v11 = vunpack.c.l.b16 %v2019_v53  ;;  %v11992_v26 = vpack.c.bf16 %v1127_v14, %v1127_v14 }
 0x43a   :  { %v2020_v8 = vsel %vm1892_vm15, %v11833_v22, %v15820_v54  ;;  %v8222_v44 = vpop.eup %8221  ;;  %v4063_v2 = vsel %vm3935_vm12, %v11888_v9, %v3807_v1  ;;  %v2908_v22 = vpack.c.bf16 %v2717_v49, %v2717_v49  ;;  %v11997_v60 = vmul.f32 0.010009766, %v1381_v32 }
 0x43b   :  { %v11967_v41 = vsel %vm15512_vm10, %v7602_v28, %v7601_v25  ;;  %v4578_v51 = vpop.xlane.xlu0 %4577  ;;  %v2292_v38 = vunpack.c.l.b16 %v2020_v8  ;;  %7825 = vmatmul.msk.bf16.gmra.mxu3 %vm237_vm0, %v219_v17  ;;  %v11999_v25 = vmul.f32 0.010009766, %v1382_v5  ;;  %v6401_v28 = vmul.f32 %v8222_v44, %v11944_v3 }
 0x43c   :  { %v4824_v24 = vadd.f32 %v9036_v59, %v4578_v51  ;;  %8223 = vrcp.f32 %v11987_v15  ;;  %vm12005_vm7 = vcmp.ge.f32.partialorder %v1381_v32, 0.0  ;;  %v3808_v9 = vpack.c.bf16 %v3680_v43, %v3680_v43 }
 0x43d   :  { %v3169_v63 = vadd.f32 %v8781_v16, %v3040_v48  ;;  %v999_v27 = vunpack.c.l.bf16 %v866_v45  ;;  %vm12010_vm6 = vcmp.ge.f32.partialorder %v3424_v31, 0.0  ;;  %vm12014_vm14 = vcmp.ge.f32.partialorder %v1382_v5, 0.0  ;;  %v2719_v31 = vpop.f32.mrf.mxu2  ;;  %v12024_v5 = vld [vmem:[%s15470_s5] ss:$0 sm:$0xff] }
 0x43e   :  { %v6402_v53 = vsub.f32 1.0, %v6401_v28  ;;  %v2368_v34 = vpack.c.b16 %v2292_v38, %v2291_v11  ;;  %v4192_v47 = vunpack.c.l.bf16 %v4063_v2  ;;  %v7928_v51 = vmul.f32 -1.442695, %v4824_v24  ;;  %vm3936_vm5 = vmpackc.low %vm12010_vm6, %vm12010_vm6 }
 0x43f   :  { %v6409_v18 = vand.u32 2147483647, %v11944_v3  ;;  %v6411_v43 = vand.u32 2147483648, %v11944_v3  ;;  %v1383_v48 = vunpack.c.l.bf16 %v11992_v26  ;;  %v3041_v45 = vunpack.c.l.bf16 %v2908_v22  ;;  %vm1893_vm6 = vmpackc.low %vm12005_vm7, %vm12005_vm7 }
 0x440   :  { %v4581_v32 = vpop.xlane.xlu1 %4580  ;;  %v6403_v54 = vmul.f32 %v8222_v44, %v6402_v53  ;;  %vm6406_vm9 = vweird.f32 %v8222_v44  ;;  %2756 = vmatmul.bf16.gmra.mxu2 %v2368_v34  ;;  %v4323_v8 = vmul.f32 %v12024_v5, %v4192_v47  ;;  %8225 = vpow2.f32 %v7928_v51 }
 0x441   :  { %vm6405_vm3 = vweird.f32 %v11944_v3  ;;  %v1128_v1 = vadd.f32 %v8693_v42, %v999_v27  ;;  %v4064_v17 = vsel %vm3936_vm5, %v11940_v55, %v3808_v9  ;;  %v4825_v11 = vadd.f32 %v9036_v59, %v4581_v32 }
 0x442   :  { %v8224_v38 = vpop.eup %8223  ;;  %v6404_v2 = vadd.f32 %v8222_v44, %v6403_v54  ;;  %v12034_v24 = vpack.c.bf16 %v3169_v63, %v3169_v63  ;;  %v4618_v22 = vsel %vm4368_vm13, %v4323_v8, 0.0  ;;  %v4193_v28 = vunpack.c.l.bf16 %v4064_v17  ;;  %vm6407_vm8 = vmor %vm6405_vm3, %vm6406_vm9  ;;  %v12047_v17 = vpop.f32.mrf.mxu3 }
 0x443   :  { %v6412_v49 = vor.u32 1.1754944e-38, %v6411_v43  ;;  %v6416_v53 = vmul.f32 %v8224_v38, %v11987_v15  ;;  %4619 = vadd.xlane.f32.xlu2 %v4618_v22  ;;  %v3170_v3 = vadd.f32 %v8781_v16, %v3041_v45  ;;  %v7929_v27 = vmul.f32 -1.442695, %v4825_v11  ;;  %vm1894_vm9 = vmpackc.low %vm12014_vm14, %vm12014_vm14 }
 0x444   :  { %v6408_v34 = vsel %vm6407_vm8, %v8222_v44, %v6404_v2  ;;  %vm6410_vm15 = vcmp.eq.f32.partialorder %v6409_v18, 8.507059e+37  ;;  %v4324_v55 = vmul.f32 %v12024_v5, %v4193_v28  ;;  %v2909_v9 = vpack.c.bf16 %v2719_v31, %v2719_v31 }
 0x445   :  { %v6413_v47 = vsel %vm6410_vm15, %v6412_v49, %v6408_v34  ;;  %v6417_v63 = vsub.f32 1.0, %v6416_v53  ;;  %v12041_v51 = vpack.c.bf16 %v1128_v1, %v1128_v1  ;;  %8227 = vpow2.f32 %v7929_v27  ;;  %v2722_v49 = vpop.f32.mrf.mxu2 }
 0x446   :  { %v8226_v32 = vpop.eup %8225  ;;  %v7604_v54 = vperm.slane %v6413_v47, %v9152_v61  ;;  %v6424_v43 = vand.u32 2147483647, %v11987_v15  ;;  %v6426_v8 = vand.u32 2147483648, %v11987_v15  ;;  %v4621_v45 = vsel %vm4368_vm13, %v4324_v55, 0.0 }
 0x447   :  { %v6418_v44 = vmul.f32 %v8224_v38, %v6417_v63  ;;  %vm6421_vm12 = vweird.f32 %v8224_v38  ;;  %v12049_v18 = vadd.f32 1.0, %v8226_v32  ;;  %v12051_v31 = vpack.c.bf16 %v3170_v3, %v3170_v3  ;;  %4622 = vadd.xlane.f32.xlu0 %v4621_v45 }
 0x448   :  { %v1765_v1 = vpack.c.bf16 %v11997_v60, %v11997_v60  ;;  %v1766_v11 = vpack.c.bf16 %v11999_v25, %v11999_v25  ;;  %v7605_v2 = vsel %vm15511_vm2, %v7604_v54, %v11967_v41  ;;  %v3042_v22 = vunpack.c.l.bf16 %v2909_v9 }
 0x449   :  { %v6419_v28 = vadd.f32 %v8224_v38, %v6418_v44  ;;  %vm6420_vm5 = vweird.f32 %v11987_v15  ;;  %v3425_v60 = vunpack.c.l.bf16 %v12034_v24  ;;  %8229 = vrcp.f32 %v12049_v18 }
 0x44a   :  { %v12070_v53 = vmul.f32 0.010009766, %v1383_v48  ;;  %vm6422_vm3 = vmor %vm6420_vm5, %vm6421_vm12  ;;  %v6427_v41 = vor.u32 1.1754944e-38, %v6426_v8  ;;  %v1384_v25 = vunpack.c.l.bf16 %v12041_v51  ;;  %vm6425_vm8 = vcmp.eq.f32.partialorder %v6424_v43, 8.507059e+37 }
 0x44b   :  { %v8228_v3 = vpop.eup %8227  ;;  %v6423_v27 = vsel %vm6422_vm3, %v8224_v38, %v6419_v28  ;;  %v3426_v34 = vunpack.c.l.bf16 %v12051_v31  ;;  %v867_v15 = vpack.c.bf16 %v12003_v0, %v12003_v0  ;;  %v3171_v47 = vadd.f32 %v8781_v16, %v3042_v22 }
 0x44c   :  { %v6428_v55 = vsel %vm6425_vm8, %v6427_v41, %v6423_v27  ;;  %v12077_v9 = vadd.f32 1.0, %v8228_v3  ;;  %v2021_v63 = vsel %vm1893_vm6, %v11904_v40, %v1765_v1  ;;  %v3681_v32 = vmul.f32 0.010009766, %v3425_v60  ;;  %v12114_v41 = vpop.f32.mrf.mxu3 }
 0x44d   :  { %v7606_v38 = vperm.slane %v6428_v55, %v9281_v10  ;;  %v2022_v0 = vsel %vm1894_vm9, %v11953_v21, %v1766_v11  ;;  %v12095_v43 = vmul.f32 0.010009766, %v1384_v25  ;;  %v12101_v8 = vunpack.c.l.bf16 %v867_v15  ;;  %v156_v21 = vld [vmem:[%s15465_s0 + $0x3f8] sm:$0xff] }
 0x44e   :  { %8231 = vrcp.f32 %v12077_v9  ;;  %v2293_v45 = vunpack.c.l.b16 %v2021_v63  ;;  %v2294_v44 = vunpack.c.l.b16 %v2022_v0  ;;  %v3682_v22 = vmul.f32 0.010009766, %v3426_v34 }
 0x44f   :  { %v8230_v14 = vpop.eup %8229  ;;  %v12099_v40 = vsel %vm15510_vm11, %v7606_v38, %v7605_v2  ;;  %v4584_v1 = vpop.xlane.xlu2 %4583  ;;  %v12110_v28 = vpack.c.bf16 %v3171_v47, %v3171_v47  ;;  %v868_v2 = vpack.c.bf16 %v12047_v17, %v12047_v17  ;;  %v6439_v3 = vand.u32 2147483647, %v12049_v18 }
 0x450   :  { %v6431_v11 = vmul.f32 %v8230_v14, %v12049_v18  ;;  %v2369_v27 = vpack.c.b16 %v2294_v44, %v2293_v45  ;;  %vm3553_vm7 = vcmp.ge.f32.partialorder %v3425_v60, 0.0  ;;  %v3809_v15 = vpack.c.bf16 %v3681_v32, %v3681_v32  ;;  %v12131_v32 = vpop.f32.mrf.mxu2 }
 0x451   :  { %vm12119_vm14 = vcmp.ge.f32.partialorder %v1383_v48, 0.0  ;;  %vm3937_vm15 = vmpackc.low %vm3553_vm7, %vm3553_vm7  ;;  %v220_v47 = vpack.c.bf16 %v156_v21, %v155_v52  ;;  %v4826_v38 = vadd.f32 %v9036_v59, %v4584_v1  ;;  %v2910_v0 = vpack.c.bf16 %v2722_v49, %v2722_v49 }
 0x452   :  { %v6432_v63 = vsub.f32 1.0, %v6431_v11  ;;  %vm12124_vm12 = vcmp.ge.f32.partialorder %v1384_v25, 0.0  ;;  %vm6435_vm6 = vweird.f32 %v12049_v18  ;;  %vm6436_vm9 = vweird.f32 %v8230_v14  ;;  %2761 = vmatmul.bf16.gmra.mxu2 %v2369_v27 }
 0x453   :  { %v6441_v60 = vand.u32 2147483648, %v12049_v18  ;;  %v4065_v48 = vsel %vm3937_vm15, %v12034_v24, %v3809_v15  ;;  %7826 = vmatmul.msk.bf16.gmra.mxu3 %vm237_vm0, %v220_v47  ;;  %v7930_v49 = vmul.f32 -1.442695, %v4826_v38  ;;  %v3043_v25 = vunpack.c.l.bf16 %v2910_v0  ;;  %vm6437_vm0 = vmor %vm6435_vm6, %vm6436_vm9 }
 0x454   :  { %v8232_v45 = vpop.eup %8231  ;;  %v6433_v44 = vmul.f32 %v8230_v14, %v6432_v63  ;;  %v4194_v52 = vunpack.c.l.bf16 %v4065_v48  ;;  %vm12134_vm5 = vcmp.eq.f32.partialorder %v6439_v3, 8.507059e+37  ;;  %v3810_v11 = vpack.c.bf16 %v3682_v22, %v3682_v22  ;;  %vm1895_vm9 = vmpackc.low %vm12119_vm14, %vm12119_vm14 }
 0x455   :  { %v4587_v21 = vpop.xlane.xlu0 %4586  ;;  %v6446_v54 = vmul.f32 %v8232_v45, %v12077_v9  ;;  %v1001_v27 = vunpack.c.l.bf16 %v868_v2  ;;  %8233 = vpow2.f32 %v7930_v49  ;;  %v3172_v15 = vadd.f32 %v8781_v16, %v3043_v25 }
 0x456   :  { %v6434_v50 = vadd.f32 %v8230_v14, %v6433_v44  ;;  %v4325_v24 = vmul.f32 %v12024_v5, %v4194_v52  ;;  %v6442_v63 = vor.u32 1.1754944e-38, %v6441_v60  ;;  %vm3554_vm3 = vcmp.ge.f32.partialorder %v3426_v34, 0.0  ;;  %v12154_v60 = vpop.f32.mrf.mxu3 }
 0x457   :  { %v6447_v47 = vsub.f32 1.0, %v6446_v54  ;;  %v4827_v3 = vadd.f32 %v9036_v59, %v4587_v21  ;;  %v6454_v22 = vand.u32 2147483647, %v12077_v9  ;;  %v6456_v2 = vand.u32 2147483648, %v12077_v9  ;;  %vm3938_vm8 = vmpackc.low %vm3554_vm3, %vm3554_vm3 }
 0x458   :  { %v6438_v38 = vsel %vm6437_vm0, %v8230_v14, %v6434_v50  ;;  %v4624_v0 = vsel %vm4368_vm13, %v4325_v24, 0.0  ;;  %vm6451_vm7 = vweird.f32 %v8232_v45  ;;  %v4066_v18 = vsel %vm3938_vm8, %v12051_v31, %v3810_v11  ;;  %vm1896_vm0 = vmpackc.low %vm12124_vm12, %vm12124_vm12 }
 0x459   :  { %v6443_v48 = vsel %vm12134_vm5, %v6442_v63, %v6438_v38  ;;  %v6448_v44 = vmul.f32 %v8232_v45, %v6447_v47  ;;  %4625 = vadd.xlane.f32.xlu1 %v4624_v0  ;;  %v12152_v54 = vpack.c.bf16 %v3172_v15, %v3172_v15  ;;  %v4195_v50 = vunpack.c.l.bf16 %v4066_v18 }
 0x45a   :  { %v7608_v34 = vperm.slane %v6443_v48, %v9287_v12  ;;  %v7931_v14 = vmul.f32 -1.442695, %v4827_v3  ;;  %v1768_v52 = vpack.c.bf16 %v12095_v43, %v12095_v43  ;;  %vm6450_vm15 = vweird.f32 %v12077_v9 }
 0x45b   :  { %v6449_v49 = vadd.f32 %v8232_v45, %v6448_v44  ;;  %v3427_v25 = vunpack.c.l.bf16 %v12110_v28  ;;  %v8234_v21 = vpop.eup %8233  ;;  %vm6452_vm6 = vmor %vm6450_vm15, %vm6451_vm7  ;;  %v6457_v1 = vor.u32 1.1754944e-38, %v6456_v2  ;;  %v4326_v11 = vmul.f32 %v12024_v5, %v4195_v50  ;;  %v2727_v15 = vpop.f32.mrf.mxu2 }
 0x45c   :  { %v7609_v31 = vsel %vm15509_vm4, %v7608_v34, %v12099_v40  ;;  %8235 = vpow2.f32 %v7931_v14  ;;  %v1129_v43 = vadd.f32 %v8693_v42, %v12101_v8  ;;  %vm6455_vm5 = vcmp.eq.f32.partialorder %v6454_v22, 8.507059e+37 }
 0x45d   :  { %v6453_v24 = vsel %vm6452_vm6, %v8232_v45, %v6449_v49  ;;  %v12168_v9 = vadd.f32 1.0, %v8234_v21  ;;  %v1130_v63 = vadd.f32 %v8693_v42, %v1001_v27  ;;  %v3428_v47 = vunpack.c.l.bf16 %v12152_v54 }
 0x45e   :  { %v6458_v40 = vsel %vm6455_vm5, %v6457_v1, %v6453_v24  ;;  %v4627_v3 = vsel %vm4368_vm13, %v4326_v11, 0.0  ;;  %v3683_v2 = vmul.f32 0.010009766, %v3427_v25  ;;  %v2911_v8 = vpack.c.bf16 %v12131_v32, %v12131_v32 }
 0x45f   :  { %v7610_v38 = vperm.slane %v6458_v40, %v9377_v46  ;;  %8237 = vrcp.f32 %v12168_v9  ;;  %4628 = vadd.xlane.f32.xlu2 %v4627_v3  ;;  %v12180_v45 = vpack.c.bf16 %v1129_v43, %v1129_v43  ;;  %vm15833_vm3 = vcmask 458112  }
 0x460   :  { %v15834_v27 = vpack.c.bf16 %v12070_v53, %v12070_v53  ;;  %v2024_v0 = vsel %vm1896_vm0, %v12041_v51, %v1768_v52  ;;  %v12195_v32 = vpack.c.bf16 %v1130_v63, %v1130_v63  ;;  %v3684_v18 = vmul.f32 0.010009766, %v3428_v47 }
 0x461   :  { %v12183_v17 = vsel %vm15833_vm3, %v7610_v38, %v7609_v31  ;;  %v2296_v14 = vunpack.c.l.b16 %v2024_v0  ;;  %vm12199_vm12 = vcmp.ge.f32.partialorder %v3427_v25, 0.0  ;;  %v3811_v49 = vpack.c.bf16 %v3683_v2, %v3683_v2 }
 0x462   :  { %v2023_v22 = vsel %vm1895_vm9, %v11992_v26, %v15834_v27  ;;  %v8236_v44 = vpop.eup %8235  ;;  %v3044_v21 = vunpack.c.l.bf16 %v2911_v8  ;;  %v12204_v26 = vpop.f32.mrf.mxu3  ;;  %v1385_v52 = vunpack.c.l.bf16 %v12180_v45  ;;  %v2912_v31 = vpack.c.bf16 %v2727_v15, %v2727_v15  ;;  %vm3939_vm14 = vmpackc.low %vm12199_vm12, %vm12199_vm12 }
 0x463   :  { %v2295_v34 = vunpack.c.l.b16 %v2023_v22  ;;  %v12197_v50 = vadd.f32 1.0, %v8236_v44  ;;  %v12210_v1 = vadd.f32 %v9036_v59, %v9671_v39  ;;  %v1386_v25 = vunpack.c.l.bf16 %v12195_v32  ;;  %v12224_v3 = vpop.f32.mrf.mxu2 }
 0x464   :  { %v4590_v48 = vpop.xlane.xlu1 %4589  ;;  %vm12217_vm8 = vcmp.ge.f32.partialorder %v1385_v52, 0.0  ;;  %v3812_v40 = vpack.c.bf16 %v3684_v18, %v3684_v18  ;;  %v869_v15 = vpack.c.bf16 %v12114_v41, %v12114_v41  ;;  %v4067_v39 = vsel %vm3939_vm14, %v12110_v28, %v3811_v49 }
 0x465   :  { %v4828_v55 = vadd.f32 %v9036_v59, %v4590_v48  ;;  %v8238_v51 = vpop.eup %8237  ;;  %8239 = vrcp.f32 %v12197_v50  ;;  %v2370_v43 = vpack.c.b16 %v2296_v14, %v2295_v34  ;;  %v3173_v2 = vadd.f32 %v8781_v16, %v3044_v21  ;;  %vm1897_vm14 = vmpackc.low %vm12217_vm8, %vm12217_vm8 }
 0x466   :  { %v6461_v11 = vmul.f32 %v8238_v51, %v12168_v9  ;;  %v870_v8 = vpack.c.bf16 %v12154_v60, %v12154_v60  ;;  %v4196_v27 = vunpack.c.l.bf16 %v4067_v39  ;;  %v6471_v22 = vand.u32 2147483648, %v12168_v9 }
 0x467   :  { %v7932_v63 = vmul.f32 -1.442695, %v4828_v55  ;;  %2766 = vmatmul.bf16.gmra.mxu2 %v2370_v43  ;;  %v3045_v0 = vunpack.c.l.bf16 %v2912_v31  ;;  %vm3556_vm7 = vcmp.ge.f32.partialorder %v3428_v47, 0.0  ;;  %vm6466_vm15 = vweird.f32 %v8238_v51 }
 0x468   :  { %v6462_v38 = vsub.f32 1.0, %v6461_v11  ;;  %v6469_v28 = vand.u32 2147483647, %v12168_v9  ;;  %v4327_v41 = vmul.f32 %v12024_v5, %v4196_v27  ;;  %vm3940_vm6 = vmpackc.low %vm3556_vm7, %vm3556_vm7  ;;  %v1641_v18 = vmul.f32 0.010009766, %v1385_v52 }
 0x469   :  { %8241 = vpow2.f32 %v7932_v63  ;;  %v1642_v34 = vmul.f32 0.010009766, %v1386_v25  ;;  %v1002_v14 = vunpack.c.l.bf16 %v869_v15  ;;  %v4068_v60 = vsel %vm3940_vm6, %v12152_v54, %v3812_v40 }
 0x46a   :  { %v6463_v48 = vmul.f32 %v8238_v51, %v6462_v38  ;;  %vm6465_vm9 = vweird.f32 %v12168_v9  ;;  %v4630_v47 = vsel %vm4368_vm13, %v4327_v41, 0.0  ;;  %v6472_v21 = vor.u32 1.1754944e-38, %v6471_v22  ;;  %v12239_v54 = vpop.f32.mrf.mxu3 }
 0x46b   :  { %v8240_v44 = vpop.eup %8239  ;;  %vm6467_vm5 = vmor %vm6465_vm9, %vm6466_vm15  ;;  %v12236_v55 = vpack.c.bf16 %v3173_v2, %v3173_v2  ;;  %4631 = vadd.xlane.f32.xlu0 %v4630_v47  ;;  %v3174_v31 = vadd.f32 %v8781_v16, %v3045_v0  ;;  %v4197_v11 = vunpack.c.l.bf16 %v4068_v60  ;;  %vm6470_vm0 = vcmp.eq.f32.partialorder %v6469_v28, 8.507059e+37 }
 0x46c   :  { %v6464_v53 = vadd.f32 %v8238_v51, %v6463_v48  ;;  %v6476_v49 = vmul.f32 %v8240_v44, %v12197_v50  ;;  %v1003_v15 = vunpack.c.l.bf16 %v870_v8  ;;  %v6484_v39 = vand.u32 2147483647, %v12197_v50 }
 0x46d   :  { %v6486_v63 = vand.u32 2147483648, %v12197_v50  ;;  %v4328_v38 = vmul.f32 %v12024_v5, %v4197_v11  ;;  %vm6481_vm3 = vweird.f32 %v8240_v44  ;;  %vm12247_vm12 = vcmp.ge.f32.partialorder %v1386_v25, 0.0 }
 0x46e   :  { %v6468_v52 = vsel %vm6467_vm5, %v8238_v51, %v6464_v53  ;;  %v6477_v43 = vsub.f32 1.0, %v6476_v49  ;;  %v1769_v51 = vpack.c.bf16 %v1641_v18, %v1641_v18  ;;  %v12251_v8 = vpack.c.bf16 %v3174_v31, %v3174_v31  ;;  %vm1898_vm9 = vmpackc.low %vm12247_vm12, %vm12247_vm12 }
 0x46f   :  { %v8242_v40 = vpop.eup %8241  ;;  %v6473_v9 = vsel %vm6470_vm0, %v6472_v21, %v6468_v52  ;;  %v4633_v48 = vsel %vm4368_vm13, %v4328_v38, 0.0  ;;  %vm15841_vm7 = vcmask 523712   ;;  %vm6480_vm15 = vweird.f32 %v12197_v50 }
 0x470   :  { %v7612_v2 = vperm.slane %v6473_v9, %v9439_v37  ;;  %v6478_v27 = vmul.f32 %v8240_v44, %v6477_v43  ;;  %v12245_v22 = vadd.f32 1.0, %v8242_v40  ;;  %v2732_v28 = vpop.f32.mrf.mxu2  ;;  %4634 = vadd.xlane.f32.xlu1 %v4633_v48  ;;  %v1770_v25 = vpack.c.bf16 %v1642_v34, %v1642_v34  ;;  %vm6482_vm6 = vmor %vm6480_vm15, %vm6481_vm3 }
 0x471   :  { %v1131_v18 = vadd.f32 %v8693_v42, %v1002_v14  ;;  %v6487_v53 = vor.u32 1.1754944e-38, %v6486_v63  ;;  %v3429_v49 = vunpack.c.l.bf16 %v12236_v55  ;;  %vm6485_vm5 = vcmp.eq.f32.partialorder %v6484_v39, 8.507059e+37 }
 0x472   :  { %v7613_v41 = vsel %vm15841_vm7, %v7612_v2, %v12183_v17  ;;  %v6479_v60 = vadd.f32 %v8240_v44, %v6478_v27  ;;  %8243 = vrcp.f32 %v12245_v22  ;;  %v1132_v17 = vadd.f32 %v8693_v42, %v1003_v15  ;;  %v12285_v24 = vpop.f32.mrf.mxu3 }
 0x473   :  { %v2913_v50 = vpack.c.bf16 %v12224_v3, %v12224_v3  ;;  %v3430_v34 = vunpack.c.l.bf16 %v12251_v8  ;;  %v2025_v14 = vsel %vm1897_vm14, %v12180_v45, %v1769_v51  ;;  %v7872_v31 = vmul.f32 -1.442695, %v12210_v1 }
 0x474   :  { %v6483_v47 = vsel %vm6482_vm6, %v8240_v44, %v6479_v60  ;;  %v12279_v11 = vpack.c.bf16 %v1131_v18, %v1131_v18  ;;  %v3685_v52 = vmul.f32 0.010009766, %v3429_v49  ;;  %v2026_v43 = vsel %vm1898_vm9, %v12195_v32, %v1770_v25 }
 0x475   :  { %v6488_v21 = vsel %vm6485_vm5, %v6487_v53, %v6483_v47  ;;  %v2297_v3 = vunpack.c.l.b16 %v2025_v14  ;;  %vm15842_vm0 = vcmask 589312   ;;  %v12283_v9 = vpack.c.bf16 %v1132_v17, %v1132_v17 }
 0x476   :  { %v7614_v44 = vperm.slane %v6488_v21, %v9458_v36  ;;  %v3046_v39 = vunpack.c.l.bf16 %v2913_v50  ;;  %v2298_v63 = vunpack.c.l.b16 %v2026_v43  ;;  %v3686_v1 = vmul.f32 0.010009766, %v3430_v34 }
 0x477   :  { %vm12288_vm8 = vcmp.ge.f32.partialorder %v3429_v49, 0.0  ;;  %8245 = vpow2.f32 %v7872_v31  ;;  %v1387_v32 = vunpack.c.l.bf16 %v12279_v11  ;;  %v3813_v51 = vpack.c.bf16 %v3685_v52, %v3685_v52 }
 0x478   :  { %v8244_v15 = vpop.eup %8243  ;;  %v7615_v40 = vsel %vm15842_vm0, %v7614_v44, %v7613_v41  ;;  %v2371_v2 = vpack.c.b16 %v2298_v63, %v2297_v3  ;;  %v2914_v0 = vpack.c.bf16 %v2732_v28, %v2732_v28  ;;  %v2734_v48 = vpop.f32.mrf.mxu2  ;;  %v1388_v41 = vunpack.c.l.bf16 %v12283_v9  ;;  %vm3941_vm12 = vmpackc.low %vm12288_vm8, %vm12288_vm8 }
 0x479   :  { %v6491_v45 = vmul.f32 %v8244_v15, %v12245_v22  ;;  %vm6496_vm3 = vweird.f32 %v8244_v15  ;;  %v6501_v60 = vand.u32 2147483648, %v12245_v22  ;;  %v3175_v25 = vadd.f32 %v8781_v16, %v3046_v39 }
 0x47a   :  { %2771 = vmatmul.bf16.gmra.mxu2 %v2371_v2  ;;  %v6499_v53 = vand.u32 2147483647, %v12245_v22  ;;  %v3814_v49 = vpack.c.bf16 %v3686_v1, %v3686_v1  ;;  %v4069_v47 = vsel %vm3941_vm12, %v12236_v55, %v3813_v51  ;;  %vm6495_vm14 = vweird.f32 %v12245_v22 }
 0x47b   :  { %v6492_v27 = vsub.f32 1.0, %v6491_v45  ;;  %v4198_v28 = vunpack.c.l.bf16 %v4069_v47  ;;  %v3047_v17 = vunpack.c.l.bf16 %v2914_v0  ;;  %vm3558_vm7 = vcmp.ge.f32.partialorder %v3430_v34, 0.0  ;;  %vm6497_vm15 = vmor %vm6495_vm14, %vm6496_vm3  ;;  %v12308_v45 = vpop.f32.mrf.mxu3 }
 0x47c   :  { %v1643_v14 = vmul.f32 0.010009766, %v1387_v32  ;;  %v1644_v31 = vmul.f32 0.010009766, %v1388_v41  ;;  %v6502_v44 = vor.u32 1.1754944e-38, %v6501_v60  ;;  %vm3942_vm6 = vmpackc.low %vm3558_vm7, %vm3558_vm7  ;;  %vm6500_vm9 = vcmp.eq.f32.partialorder %v6499_v53, 8.507059e+37 }
 0x47d   :  { %v6493_v18 = vmul.f32 %v8244_v15, %v6492_v27  ;;  %v8246_v21 = vpop.eup %8245  ;;  %v4329_v52 = vmul.f32 %v12024_v5, %v4198_v28  ;;  %v871_v3 = vpack.c.bf16 %v12204_v26, %v12204_v26  ;;  %v4070_v55 = vsel %vm3942_vm6, %v12251_v8, %v3814_v49 }
 0x47e   :  { %v3303_v39 = vpack.c.bf16 %v3175_v25, %v3175_v25  ;;  %v3176_v63 = vadd.f32 %v8781_v16, %v3047_v17  ;;  %vm12310_vm5 = vcmp.ge.f32.partialorder %v1387_v32, 0.0  ;;  %v872_v38 = vpack.c.bf16 %v12239_v54, %v12239_v54 }
 0x47f   :  { %v6494_v50 = vadd.f32 %v8244_v15, %v6493_v18  ;;  %v4636_v34 = vsel %vm4368_vm13, %v4329_v52, 0.0  ;;  %v4199_v26 = vunpack.c.l.bf16 %v4070_v55  ;;  %vm12317_vm0 = vcmp.ge.f32.partialorder %v1388_v41, 0.0  ;;  %vm1899_vm3 = vmpackc.low %vm12310_vm5, %vm12310_vm5 }
 0x480   :  { %4637 = vadd.xlane.f32.xlu2 %v4636_v34  ;;  %v1771_v2 = vpack.c.bf16 %v1643_v14, %v1643_v14  ;;  %vm15849_vm8 = vcmask 654912   ;;  %v2737_v51 = vpop.f32.mrf.mxu2  ;;  %v1772_v0 = vpack.c.bf16 %v1644_v31, %v1644_v31  ;;  %v1004_v60 = vunpack.c.l.bf16 %v871_v3  ;;  %vm1900_vm12 = vmpackc.low %vm12317_vm0, %vm12317_vm0 }
 0x481   :  { %v6498_v43 = vsel %vm6497_vm15, %v8244_v15, %v6494_v50  ;;  %v4330_v32 = vmul.f32 %v12024_v5, %v4199_v26  ;;  %v3431_v54 = vunpack.c.l.bf16 %v3303_v39  ;;  %v3304_v25 = vpack.c.bf16 %v3176_v63, %v3176_v63 }
 0x482   :  { %v6503_v22 = vsel %vm6500_vm9, %v6502_v44, %v6498_v43  ;;  %v12328_v18 = vadd.f32 1.0, %v8246_v21  ;;  %v1005_v41 = vunpack.c.l.bf16 %v872_v38  ;;  %v2915_v53 = vpack.c.bf16 %v2734_v48, %v2734_v48 }
 0x483   :  { %v7616_v15 = vperm.slane %v6503_v22, %v9468_v30  ;;  %v4769_v49 = vadd.f32 %v9036_v59, %v9699_v58  ;;  %v2027_v47 = vsel %vm1899_vm3, %v12279_v11, %v1771_v2  ;;  %v1133_v28 = vadd.f32 %v8693_v42, %v1004_v60  ;;  %v12341_v52 = vpop.f32.mrf.mxu3 }
 0x484   :  { %v3687_v17 = vmul.f32 0.010009766, %v3431_v54  ;;  %v3432_v50 = vunpack.c.l.bf16 %v3304_v25  ;;  %v2028_v21 = vsel %vm1900_vm12, %v12283_v9, %v1772_v0  ;;  %8247 = vrcp.f32 %v12328_v18 }
 0x485   :  { %v12322_v27 = vsel %vm15849_vm8, %v7616_v15, %v7615_v40  ;;  %v4639_v40 = vsel %vm4368_vm13, %v4330_v32, 0.0  ;;  %v1134_v14 = vadd.f32 %v8693_v42, %v1005_v41  ;;  %v3048_v31 = vunpack.c.l.bf16 %v2915_v53 }
 0x486   :  { %15850 = vst [vmem:[#allocation23_spill] sm:$0xff] %v12322_v27  ;;  %4640 = vadd.xlane.f32.xlu0 %v4639_v40  ;;  %v2299_v44 = vunpack.c.l.b16 %v2027_v47  ;;  %v7873_v48 = vmul.f32 -1.442695, %v4769_v49  ;;  %v4770_v58 = vadd.f32 %v9036_v59, %v9733_v62  ;;  %v2300_v43 = vunpack.c.l.b16 %v2028_v21 }
 0x487   :  { %vm3559_vm14 = vcmp.ge.f32.partialorder %v3431_v54, 0.0  ;;  %v12345_v11 = vpack.c.bf16 %v1133_v28, %v1133_v28  ;;  %v3688_v3 = vmul.f32 0.010009766, %v3432_v50  ;;  %v3815_v55 = vpack.c.bf16 %v3687_v17, %v3687_v17  ;;  %v12358_v54 = vpop.xlane.xlu2 %4592 }
 0x488   :  { %v12347_v22 = vpack.c.bf16 %v1134_v14, %v1134_v14  ;;  %vm3943_vm7 = vmpackc.low %vm3559_vm14, %vm3559_vm14  ;;  %v12349_v9 = vpop.f32.mrf.mxu2  ;;  %v3177_v34 = vadd.f32 %v8781_v16, %v3048_v31  ;;  %v2372_v63 = vpack.c.b16 %v2300_v43, %v2299_v44  ;;  %v2916_v15 = vpack.c.bf16 %v2737_v51, %v2737_v51  ;;  %15851 = vst [vmem:[#allocation24_spill] sm:$0xff] %v12358_v54 }
 0x489   :  { %v4071_v1 = vsel %vm3943_vm7, %v3303_v39, %v3815_v55  ;;  %8249 = vpow2.f32 %v7873_v48  ;;  %v7874_v62 = vmul.f32 -1.442695, %v4770_v58  ;;  %v1389_v26 = vunpack.c.l.bf16 %v12345_v11 }
 0x48a   :  { %v12352_v38 = vpop.eup %8247  ;;  %v3816_v8 = vpack.c.bf16 %v3688_v3, %v3688_v3  ;;  %2776 = vmatmul.bf16.gmra.mxu2 %v2372_v63  ;;  %v4200_v2 = vunpack.c.l.bf16 %v4071_v1  ;;  %v3049_v32 = vunpack.c.l.bf16 %v2916_v15  ;;  %v1390_v0 = vunpack.c.l.bf16 %v12347_v22 }
 0x48b   :  { %v5591_v60 = vmul.f32 %v12352_v38, %v12328_v18  ;;  %v12360_v41 = vpack.c.bf16 %v3177_v34, %v3177_v34  ;;  %vm3560_vm15 = vcmp.ge.f32.partialorder %v3432_v50, 0.0  ;;  %8251 = vpow2.f32 %v7874_v62  ;;  %v12369_v17 = vpop.f32.mrf.mxu3 }
 0x48c   :  { %v4331_v39 = vmul.f32 %v12024_v5, %v4200_v2  ;;  %v873_v51 = vpack.c.bf16 %v12285_v24, %v12285_v24  ;;  %v3178_v40 = vadd.f32 %v8781_v16, %v3049_v32  ;;  %vm3944_vm6 = vmpackc.low %vm3560_vm15, %vm3560_vm15  ;;  %v1645_v53 = vmul.f32 0.010009766, %v1389_v26 }
 0x48d   :  { %v874_v49 = vpack.c.bf16 %v12308_v45, %v12308_v45  ;;  %v4072_v28 = vsel %vm3944_vm6, %v3304_v25, %v3816_v8  ;;  %v1646_v14 = vmul.f32 0.010009766, %v1390_v0  ;;  %v5592_v31 = vsub.f32 1.0, %v5591_v60 }
 0x48e   :  { %v4642_v47 = vsel %vm4368_vm13, %v4331_v39, 0.0  ;;  %v4201_v50 = vunpack.c.l.bf16 %v4072_v28  ;;  %vm12371_vm9 = vcmp.ge.f32.partialorder %v1389_v26, 0.0  ;;  %v3433_v24 = vunpack.c.l.bf16 %v12360_v41 }
 0x48f   :  { %v8250_v21 = vpop.eup %8249  ;;  %4643 = vadd.xlane.f32.xlu1 %v4642_v47  ;;  %vm12376_vm5 = vcmp.ge.f32.partialorder %v1390_v0, 0.0  ;;  %v1006_v45 = vunpack.c.l.bf16 %v873_v51  ;;  %v12380_v58 = vpack.c.bf16 %v3178_v40, %v3178_v40  ;;  %v1773_v55 = vpack.c.bf16 %v1645_v53, %v1645_v53  ;;  %vm1901_vm0 = vmpackc.low %vm12371_vm9, %vm12371_vm9  ;;  %v12402_v32 = vpop.xlane.xlu2 %4601 }
 0x490   :  { %v4332_v25 = vmul.f32 %v12024_v5, %v4201_v50  ;;  %v12383_v43 = vpop.f32.mrf.mxu2  ;;  %v12385_v3 = vadd.f32 1.0, %v8250_v21  ;;  %v1007_v34 = vunpack.c.l.bf16 %v874_v49  ;;  %v4784_v1 = vadd.f32 %v9036_v59, %v10360_v29  ;;  %vm1902_vm8 = vmpackc.low %vm12376_vm5, %vm12376_vm5  ;;  %15857 = vst [vmem:[#allocation26_spill] sm:$0xff] %v12402_v32 }
 0x491   :  { %v8252_v63 = vpop.eup %8251  ;;  %v1774_v15 = vpack.c.bf16 %v1646_v14, %v1646_v14  ;;  %v12393_v62 = vadd.s32 4294967192, %v9086_v4  ;;  %v5601_v26 = vand.u32 2147483648, %v12328_v18  ;;  %v12397_v8 = vadd.s32 4294967184, %v9086_v4 }
 0x492   :  { %v3689_v2 = vmul.f32 0.010009766, %v3433_v24  ;;  %v5593_v29 = vmul.f32 %v12352_v38, %v5592_v31  ;;  %v1135_v0 = vadd.f32 %v8693_v42, %v1006_v45  ;;  %v3434_v60 = vunpack.c.l.bf16 %v12380_v58 }
 0x493   :  { %15856 = vst [vmem:[#allocation25_spill] sm:$0xff] %v12393_v62  ;;  %v4645_v39 = vsel %vm4368_vm13, %v4332_v25, 0.0  ;;  %vm5595_vm3 = vweird.f32 %v12328_v18  ;;  %8253 = vrcp.f32 %v12385_v3  ;;  %v1136_v51 = vadd.f32 %v8693_v42, %v1007_v34  ;;  %v12433_v31 = vpop.f32.mrf.mxu3 }
 0x494   :  { %4646 = vadd.xlane.f32.xlu2 %v4645_v39  ;;  %v2917_v40 = vpack.c.bf16 %v12349_v9, %v12349_v9  ;;  %v2029_v53 = vsel %vm1901_vm0, %v12345_v11, %v1773_v55  ;;  %v12419_v49 = vadd.f32 1.0, %v8252_v63  ;;  %v7888_v47 = vmul.f32 -1.442695, %v4784_v1  ;;  %v12467_v39 = vpop.xlane.xlu0 %4595 }
 0x495   :  { %v4785_v28 = vadd.f32 %v9036_v59, %v10372_v56  ;;  %v2030_v9 = vsel %vm1902_vm8, %v12347_v22, %v1774_v15  ;;  %v2301_v21 = vunpack.c.l.b16 %v2029_v53  ;;  %vm12429_vm12 = vcmp.ge.f32.partialorder %v3433_v24, 0.0  ;;  %15863 = vst [vmem:[#allocation28_spill] sm:$0xff] %v12467_v39 }
 0x496   :  { %v2302_v14 = vunpack.c.l.b16 %v2030_v9  ;;  %v3817_v11 = vpack.c.bf16 %v3689_v2, %v3689_v2  ;;  %v5599_v44 = vand.u32 2147483647, %v12328_v18  ;;  %v12436_v45 = vor.u32 1.1754944e-38, %v5601_v26  ;;  %vm3945_vm7 = vmpackc.low %vm12429_vm12, %vm12429_vm12 }
 0x497   :  { %v12438_v56 = vpack.c.bf16 %v1135_v0, %v1135_v0  ;;  %v3690_v25 = vmul.f32 0.010009766, %v3434_v60  ;;  %v12440_v55 = vpack.c.bf16 %v1136_v51, %v1136_v51  ;;  %v875_v22 = vpack.c.bf16 %v12341_v52, %v12341_v52  ;;  %v4611_v2 = vpop.xlane.xlu2 %4610 }
 0x498   :  { %v3050_v48 = vunpack.c.l.bf16 %v2917_v40  ;;  %v2918_v24 = vpack.c.bf16 %v12383_v43, %v12383_v43  ;;  %v12447_v34 = vadd.f32 %v12352_v38, %v5593_v29  ;;  %vm5596_vm14 = vweird.f32 %v12352_v38  ;;  %v12457_v1 = vpop.f32.mrf.mxu2 }
 0x499   :  { %v12451_v63 = vadd.s32 4294967176, %v9086_v4  ;;  %8255 = vrcp.f32 %v12419_v49  ;;  %v12459_v52 = vpop.eup %8253  ;;  %v7889_v43 = vmul.f32 -1.442695, %v4785_v28  ;;  %v2373_v15 = vpack.c.b16 %v2302_v14, %v2301_v21  ;;  %vm12476_vm6 = vmor %vm5595_vm3, %vm5596_vm14 }
 0x49a   :  { %8257 = vpow2.f32 %v7888_v47  ;;  %v4073_v26 = vsel %vm3945_vm7, %v12360_v41, %v3817_v11  ;;  %vm12462_vm15 = vcmp.eq.f32.partialorder %v5599_v44, 8.507059e+37  ;;  %v1391_v51 = vunpack.c.l.bf16 %v12438_v56 }
 0x49b   :  { %15860 = vst [vmem:[#allocation27_spill] sm:$0xff] %v12451_v63  ;;  %v3818_v40 = vpack.c.bf16 %v3690_v25, %v3690_v25  ;;  %v4202_v53 = vunpack.c.l.bf16 %v4073_v26  ;;  %v1392_v9 = vunpack.c.l.bf16 %v12440_v55  ;;  %v1008_v47 = vunpack.c.l.bf16 %v875_v22  ;;  %2781 = vmatmul.bf16.gmra.mxu2 %v2373_v15 }
 0x49c   :  { %v3179_v28 = vadd.f32 %v8781_v16, %v3050_v48  ;;  %v3051_v41 = vunpack.c.l.bf16 %v2918_v24  ;;  %v876_v14 = vpack.c.bf16 %v12369_v17, %v12369_v17  ;;  %vm3562_vm9 = vcmp.ge.f32.partialorder %v3434_v60, 0.0 }
 0x49d   :  { %v4333_v50 = vmul.f32 %v12024_v5, %v4202_v53  ;;  %v4835_v11 = vadd.f32 %v9036_v59, %v4611_v2  ;;  %v5598_v44 = vsel %vm12476_vm6, %v12352_v38, %v12447_v34  ;;  %v5606_v18 = vmul.f32 %v12459_v52, %v12385_v3  ;;  %vm3946_vm5 = vmpackc.low %vm3562_vm9, %vm3562_vm9  ;;  %v736_v2 = vpop.f32.mrf.mxu3  ;;  %v12502_v53 = vpop.xlane.xlu1 %4598 }
 0x49e   :  { %v5616_v25 = vand.u32 2147483648, %v12385_v3  ;;  %8259 = vpow2.f32 %v7889_v43  ;;  %v1647_v17 = vmul.f32 0.010009766, %v1391_v51  ;;  %v4074_v60 = vsel %vm3946_vm5, %v12380_v58, %v3818_v40  ;;  %15868 = vst [vmem:[#allocation29_spill] sm:$0xff] %v12502_v53 }
 0x49f   :  { %v12491_v22 = vpop.eup %8255  ;;  %v4648_v48 = vsel %vm4368_vm13, %v4333_v50, 0.0  ;;  %v7939_v24 = vmul.f32 -1.442695, %v4835_v11  ;;  %vm12495_vm0 = vcmp.ge.f32.partialorder %v1391_v51, 0.0  ;;  %v1648_v38 = vmul.f32 0.010009766, %v1392_v9 }
 0x4a0   :  { %v8258_v15 = vpop.eup %8257  ;;  %v12499_v34 = vpack.c.bf16 %v3179_v28, %v3179_v28  ;;  %4649 = vadd.xlane.f32.xlu0 %v4648_v48  ;;  %v3180_v43 = vadd.f32 %v8781_v16, %v3051_v41  ;;  %v1137_v21 = vadd.f32 %v8693_v42, %v1008_v47  ;;  %v1009_v50 = vunpack.c.l.bf16 %v876_v14  ;;  %v12517_v14 = vpop.xlane.xlu0 %4604  ;;  %vm1903_vm3 = vmpackc.low %vm12495_vm0, %vm12495_vm0 }
 0x4a1   :  { %v877_v58 = vpack.c.bf16 %v12433_v31, %v12433_v31  ;;  %v4203_v40 = vunpack.c.l.bf16 %v4074_v60  ;;  %v5607_v51 = vsub.f32 1.0, %v5606_v18  ;;  %v5621_v11 = vmul.f32 %v12491_v22, %v12419_v49  ;;  %15871 = vst [vmem:[#allocation30_spill] sm:$0xff] %v12517_v14  ;;  %v12520_v60 = vpop.f32.mrf.mxu2 }
 0x4a2   :  { %vm12509_vm8 = vcmp.ge.f32.partialorder %v1392_v9, 0.0  ;;  %8261 = vpow2.f32 %v7939_v24  ;;  %v12513_v41 = vadd.f32 1.0, %v8258_v15  ;;  %v4786_v48 = vadd.f32 %v9036_v59, %v10423_v7 }
 0x4a3   :  { %v1775_v47 = vpack.c.bf16 %v1647_v17, %v1647_v17  ;;  %v4334_v31 = vmul.f32 %v12024_v5, %v4203_v40  ;;  %v12525_v9 = vsel %vm12462_vm15, %v12436_v45, %v5598_v44  ;;  %v1776_v24 = vpack.c.bf16 %v1648_v38, %v1648_v38  ;;  %vm1904_vm12 = vmpackc.low %vm12509_vm8, %vm12509_vm8 }
 0x4a4   :  { %v8260_v18 = vpop.eup %8259  ;;  %15872 = vst [vmem:[#allocation31_spill] sm:$0xff] %v12525_v9  ;;  %v3435_v7 = vunpack.c.l.bf16 %v12499_v34  ;;  %v12531_v17 = vpack.c.bf16 %v3180_v43, %v3180_v43  ;;  %v12536_v5 = vpack.c.bf16 %v1137_v21, %v1137_v21  ;;  %v1138_v15 = vadd.f32 %v8693_v42, %v1009_v50 }
 0x4a5   :  { %v1010_v29 = vunpack.c.l.bf16 %v877_v58  ;;  %v4651_v45 = vsel %vm4368_vm13, %v4334_v31, 0.0  ;;  %v5608_v44 = vmul.f32 %v12459_v52, %v5607_v51  ;;  %v12541_v40 = vor.u32 1.1754944e-38, %v5616_v25  ;;  %v12564_v26 = vpop.xlane.xlu1 %4607  ;;  %v739_v28 = vpop.f32.mrf.mxu3 }
 0x4a6   :  { %v5622_v38 = vsub.f32 1.0, %v5621_v11  ;;  %4652 = vadd.xlane.f32.xlu1 %v4651_v45  ;;  %v878_v0 = vpack.c.bf16 %v736_v2, %v736_v2  ;;  %8263 = vrcp.f32 %v12513_v41  ;;  %v7890_v43 = vmul.f32 -1.442695, %v4786_v48  ;;  %15874 = vst [vmem:[#allocation33_spill] sm:$0xff] %v12564_v26 }
 0x4a7   :  { %v2919_v27 = vpack.c.bf16 %v12457_v1, %v12457_v1  ;;  %v2031_v21 = vsel %vm1903_vm3, %v12438_v56, %v1775_v47  ;;  %v12552_v58 = vadd.f32 1.0, %v8260_v18  ;;  %v3691_v25 = vmul.f32 0.010009766, %v3435_v7 }
 0x4a8   :  { %v8262_v50 = vpop.eup %8261  ;;  %v3436_v51 = vunpack.c.l.bf16 %v12531_v17  ;;  %v2032_v1 = vsel %vm1904_vm12, %v12440_v55, %v1776_v24  ;;  %v1393_v2 = vunpack.c.l.bf16 %v12536_v5  ;;  %v12562_v11 = vpack.c.bf16 %v1138_v15, %v1138_v15 }
 0x4a9   :  { %15873 = vst [vmem:[#allocation32_spill] sm:$0xff] %v12552_v58  ;;  %v1139_v56 = vadd.f32 %v8693_v42, %v1010_v29  ;;  %v12567_v48 = vadd.f32 1.0, %v8262_v50  ;;  %v1011_v47 = vunpack.c.l.bf16 %v878_v0  ;;  %v2303_v31 = vunpack.c.l.b16 %v2031_v21  ;;  %v4614_v29 = vpop.xlane.xlu0 %4613 }
 0x4aa   :  { %v2304_v18 = vunpack.c.l.b16 %v2032_v1  ;;  %vm12569_vm14 = vcmp.ge.f32.partialorder %v3435_v7, 0.0  ;;  %v12576_v24 = vadd.f32 %v12459_v52, %v5608_v44  ;;  %v3052_v15 = vunpack.c.l.bf16 %v2919_v27  ;;  %v2749_v27 = vpop.f32.mrf.mxu2 }
 0x4ab   :  { %8265 = vrcp.f32 %v12567_v48  ;;  %v3692_v50 = vmul.f32 0.010009766, %v3436_v51  ;;  %v3819_v21 = vpack.c.bf16 %v3691_v25, %v3691_v25  ;;  %v12582_v7 = vmul.f32 %v12491_v22, %v5622_v38  ;;  %vm3947_vm7 = vmpackc.low %vm12569_vm14, %vm12569_vm14 }
 0x4ac   :  { %8267 = vpow2.f32 %v7890_v43  ;;  %v2374_v0 = vpack.c.b16 %v2304_v18, %v2303_v31  ;;  %v12579_v1 = vpop.eup %8263  ;;  %v12585_v30 = vmul.f32 0.010009766, %v1393_v2  ;;  %v1394_v44 = vunpack.c.l.bf16 %v12562_v11 }
 0x4ad   :  { %8269 = vrcp.f32 %v12552_v58  ;;  %v12591_v43 = vpack.c.bf16 %v1139_v56, %v1139_v56  ;;  %v1140_v25 = vadd.f32 %v8693_v42, %v1011_v47  ;;  %v4075_v31 = vsel %vm3947_vm7, %v12499_v34, %v3819_v21 }
 0x4ae   :  { %2786 = vmatmul.bf16.gmra.mxu2 %v2374_v0  ;;  %v4836_v38 = vadd.f32 %v9036_v59, %v4614_v29  ;;  %v3181_v18 = vadd.f32 %v8781_v16, %v3052_v15  ;;  %v4204_v55 = vunpack.c.l.bf16 %v4075_v31  ;;  %v2920_v26 = vpack.c.bf16 %v12520_v60, %v12520_v60  ;;  %v12614_v15 = vld [vmem:[%s15470_s5] ss:$0 sm:$0xff]  ;;  %v4617_v0 = vpop.xlane.xlu1 %4616 }
 0x4af   :  { %v879_v14 = vpack.c.bf16 %v739_v28, %v739_v28  ;;  %vm12599_vm15 = vcmp.ge.f32.partialorder %v1393_v2, 0.0  ;;  %v3820_v56 = vpack.c.bf16 %v3692_v50, %v3692_v50  ;;  %vm12603_vm6 = vcmp.ge.f32.partialorder %v3436_v51, 0.0 }
 0x4b0   :  { %v7940_v32 = vmul.f32 -1.442695, %v4836_v38  ;;  %v12609_v29 = vmul.f32 0.010009766, %v1394_v44  ;;  %v4335_v60 = vmul.f32 %v12614_v15, %v4204_v55  ;;  %v3053_v2 = vunpack.c.l.bf16 %v2920_v26  ;;  %vm3948_vm9 = vmpackc.low %vm12603_vm6, %vm12603_vm6 }
 0x4b1   :  { %v12607_v34 = vpop.eup %8265  ;;  %v1012_v28 = vunpack.c.l.bf16 %v879_v14  ;;  %v1777_v51 = vpack.c.bf16 %v12585_v30, %v12585_v30  ;;  %v12623_v31 = vpack.c.bf16 %v1140_v25, %v1140_v25  ;;  %v12628_v39 = vpack.c.bf16 %v3181_v18, %v3181_v18  ;;  %v741_v18 = vpop.f32.mrf.mxu3  ;;  %vm1905_vm0 = vmpackc.low %vm12599_vm15, %vm12599_vm15 }
 0x4b2   :  { %v12617_v50 = vpop.eup %8267  ;;  %v6596_v21 = vmul.f32 %v12607_v34, %v12567_v48  ;;  %8271 = vpow2.f32 %v7940_v32  ;;  %v4654_v14 = vsel %vm4368_vm13, %v4335_v60, 0.0  ;;  %v3182_v26 = vadd.f32 %v8781_v16, %v3053_v2 }
 0x4b3   :  { %v12625_v38 = vpop.eup %8269  ;;  %vm12635_vm5 = vcmp.ge.f32.partialorder %v1394_v44, 0.0  ;;  %4655 = vadd.xlane.f32.xlu2 %v4654_v14  ;;  %v4076_v32 = vsel %vm3948_vm9, %v12531_v17, %v3820_v56  ;;  %v4837_v25 = vadd.f32 %v9036_v59, %v4617_v0  ;;  %v1778_v60 = vpack.c.bf16 %v12609_v29, %v12609_v29 }
 0x4b4   :  { %15881 = vst [vmem:[#allocation34_spill] sm:$0xff] %v12625_v38  ;;  %v6597_v55 = vsub.f32 1.0, %v6596_v21  ;;  %v1141_v2 = vadd.f32 %v8693_v42, %v1012_v28  ;;  %v4205_v53 = vunpack.c.l.bf16 %v4076_v32  ;;  %v2921_v47 = vpack.c.bf16 %v2749_v27, %v2749_v27  ;;  %v12655_v28 = vpop.f32.mrf.mxu2  ;;  %vm1906_vm3 = vmpackc.low %vm12635_vm5, %vm12635_vm5 }
 0x4b5   :  { %v15496_v44 = vunpack.c.l.bf16 %v12623_v31  ;;  %v12646_v9 = vpack.c.bf16 %v3182_v26, %v3182_v26  ;;  %v7941_v21 = vmul.f32 -1.442695, %v4837_v25  ;;  %v15884_v14 = vunpack.c.l.bf16 %v12591_v43 }
 0x4b6   :  { %v6598_v54 = vmul.f32 %v12607_v34, %v6597_v55  ;;  %v6604_v56 = vand.u32 2147483647, %v12567_v48  ;;  %v3437_v0 = vunpack.c.l.bf16 %v12628_v39  ;;  %v4336_v29 = vmul.f32 %v12614_v15, %v4205_v53  ;;  %v4620_v45 = vpop.xlane.xlu2 %4619 }
 0x4b7   :  { %v12650_v17 = vmul.f32 0.010009766, %v15884_v14  ;;  %vm6601_vm8 = vweird.f32 %v12607_v34  ;;  %8273 = vpow2.f32 %v7941_v21  ;;  %v880_v55 = vpack.c.bf16 %v741_v18, %v741_v18 }
 0x4b8   :  { %v8272_v27 = vpop.eup %8271  ;;  %v6599_v26 = vadd.f32 %v12607_v34, %v6598_v54  ;;  %v6606_v32 = vand.u32 2147483648, %v12567_v48  ;;  %v12665_v14 = vpack.c.bf16 %v1141_v2, %v1141_v2  ;;  %v3054_v53 = vunpack.c.l.bf16 %v2921_v47 }
 0x4b9   :  { %v12663_v25 = vadd.f32 1.0, %v8272_v27  ;;  %vm6600_vm12 = vweird.f32 %v12567_v48  ;;  %v12673_v54 = vmul.f32 0.010009766, %v15496_v44  ;;  %v3438_v21 = vunpack.c.l.bf16 %v12646_v9 }
 0x4ba   :  { %v4657_v18 = vsel %vm4368_vm13, %v4336_v29, 0.0  ;;  %v12679_v27 = vadd.f32 %v12491_v22, %v12582_v7  ;;  %vm12681_vm14 = vmor %vm6600_vm12, %vm6601_vm8  ;;  %v3693_v47 = vmul.f32 0.010009766, %v3437_v0  ;;  %v2033_v48 = vsel %vm1905_vm0, %v12536_v5, %v1777_v51 }
 0x4bb   :  { %8275 = vrcp.f32 %v12663_v25  ;;  %4658 = vadd.xlane.f32.xlu0 %v4657_v18  ;;  %v6603_v7 = vsel %vm12681_vm14, %v12607_v34, %v6599_v26  ;;  %vm6605_vm7 = vcmp.eq.f32.partialorder %v6604_v56, 8.507059e+37  ;;  %v1013_v44 = vunpack.c.l.bf16 %v880_v55  ;;  %v744_v55 = vpop.f32.mrf.mxu3 }
 0x4bc   :  { %v6607_v6 = vor.u32 1.1754944e-38, %v6606_v32  ;;  %v3183_v18 = vadd.f32 %v8781_v16, %v3054_v53  ;;  %v2034_v5 = vsel %vm1906_vm3, %v12562_v11, %v1778_v60  ;;  %v3694_v34 = vmul.f32 0.010009766, %v3438_v21 }
 0x4bd   :  { %v8274_v51 = vpop.eup %8273  ;;  %v2305_v56 = vunpack.c.l.b16 %v2033_v48  ;;  %v2306_v26 = vunpack.c.l.b16 %v2034_v5  ;;  %vm12711_vm15 = vcmp.ge.f32.partialorder %v3437_v0, 0.0  ;;  %v3821_v30 = vpack.c.bf16 %v3693_v47, %v3693_v47  ;;  %v2754_v47 = vpop.f32.mrf.mxu2 }
 0x4be   :  { %v12707_v32 = vsel %vm6605_vm7, %v6607_v6, %v6603_v7  ;;  %v12709_v29 = vadd.f32 1.0, %v8274_v51  ;;  %v1142_v11 = vadd.f32 %v8693_v42, %v1013_v44  ;;  %v4838_v62 = vadd.f32 %v9036_v59, %v4620_v45  ;;  %vm3949_vm9 = vmpackc.low %vm12711_vm15, %vm12711_vm15  ;;  %v4623_v51 = vpop.xlane.xlu0 %4622 }
 0x4bf   :  { %v2375_v60 = vpack.c.b16 %v2306_v26, %v2305_v56  ;;  %v2922_v2 = vpack.c.bf16 %v12655_v28, %v12655_v28  ;;  %v6619_v5 = vand.u32 2147483647, %v12663_v25  ;;  %v15889_v6 = vunpack.c.l.bf16 %v12665_v14 }
 0x4c0   :  { %8277 = vrcp.f32 %v12709_v29  ;;  %v12725_v0 = vpack.c.bf16 %v3183_v18, %v3183_v18  ;;  %v7630_v44 = vperm.slane %v12707_v32, %v9086_v4  ;;  %vm6615_vm6 = vweird.f32 %v12663_v25 }
 0x4c1   :  { %v8276_v48 = vpop.eup %8275  ;;  %v12722_v7 = vmul.f32 0.010009766, %v15889_v6  ;;  %v6621_v28 = vand.u32 2147483648, %v12663_v25  ;;  %2791 = vmatmul.bf16.gmra.mxu2 %v2375_v60  ;;  %v15890_v56 = vunpack.c.l.bf16 %v12591_v43  ;;  %v3822_v26 = vpack.c.bf16 %v3694_v34, %v3694_v34 }
 0x4c2   :  { %v6611_v45 = vmul.f32 %v8276_v48, %v12663_v25  ;;  %v4077_v32 = vsel %vm3949_vm9, %v12628_v39, %v3821_v30  ;;  %v7942_v6 = vmul.f32 -1.442695, %v4838_v62  ;;  %v881_v4 = vpack.c.bf16 %v744_v55, %v744_v55 }
 0x4c3   :  { %vm12737_vm5 = vcmp.ge.f32.partialorder %v15890_v56, 0.0  ;;  %v12742_v35 = vpack.c.bf16 %v1142_v11, %v1142_v11  ;;  %v4206_v60 = vunpack.c.l.bf16 %v4077_v32  ;;  %v3055_v63 = vunpack.c.l.bf16 %v2922_v2 }
 0x4c4   :  { %v6612_v23 = vsub.f32 1.0, %v6611_v45  ;;  %v15893_v53 = vunpack.c.l.bf16 %v12623_v31  ;;  %vm12750_vm8 = vcmp.eq.f32.partialorder %v6619_v5, 8.507059e+37  ;;  %8279 = vpow2.f32 %v7942_v6 }
 0x4c5   :  { %vm3566_vm3 = vcmp.ge.f32.partialorder %v3438_v21, 0.0  ;;  %v4839_v62 = vadd.f32 %v9036_v59, %v4623_v51  ;;  %vm6616_vm12 = vweird.f32 %v8276_v48  ;;  %v4337_v34 = vmul.f32 %v12614_v15, %v4206_v60 }
 0x4c6   :  { %vm12746_vm0 = vcmp.ge.f32.partialorder %v15893_v53, 0.0  ;;  %v6613_v39 = vmul.f32 %v8276_v48, %v6612_v23  ;;  %v3184_v2 = vadd.f32 %v8781_v16, %v3055_v63  ;;  %vm3950_vm14 = vmpackc.low %vm3566_vm3, %vm3566_vm3  ;;  %v8278_v55 = vpop.eup %8277  ;;  %v6622_v30 = vor.u32 1.1754944e-38, %v6621_v28  ;;  %v746_v23 = vpop.f32.mrf.mxu3 }
 0x4c7   :  { %v1014_v11 = vunpack.c.l.bf16 %v881_v4  ;;  %v4078_v45 = vsel %vm3950_vm14, %v12646_v9, %v3822_v26  ;;  %v7943_v5 = vmul.f32 -1.442695, %v4839_v62  ;;  %v6626_v53 = vmul.f32 %v8278_v55, %v12709_v29  ;;  %vm6617_vm7 = vmor %vm6615_vm6, %vm6616_vm12 }
 0x4c8   :  { %v6614_v32 = vadd.f32 %v8276_v48, %v6613_v39  ;;  %v1398_v21 = vunpack.c.l.bf16 %v12742_v35  ;;  %v4660_v51 = vsel %vm4368_vm13, %v4337_v34, 0.0  ;;  %v12763_v63 = vpack.c.bf16 %v3184_v2, %v3184_v2  ;;  %v12771_v2 = vpop.f32.mrf.mxu2  ;;  %vm1907_vm6 = vmpackc.low %vm12737_vm5, %vm12737_vm5 }
 0x4c9   :  { %4661 = vadd.xlane.f32.xlu1 %v4660_v51  ;;  %v4207_v6 = vunpack.c.l.bf16 %v4078_v45  ;;  %8281 = vpow2.f32 %v7943_v5  ;;  %v2923_v4 = vpack.c.bf16 %v2754_v47, %v2754_v47  ;;  %v6627_v9 = vsub.f32 1.0, %v6626_v53  ;;  %vm1908_vm3 = vmpackc.low %vm12746_vm0, %vm12746_vm0 }
 0x4ca   :  { %v6618_v28 = vsel %vm6617_vm7, %v8276_v48, %v6614_v32  ;;  %v6634_v26 = vand.u32 2147483647, %v12709_v29  ;;  %v6636_v60 = vand.u32 2147483648, %v12709_v29  ;;  %v8280_v62 = vpop.eup %8279  ;;  %v1143_v34 = vadd.f32 %v8693_v42, %v1014_v11 }
 0x4cb   :  { %v6623_v39 = vsel %vm12750_vm8, %v6622_v30, %v6618_v28  ;;  %v4338_v25 = vmul.f32 %v12614_v15, %v4207_v6  ;;  %v882_v51 = vpack.c.bf16 %v746_v23, %v746_v23  ;;  %v6628_v47 = vmul.f32 %v8278_v55, %v6627_v9 }
 0x4cc   :  { %v7631_v45 = vperm.slane %v6623_v39, %v9105_v19  ;;  %vm6631_vm15 = vweird.f32 %v8278_v55  ;;  %v12774_v48 = vadd.f32 1.0, %v8280_v62  ;;  %v3439_v5 = vunpack.c.l.bf16 %v12725_v0 }
 0x4cd   :  { %v3440_v32 = vunpack.c.l.bf16 %v12763_v63  ;;  %v4663_v56 = vsel %vm4368_vm13, %v4338_v25, 0.0  ;;  %v3056_v30 = vunpack.c.l.bf16 %v2923_v4  ;;  %v6629_v53 = vadd.f32 %v8278_v55, %v6628_v47 }
 0x4ce   :  { %v7632_v11 = vsel %vm7448_vm1, %v7631_v45, %v7630_v44  ;;  %vm6630_vm9 = vweird.f32 %v12709_v29  ;;  %8283 = vrcp.f32 %v12774_v48  ;;  %4664 = vadd.xlane.f32.xlu2 %v4663_v56  ;;  %v6637_v28 = vor.u32 1.1754944e-38, %v6636_v60 }
 0x4cf   :  { %v8282_v23 = vpop.eup %8281  ;;  %vm6632_vm8 = vmor %vm6630_vm9, %vm6631_vm15  ;;  %v12789_v4 = vmul.f32 0.010009766, %v1398_v21  ;;  %v12791_v9 = vpack.c.bf16 %v1143_v34, %v1143_v34  ;;  %vm6635_vm12 = vcmp.eq.f32.partialorder %v6634_v26, 8.507059e+37  ;;  %v1015_v62 = vunpack.c.l.bf16 %v882_v51 }
 0x4d0   :  { %v6633_v29 = vsel %vm6632_vm8, %v8278_v55, %v6629_v53  ;;  %v12796_v44 = vadd.f32 1.0, %v8282_v23  ;;  %v3696_v25 = vmul.f32 0.010009766, %v3440_v32  ;;  %v3185_v45 = vadd.f32 %v8781_v16, %v3056_v30 }
 0x4d1   :  { %v6638_v39 = vsel %vm6635_vm12, %v6637_v28, %v6633_v29  ;;  %v15898_v60 = vpack.c.bf16 %v12650_v17, %v12650_v17  ;;  %v3695_v26 = vmul.f32 0.010009766, %v3439_v5  ;;  %v6649_v47 = vand.u32 2147483647, %v12774_v48 }
 0x4d2   :  { %v7633_v55 = vperm.slane %v6638_v39, %v9109_v20  ;;  %8285 = vrcp.f32 %v12796_v44  ;;  %vm6645_vm14 = vweird.f32 %v12774_v48  ;;  %v15899_v56 = vpack.c.bf16 %v12673_v54, %v12673_v54  ;;  %v4626_v39 = vpop.xlane.xlu1 %4625 }
 0x4d3   :  { %v2035_v34 = vsel %vm1907_vm6, %v12591_v43, %v15898_v60  ;;  %v15900_v30 = vunpack.c.l.bf16 %v12665_v14  ;;  %v6651_v28 = vand.u32 2147483648, %v12774_v48  ;;  %v749_v60 = vpop.f32.mrf.mxu3  ;;  %v3824_v17 = vpack.c.bf16 %v3696_v25, %v3696_v25 }
 0x4d4   :  { %v2036_v43 = vsel %vm1908_vm3, %v12623_v31, %v15899_v56  ;;  %v8284_v18 = vpop.eup %8283  ;;  %v12831_v23 = vsel %vm15512_vm10, %v7633_v55, %v7632_v11  ;;  %v2307_v54 = vunpack.c.l.b16 %v2035_v34  ;;  %v12835_v31 = vpack.c.bf16 %v3185_v45, %v3185_v45 }
 0x4d5   :  { %vm12826_vm5 = vcmp.ge.f32.partialorder %v15900_v30, 0.0  ;;  %v2308_v29 = vunpack.c.l.b16 %v2036_v43  ;;  %v6641_v38 = vmul.f32 %v8284_v18, %v12774_v48  ;;  %v12838_v56 = vadd.f32 %v8693_v42, %v1015_v62  ;;  %v12840_v30 = vpop.f32.mrf.mxu2 }
 0x4d6   :  { %vm12844_vm0 = vcmp.ge.f32.partialorder %v1398_v21, 0.0  ;;  %vm12848_vm7 = vcmp.eq.f32.partialorder %v6649_v47, 8.507059e+37  ;;  %vm3567_vm15 = vcmp.ge.f32.partialorder %v3439_v5, 0.0  ;;  %v3823_v25 = vpack.c.bf16 %v3695_v26, %v3695_v26  ;;  %v4629_v5 = vpop.xlane.xlu2 %4628 }
 0x4d7   :  { %v2376_v55 = vpack.c.b16 %v2308_v29, %v2307_v54  ;;  %v6642_v45 = vsub.f32 1.0, %v6641_v38  ;;  %vm3951_vm6 = vmpackc.low %vm3567_vm15, %vm3567_vm15  ;;  %v4840_v62 = vadd.f32 %v9036_v59, %v4626_v39  ;;  %v2924_v43 = vpack.c.bf16 %v12771_v2, %v12771_v2 }
 0x4d8   :  { %v883_v51 = vpack.c.bf16 %v749_v60, %v749_v60  ;;  %v8286_v6 = vpop.eup %8285  ;;  %v6652_v21 = vor.u32 1.1754944e-38, %v6651_v28  ;;  %v6664_v20 = vand.u32 2147483647, %v12796_v44  ;;  %v4079_v47 = vsel %vm3951_vm6, %v12725_v0, %v3823_v25 }
 0x4d9   :  { %2796 = vmatmul.bf16.gmra.mxu2 %v2376_v55  ;;  %vm12857_vm9 = vcmp.ge.f32.partialorder %v3440_v32, 0.0  ;;  %v6643_v26 = vmul.f32 %v8284_v18, %v6642_v45  ;;  %vm6646_vm8 = vweird.f32 %v8284_v18  ;;  %v6656_v54 = vmul.f32 %v8286_v6, %v12796_v44 }
 0x4da   :  { %v4208_v29 = vunpack.c.l.bf16 %v4079_v47  ;;  %v6666_v2 = vand.u32 2147483648, %v12796_v44  ;;  %v7944_v39 = vmul.f32 -1.442695, %v4840_v62  ;;  %v3057_v60 = vunpack.c.l.bf16 %v2924_v43  ;;  %vm3952_vm3 = vmpackc.low %vm12857_vm9, %vm12857_vm9 }
 0x4db   :  { %v1016_v28 = vunpack.c.l.bf16 %v883_v51  ;;  %v6644_v38 = vadd.f32 %v8284_v18, %v6643_v26  ;;  %v6657_v58 = vsub.f32 1.0, %v6656_v54  ;;  %v4841_v0 = vadd.f32 %v9036_v59, %v4629_v5  ;;  %vm6647_vm12 = vmor %vm6645_vm14, %vm6646_vm8  ;;  %v751_v5 = vpop.f32.mrf.mxu3 }
 0x4dc   :  { %v4339_v55 = vmul.f32 %v12614_v15, %v4208_v29  ;;  %vm6661_vm15 = vweird.f32 %v8286_v6  ;;  %8287 = vpow2.f32 %v7944_v39  ;;  %v3186_v32 = vadd.f32 %v8781_v16, %v3057_v60  ;;  %vm1909_vm14 = vmpackc.low %vm12826_vm5, %vm12826_vm5 }
 0x4dd   :  { %v4080_v25 = vsel %vm3952_vm3, %v12763_v63, %v3824_v17  ;;  %v6648_v51 = vsel %vm6647_vm12, %v8284_v18, %v6644_v38  ;;  %v6658_v45 = vmul.f32 %v8286_v6, %v6657_v58  ;;  %vm6660_vm6 = vweird.f32 %v12796_v44  ;;  %v12884_v34 = vpop.f32.mrf.mxu2  ;;  %vm1910_vm9 = vmpackc.low %vm12844_vm0, %vm12844_vm0 }
 0x4de   :  { %v4666_v62 = vsel %vm4368_vm13, %v4339_v55, 0.0  ;;  %v4209_v43 = vunpack.c.l.bf16 %v4080_v25  ;;  %v6653_v19 = vsel %vm12848_vm7, %v6652_v21, %v6648_v51  ;;  %v1145_v48 = vadd.f32 %v8693_v42, %v1016_v28  ;;  %vm6662_vm7 = vmor %vm6660_vm6, %vm6661_vm15 }
 0x4df   :  { %4667 = vadd.xlane.f32.xlu2 %v4666_v62  ;;  %v7945_v47 = vmul.f32 -1.442695, %v4841_v0  ;;  %v7635_v63 = vperm.slane %v6653_v19, %v9152_v61  ;;  %v6659_v58 = vadd.f32 %v8286_v6, %v6658_v45  ;;  %v2925_v18 = vpack.c.bf16 %v12840_v30, %v12840_v30 }
 0x4e0   :  { %v4340_v17 = vmul.f32 %v12614_v15, %v4209_v43  ;;  %v6667_v44 = vor.u32 1.1754944e-38, %v6666_v2  ;;  %v3441_v21 = vunpack.c.l.bf16 %v12835_v31  ;;  %v12888_v26 = vpack.c.bf16 %v3186_v32, %v3186_v32 }
 0x4e1   :  { %8289 = vpow2.f32 %v7945_v47  ;;  %v7636_v54 = vsel %vm15511_vm2, %v7635_v63, %v12831_v23  ;;  %v6663_v29 = vsel %vm6662_vm7, %v8286_v6, %v6659_v58  ;;  %vm6665_vm8 = vcmp.eq.f32.partialorder %v6664_v20, 8.507059e+37 }
 0x4e2   :  { %v4669_v30 = vsel %vm4368_vm13, %v4340_v17, 0.0  ;;  %v8288_v39 = vpop.eup %8287  ;;  %v6668_v60 = vsel %vm6665_vm8, %v6667_v44, %v6663_v29  ;;  %v12898_v2 = vpack.c.bf16 %v12838_v56, %v12838_v56  ;;  %v12900_v28 = vpack.c.bf16 %v1145_v48, %v1145_v48 }
 0x4e3   :  { %4670 = vadd.xlane.f32.xlu1 %v4669_v30  ;;  %v3058_v38 = vunpack.c.l.bf16 %v2925_v18  ;;  %v4799_v55 = vadd.f32 %v9036_v59, %v11065_v57  ;;  %v7637_v0 = vperm.slane %v6668_v60, %v9281_v10  ;;  %v12905_v23 = vadd.f32 1.0, %v8288_v39  ;;  %v4632_v18 = vpop.xlane.xlu0 %4631  ;;  %v12949_v44 = vpop.f32.mrf.mxu3 }
 0x4e4   :  { %v884_v20 = vpack.c.bf16 %v751_v5, %v751_v5  ;;  %v3697_v6 = vmul.f32 0.010009766, %v3441_v21  ;;  %v3442_v32 = vunpack.c.l.bf16 %v12888_v26  ;;  %v15909_v25 = vpack.c.bf16 %v12722_v7, %v12722_v7 }
 0x4e5   :  { %v15910_v57 = vpack.c.bf16 %v12789_v4, %v12789_v4  ;;  %v12927_v45 = vadd.f32 1.0, %v12617_v50  ;;  %v15911_v7 = vunpack.c.l.bf16 %v12791_v9  ;;  %v12934_v53 = vsel %vm15510_vm11, %v7637_v0, %v7636_v54  ;;  %v2764_v30 = vpop.f32.mrf.mxu2 }
 0x4e6   :  { %v2037_v56 = vsel %vm1909_vm14, %v12665_v14, %v15909_v25  ;;  %8291 = vrcp.f32 %v12905_v23  ;;  %v1400_v4 = vunpack.c.l.bf16 %v12898_v2  ;;  %v1401_v43 = vunpack.c.l.bf16 %v12900_v28 }
 0x4e7   :  { %v2038_v51 = vsel %vm1910_vm9, %v12742_v35, %v15910_v57  ;;  %v12931_v62 = vmul.f32 0.010009766, %v15911_v7  ;;  %v8290_v14 = vpop.eup %8289  ;;  %v3187_v11 = vadd.f32 %v8781_v16, %v3058_v38  ;;  %v2309_v35 = vunpack.c.l.b16 %v2037_v56  ;;  %v4635_v56 = vpop.xlane.xlu1 %4634 }
 0x4e8   :  { %v12940_v19 = vadd.f32 1.0, %v8290_v14  ;;  %v1017_v50 = vunpack.c.l.bf16 %v884_v20  ;;  %v2310_v48 = vunpack.c.l.b16 %v2038_v51  ;;  %vm12942_vm5 = vcmp.ge.f32.partialorder %v3441_v21, 0.0 }
 0x4e9   :  { %v12946_v5 = vmul.f32 -1.442695, %v4799_v55  ;;  %v6679_v63 = vand.u32 2147483647, %v12905_v23  ;;  %v3698_v58 = vmul.f32 0.010009766, %v3442_v32  ;;  %v3825_v17 = vpack.c.bf16 %v3697_v6, %v3697_v6  ;;  %vm3953_vm0 = vmpackc.low %vm12942_vm5, %vm12942_vm5 }
 0x4ea   :  { %v12953_v54 = vadd.f32 %v9036_v59, %v11028_v13  ;;  %v1783_v29 = vpack.c.bf16 %v12931_v62, %v12931_v62  ;;  %v6681_v21 = vand.u32 2147483648, %v12905_v23  ;;  %8293 = vrcp.f32 %v12940_v19 }
 0x4eb   :  { %v12962_v39 = vmul.f32 0.010009766, %v1400_v4  ;;  %v12964_v60 = vpack.c.bf16 %v3187_v11, %v3187_v11  ;;  %v2377_v38 = vpack.c.b16 %v2310_v48, %v2309_v35  ;;  %v4081_v13 = vsel %vm3953_vm0, %v12835_v31, %v3825_v17 }
 0x4ec   :  { %v8292_v55 = vpop.eup %8291  ;;  %v12969_v0 = vmul.f32 0.010009766, %v1401_v43  ;;  %v1146_v20 = vadd.f32 %v8693_v42, %v1017_v50  ;;  %v4210_v6 = vunpack.c.l.bf16 %v4081_v13  ;;  %v4842_v25 = vadd.f32 %v9036_v59, %v4632_v18 }
 0x4ed   :  { %v6671_v57 = vmul.f32 %v8292_v55, %v12905_v23  ;;  %vm6675_vm3 = vweird.f32 %v12905_v23  ;;  %vm12975_vm12 = vcmp.eq.f32.partialorder %v6679_v63, 8.507059e+37  ;;  %v3826_v31 = vpack.c.bf16 %v3698_v58, %v3698_v58  ;;  %2801 = vmatmul.bf16.gmra.mxu2 %v2377_v38 }
 0x4ee   :  { %vm12981_vm15 = vcmp.ge.f32.partialorder %v15911_v7, 0.0  ;;  %v6682_v11 = vor.u32 1.1754944e-38, %v6681_v21  ;;  %v4341_v35 = vmul.f32 %v12614_v15, %v4210_v6  ;;  %v7946_v50 = vmul.f32 -1.442695, %v4842_v25 }
 0x4ef   :  { %v2926_v48 = vpack.c.bf16 %v12884_v34, %v12884_v34  ;;  %v6672_v47 = vsub.f32 1.0, %v6671_v57  ;;  %v3443_v63 = vunpack.c.l.bf16 %v12964_v60  ;;  %vm3570_vm6 = vcmp.ge.f32.partialorder %v3442_v32, 0.0 }
 0x4f0   :  { %v4843_v58 = vadd.f32 %v9036_v59, %v4635_v56  ;;  %v8294_v17 = vpop.eup %8293  ;;  %vm12990_vm14 = vcmp.ge.f32.partialorder %v1400_v4, 0.0  ;;  %v12994_v38 = vpack.c.bf16 %v1146_v20, %v1146_v20  ;;  %v4672_v21 = vsel %vm4368_vm13, %v4341_v35, 0.0  ;;  %vm3954_vm7 = vmpackc.low %vm3570_vm6, %vm3570_vm6 }
 0x4f1   :  { %8295 = vpow2.f32 %v7946_v50  ;;  %v3059_v13 = vunpack.c.l.bf16 %v2926_v48  ;;  %v6673_v6 = vmul.f32 %v8292_v55, %v6672_v47  ;;  %vm6676_vm9 = vweird.f32 %v8292_v55  ;;  %4673 = vadd.xlane.f32.xlu0 %v4672_v21  ;;  %v756_v48 = vpop.f32.mrf.mxu3 }
 0x4f2   :  { %v6686_v34 = vmul.f32 %v8294_v17, %v12940_v19  ;;  %v4082_v32 = vsel %vm3954_vm7, %v12888_v26, %v3826_v31  ;;  %v6694_v25 = vand.u32 2147483647, %v12940_v19  ;;  %v7947_v57 = vmul.f32 -1.442695, %v4843_v58  ;;  %vm6677_vm8 = vmor %vm6675_vm3, %vm6676_vm9  ;;  %v13007_v31 = vpop.f32.mrf.mxu2 }
 0x4f3   :  { %v3188_v4 = vadd.f32 %v8781_v16, %v3059_v13  ;;  %v4211_v56 = vunpack.c.l.bf16 %v4082_v32  ;;  %v6674_v20 = vadd.f32 %v8292_v55, %v6673_v6  ;;  %v6696_v35 = vand.u32 2147483648, %v12940_v19  ;;  %vm1912_vm9 = vmpackc.low %vm12990_vm14, %vm12990_vm14 }
 0x4f4   :  { %v6687_v7 = vsub.f32 1.0, %v6686_v34  ;;  %v2927_v50 = vpack.c.bf16 %v2764_v30, %v2764_v30  ;;  %vm6691_vm5 = vweird.f32 %v8294_v17  ;;  %v885_v47 = vpack.c.bf16 %v12949_v44, %v12949_v44 }
 0x4f5   :  { %v4342_v26 = vmul.f32 %v12614_v15, %v4211_v56  ;;  %8297 = vpow2.f32 %v7947_v57  ;;  %v6678_v21 = vsel %vm6677_vm8, %v8292_v55, %v6674_v20  ;;  %v13009_v13 = vpack.c.bf16 %v3188_v4, %v3188_v4 }
 0x4f6   :  { %v6688_v58 = vmul.f32 %v8294_v17, %v6687_v7  ;;  %v3060_v6 = vunpack.c.l.bf16 %v2927_v50  ;;  %v6683_v30 = vsel %vm12975_vm12, %v6682_v11, %v6678_v21  ;;  %vm6690_vm0 = vweird.f32 %v12940_v19  ;;  %vm1911_vm12 = vmpackc.low %vm12981_vm15, %vm12981_vm15 }
 0x4f7   :  { %v8296_v34 = vpop.eup %8295  ;;  %v4675_v23 = vsel %vm4368_vm13, %v4342_v26, 0.0  ;;  %v886_v32 = vpack.c.bf16 %v756_v48, %v756_v48  ;;  %v7639_v44 = vperm.slane %v6683_v30, %v9287_v12  ;;  %vm6692_vm3 = vmor %vm6690_vm0, %vm6691_vm5  ;;  %vm6695_vm6 = vcmp.eq.f32.partialorder %v6694_v25, 8.507059e+37 }
 0x4f8   :  { %v6689_v56 = vadd.f32 %v8294_v17, %v6688_v58  ;;  %v13016_v57 = vadd.f32 1.0, %v8296_v34  ;;  %4676 = vadd.xlane.f32.xlu2 %v4675_v23  ;;  %v3189_v55 = vadd.f32 %v8781_v16, %v3060_v6  ;;  %v6697_v4 = vor.u32 1.1754944e-38, %v6696_v35 }
 0x4f9   :  { %v1402_v51 = vunpack.c.l.bf16 %v12994_v38  ;;  %v1018_v11 = vunpack.c.l.bf16 %v885_v47  ;;  %v7640_v19 = vsel %vm15509_vm4, %v7639_v44, %v12934_v53  ;;  %v3444_v7 = vunpack.c.l.bf16 %v13009_v13 }
 0x4fa   :  { %v6693_v20 = vsel %vm6692_vm3, %v8294_v17, %v6689_v56  ;;  %8299 = vrcp.f32 %v13016_v57  ;;  %v1784_v25 = vpack.c.bf16 %v12962_v39, %v12962_v39  ;;  %vm13032_vm7 = vcmp.ge.f32.partialorder %v1401_v43, 0.0  ;;  %v13060_v34 = vpop.f32.mrf.mxu2 }
 0x4fb   :  { %v8298_v50 = vpop.eup %8297  ;;  %v6698_v48 = vsel %vm6695_vm6, %v6697_v4, %v6693_v20  ;;  %v1019_v47 = vunpack.c.l.bf16 %v886_v32  ;;  %v1785_v53 = vpack.c.bf16 %v12969_v0, %v12969_v0  ;;  %v13044_v39 = vpack.c.bf16 %v3189_v55, %v3189_v55 }
 0x4fc   :  { %v7641_v17 = vperm.slane %v6698_v48, %v9377_v46  ;;  %v13042_v26 = vadd.f32 1.0, %v8298_v50  ;;  %v3699_v43 = vmul.f32 0.010009766, %v3443_v63  ;;  %v13048_v21 = vmul.f32 0.010009766, %v1402_v51 }
 0x4fd   :  { %v1147_v58 = vadd.f32 %v8693_v42, %v1018_v11  ;;  %v2039_v6 = vsel %vm1911_vm12, %v12791_v9, %v1783_v29  ;;  %vm15922_vm8 = vcmask 458112   ;;  %v6709_v23 = vand.u32 2147483647, %v13016_v57 }
 0x4fe   :  { %v13063_v30 = vsel %vm15922_vm8, %v7641_v17, %v7640_v19  ;;  %v3700_v32 = vmul.f32 0.010009766, %v3444_v7  ;;  %8301 = vrcp.f32 %v13042_v26  ;;  %vm13067_vm5 = vcmp.ge.f32.partialorder %v1402_v51, 0.0 }
 0x4ff   :  { %v6711_v62 = vand.u32 2147483648, %v13016_v57  ;;  %v1148_v14 = vadd.f32 %v8693_v42, %v1019_v47  ;;  %v2040_v9 = vsel %vm1912_vm9, %v12898_v2, %v1784_v25  ;;  %v3445_v56 = vunpack.c.l.bf16 %v13044_v39  ;;  %vm1914_vm4 = vmpackc.low %vm13067_vm5, %vm13067_vm5 }
 0x500   :  { %v8300_v29 = vpop.eup %8299  ;;  %v2311_v55 = vunpack.c.l.b16 %v2039_v6  ;;  %v2312_v4 = vunpack.c.l.b16 %v2040_v9  ;;  %vm13082_vm15 = vcmp.ge.f32.partialorder %v3443_v63, 0.0  ;;  %v1786_v42 = vpack.c.bf16 %v13048_v21, %v13048_v21 }
 0x501   :  { %v6701_v11 = vmul.f32 %v8300_v29, %v13016_v57  ;;  %vm6705_vm0 = vweird.f32 %v13016_v57  ;;  %v13090_v18 = vpack.c.bf16 %v1147_v58, %v1147_v58  ;;  %vm13092_vm14 = vcmp.eq.f32.partialorder %v6709_v23, 8.507059e+37  ;;  %vm3955_vm3 = vmpackc.low %vm13082_vm15, %vm13082_vm15 }
 0x502   :  { %v3828_v19 = vpack.c.bf16 %v3700_v32, %v3700_v32  ;;  %v2378_v20 = vpack.c.b16 %v2312_v4, %v2311_v55  ;;  %v3827_v50 = vpack.c.bf16 %v3699_v43, %v3699_v43  ;;  %v6712_v25 = vor.u32 1.1754944e-38, %v6711_v62  ;;  %v13110_v32 = vpop.f32.mrf.mxu2  ;;  %vm1913_vm15 = vmpackc.low %vm13032_vm7, %vm13032_vm7 }
 0x503   :  { %v6702_v63 = vsub.f32 1.0, %v6701_v11  ;;  %v13096_v48 = vpack.c.bf16 %v1148_v14, %v1148_v14  ;;  %v2928_v47 = vpack.c.bf16 %v13007_v31, %v13007_v31  ;;  %vm6720_vm6 = vweird.f32 %v13042_v26 }
 0x504   :  { %v8302_v17 = vpop.eup %8301  ;;  %v13106_v21 = vmul.f32 0.010009766, %v3445_v56  ;;  %2806 = vmatmul.bf16.gmra.mxu2 %v2378_v20  ;;  %v4083_v43 = vsel %vm3955_vm3, %v12964_v60, %v3827_v50  ;;  %vm3572_vm12 = vcmp.ge.f32.partialorder %v3444_v7, 0.0  ;;  %vm6706_vm9 = vweird.f32 %v8300_v29 }
 0x505   :  { %v6703_v58 = vmul.f32 %v8300_v29, %v6702_v63  ;;  %v6716_v6 = vmul.f32 %v8302_v17, %v13042_v26  ;;  %v4212_v23 = vunpack.c.l.bf16 %v4083_v43  ;;  %vm3956_vm8 = vmpackc.low %vm3572_vm12, %vm3572_vm12  ;;  %v6724_v31 = vand.u32 2147483647, %v13042_v26 }
 0x506   :  { %v6726_v62 = vand.u32 2147483648, %v13042_v26  ;;  %v3061_v14 = vunpack.c.l.bf16 %v2928_v47  ;;  %v4084_v60 = vsel %vm3956_vm8, %v13009_v13, %v3828_v19  ;;  %vm5611_vm3 = vweird.f32 %v12459_v52  ;;  %vm6707_vm11 = vmor %vm6705_vm0, %vm6706_vm9 }
 0x507   :  { %v6704_v7 = vadd.f32 %v8300_v29, %v6703_v58  ;;  %v6717_v9 = vsub.f32 1.0, %v6716_v6  ;;  %v4343_v55 = vmul.f32 %v12614_v15, %v4212_v23  ;;  %v4213_v4 = vunpack.c.l.bf16 %v4084_v60 }
 0x508   :  { %vm5626_vm12 = vweird.f32 %v12491_v22  ;;  %vm6721_vm2 = vweird.f32 %v8302_v17  ;;  %v3829_v13 = vpack.c.bf16 %v13106_v21, %v13106_v21  ;;  %v3190_v51 = vadd.f32 %v8781_v16, %v3061_v14 }
 0x509   :  { %v2929_v11 = vpack.c.bf16 %v13060_v34, %v13060_v34  ;;  %vm5610_vm8 = vweird.f32 %v12385_v3  ;;  %v6708_v19 = vsel %vm6707_vm11, %v8300_v29, %v6704_v7  ;;  %v6718_v20 = vmul.f32 %v8302_v17, %v6717_v9  ;;  %vm6722_vm11 = vmor %vm6720_vm6, %vm6721_vm2 }
 0x50a   :  { %v4678_v50 = vsel %vm4368_vm13, %v4343_v55, 0.0  ;;  %v4344_v63 = vmul.f32 %v12614_v15, %v4213_v4  ;;  %vm5625_vm10 = vweird.f32 %v12419_v49  ;;  %v6713_v57 = vsel %vm13092_vm14, %v6712_v25, %v6708_v19  ;;  %vm13189_vm6 = vmor %vm5610_vm8, %vm5611_vm3 }
 0x50b   :  { %4679 = vadd.xlane.f32.xlu1 %v4678_v50  ;;  %v3318_v47 = vpack.c.bf16 %v3190_v51, %v3190_v51  ;;  %v3062_v21 = vunpack.c.l.bf16 %v2929_v11  ;;  %v2041_v34 = vsel %vm1913_vm15, %v12900_v28, %v1785_v53  ;;  %v7643_v29 = vperm.slane %v6713_v57, %v9439_v37  ;;  %vm13198_vm9 = vmor %vm5625_vm10, %vm5626_vm12 }
 0x50c   :  { %v6719_v43 = vadd.f32 %v8302_v17, %v6718_v20  ;;  %v4681_v58 = vsel %vm4368_vm13, %v4344_v63, 0.0  ;;  %v2042_v2 = vsel %vm1914_vm4, %v12994_v38, %v1786_v42  ;;  %v7904_v0 = vmul.f32 -1.442695, %v12953_v54  ;;  %v2774_v38 = vpop.f32.mrf.mxu2 }
 0x50d   :  { %v6727_v35 = vor.u32 1.1754944e-38, %v6726_v62  ;;  %v3446_v28 = vunpack.c.l.bf16 %v3318_v47  ;;  %4682 = vadd.xlane.f32.xlu0 %v4681_v58  ;;  %v3191_v53 = vadd.f32 %v8781_v16, %v3062_v21  ;;  %vm15929_vm7 = vcmask 523712  }
 0x50e   :  { %v7644_v25 = vsel %vm15929_vm7, %v7643_v29, %v13063_v30  ;;  %v6723_v6 = vsel %vm6722_vm11, %v8302_v17, %v6719_v43  ;;  %vm6725_vm0 = vcmp.eq.f32.partialorder %v6724_v31, 8.507059e+37  ;;  %vm3573_vm5 = vcmp.ge.f32.partialorder %v3445_v56, 0.0 }
 0x50f   :  { %v15930_v54 = vand.u32 2147483647, %v12385_v3  ;;  %v6728_v26 = vsel %vm6725_vm0, %v6727_v35, %v6723_v6  ;;  %v3702_v42 = vmul.f32 0.010009766, %v3446_v28  ;;  %v2313_v23 = vunpack.c.l.b16 %v2041_v34  ;;  %vm3957_vm2 = vmpackc.low %vm3573_vm5, %vm3573_vm5 }
 0x510   :  { %v2314_v62 = vunpack.c.l.b16 %v2042_v2  ;;  %v1403_v14 = vunpack.c.l.bf16 %v13090_v18  ;;  %v7645_v30 = vperm.slane %v6728_v26, %v9458_v36  ;;  %v1404_v17 = vunpack.c.l.bf16 %v13096_v48  ;;  %v13254_v26 = vld [vmem:[%s15470_s5] ss:$0 sm:$0xff] }
 0x511   :  { %vm13166_vm4 = vcmp.eq.f32.partialorder %v15930_v54, 8.507059e+37  ;;  %v4085_v56 = vsel %vm3957_vm2, %v13044_v39, %v3829_v13  ;;  %8303 = vpow2.f32 %v12946_v5  ;;  %v13175_v31 = vpack.c.bf16 %v3191_v53, %v3191_v53  ;;  %v15987_v5 = vld [vmem:[#allocation31_spill] sm:$0xff] }
 0x512   :  { %v4214_v60 = vunpack.c.l.bf16 %v4085_v56  ;;  %v2930_v7 = vpack.c.bf16 %v13110_v32, %v13110_v32  ;;  %v5629_v9 = vand.u32 2147483647, %v12419_v49  ;;  %v5631_v55 = vand.u32 2147483648, %v12419_v49 }
 0x513   :  { %8305 = vrcp.f32 %v12927_v45  ;;  %vm15933_vm14 = vcmask 589312   ;;  %v3830_v39 = vpack.c.bf16 %v3702_v42, %v3702_v42  ;;  %v2379_v32 = vpack.c.b16 %v2314_v62, %v2313_v23  ;;  %v15945_v23 = vld [vmem:[#allocation32_spill] sm:$0xff]  ;;  %v15946_v62 = vld [vmem:[#allocation34_spill] sm:$0xff] }
 0x514   :  { %v13183_v4 = vsel %vm15933_vm14, %v7645_v30, %v7644_v25  ;;  %8307 = vpow2.f32 %v7904_v0  ;;  %v4345_v13 = vmul.f32 %v12614_v15, %v4214_v60  ;;  %v1659_v11 = vmul.f32 0.010009766, %v1403_v14 }
 0x515   :  { %15934 = vst [vmem:[#allocation35_spill] sm:$0xff] %v13183_v4  ;;  %v1660_v19 = vmul.f32 0.010009766, %v1404_v17  ;;  %v3063_v3 = vunpack.c.l.bf16 %v2930_v7  ;;  %vm13202_vm15 = vcmp.ge.f32.partialorder %v3446_v28, 0.0  ;;  %v5613_v15 = vsel %vm13189_vm6, %v12459_v52, %v12576_v24  ;;  %2811 = vmatmul.bf16.gmra.mxu2 %v2379_v32 }
 0x516   :  { %v5628_v49 = vsel %vm13198_vm9, %v12491_v22, %v12679_v27  ;;  %vm13214_vm10 = vcmp.ge.f32.partialorder %v1403_v14, 0.0  ;;  %v3447_v63 = vunpack.c.l.bf16 %v13175_v31  ;;  %v5831_v57 = vmul.f32 %v12579_v1, %v12513_v41  ;;  %vm3958_vm12 = vmpackc.low %vm13202_vm15, %vm13202_vm15  ;;  %v2777_v22 = vpop.f32.mrf.mxu2 }
 0x517   :  { %vm13221_vm3 = vcmp.ge.f32.partialorder %v1404_v17, 0.0  ;;  %v4684_v52 = vsel %vm4368_vm13, %v4345_v13, 0.0  ;;  %v3192_v24 = vadd.f32 %v8781_v16, %v3063_v3  ;;  %v8304_v27 = vpop.eup %8303  ;;  %vm5630_vm8 = vcmp.eq.f32.partialorder %v5629_v9, 8.507059e+37  ;;  %vm1915_vm11 = vmpackc.low %vm13214_vm10, %vm13214_vm10 }
 0x518   :  { %v5632_v34 = vor.u32 1.1754944e-38, %v5631_v55  ;;  %4685 = vadd.xlane.f32.xlu2 %v4684_v52  ;;  %v4086_v29 = vsel %vm3958_vm12, %v3318_v47, %v3830_v39  ;;  %v2931_v43 = vpack.c.bf16 %v2774_v38, %v2774_v38  ;;  %v13235_v2 = vsel %vm13166_vm4, %v12541_v40, %v5613_v15  ;;  %vm1916_vm7 = vmpackc.low %vm13221_vm3, %vm13221_vm3  ;;  %v15947_v55 = vld [vmem:[#allocation27_spill] sm:$0xff] }
 0x519   :  { %v13230_v58 = vpop.eup %8305  ;;  %v1787_v0 = vpack.c.bf16 %v1659_v11, %v1659_v11  ;;  %v1788_v35 = vpack.c.bf16 %v1660_v19, %v1660_v19  ;;  %v4215_v28 = vunpack.c.l.bf16 %v4086_v29  ;;  %v4801_v47 = vadd.f32 %v9036_v59, %v11051_v33 }
 0x51a   :  { %v8308_v53 = vpop.eup %8307  ;;  %v13240_v25 = vsel %vm5630_vm8, %v5632_v34, %v5628_v49  ;;  %v3703_v6 = vmul.f32 0.010009766, %v3447_v63  ;;  %v3064_v40 = vunpack.c.l.bf16 %v2931_v43  ;;  %v5832_v38 = vsub.f32 1.0, %v5831_v57  ;;  %v15948_v57 = vld [vmem:[#allocation16_spill] sm:$0xff] }
 0x51b   :  { %v13247_v54 = vadd.f32 1.0, %v8304_v27  ;;  %v13249_v44 = vpack.c.bf16 %v3192_v24, %v3192_v24  ;;  %v4346_v42 = vmul.f32 %v13254_v26, %v4215_v28  ;;  %v5846_v14 = vmul.f32 %v15946_v62, %v15945_v23 }
 0x51c   :  { %v5861_v30 = vmul.f32 %v13230_v58, %v12927_v45  ;;  %v3193_v17 = vadd.f32 %v8781_v16, %v3064_v40  ;;  %v13264_v56 = vadd.f32 1.0, %v8308_v53  ;;  %v2043_v7 = vsel %vm1915_vm11, %v13090_v18, %v1787_v0 }
 0x51d   :  { %v4687_v60 = vsel %vm4368_vm13, %v4346_v42, 0.0  ;;  %v2044_v9 = vsel %vm1916_vm7, %v13096_v48, %v1788_v35  ;;  %v5839_v39 = vand.u32 2147483647, %v12513_v41  ;;  %v7905_v32 = vmul.f32 -1.442695, %v4801_v47 }
 0x51e   :  { %v3831_v13 = vpack.c.bf16 %v3703_v6, %v3703_v6  ;;  %4688 = vadd.xlane.f32.xlu1 %v4687_v60  ;;  %v5833_v51 = vmul.f32 %v12579_v1, %v5832_v38  ;;  %8309 = vrcp.f32 %v13247_v54  ;;  %v3448_v11 = vunpack.c.l.bf16 %v13249_v44  ;;  %v13282_v3 = vpop.f32.mrf.mxu2 }
 0x51f   :  { %v13280_v19 = vpack.c.bf16 %v3193_v17, %v3193_v17  ;;  %v5847_v18 = vsub.f32 1.0, %v5846_v14  ;;  %v2315_v48 = vunpack.c.l.b16 %v2043_v7  ;;  %v2316_v20 = vunpack.c.l.b16 %v2044_v9 }
 0x520   :  { %vm3575_vm0 = vcmp.ge.f32.partialorder %v3447_v63, 0.0  ;;  %v5841_v15 = vand.u32 2147483648, %v12513_v41  ;;  %v5862_v49 = vsub.f32 1.0, %v5861_v30  ;;  %8311 = vrcp.f32 %v13264_v56 }
 0x521   :  { %v3449_v50 = vunpack.c.l.bf16 %v13280_v19  ;;  %vm3959_vm5 = vmpackc.low %vm3575_vm0, %vm3575_vm0  ;;  %8313 = vpow2.f32 %v7905_v32  ;;  %v4802_v21 = vadd.f32 %v9036_v59, %v15948_v57  ;;  %v2932_v24 = vpack.c.bf16 %v2777_v22, %v2777_v22  ;;  %v13301_v22 = vpop.xlane.xlu0 %4640 }
 0x522   :  { %v4087_v52 = vsel %vm3959_vm5, %v13175_v31, %v3831_v13  ;;  %v5834_v27 = vadd.f32 %v12579_v1, %v5833_v51  ;;  %vm5836_vm4 = vweird.f32 %v12579_v1  ;;  %v5854_v63 = vand.u32 2147483647, %v15945_v23 }
 0x523   :  { %v3704_v34 = vmul.f32 0.010009766, %v3448_v11  ;;  %v5848_v29 = vmul.f32 %v15946_v62, %v5847_v18  ;;  %v2380_v43 = vpack.c.b16 %v2316_v20, %v2315_v48  ;;  %v4216_v0 = vunpack.c.l.bf16 %v4087_v52  ;;  %v15959_v52 = vld [vmem:[#allocation19_spill] sm:$0xff] }
 0x524   :  { %v3065_v35 = vunpack.c.l.bf16 %v2932_v24  ;;  %v13294_v28 = vpop.eup %8309  ;;  %vm5835_vm2 = vweird.f32 %v12513_v41  ;;  %vm13297_vm14 = vcmp.eq.f32.partialorder %v5839_v39, 8.507059e+37  ;;  %v5842_v31 = vor.u32 1.1754944e-38, %v5841_v15 }
 0x525   :  { %v3705_v47 = vmul.f32 0.010009766, %v3449_v50  ;;  %vm13303_vm6 = vmor %vm5835_vm2, %vm5836_vm4  ;;  %vm5850_vm9 = vweird.f32 %v15945_v23  ;;  %v5856_v40 = vand.u32 2147483648, %v15945_v23  ;;  %v5863_v38 = vmul.f32 %v13230_v58, %v5862_v49  ;;  %2816 = vmatmul.bf16.gmra.mxu2 %v2380_v43 }
 0x526   :  { %v7906_v42 = vmul.f32 -1.442695, %v4802_v21  ;;  %v13310_v41 = vpop.eup %8311  ;;  %v5838_v14 = vsel %vm13303_vm6, %v12579_v1, %v5834_v27  ;;  %vm5851_vm15 = vweird.f32 %v15946_v62  ;;  %v3832_v30 = vpack.c.bf16 %v3704_v34, %v3704_v34  ;;  %v2782_v60 = vpop.f32.mrf.mxu2 }
 0x527   :  { %v4347_v17 = vmul.f32 %v13254_v26, %v4216_v0  ;;  %v8314_v7 = vpop.eup %8313  ;;  %v5849_v9 = vadd.f32 %v15946_v62, %v5848_v29  ;;  %vm13318_vm10 = vcmp.eq.f32.partialorder %v5854_v63, 8.507059e+37  ;;  %vm5865_vm3 = vweird.f32 %v12927_v45  ;;  %vm13337_vm0 = vmor %vm5850_vm9, %vm5851_vm15 }
 0x528   :  { %v6056_v32 = vmul.f32 %v13294_v28, %v13247_v54  ;;  %v3194_v1 = vadd.f32 %v8781_v16, %v3065_v35  ;;  %vm5866_vm12 = vweird.f32 %v13230_v58  ;;  %v3833_v13 = vpack.c.bf16 %v3705_v47, %v3705_v47 }
 0x529   :  { %v4690_v51 = vsel %vm4368_vm13, %v4347_v17, 0.0  ;;  %vm3576_vm8 = vcmp.ge.f32.partialorder %v3448_v11, 0.0  ;;  %v5864_v18 = vadd.f32 %v13230_v58, %v5863_v38  ;;  %8315 = vpow2.f32 %v7906_v42  ;;  %vm13360_vm4 = vmor %vm5865_vm3, %vm5866_vm12  ;;  %v13365_v43 = vpop.xlane.xlu0 %4649 }
 0x52a   :  { %4691 = vadd.xlane.f32.xlu0 %v4690_v51  ;;  %v3322_v48 = vpack.c.bf16 %v3194_v1, %v3194_v1  ;;  %vm3960_vm11 = vmpackc.low %vm3576_vm8, %vm3576_vm8  ;;  %vm13329_vm7 = vcmp.ge.f32.partialorder %v3449_v50, 0.0  ;;  %v5871_v11 = vand.u32 2147483648, %v12927_v45  ;;  %v6071_v49 = vmul.f32 %v13310_v41, %v13264_v56 }
 0x52b   :  { %v13344_v57 = vadd.f32 1.0, %v8314_v7  ;;  %v4088_v50 = vsel %vm3960_vm11, %v13249_v44, %v3832_v30  ;;  %v6057_v21 = vsub.f32 1.0, %v6056_v32  ;;  %v4814_v24 = vadd.f32 %v9036_v59, %v15959_v52  ;;  %vm3961_vm5 = vmpackc.low %vm13329_vm7, %vm13329_vm7 }
 0x52c   :  { %v3450_v27 = vunpack.c.l.bf16 %v3322_v48  ;;  %v4217_v63 = vunpack.c.l.bf16 %v4088_v50  ;;  %v13354_v23 = vsel %vm13297_vm14, %v5842_v31, %v5838_v14  ;;  %v5857_v34 = vor.u32 1.1754944e-38, %v5856_v40 }
 0x52d   :  { %v5869_v29 = vand.u32 2147483647, %v12927_v45  ;;  %v4089_v0 = vsel %vm3961_vm5, %v13280_v19, %v3833_v13  ;;  %v5853_v35 = vsel %vm13337_vm0, %v15946_v62, %v5849_v9  ;;  %v5868_v53 = vsel %vm13360_vm4, %v13230_v58, %v5864_v18  ;;  %v13379_v62 = vpop.xlane.xlu1 %4643  ;;  %v15962_v58 = vld [vmem:[#allocation25_spill] sm:$0xff] }
 0x52e   :  { %v3706_v31 = vmul.f32 0.010009766, %v3450_v27  ;;  %v4348_v47 = vmul.f32 %v13254_v26, %v4217_v63  ;;  %v6072_v6 = vsub.f32 1.0, %v6071_v49  ;;  %8317 = vrcp.f32 %v13344_v57  ;;  %v13376_v38 = vpop.f32.mrf.mxu2 }
 0x52f   :  { %v4218_v40 = vunpack.c.l.bf16 %v4089_v0  ;;  %v2934_v45 = vpack.c.bf16 %v2782_v60, %v2782_v60  ;;  %v8316_v42 = vpop.eup %8315  ;;  %v5872_v19 = vor.u32 1.1754944e-38, %v5871_v11  ;;  %v6058_v14 = vmul.f32 %v13294_v28, %v6057_v21 }
 0x530   :  { %v7918_v30 = vmul.f32 -1.442695, %v4814_v24  ;;  %v4693_v17 = vsel %vm4368_vm13, %v4348_v47, 0.0  ;;  %v13386_v9 = vsel %vm13318_vm10, %v5857_v34, %v5853_v35  ;;  %vm5870_vm2 = vcmp.eq.f32.partialorder %v5869_v29, 8.507059e+37  ;;  %v15965_v34 = vld [vmem:[#allocation20_spill] sm:$0xff] }
 0x531   :  { %v3834_v60 = vpack.c.bf16 %v3706_v31, %v3706_v31  ;;  %4694 = vadd.xlane.f32.xlu2 %v4693_v17  ;;  %v13388_v32 = vsel %vm5870_vm2, %v5872_v19, %v5868_v53  ;;  %v6064_v1 = vand.u32 2147483647, %v13247_v54  ;;  %v6066_v13 = vand.u32 2147483648, %v13247_v54  ;;  %v4659_v24 = vpop.xlane.xlu0 %4658 }
 0x532   :  { %v4349_v51 = vmul.f32 %v13254_v26, %v4218_v40  ;;  %v6073_v18 = vmul.f32 %v13310_v41, %v6072_v6  ;;  %v13394_v20 = vadd.f32 1.0, %v8316_v42  ;;  %v3067_v15 = vunpack.c.l.bf16 %v2934_v45 }
 0x533   :  { %vm3578_vm14 = vcmp.ge.f32.partialorder %v3450_v27, 0.0  ;;  %v6059_v39 = vadd.f32 %v13294_v28, %v6058_v14  ;;  %vm6061_vm6 = vweird.f32 %v13294_v28  ;;  %8319 = vpow2.f32 %v7918_v30 }
 0x534   :  { %v4696_v11 = vsel %vm4368_vm13, %v4349_v51, 0.0  ;;  %vm3962_vm9 = vmpackc.low %vm3578_vm14, %vm3578_vm14  ;;  %v13399_v49 = vpop.eup %8317  ;;  %vm6060_vm15 = vweird.f32 %v13247_v54  ;;  %v6081_v50 = vand.u32 2147483648, %v13264_v56  ;;  %v3196_v21 = vadd.f32 %v8781_v16, %v3067_v15 }
 0x535   :  { %4697 = vadd.xlane.f32.xlu1 %v4696_v11  ;;  %v4090_v52 = vsel %vm3962_vm9, %v3322_v48, %v3834_v60  ;;  %vm13404_vm10 = vcmp.eq.f32.partialorder %v6064_v1, 8.507059e+37  ;;  %v6067_v63 = vor.u32 1.1754944e-38, %v6066_v13  ;;  %vm6076_vm3 = vweird.f32 %v13310_v41  ;;  %vm13413_vm12 = vmor %vm6060_vm15, %vm6061_vm6  ;;  %v13425_v47 = vpop.xlane.xlu1 %4652 }
 0x536   :  { %v4815_v44 = vadd.f32 %v9036_v59, %v15965_v34  ;;  %v6074_v29 = vadd.f32 %v13310_v41, %v6073_v18  ;;  %8321 = vrcp.f32 %v13394_v20  ;;  %v3324_v48 = vpack.c.bf16 %v3196_v21, %v3196_v21  ;;  %v2787_v35 = vpop.f32.mrf.mxu2  ;;  %v15973_v21 = vld [vmem:[#allocation18_spill] sm:$0xff]  ;;  %v15974_v34 = vld [vmem:[#allocation12_spill] sm:$0xff] }
 0x537   :  { %v4219_v0 = vunpack.c.l.bf16 %v4090_v52  ;;  %v6063_v53 = vsel %vm13413_vm12, %v13294_v28, %v6059_v39  ;;  %vm6075_vm8 = vweird.f32 %v13264_v56  ;;  %v6086_v31 = vmul.f32 %v13399_v49, %v13344_v57 }
 0x538   :  { %v4851_v6 = vadd.f32 %v9036_v59, %v4659_v24  ;;  %v6079_v40 = vand.u32 2147483647, %v13264_v56  ;;  %v6082_v45 = vor.u32 1.1754944e-38, %v6081_v50  ;;  %v3452_v42 = vunpack.c.l.bf16 %v3324_v48  ;;  %vm13432_vm11 = vmor %vm6075_vm8, %vm6076_vm3 }
 0x539   :  { %v4350_v19 = vmul.f32 %v13254_v26, %v4219_v0  ;;  %v8320_v14 = vpop.eup %8319  ;;  %v7919_v30 = vmul.f32 -1.442695, %v4815_v44  ;;  %v2935_v60 = vpack.c.bf16 %v13376_v38, %v13376_v38  ;;  %v2936_v1 = vpack.c.bf16 %v2787_v35, %v2787_v35 }
 0x53a   :  { %v7955_v17 = vmul.f32 -1.442695, %v4851_v6  ;;  %v13440_v56 = vsel %vm13404_vm10, %v6067_v63, %v6063_v53  ;;  %v6078_v13 = vsel %vm13432_vm11, %v13310_v41, %v6074_v29  ;;  %v3708_v51 = vmul.f32 0.010009766, %v3452_v42 }
 0x53b   :  { %15970 = vst [vmem:[#allocation32_spill] sm:$0xff] %v13440_v56  ;;  %v4699_v18 = vsel %vm4368_vm13, %v4350_v19, 0.0  ;;  %v6087_v15 = vsub.f32 1.0, %v6086_v31  ;;  %v3068_v39 = vunpack.c.l.bf16 %v2935_v60  ;;  %vm13446_vm7 = vcmp.ge.f32.partialorder %v3452_v42, 0.0 }
 0x53c   :  { %4700 = vadd.xlane.f32.xlu0 %v4699_v18  ;;  %8323 = vpow2.f32 %v7955_v17  ;;  %v13450_v38 = vpop.eup %8321  ;;  %v13452_v50 = vadd.f32 1.0, %v8320_v14  ;;  %v4816_v52 = vadd.f32 %v9036_v59, %v15973_v21  ;;  %v3836_v24 = vpack.c.bf16 %v3708_v51, %v3708_v51  ;;  %vm3964_vm5 = vmpackc.low %vm13446_vm7, %vm13446_vm7 }
 0x53d   :  { %v3069_v41 = vunpack.c.l.bf16 %v2936_v1  ;;  %vm6080_vm0 = vcmp.eq.f32.partialorder %v6079_v40, 8.507059e+37  ;;  %8325 = vpow2.f32 %v7919_v30  ;;  %v3197_v29 = vadd.f32 %v8781_v16, %v3068_v39  ;;  %v4662_v31 = vpop.xlane.xlu1 %4661 }
 0x53e   :  { %v13462_v54 = vsel %vm6080_vm0, %v6082_v45, %v6078_v13  ;;  %v2789_v35 = vpop.f32.mrf.mxu2  ;;  %vm6090_vm4 = vweird.f32 %v13344_v57  ;;  %v6101_v53 = vmul.f32 %v13450_v38, %v13394_v20  ;;  %v4092_v6 = vsel %vm3964_vm5, %v3324_v48, %v3836_v24 }
 0x53f   :  { %15975 = vst [vmem:[#allocation34_spill] sm:$0xff] %v13462_v54  ;;  %v3198_v0 = vadd.f32 %v8781_v16, %v3069_v41  ;;  %v2937_v40 = vpack.c.bf16 %v2789_v35, %v2789_v35  ;;  %v6088_v45 = vmul.f32 %v13399_v49, %v6087_v15  ;;  %8327 = vrcp.f32 %v13452_v50 }
 0x540   :  { %v7920_v42 = vmul.f32 -1.442695, %v4816_v52  ;;  %v3325_v19 = vpack.c.bf16 %v3197_v29, %v3197_v29  ;;  %v4852_v28 = vadd.f32 %v9036_v59, %v4662_v31  ;;  %v4221_v17 = vunpack.c.l.bf16 %v4092_v6 }
 0x541   :  { %v3326_v30 = vpack.c.bf16 %v3198_v0, %v3198_v0  ;;  %v3070_v60 = vunpack.c.l.bf16 %v2937_v40  ;;  %v6094_v1 = vand.u32 2147483647, %v13344_v57  ;;  %v6096_v13 = vand.u32 2147483648, %v13344_v57 }
 0x542   :  { %v8324_v14 = vpop.eup %8323  ;;  %v3453_v48 = vunpack.c.l.bf16 %v3325_v19  ;;  %v6111_v15 = vand.u32 2147483648, %v13394_v20  ;;  %v7956_v39 = vmul.f32 -1.442695, %v4852_v28  ;;  %v4352_v21 = vmul.f32 %v13254_v26, %v4221_v17 }
 0x543   :  { %v13477_v51 = vadd.f32 1.0, %v8324_v14  ;;  %v8326_v18 = vpop.eup %8325  ;;  %v3454_v11 = vunpack.c.l.bf16 %v3326_v30  ;;  %v6102_v24 = vsub.f32 1.0, %v6101_v53  ;;  %v3199_v41 = vadd.f32 %v8781_v16, %v3070_v60  ;;  %v15986_v14 = vld [vmem:[#allocation13_spill] sm:$0xff] }
 0x544   :  { %v13486_v29 = vadd.f32 %v13399_v49, %v6088_v45  ;;  %vm6091_vm2 = vweird.f32 %v13399_v49  ;;  %v3709_v0 = vmul.f32 0.010009766, %v3453_v48  ;;  %v13491_v31 = vadd.f32 1.0, %v8326_v18 }
 0x545   :  { %8329 = vrcp.f32 %v13477_v51  ;;  %v13489_v35 = vpop.eup %8327  ;;  %v3710_v6 = vmul.f32 0.010009766, %v3454_v11  ;;  %v4705_v40 = vsel %vm4368_vm13, %v4352_v21, 0.0  ;;  %v6097_v53 = vor.u32 1.1754944e-38, %v6096_v13  ;;  %vm13499_vm14 = vmor %vm6090_vm4, %vm6091_vm2 }
 0x546   :  { %8331 = vpow2.f32 %v7920_v42  ;;  %v13495_v28 = vor.u32 1.1754944e-38, %v6111_v15  ;;  %v3837_v17 = vpack.c.bf16 %v3709_v0, %v3709_v0  ;;  %4706 = vadd.xlane.f32.xlu0 %v4705_v40  ;;  %v6103_v42 = vmul.f32 %v13450_v38, %v6102_v24 }
 0x547   :  { %8333 = vpow2.f32 %v7956_v39  ;;  %v3838_v60 = vpack.c.bf16 %v3710_v6, %v3710_v6  ;;  %v3327_v18 = vpack.c.bf16 %v3199_v41, %v3199_v41  ;;  %vm3581_vm6 = vcmp.ge.f32.partialorder %v3453_v48, 0.0  ;;  %v2792_v39 = vpop.f32.mrf.mxu2  ;;  %v15982_v41 = vld [vmem:[#allocation21_spill] sm:$0xff]  ;;  %v15983_v6 = vld [vmem:[#allocation22_spill] sm:$0xff] }
 0x548   :  { %v6093_v13 = vsel %vm13499_vm14, %v13399_v49, %v13486_v29  ;;  %vm13508_vm9 = vcmp.eq.f32.partialorder %v6094_v1, 8.507059e+37  ;;  %v6281_v57 = vmul.f32 %v13489_v35, %v13452_v50  ;;  %vm3965_vm15 = vmpackc.low %vm3581_vm6, %vm3581_vm6  ;;  %v2938_v21 = vpack.c.bf16 %v2792_v39, %v2792_v39 }
 0x549   :  { %vm13514_vm10 = vcmp.ge.f32.partialorder %v3454_v11, 0.0  ;;  %8335 = vrcp.f32 %v13491_v31  ;;  %v4817_v49 = vadd.f32 %v9036_v59, %v15982_v41  ;;  %v3455_v1 = vunpack.c.l.bf16 %v3327_v18 }
 0x54a   :  { %v4093_v29 = vsel %vm3965_vm15, %v3325_v19, %v3837_v17  ;;  %v4818_v40 = vadd.f32 %v9036_v59, %v15983_v6  ;;  %vm3966_vm3 = vmpackc.low %vm13514_vm10, %vm13514_vm10  ;;  %vm7496_vm12 = vcmask 917312   ;;  %v3071_v44 = vunpack.c.l.bf16 %v2938_v21 }
 0x54b   :  { %v13518_v48 = vpop.eup %8329  ;;  %v4222_v11 = vunpack.c.l.bf16 %v4093_v29  ;;  %v3711_v52 = vmul.f32 0.010009766, %v3455_v1  ;;  %v4094_v63 = vsel %vm3966_vm3, %v3326_v30, %v3838_v60  ;;  %vm13530_vm8 = vcmp.ge.f32.partialorder %v3455_v1, 0.0 }
 0x54c   :  { %v8332_v0 = vpop.eup %8331  ;;  %v6836_v45 = vmul.f32 %v13518_v48, %v13477_v51  ;;  %v4223_v27 = vunpack.c.l.bf16 %v4094_v63  ;;  %v3200_v7 = vadd.f32 %v8781_v16, %v3071_v44  ;;  %v15988_v21 = vperm.slane %v15987_v5, %v15962_v58  ;;  %vm3967_vm11 = vmpackc.low %vm13530_vm8, %vm13530_vm8 }
 0x54d   :  { %v8334_v39 = vpop.eup %8333  ;;  %v4353_v6 = vmul.f32 %v13254_v26, %v4222_v11  ;;  %v13537_v29 = vadd.f32 1.0, %v8332_v0  ;;  %v3839_v24 = vpack.c.bf16 %v3711_v52, %v3711_v52  ;;  %v6282_v60 = vsub.f32 1.0, %v6281_v57  ;;  %v15989_v11 = vld [vmem:[#allocation24_spill] sm:$0xff] }
 0x54e   :  { %v6837_v19 = vsub.f32 1.0, %v6836_v45  ;;  %v13534_v17 = vadd.f32 1.0, %v8334_v39  ;;  %v7497_v30 = vsel %vm7496_vm12, %v15988_v21, %v15986_v14  ;;  %v7921_v1 = vmul.f32 -1.442695, %v4817_v49 }
 0x54f   :  { %v7922_v33 = vmul.f32 -1.442695, %v4818_v40  ;;  %v13546_v45 = vpop.eup %8335  ;;  %v4829_v63 = vadd.f32 %v9036_v59, %v15989_v11  ;;  %v4708_v52 = vsel %vm4368_vm13, %v4353_v6, 0.0  ;;  %v3328_v0 = vpack.c.bf16 %v3200_v7, %v3200_v7  ;;  %v2794_v39 = vpop.f32.mrf.mxu2 }
 0x550   :  { %8337 = vrcp.f32 %v13534_v17  ;;  %v4354_v44 = vmul.f32 %v13254_v26, %v4223_v27  ;;  %v13556_v5 = vadd.f32 %v13450_v38, %v6103_v42  ;;  %v6838_v14 = vmul.f32 %v13518_v48, %v6837_v19  ;;  %4709 = vadd.xlane.f32.xlu1 %v4708_v52 }
 0x551   :  { %v2939_v57 = vpack.c.bf16 %v2794_v39, %v2794_v39  ;;  %v4095_v49 = vsel %vm3967_vm11, %v3327_v18, %v3839_v24  ;;  %v13561_v40 = vsel %vm13508_vm9, %v6097_v53, %v6093_v13  ;;  %8339 = vrcp.f32 %v13537_v29 }
 0x552   :  { %15990 = vst [vmem:[#allocation16_spill] sm:$0xff] %v13561_v40  ;;  %v3456_v7 = vunpack.c.l.bf16 %v3328_v0  ;;  %v4711_v27 = vsel %vm4368_vm13, %v4354_v44, 0.0  ;;  %8341 = vpow2.f32 %v7921_v1  ;;  %v4224_v6 = vunpack.c.l.bf16 %v4095_v49 }
 0x553   :  { %4712 = vadd.xlane.f32.xlu0 %v4711_v27  ;;  %v3072_v42 = vunpack.c.l.bf16 %v2939_v57  ;;  %v13567_v19 = vmul.f32 %v13489_v35, %v6282_v60  ;;  %v13571_v18 = vmul.f32 %v13546_v45, %v13491_v31  ;;  %8343 = vpow2.f32 %v7922_v33 }
 0x554   :  { %v7933_v53 = vmul.f32 -1.442695, %v4829_v63  ;;  %v6839_v15 = vadd.f32 %v13518_v48, %v6838_v14  ;;  %vm6840_vm7 = vweird.f32 %v13477_v51  ;;  %vm6841_vm0 = vweird.f32 %v13518_v48 }
 0x555   :  { %v3712_v24 = vmul.f32 0.010009766, %v3456_v7  ;;  %v6844_v21 = vand.u32 2147483647, %v13477_v51  ;;  %v6846_v1 = vand.u32 2147483648, %v13477_v51  ;;  %v3201_v11 = vadd.f32 %v8781_v16, %v3072_v42  ;;  %vm13586_vm4 = vmor %vm6840_vm7, %vm6841_vm0 }
 0x556   :  { %v8338_v13 = vpop.eup %8337  ;;  %vm6106_vm5 = vweird.f32 %v13450_v38  ;;  %v6859_v33 = vand.u32 2147483647, %v13534_v17  ;;  %v6861_v63 = vand.u32 2147483648, %v13534_v17  ;;  %v4355_v44 = vmul.f32 %v13254_v26, %v4224_v6 }
 0x557   :  { %v6851_v60 = vmul.f32 %v8338_v13, %v13534_v17  ;;  %v3840_v52 = vpack.c.bf16 %v3712_v24, %v3712_v24  ;;  %v13584_v39 = vpop.eup %8339  ;;  %v3329_v57 = vpack.c.bf16 %v3201_v11, %v3201_v11  ;;  %vm3584_vm2 = vcmp.ge.f32.partialorder %v3456_v7, 0.0 }
 0x558   :  { %vm7500_vm14 = vcmask 982912   ;;  %v8342_v49 = vpop.eup %8341  ;;  %vm6105_vm6 = vweird.f32 %v13394_v20  ;;  %v6843_v27 = vsel %vm13586_vm4, %v13518_v48, %v6839_v15  ;;  %vm6856_vm9 = vweird.f32 %v8338_v13  ;;  %vm3968_vm15 = vmpackc.low %vm3584_vm2, %vm3584_vm2 }
 0x559   :  { %v6852_v51 = vsub.f32 1.0, %v6851_v60  ;;  %v4714_v42 = vsel %vm4368_vm13, %v4355_v44, 0.0  ;;  %v15993_v6 = vperm.slane %v13235_v2, %v12397_v8  ;;  %v8344_v60 = vpop.eup %8343  ;;  %v3457_v7 = vunpack.c.l.bf16 %v3329_v57 }
 0x55a   :  { %4715 = vadd.xlane.f32.xlu2 %v4714_v42  ;;  %v4096_v41 = vsel %vm3968_vm15, %v3328_v0, %v3840_v52  ;;  %vm7504_vm10 = vcmask 1048512   ;;  %vm6845_vm3 = vcmp.eq.f32.partialorder %v6844_v21, 8.507059e+37  ;;  %v6847_v4 = vor.u32 1.1754944e-38, %v6846_v1  ;;  %vm13637_vm15 = vmor %vm6105_vm6, %vm6106_vm5 }
 0x55b   :  { %v7501_v24 = vsel %vm7500_vm14, %v15993_v6, %v7497_v30  ;;  %v6853_v11 = vmul.f32 %v8338_v13, %v6852_v51  ;;  %vm6855_vm8 = vweird.f32 %v13534_v17  ;;  %v4225_v48 = vunpack.c.l.bf16 %v4096_v41  ;;  %v15997_v41 = vld [vmem:[#allocation28_spill] sm:$0xff] }
 0x55c   :  { %v3713_v14 = vmul.f32 0.010009766, %v3457_v7  ;;  %vm13600_vm11 = vcmp.ge.f32.partialorder %v3457_v7, 0.0  ;;  %v15996_v2 = vperm.slane %v13240_v25, %v15947_v55  ;;  %8345 = vpow2.f32 %v7933_v53  ;;  %vm6857_vm7 = vmor %vm6855_vm8, %vm6856_vm9  ;;  %v2797_v42 = vpop.f32.mrf.mxu2  ;;  %v16001_v53 = vld [vmem:[#allocation29_spill] sm:$0xff] }
 0x55d   :  { %v6854_v15 = vadd.f32 %v8338_v13, %v6853_v11  ;;  %v6848_v0 = vsel %vm6845_vm3, %v6847_v4, %v6843_v27  ;;  %v6862_v21 = vor.u32 1.1754944e-38, %v6861_v63  ;;  %v4356_v17 = vmul.f32 %v13254_v26, %v4225_v48  ;;  %vm3969_vm2 = vmpackc.low %vm13600_vm11, %vm13600_vm11  ;;  %v16003_v11 = vld [vmem:[#allocation7_spill] sm:$0xff] }
 0x55e   :  { %v13608_v30 = vsel %vm7504_vm10, %v15996_v2, %v7501_v24  ;;  %v4830_v1 = vadd.f32 %v9036_v59, %v15997_v41  ;;  %vm6860_vm0 = vcmp.eq.f32.partialorder %v6859_v33, 8.507059e+37  ;;  %v3841_v51 = vpack.c.bf16 %v3713_v14, %v3713_v14 }
 0x55f   :  { %v6858_v52 = vsel %vm6857_vm7, %v8338_v13, %v6854_v15  ;;  %v15998_v6 = vand.u32 2147483647, %v13394_v20  ;;  %v4831_v4 = vadd.f32 %v9036_v59, %v16001_v53  ;;  %v2940_v63 = vpack.c.bf16 %v2797_v42, %v2797_v42  ;;  %v16002_v13 = vld [vmem:[#allocation6_spill] sm:$0xff] }
 0x560   :  { %v6863_v27 = vsel %vm6860_vm0, %v6862_v21, %v6858_v52  ;;  %v4717_v24 = vsel %vm4368_vm13, %v4356_v17, 0.0  ;;  %vm6286_vm9 = vweird.f32 %v13489_v35  ;;  %v7661_v33 = vperm.slane %v6848_v0, %v16002_v13 }
 0x561   :  { %vm13616_vm4 = vcmp.eq.f32.partialorder %v15998_v6, 8.507059e+37  ;;  %v7662_v7 = vperm.slane %v6863_v27, %v16003_v11  ;;  %4718 = vadd.xlane.f32.xlu1 %v4717_v24  ;;  %v4097_v48 = vsel %vm3969_vm2, %v3329_v57, %v3841_v51  ;;  %v6311_v15 = vmul.f32 %v13584_v39, %v13537_v29 }
 0x562   :  { %v13631_v14 = vadd.f32 1.0, %v8342_v49  ;;  %v3073_v2 = vunpack.c.l.bf16 %v2940_v63  ;;  %v4226_v21 = vunpack.c.l.bf16 %v4097_v48  ;;  %v6284_v0 = vadd.f32 %v13489_v35, %v13567_v19  ;;  %v8346_v49 = vpop.eup %8345 }
 0x563   :  { %v6297_v57 = vsub.f32 1.0, %v13571_v18  ;;  %v7934_v17 = vmul.f32 -1.442695, %v4830_v1  ;;  %v13645_v41 = vsel %vm7448_vm1, %v7662_v7, %v7661_v33  ;;  %v6108_v52 = vsel %vm13637_vm15, %v13450_v38, %v13556_v5 }
 0x564   :  { %v7935_v20 = vmul.f32 -1.442695, %v4831_v4  ;;  %v3202_v51 = vadd.f32 %v8781_v16, %v3073_v2  ;;  %v4357_v42 = vmul.f32 %v13254_v26, %v4226_v21  ;;  %vm6285_vm5 = vweird.f32 %v13452_v50  ;;  %v2799_v24 = vpop.f32.mrf.mxu2  ;;  %v16010_v2 = vld [vmem:[#allocation26_spill] sm:$0xff] }
 0x565   :  { %v6289_v18 = vand.u32 2147483647, %v13452_v50  ;;  %v16006_v1 = vand.u32 2147483648, %v13452_v50  ;;  %vm13661_vm6 = vmor %vm6285_vm5, %vm6286_vm9  ;;  %v6312_v38 = vsub.f32 1.0, %v6311_v15  ;;  %8347 = vrcp.f32 %v13631_v14 }
 0x566   :  { %v3330_v5 = vpack.c.bf16 %v3202_v51, %v3202_v51  ;;  %v4720_v4 = vsel %vm4368_vm13, %v4357_v42, 0.0  ;;  %v6288_v27 = vsel %vm13661_vm6, %v13489_v35, %v6284_v0  ;;  %v6298_v63 = vmul.f32 %v13546_v45, %v6297_v57 }
 0x567   :  { %v6292_v6 = vor.u32 1.1754944e-38, %v16006_v1  ;;  %v13671_v50 = vadd.f32 1.0, %v8344_v60  ;;  %8349 = vpow2.f32 %v7934_v17  ;;  %4721 = vadd.xlane.f32.xlu0 %v4720_v4  ;;  %v13673_v33 = vadd.f32 1.0, %v8346_v49  ;;  %v16016_v4 = vld [vmem:[#allocation30_spill] sm:$0xff] }
 0x568   :  { %8351 = vpow2.f32 %v7935_v20  ;;  %v3458_v7 = vunpack.c.l.bf16 %v3330_v5  ;;  %v2941_v48 = vpack.c.bf16 %v2799_v24, %v2799_v24  ;;  %v13678_v15 = vsel %vm13616_vm4, %v13495_v28, %v6108_v52 }
 0x569   :  { %16009 = vst [vmem:[#allocation19_spill] sm:$0xff] %v13678_v15  ;;  %vm6290_vm3 = vcmp.eq.f32.partialorder %v6289_v18, 8.507059e+37  ;;  %v6304_v35 = vand.u32 2147483647, %v13491_v31  ;;  %v4832_v60 = vadd.f32 %v9036_v59, %v16010_v2  ;;  %vm6300_vm8 = vweird.f32 %v13491_v31 }
 0x56a   :  { %v13683_v21 = vsel %vm6290_vm3, %v6292_v6, %v6288_v27  ;;  %v6313_v44 = vmul.f32 %v13584_v39, %v6312_v38  ;;  %v3714_v0 = vmul.f32 0.010009766, %v3458_v7  ;;  %v6306_v57 = vand.u32 2147483648, %v13491_v31 }
 0x56b   :  { %16011 = vst [vmem:[#allocation20_spill] sm:$0xff] %v13683_v21  ;;  %8353 = vrcp.f32 %v13671_v50  ;;  %v3074_v25 = vunpack.c.l.bf16 %v2941_v48  ;;  %vm13689_vm11 = vcmp.ge.f32.partialorder %v3458_v7, 0.0  ;;  %v13693_v17 = vpop.eup %8347  ;;  %v6299_v49 = vadd.f32 %v13546_v45, %v6298_v63  ;;  %v4638_v21 = vpop.xlane.xlu2 %4637 }
 0x56c   :  { %vm6301_vm7 = vweird.f32 %v13546_v45  ;;  %8355 = vrcp.f32 %v13673_v33  ;;  %v3842_v52 = vpack.c.bf16 %v3714_v0, %v3714_v0  ;;  %vm13698_vm0 = vcmp.eq.f32.partialorder %v6304_v35, 8.507059e+37  ;;  %vm3970_vm2 = vmpackc.low %vm13689_vm11, %vm13689_vm11 }
 0x56d   :  { %v8350_v20 = vpop.eup %8349  ;;  %v6319_v42 = vand.u32 2147483647, %v13537_v29  ;;  %v7936_v18 = vmul.f32 -1.442695, %v4832_v60  ;;  %v3203_v1 = vadd.f32 %v8781_v16, %v3074_v25  ;;  %v6314_v53 = vadd.f32 %v13584_v39, %v6313_v44  ;;  %vm13714_vm9 = vmor %vm6300_vm8, %vm6301_vm7 }
 0x56e   :  { %v8352_v6 = vpop.eup %8351  ;;  %vm6316_vm4 = vweird.f32 %v13584_v39  ;;  %v6321_v38 = vand.u32 2147483648, %v13537_v29  ;;  %v4833_v27 = vadd.f32 %v9036_v59, %v16016_v4  ;;  %v6307_v24 = vor.u32 1.1754944e-38, %v6306_v57 }
 0x56f   :  { %v6326_v7 = vmul.f32 %v13693_v17, %v13631_v14  ;;  %v3331_v48 = vpack.c.bf16 %v3203_v1, %v3203_v1  ;;  %v4098_v35 = vsel %vm3970_vm2, %v3330_v5, %v3842_v52  ;;  %v6303_v2 = vsel %vm13714_vm9, %v13546_v45, %v6299_v49  ;;  %v16024_v1 = vld [vmem:[#allocation33_spill] sm:$0xff] }
 0x570   :  { %vm6315_vm15 = vweird.f32 %v13537_v29  ;;  %v13724_v60 = vadd.f32 1.0, %v8350_v20  ;;  %v4227_v44 = vunpack.c.l.bf16 %v4098_v35  ;;  %vm13732_vm6 = vcmp.eq.f32.partialorder %v6319_v42, 8.507059e+37  ;;  %v2802_v4 = vpop.f32.mrf.mxu2 }
 0x571   :  { %v13726_v31 = vpop.eup %8353  ;;  %vm13728_vm5 = vmor %vm6315_vm15, %vm6316_vm4  ;;  %v13736_v5 = vadd.f32 1.0, %v8352_v6  ;;  %8357 = vpow2.f32 %v7936_v18  ;;  %v3459_v25 = vunpack.c.l.bf16 %v3331_v48  ;;  %v6322_v28 = vor.u32 1.1754944e-38, %v6321_v38 }
 0x572   :  { %v13738_v45 = vpop.eup %8355  ;;  %v6318_v29 = vsel %vm13728_vm5, %v13584_v39, %v6314_v53  ;;  %v7937_v49 = vmul.f32 -1.442695, %v4833_v27  ;;  %v4358_v52 = vmul.f32 %v13254_v26, %v4227_v44  ;;  %v13746_v20 = vsel %vm13698_vm0, %v6307_v24, %v6303_v2 }
 0x573   :  { %16023 = vst [vmem:[#allocation18_spill] sm:$0xff] %v13746_v20  ;;  %v6327_v42 = vsub.f32 1.0, %v6326_v7  ;;  %v4834_v6 = vadd.f32 %v9036_v59, %v16024_v1  ;;  %v3715_v18 = vmul.f32 0.010009766, %v3459_v25  ;;  %8359 = vrcp.f32 %v13724_v60 }
 0x574   :  { %v2942_v63 = vpack.c.bf16 %v2802_v4, %v2802_v4  ;;  %v4723_v35 = vsel %vm4368_vm13, %v4358_v52, 0.0  ;;  %vm13752_vm3 = vcmp.ge.f32.partialorder %v3459_v25, 0.0  ;;  %v13758_v51 = vsel %vm13732_vm6, %v6322_v28, %v6318_v29 }
 0x575   :  { %16027 = vst [vmem:[#allocation12_spill] sm:$0xff] %v13758_v51  ;;  %v6341_v53 = vmul.f32 %v13726_v31, %v13671_v50  ;;  %v6506_v38 = vmul.f32 %v13738_v45, %v13673_v33  ;;  %8361 = vrcp.f32 %v13736_v5  ;;  %4724 = vadd.xlane.f32.xlu2 %v4723_v35  ;;  %v6334_v27 = vand.u32 2147483647, %v13631_v14  ;;  %vm3971_vm8 = vmpackc.low %vm13752_vm3, %vm13752_vm3 }
 0x576   :  { %8363 = vpow2.f32 %v7937_v49  ;;  %v3843_v24 = vpack.c.bf16 %v3715_v18, %v3715_v18  ;;  %v3075_v7 = vunpack.c.l.bf16 %v2942_v63  ;;  %v6336_v25 = vand.u32 2147483648, %v13631_v14 }
 0x577   :  { %v8358_v2 = vpop.eup %8357  ;;  %v7938_v29 = vmul.f32 -1.442695, %v4834_v6  ;;  %v6328_v49 = vmul.f32 %v13693_v17, %v6327_v42  ;;  %v6342_v4 = vsub.f32 1.0, %v6341_v53  ;;  %v6507_v63 = vsub.f32 1.0, %v6506_v38 }
 0x578   :  { %v3204_v52 = vadd.f32 %v8781_v16, %v3075_v7  ;;  %v4099_v1 = vsel %vm3971_vm8, %v3331_v48, %v3843_v24  ;;  %vm6330_vm11 = vweird.f32 %v13631_v14  ;;  %vm13783_vm7 = vcmp.eq.f32.partialorder %v6334_v27, 8.507059e+37  ;;  %v2804_v38 = vpop.f32.mrf.mxu2 }
 0x579   :  { %v4228_v35 = vunpack.c.l.bf16 %v4099_v1  ;;  %v13780_v57 = vpop.eup %8359  ;;  %v13787_v39 = vadd.f32 1.0, %v8358_v2  ;;  %v6337_v48 = vor.u32 1.1754944e-38, %v6336_v25  ;;  %vm6345_vm0 = vweird.f32 %v13671_v50 }
 0x57a   :  { %v3332_v42 = vpack.c.bf16 %v3204_v52, %v3204_v52  ;;  %v6351_v53 = vand.u32 2147483648, %v13671_v50  ;;  %8365 = vpow2.f32 %v7938_v29  ;;  %v6329_v7 = vadd.f32 %v13693_v17, %v6328_v49 }
 0x57b   :  { %v13789_v28 = vpop.eup %8361  ;;  %vm6331_vm4 = vweird.f32 %v13693_v17  ;;  %v2943_v1 = vpack.c.bf16 %v2804_v38, %v2804_v38  ;;  %v6343_v2 = vmul.f32 %v13726_v31, %v6342_v4  ;;  %v6508_v52 = vmul.f32 %v13738_v45, %v6507_v63  ;;  %v13874_v38 = vld [vmem:[%s15470_s5] ss:$0 sm:$0xff]  ;;  %s8557_s5 = smov [#allocation3]  }
 0x57c   :  { %v8364_v24 = vpop.eup %8363  ;;  %v3460_v27 = vunpack.c.l.bf16 %v3332_v42  ;;  %v6521_v25 = vmul.f32 %v13780_v57, %v13724_v60  ;;  %v4359_v18 = vmul.f32 %v13254_v26, %v4228_v35  ;;  %v6536_v29 = vmul.f32 %v13789_v28, %v13736_v5  ;;  %vm13805_vm2 = vmor %vm6330_vm11, %vm6331_vm4  ;;  %s7744_s8 = sshll.u32 %s8557_s5, 4  ;;  %s7745_s8 = int_to_ptr.vmem [resolvable:$true] %s7744_s8 }
 0x57d   :  { %8367 = vrcp.f32 %v13787_v39  ;;  %v3076_v49 = vunpack.c.l.bf16 %v2943_v1  ;;  %v6349_v4 = vand.u32 2147483647, %v13671_v50  ;;  %v13810_v63 = vadd.f32 1.0, %v8364_v24 }
 0x57e   :  { %v3716_v44 = vmul.f32 0.010009766, %v3460_v27  ;;  %v4726_v19 = vsel %vm4368_vm13, %v4359_v18, 0.0  ;;  %vm13813_vm9 = vcmp.ge.f32.partialorder %v3460_v27, 0.0  ;;  %v6333_v35 = vsel %vm13805_vm2, %v13693_v17, %v6329_v7 }
 0x57f   :  { %v13820_v1 = vor.u32 1.1754944e-38, %v6351_v53  ;;  %v3205_v51 = vadd.f32 %v8781_v16, %v3076_v49  ;;  %4727 = vadd.xlane.f32.xlu1 %v4726_v19  ;;  %v6344_v24 = vadd.f32 %v13726_v31, %v6343_v2  ;;  %vm6346_vm15 = vweird.f32 %v13726_v31  ;;  %vm3972_vm6 = vmpackc.low %vm13813_vm9, %vm13813_vm9 }
 0x580   :  { %v3844_v14 = vpack.c.bf16 %v3716_v44, %v3716_v44  ;;  %v8366_v20 = vpop.eup %8365  ;;  %v6514_v18 = vand.u32 2147483647, %v13673_v33  ;;  %v6516_v27 = vand.u32 2147483648, %v13673_v33  ;;  %v6509_v15 = vadd.f32 %v13738_v45, %v6508_v52  ;;  %vm13841_vm3 = vmor %vm6345_vm0, %vm6346_vm15 }
 0x581   :  { %vm6511_vm5 = vweird.f32 %v13738_v45  ;;  %v6522_v17 = vsub.f32 1.0, %v6521_v25  ;;  %v6537_v53 = vsub.f32 1.0, %v6536_v29  ;;  %v13834_v19 = vsel %vm13783_vm7, %v6337_v48, %v6333_v35 }
 0x582   :  { %16035 = vst [vmem:[#allocation21_spill] sm:$0xff] %v13834_v19  ;;  %8369 = vrcp.f32 %v13810_v63  ;;  %v3333_v44 = vpack.c.bf16 %v3205_v51, %v3205_v51  ;;  %v4100_v7 = vsel %vm3972_vm6, %v3332_v42, %v3844_v14  ;;  %vm13845_vm8 = vcmp.eq.f32.partialorder %v6349_v4, 8.507059e+37 }
 0x583   :  { %v13837_v2 = vpop.eup %8367  ;;  %vm6510_vm11 = vweird.f32 %v13673_v33  ;;  %v13850_v6 = vadd.f32 1.0, %v8366_v20  ;;  %v4844_v48 = vadd.f32 %v9036_v59, %v4638_v21  ;;  %v4229_v51 = vunpack.c.l.bf16 %v4100_v7 }
 0x584   :  { %v6348_v42 = vsel %vm13841_vm3, %v13726_v31, %v6344_v24  ;;  %vm13858_vm7 = vmor %vm6510_vm11, %vm6511_vm5  ;;  %vm13862_vm0 = vcmp.eq.f32.partialorder %v6514_v18, 8.507059e+37  ;;  %v6517_v33 = vor.u32 1.1754944e-38, %v6516_v27  ;;  %v3461_v20 = vunpack.c.l.bf16 %v3333_v44 }
 0x585   :  { %v6513_v21 = vsel %vm13858_vm7, %v13738_v45, %v6509_v15  ;;  %v6523_v49 = vmul.f32 %v13780_v57, %v6522_v17  ;;  %v6538_v31 = vmul.f32 %v13789_v28, %v6537_v53  ;;  %v4360_v4 = vmul.f32 %v13874_v38, %v4229_v51 }
 0x586   :  { %v6551_v26 = vmul.f32 %v13837_v2, %v13787_v39  ;;  %v4845_v35 = vadd.f32 %v9036_v59, %v13301_v22  ;;  %v3717_v14 = vmul.f32 0.010009766, %v3461_v20  ;;  %vm13881_vm4 = vcmp.ge.f32.partialorder %v3461_v20, 0.0 }
 0x587   :  { %v6529_v45 = vand.u32 2147483647, %v13724_v60  ;;  %8371 = vrcp.f32 %v13850_v6  ;;  %v7948_v24 = vmul.f32 -1.442695, %v4844_v48  ;;  %v4729_v18 = vsel %vm4368_vm13, %v4360_v4, 0.0  ;;  %v2807_v52 = vpop.f32.mrf.mxu2  ;;  %vm3973_vm15 = vmpackc.low %vm13881_vm4, %vm13881_vm4 }
 0x588   :  { %v13888_v27 = vpop.eup %8369  ;;  %v13892_v17 = vsel %vm13862_vm0, %v6517_v33, %v6513_v21  ;;  %v6531_v22 = vand.u32 2147483648, %v13724_v60  ;;  %v6544_v53 = vand.u32 2147483647, %v13736_v5  ;;  %v3845_v7 = vpack.c.bf16 %v3717_v14, %v3717_v14  ;;  %4730 = vadd.xlane.f32.xlu0 %v4729_v18 }
 0x589   :  { %16046 = vst [vmem:[#allocation22_spill] sm:$0xff] %v13892_v17  ;;  %v6524_v51 = vadd.f32 %v13780_v57, %v6523_v49  ;;  %vm6526_vm2 = vweird.f32 %v13780_v57  ;;  %vm6541_vm9 = vweird.f32 %v13789_v28  ;;  %v2944_v48 = vpack.c.bf16 %v2807_v52, %v2807_v52 }
 0x58a   :  { %v6539_v50 = vadd.f32 %v13789_v28, %v6538_v31  ;;  %v6552_v29 = vsub.f32 1.0, %v6551_v26  ;;  %v7949_v33 = vmul.f32 -1.442695, %v4845_v35  ;;  %v4101_v20 = vsel %vm3973_vm15, %v3333_v44, %v3845_v7  ;;  %v4647_v26 = vpop.xlane.xlu2 %4646 }
 0x58b   :  { %v6566_v21 = vmul.f32 %v13888_v27, %v13810_v63  ;;  %8373 = vpow2.f32 %v7948_v24  ;;  %v3077_v4 = vunpack.c.l.bf16 %v2944_v48  ;;  %v4230_v49 = vunpack.c.l.bf16 %v4101_v20 }
 0x58c   :  { %v13910_v15 = vsel %vm13845_vm8, %v13820_v1, %v6348_v42  ;;  %vm6525_vm5 = vweird.f32 %v13724_v60  ;;  %v6546_v31 = vand.u32 2147483648, %v13736_v5  ;;  %vm13924_vm3 = vcmp.eq.f32.partialorder %v6529_v45, 8.507059e+37 }
 0x58d   :  { %16047 = vst [vmem:[#allocation13_spill] sm:$0xff] %v13910_v15  ;;  %v13914_v44 = vpop.eup %8371  ;;  %vm13920_vm6 = vmor %vm6525_vm5, %vm6526_vm2  ;;  %vm6540_vm8 = vweird.f32 %v13736_v5  ;;  %v3206_v60 = vadd.f32 %v8781_v16, %v3077_v4  ;;  %v6532_v42 = vor.u32 1.1754944e-38, %v6531_v22  ;;  %8375 = vpow2.f32 %v7949_v33 }
 0x58e   :  { %v6528_v1 = vsel %vm13920_vm6, %v13780_v57, %v6524_v51  ;;  %vm13935_vm11 = vmor %vm6540_vm8, %vm6541_vm9  ;;  %v4361_v45 = vmul.f32 %v13874_v38, %v4230_v49  ;;  %vm6545_vm7 = vcmp.eq.f32.partialorder %v6544_v53, 8.507059e+37  ;;  %v6553_v52 = vmul.f32 %v13837_v2, %v6552_v29 }
 0x58f   :  { %v6543_v5 = vsel %vm13935_vm11, %v13789_v28, %v6539_v50  ;;  %v6567_v48 = vsub.f32 1.0, %v6566_v21  ;;  %v6547_v20 = vor.u32 1.1754944e-38, %v6546_v31  ;;  %v6581_v57 = vmul.f32 %v13914_v44, %v13850_v6  ;;  %v2809_v51 = vpop.f32.mrf.mxu2 }
 0x590   :  { %v3334_v22 = vpack.c.bf16 %v3206_v60, %v3206_v60  ;;  %v4732_v4 = vsel %vm4368_vm13, %v4361_v45, 0.0  ;;  %v13949_v33 = vsel %vm13924_vm3, %v6532_v42, %v6528_v1  ;;  %v6559_v49 = vand.u32 2147483647, %v13787_v39 }
 0x591   :  { %v8374_v18 = vpop.eup %8373  ;;  %16055 = vst [vmem:[#allocation31_spill] sm:$0xff] %v13949_v33  ;;  %v4846_v28 = vadd.f32 %v9036_v59, %v13379_v62  ;;  %v2945_v53 = vpack.c.bf16 %v2809_v51, %v2809_v51  ;;  %4733 = vadd.xlane.f32.xlu2 %v4732_v4  ;;  %v13954_v50 = vsel %vm6545_vm7, %v6547_v20, %v6543_v5  ;;  %vm6555_vm0 = vweird.f32 %v13787_v39 }
 0x592   :  { %16056 = vst [vmem:[#allocation24_spill] sm:$0xff] %v13954_v50  ;;  %v2933_v29 = vpack.c.bf16 %v13282_v3, %v13282_v3  ;;  %v3462_v21 = vunpack.c.l.bf16 %v3334_v22  ;;  %v6554_v31 = vadd.f32 %v13837_v2, %v6553_v52  ;;  %vm6556_vm4 = vweird.f32 %v13837_v2  ;;  %v13965_v45 = vpop.xlane.xlu2 %4655 }
 0x593   :  { %v6568_v25 = vmul.f32 %v13888_v27, %v6567_v48  ;;  %v3078_v60 = vunpack.c.l.bf16 %v2945_v53  ;;  %v8376_v1 = vpop.eup %8375  ;;  %v6582_v42 = vsub.f32 1.0, %v6581_v57  ;;  %v13962_v62 = vadd.f32 1.0, %v8374_v18  ;;  %vm13975_vm9 = vmor %vm6555_vm0, %vm6556_vm4 }
 0x594   :  { %v4847_v7 = vadd.f32 %v9036_v59, %v4647_v26  ;;  %v3718_v5 = vmul.f32 0.010009766, %v3462_v21  ;;  %vm13967_vm2 = vcmp.eq.f32.partialorder %v6559_v49, 8.507059e+37  ;;  %v6561_v3 = vand.u32 2147483648, %v13787_v39 }
 0x595   :  { %v7950_v52 = vmul.f32 -1.442695, %v4846_v28  ;;  %v3207_v51 = vadd.f32 %v8781_v16, %v3078_v60  ;;  %v6576_v26 = vand.u32 2147483648, %v13810_v63  ;;  %v3066_v57 = vunpack.c.l.bf16 %v2933_v29 }
 0x596   :  { %v3846_v4 = vpack.c.bf16 %v3718_v5, %v3718_v5  ;;  %vm13980_vm15 = vcmp.ge.f32.partialorder %v3462_v21, 0.0  ;;  %v6558_v49 = vsel %vm13975_vm9, %v13837_v2, %v6554_v31  ;;  %vm6571_vm5 = vweird.f32 %v13888_v27 }
 0x597   :  { %v13988_v28 = vadd.f32 1.0, %v8376_v1  ;;  %v13990_v39 = vpack.c.bf16 %v3207_v51, %v3207_v51  ;;  %v6569_v53 = vadd.f32 %v13888_v27, %v6568_v25  ;;  %v6583_v60 = vmul.f32 %v13914_v44, %v6582_v42  ;;  %vm3974_vm3 = vmpackc.low %vm13980_vm15, %vm13980_vm15 }
 0x598   :  { %8377 = vrcp.f32 %v13962_v62  ;;  %v7951_v29 = vmul.f32 -1.442695, %v4847_v7  ;;  %v2812_v21 = vpop.f32.mrf.mxu2  ;;  %v6562_v5 = vor.u32 1.1754944e-38, %v6561_v3  ;;  %vm6570_vm6 = vweird.f32 %v13810_v63 }
 0x599   :  { %v6574_v48 = vand.u32 2147483647, %v13810_v63  ;;  %8379 = vpow2.f32 %v7950_v52  ;;  %v3195_v2 = vadd.f32 %v8781_v16, %v3066_v57  ;;  %v3463_v31 = vunpack.c.l.bf16 %v13990_v39  ;;  %vm14008_vm8 = vmor %vm6570_vm6, %vm6571_vm5 }
 0x59a   :  { %v2946_v25 = vpack.c.bf16 %v2812_v21, %v2812_v21  ;;  %v4102_v1 = vsel %vm3974_vm3, %v3334_v22, %v3846_v4  ;;  %v14004_v42 = vsel %vm13967_vm2, %v6562_v5, %v6558_v49  ;;  %v6577_v63 = vor.u32 1.1754944e-38, %v6576_v26  ;;  %v4665_v20 = vpop.xlane.xlu2 %4664 }
 0x59b   :  { %16063 = vst [vmem:[#allocation28_spill] sm:$0xff] %v14004_v42  ;;  %v6591_v3 = vand.u32 2147483648, %v13850_v6  ;;  %8381 = vrcp.f32 %v13988_v28  ;;  %v6573_v52 = vsel %vm14008_vm8, %v13888_v27, %v6569_v53  ;;  %v14018_v22 = vadd.f32 %v13914_v44, %v6583_v60 }
 0x59c   :  { %vm6586_vm11 = vweird.f32 %v13914_v44  ;;  %8383 = vpow2.f32 %v7951_v29  ;;  %v6741_v51 = vand.u32 2147483648, %v13962_v62  ;;  %v3719_v57 = vmul.f32 0.010009766, %v3463_v31 }
 0x59d   :  { %v3079_v4 = vunpack.c.l.bf16 %v2946_v25  ;;  %v4231_v26 = vunpack.c.l.bf16 %v4102_v1  ;;  %vm6575_vm7 = vcmp.eq.f32.partialorder %v6574_v48, 8.507059e+37  ;;  %vm6585_vm0 = vweird.f32 %v13850_v6 }
 0x59e   :  { %v14022_v18 = vpop.eup %8377  ;;  %v14027_v27 = vpack.c.bf16 %v3195_v2, %v3195_v2  ;;  %v14033_v21 = vsel %vm6575_vm7, %v6577_v63, %v6573_v52  ;;  %vm14037_vm4 = vmor %vm6585_vm0, %vm6586_vm11  ;;  %v14046_v25 = vor.u32 1.1754944e-38, %v6591_v3  ;;  %v3847_v7 = vpack.c.bf16 %v3719_v57, %v3719_v57 }
 0x59f   :  { %v8380_v53 = vpop.eup %8379  ;;  %16066 = vst [vmem:[#allocation29_spill] sm:$0xff] %v14033_v21  ;;  %v6731_v29 = vmul.f32 %v14022_v18, %v13962_v62  ;;  %v14053_v60 = vor.u32 1.1754944e-38, %v6741_v51  ;;  %v3208_v14 = vadd.f32 %v8781_v16, %v3079_v4  ;;  %v4362_v49 = vmul.f32 %v13874_v38, %v4231_v26 }
 0x5a0   :  { %v2814_v63 = vpop.f32.mrf.mxu2  ;;  %v4848_v3 = vadd.f32 %v9036_v59, %v13365_v43  ;;  %v3451_v2 = vunpack.c.l.bf16 %v14027_v27  ;;  %vm3591_vm2 = vcmp.ge.f32.partialorder %v3463_v31, 0.0  ;;  %v14061_v1 = vadd.f32 1.0, %v8380_v53 }
 0x5a1   :  { %v14049_v52 = vpop.eup %8381  ;;  %v2947_v48 = vpack.c.bf16 %v2814_v63, %v2814_v63  ;;  %v3336_v42 = vpack.c.bf16 %v3208_v14, %v3208_v14  ;;  %v4735_v51 = vsel %vm4368_vm13, %v4362_v49, 0.0  ;;  %vm3975_vm9 = vmpackc.low %vm3591_vm2, %vm3591_vm2  ;;  %v4853_v26 = vadd.f32 %v9036_v59, %v4665_v20 }
 0x5a2   :  { %v8384_v24 = vpop.eup %8383  ;;  %v6746_v4 = vmul.f32 %v14049_v52, %v13988_v28  ;;  %4736 = vadd.xlane.f32.xlu1 %v4735_v51  ;;  %v4103_v43 = vsel %vm3975_vm9, %v13990_v39, %v3847_v7  ;;  %v6756_v63 = vand.u32 2147483648, %v13988_v28  ;;  %v6732_v21 = vsub.f32 1.0, %v6731_v29  ;;  %v4668_v49 = vpop.xlane.xlu2 %4667 }
 0x5a3   :  { %v3080_v50 = vunpack.c.l.bf16 %v2947_v48  ;;  %v14069_v31 = vadd.f32 1.0, %v8384_v24  ;;  %v3464_v57 = vunpack.c.l.bf16 %v3336_v42  ;;  %v4232_v53 = vunpack.c.l.bf16 %v4103_v43  ;;  %v4671_v51 = vpop.xlane.xlu1 %4670 }
 0x5a4   :  { %v7952_v14 = vmul.f32 -1.442695, %v4848_v3  ;;  %v3707_v19 = vmul.f32 0.010009766, %v3451_v2  ;;  %v4849_v17 = vadd.f32 %v9036_v59, %v13425_v47  ;;  %v6747_v24 = vsub.f32 1.0, %v6746_v4 }
 0x5a5   :  { %v3209_v33 = vadd.f32 %v8781_v16, %v3080_v50  ;;  %v3720_v20 = vmul.f32 0.010009766, %v3464_v57  ;;  %v4363_v48 = vmul.f32 %v13874_v38, %v4232_v53  ;;  %vm14075_vm15 = vcmp.ge.f32.partialorder %v3464_v57, 0.0 }
 0x5a6   :  { %8385 = vrcp.f32 %v14061_v1  ;;  %v7957_v7 = vmul.f32 -1.442695, %v4853_v26  ;;  %v4854_v50 = vadd.f32 %v9036_v59, %v4668_v49  ;;  %vm6735_vm5 = vweird.f32 %v13962_v62  ;;  %vm3976_vm6 = vmpackc.low %vm14075_vm15, %vm14075_vm15 }
 0x5a7   :  { %v14080_v29 = vpack.c.bf16 %v3209_v33, %v3209_v33  ;;  %8387 = vrcp.f32 %v14069_v31  ;;  %v3848_v47 = vpack.c.bf16 %v3720_v20, %v3720_v20  ;;  %v4738_v43 = vsel %vm4368_vm13, %v4363_v48, 0.0 }
 0x5a8   :  { %v2817_v3 = vpop.f32.mrf.mxu2  ;;  %8389 = vpow2.f32 %v7952_v14  ;;  %v3835_v57 = vpack.c.bf16 %v3707_v19, %v3707_v19  ;;  %4739 = vadd.xlane.f32.xlu0 %v4738_v43  ;;  %vm14090_vm3 = vcmp.ge.f32.partialorder %v3451_v2, 0.0  ;;  %v6733_v26 = vmul.f32 %v14022_v18, %v6732_v21 }
 0x5a9   :  { %v3465_v4 = vunpack.c.l.bf16 %v14080_v29  ;;  %v7953_v53 = vmul.f32 -1.442695, %v4849_v17  ;;  %v2948_v49 = vpack.c.bf16 %v2817_v3, %v2817_v3  ;;  %v4104_v20 = vsel %vm3976_vm6, %v3336_v42, %v3848_v47  ;;  %vm3963_vm11 = vmpackc.low %vm14090_vm3, %vm14090_vm3 }
 0x5aa   :  { %v6748_v48 = vmul.f32 %v14049_v52, %v6747_v24  ;;  %vm6750_vm8 = vweird.f32 %v13988_v28  ;;  %v4850_v19 = vadd.f32 %v9036_v59, %v13965_v45  ;;  %8391 = vpow2.f32 %v7957_v7  ;;  %v4674_v7 = vpop.xlane.xlu0 %4673 }
 0x5ab   :  { %v4855_v14 = vadd.f32 %v9036_v59, %v4671_v51  ;;  %v14100_v39 = vor.u32 1.1754944e-38, %v6756_v63  ;;  %v7958_v2 = vmul.f32 -1.442695, %v4854_v50  ;;  %v3721_v43 = vmul.f32 0.010009766, %v3465_v4 }
 0x5ac   :  { %v3081_v15 = vunpack.c.l.bf16 %v2948_v49  ;;  %v14105_v17 = vpop.eup %8385  ;;  %vm6736_vm7 = vweird.f32 %v14022_v18  ;;  %vm6751_vm0 = vweird.f32 %v14049_v52  ;;  %v4233_v42 = vunpack.c.l.bf16 %v4104_v20 }
 0x5ad   :  { %v4091_v45 = vsel %vm3963_vm11, %v14027_v27, %v3835_v57  ;;  %v14110_v21 = vpop.eup %8387  ;;  %v14113_v63 = vadd.f32 %v14022_v18, %v6733_v26  ;;  %8393 = vpow2.f32 %v7953_v53  ;;  %v14118_v51 = vadd.f32 %v14049_v52, %v6748_v48  ;;  %v4677_v57 = vpop.xlane.xlu2 %4676  ;;  %vm14131_vm9 = vmor %vm6735_vm5, %vm6736_vm7 }
 0x5ae   :  { %v3210_v3 = vadd.f32 %v8781_v16, %v3081_v15  ;;  %v8390_v50 = vpop.eup %8389  ;;  %v7954_v47 = vmul.f32 -1.442695, %v4850_v19  ;;  %v7959_v33 = vmul.f32 -1.442695, %v4855_v14  ;;  %v4364_v49 = vmul.f32 %v13874_v38, %v4233_v42  ;;  %vm14162_vm3 = vmor %vm6750_vm8, %vm6751_vm0 }
 0x5af   :  { %8395 = vpow2.f32 %v7958_v2  ;;  %v3849_v20 = vpack.c.bf16 %v3721_v43, %v3721_v43  ;;  %v4220_v26 = vunpack.c.l.bf16 %v4091_v45  ;;  %vm14121_vm2 = vcmp.ge.f32.partialorder %v3465_v4, 0.0 }
 0x5b0   :  { %v2819_v27 = vpop.f32.mrf.mxu2  ;;  %v8392_v53 = vpop.eup %8391  ;;  %v4856_v15 = vadd.f32 %v9036_v59, %v4674_v7  ;;  %v3338_v24 = vpack.c.bf16 %v3210_v3, %v3210_v3  ;;  %v4741_v48 = vsel %vm4368_vm13, %v4364_v49, 0.0  ;;  %v6761_v4 = vmul.f32 %v14105_v17, %v14061_v1  ;;  %vm3977_vm6 = vmpackc.low %vm14121_vm2, %vm14121_vm2 }
 0x5b1   :  { %v2949_v54 = vpack.c.bf16 %v2819_v27, %v2819_v27  ;;  %v6771_v14 = vand.u32 2147483648, %v14061_v1  ;;  %v6776_v2 = vmul.f32 %v14110_v21, %v14069_v31  ;;  %v14140_v43 = vadd.f32 1.0, %v8390_v50  ;;  %4742 = vadd.xlane.f32.xlu2 %v4741_v48 }
 0x5b2   :  { %v16077_v42 = vand.u32 2147483647, %v13962_v62  ;;  %v16080_v7 = vand.u32 2147483647, %v13988_v28  ;;  %8397 = vpow2.f32 %v7959_v33  ;;  %v4857_v49 = vadd.f32 %v9036_v59, %v4677_v57  ;;  %v16085_v57 = vld [vmem:[#allocation14_spill] sm:$0xff] }
 0x5b3   :  { %v3466_v27 = vunpack.c.l.bf16 %v3338_v24  ;;  %v3082_v56 = vunpack.c.l.bf16 %v2949_v54  ;;  %v8394_v62 = vpop.eup %8393  ;;  %8399 = vpow2.f32 %v7954_v47  ;;  %v14166_v48 = vadd.f32 1.0, %v8392_v53 }
 0x5b4   :  { %vm14144_vm15 = vcmp.eq.f32.partialorder %v16077_v42, 8.507059e+37  ;;  %vm14150_vm5 = vcmp.eq.f32.partialorder %v16080_v7, 8.507059e+37  ;;  %v4105_v33 = vsel %vm3977_vm6, %v14080_v29, %v3849_v20  ;;  %v16086_v54 = vperm.slane %v13354_v23, %v15962_v58 }
 0x5b5   :  { %v6738_v28 = vsel %vm14131_vm9, %v14022_v18, %v14113_v63  ;;  %v6753_v47 = vsel %vm14162_vm3, %v14049_v52, %v14118_v51  ;;  %v7960_v53 = vmul.f32 -1.442695, %v4856_v15  ;;  %v4351_v42 = vmul.f32 %v13874_v38, %v4220_v26  ;;  %v8396_v29 = vpop.eup %8395 }
 0x5b6   :  { %v7532_v40 = vsel %vm7496_vm12, %v16086_v54, %v16085_v57  ;;  %v6762_v20 = vsub.f32 1.0, %v6761_v4  ;;  %v3722_v7 = vmul.f32 0.010009766, %v3466_v27  ;;  %v3211_v23 = vadd.f32 %v8781_v16, %v3082_v56 }
 0x5b7   :  { %v4234_v58 = vunpack.c.l.bf16 %v4105_v33  ;;  %v6777_v57 = vsub.f32 1.0, %v6776_v2  ;;  %8401 = vrcp.f32 %v14140_v43  ;;  %v14185_v54 = vadd.f32 1.0, %v8394_v62 }
 0x5b8   :  { %v7961_v18 = vmul.f32 -1.442695, %v4857_v49  ;;  %8403 = vrcp.f32 %v14166_v48  ;;  %v3850_v63 = vpack.c.bf16 %v3722_v7, %v3722_v7  ;;  %v3339_v19 = vpack.c.bf16 %v3211_v23, %v3211_v23  ;;  %v8398_v51 = vpop.eup %8397 }
 0x5b9   :  { %v4365_v52 = vmul.f32 %v13874_v38, %v4234_v58  ;;  %vm6765_vm8 = vweird.f32 %v14061_v1  ;;  %8405 = vpow2.f32 %v7960_v53  ;;  %v4702_v26 = vsel %vm4368_vm13, %v4351_v42, 0.0  ;;  %v8400_v15 = vpop.eup %8399 }
 0x5ba   :  { %vm3594_vm11 = vcmp.ge.f32.partialorder %v3466_v27, 0.0  ;;  %v16087_v16 = vperm.slane %v13386_v9, %v12397_v8  ;;  %v14195_v4 = vor.u32 1.1754944e-38, %v6771_v14  ;;  %v14197_v2 = vadd.f32 1.0, %v8396_v29  ;;  %4703 = vadd.xlane.f32.xlu2 %v4702_v26 }
 0x5bb   :  { %v3467_v49 = vunpack.c.l.bf16 %v3339_v19  ;;  %v4744_v58 = vsel %vm4368_vm13, %v4365_v52, 0.0  ;;  %vm3978_vm7 = vmpackc.low %vm3594_vm11, %vm3594_vm11  ;;  %v6763_v62 = vmul.f32 %v14105_v17, %v6762_v20  ;;  %v6778_v50 = vmul.f32 %v14110_v21, %v6777_v57 }
 0x5bc   :  { %v7534_v56 = vsel %vm7500_vm14, %v16087_v16, %v7532_v40  ;;  %8407 = vpow2.f32 %v7961_v18  ;;  %4745 = vadd.xlane.f32.xlu1 %v4744_v58  ;;  %v4106_v27 = vsel %vm3978_vm7, %v3338_v24, %v3850_v63  ;;  %v14205_v9 = vsel %vm14144_vm15, %v14053_v60, %v6738_v28  ;;  %v4680_v40 = vpop.xlane.xlu1 %4679 }
 0x5bd   :  { %16088 = vst [vmem:[#allocation6_spill] sm:$0xff] %v14205_v9  ;;  %v14210_v14 = vsel %vm14150_vm5, %v14100_v39, %v6753_v47  ;;  %vm6766_vm0 = vweird.f32 %v14105_v17  ;;  %v14213_v33 = vadd.f32 1.0, %v8398_v51  ;;  %v14215_v53 = vpop.eup %8401  ;;  %v16090_v42 = vand.u32 2147483647, %v14061_v1 }
 0x5be   :  { %16089 = vst [vmem:[#allocation7_spill] sm:$0xff] %v14210_v14  ;;  %v6784_v60 = vand.u32 2147483647, %v14069_v31  ;;  %v6786_v45 = vand.u32 2147483648, %v14069_v31  ;;  %8409 = vrcp.f32 %v14185_v54  ;;  %v14226_v39 = vadd.f32 1.0, %v8400_v15  ;;  %v14228_v3 = vpop.eup %8403  ;;  %vm14263_vm11 = vmor %vm6765_vm8, %vm6766_vm0 }
 0x5bf   :  { %vm14219_vm2 = vcmp.eq.f32.partialorder %v16090_v42, 8.507059e+37  ;;  %8411 = vrcp.f32 %v14197_v2  ;;  %vm14231_vm9 = vcmp.ge.f32.partialorder %v3467_v49, 0.0  ;;  %v3723_v47 = vmul.f32 0.010009766, %v3467_v49  ;;  %v8406_v20 = vpop.eup %8405  ;;  %v4683_v42 = vpop.xlane.xlu0 %4682 }
 0x5c0   :  { %v4235_v29 = vunpack.c.l.bf16 %v4106_v27  ;;  %v6764_v7 = vadd.f32 %v14105_v17, %v6763_v62  ;;  %v6779_v23 = vadd.f32 %v14110_v21, %v6778_v50  ;;  %vm6781_vm15 = vweird.f32 %v14110_v21  ;;  %vm3979_vm6 = vmpackc.low %vm14231_vm9, %vm14231_vm9 }
 0x5c1   :  { %v4858_v57 = vadd.f32 %v9036_v59, %v4680_v40  ;;  %v16095_v18 = vand.u32 2147483647, %v13850_v6  ;;  %v6791_v52 = vmul.f32 %v14215_v53, %v14140_v43  ;;  %8413 = vrcp.f32 %v14213_v33 }
 0x5c2   :  { %v3851_v51 = vpack.c.bf16 %v3723_v47, %v3723_v47  ;;  %v4366_v26 = vmul.f32 %v13874_v38, %v4235_v29  ;;  %v8408_v16 = vpop.eup %8407  ;;  %8415 = vrcp.f32 %v14226_v39  ;;  %v6866_v15 = vmul.f32 %v14228_v3, %v14166_v48  ;;  %v16102_v29 = vld [vmem:[#allocation9_spill] sm:$0xff] }
 0x5c3   :  { %vm14241_vm5 = vcmp.eq.f32.partialorder %v16095_v18, 8.507059e+37  ;;  %v16098_v6 = vperm.slane %v13388_v32, %v15947_v55  ;;  %vm7723_vm3 = vcmask 1041409   ;;  %v14267_v62 = vadd.f32 1.0, %v8406_v20 }
 0x5c4   :  { %v4747_v50 = vsel %vm4368_vm13, %v4366_v26, 0.0  ;;  %v4107_v27 = vsel %vm3979_vm6, %v3339_v19, %v3851_v51  ;;  %v14273_v32 = vpop.eup %8409  ;;  %vm6780_vm7 = vweird.f32 %v14069_v31  ;;  %v7962_v1 = vmul.f32 -1.442695, %v4858_v57 }
 0x5c5   :  { %v7536_v49 = vsel %vm7504_vm10, %v16098_v6, %v7534_v56  ;;  %v6768_v56 = vsel %vm14263_vm11, %v14105_v17, %v6764_v7  ;;  %4748 = vadd.xlane.f32.xlu0 %v4747_v50  ;;  %v4236_v28 = vunpack.c.l.bf16 %v4107_v27  ;;  %v14279_v47 = vpop.eup %8411  ;;  %vm14287_vm8 = vmor %vm6780_vm7, %vm6781_vm15  ;;  %v6792_v17 = vsub.f32 1.0, %v6791_v52 }
 0x5c6   :  { %v14271_v40 = vsel %vm7723_vm3, %v7536_v49, %v13608_v30  ;;  %v14291_v31 = vadd.f32 1.0, %v8408_v16  ;;  %v6783_v7 = vsel %vm14287_vm8, %v14110_v21, %v6779_v23  ;;  %vm6785_vm0 = vcmp.eq.f32.partialorder %v6784_v60, 8.507059e+37  ;;  %v4686_v60 = vpop.xlane.xlu2 %4685 }
 0x5c7   :  { %16101 = vst [vmem:[#allocation26_spill] sm:$0xff] %v14271_v40  ;;  %v6787_v57 = vor.u32 1.1754944e-38, %v6786_v45  ;;  %v4367_v18 = vmul.f32 %v13874_v38, %v4236_v28  ;;  %v14297_v51 = vpop.eup %8413  ;;  %v14302_v26 = vsel %vm14219_vm2, %v14195_v4, %v6768_v56  ;;  %v6801_v6 = vand.u32 2147483648, %v14140_v43 }
 0x5c8   :  { %16105 = vst [vmem:[#allocation30_spill] sm:$0xff] %v14302_v26  ;;  %v6867_v52 = vsub.f32 1.0, %v6866_v15  ;;  %8417 = vrcp.f32 %v14267_v62  ;;  %v14306_v16 = vpop.eup %8415  ;;  %v6806_v21 = vmul.f32 %v14273_v32, %v14185_v54  ;;  %v6881_v38 = vmul.f32 %v14279_v47, %v14197_v2 }
 0x5c9   :  { %8419 = vpow2.f32 %v7962_v1  ;;  %v4750_v45 = vsel %vm4368_vm13, %v4367_v18, 0.0  ;;  %v14313_v24 = vsel %vm6785_vm0, %v6787_v57, %v6783_v7  ;;  %v6793_v4 = vmul.f32 %v14215_v53, %v6792_v17  ;;  %v4689_v17 = vpop.xlane.xlu1 %4688 }
 0x5ca   :  { %16106 = vst [vmem:[#allocation33_spill] sm:$0xff] %v14313_v24  ;;  %v6816_v23 = vand.u32 2147483648, %v14185_v54  ;;  %8421 = vrcp.f32 %v14291_v31  ;;  %4751 = vadd.xlane.f32.xlu1 %v4750_v45  ;;  %v6896_v49 = vmul.f32 %v14297_v51, %v14213_v33  ;;  %v4859_v58 = vadd.f32 %v9036_v59, %v4683_v42 }
 0x5cb   :  { %v16107_v50 = vsel %vm14037_vm4, %v13914_v44, %v14018_v22  ;;  %v14334_v1 = vor.u32 1.1754944e-38, %v6801_v6  ;;  %v6868_v28 = vmul.f32 %v14228_v3, %v6867_v52  ;;  %v4860_v20 = vadd.f32 %v9036_v59, %v4686_v60 }
 0x5cc   :  { %v14331_v27 = vsel %vm14241_vm5, %v14046_v25, %v16107_v50  ;;  %v6807_v42 = vsub.f32 1.0, %v6806_v21  ;;  %v14342_v44 = vmul.f32 %v14306_v16, %v14226_v39  ;;  %v6882_v22 = vsub.f32 1.0, %v6881_v38  ;;  %v4692_v25 = vpop.xlane.xlu0 %4691 }
 0x5cd   :  { %16108 = vst [vmem:[#allocation14_spill] sm:$0xff] %v14331_v27  ;;  %v14347_v7 = vadd.f32 %v14215_v53, %v6793_v4  ;;  %vm6795_vm13 = vweird.f32 %v14140_v43  ;;  %vm6796_vm4 = vweird.f32 %v14215_v53  ;;  %v14352_v18 = vor.u32 1.1754944e-38, %v6816_v23 }
 0x5ce   :  { %v14344_v63 = vpop.eup %8417  ;;  %v6897_v21 = vsub.f32 1.0, %v6896_v49  ;;  %v7963_v60 = vmul.f32 -1.442695, %v4859_v58  ;;  %v4861_v38 = vadd.f32 %v9036_v59, %v4689_v17  ;;  %v6869_v50 = vadd.f32 %v14228_v3, %v6868_v28  ;;  %vm14396_vm3 = vmor %vm6795_vm13, %vm6796_vm4 }
 0x5cf   :  { %v8420_v6 = vpop.eup %8419  ;;  %vm6871_vm2 = vweird.f32 %v14228_v3  ;;  %v7964_v5 = vmul.f32 -1.442695, %v4860_v20  ;;  %v6808_v15 = vmul.f32 %v14273_v32, %v6807_v42  ;;  %v6822_v23 = vsub.f32 1.0, %v14342_v44 }
 0x5d0   :  { %v14356_v45 = vpop.eup %8421  ;;  %v6883_v30 = vmul.f32 %v14279_v47, %v6882_v22  ;;  %v6911_v49 = vmul.f32 %v14344_v63, %v14267_v62  ;;  %vm6870_vm9 = vweird.f32 %v14166_v48  ;;  %v6874_v58 = vand.u32 2147483647, %v14166_v48 }
 0x5d1   :  { %v6876_v17 = vand.u32 2147483648, %v14166_v48  ;;  %v14369_v19 = vadd.f32 1.0, %v8420_v6  ;;  %vm14371_vm15 = vmor %vm6870_vm9, %vm6871_vm2  ;;  %v6898_v20 = vmul.f32 %v14297_v51, %v6897_v21  ;;  %v6926_v42 = vmul.f32 %v14356_v45, %v14291_v31  ;;  %v4698_v56 = vpop.xlane.xlu1 %4697 }
 0x5d2   :  { %8423 = vpow2.f32 %v7963_v60  ;;  %v7965_v44 = vmul.f32 -1.442695, %v4861_v38  ;;  %v6873_v22 = vsel %vm14371_vm15, %v14228_v3, %v6869_v50  ;;  %vm6885_vm5 = vweird.f32 %v14197_v2 }
 0x5d3   :  { %v6889_v48 = vand.u32 2147483647, %v14197_v2  ;;  %8425 = vpow2.f32 %v7964_v5  ;;  %v6884_v6 = vadd.f32 %v14279_v47, %v6883_v30  ;;  %vm6886_vm6 = vweird.f32 %v14279_v47 }
 0x5d4   :  { %v6912_v4 = vsub.f32 1.0, %v6911_v49  ;;  %v4862_v21 = vadd.f32 %v9036_v59, %v4692_v25  ;;  %v14386_v52 = vpop.xlane.xlu0 %4700  ;;  %v6891_v60 = vand.u32 2147483648, %v14197_v2  ;;  %v6904_v38 = vand.u32 2147483647, %v14213_v33  ;;  %vm14413_vm8 = vmor %vm6885_vm5, %vm6886_vm6 }
 0x5d5   :  { %v6906_v3 = vand.u32 2147483648, %v14213_v33  ;;  %8427 = vrcp.f32 %v14369_v19  ;;  %v6899_v5 = vadd.f32 %v14297_v51, %v6898_v20  ;;  %vm6901_vm11 = vweird.f32 %v14297_v51 }
 0x5d6   :  { %v6927_v25 = vsub.f32 1.0, %v6926_v42  ;;  %8429 = vpow2.f32 %v7965_v44  ;;  %v14407_v49 = vadd.f32 %v14273_v32, %v6808_v15  ;;  %vm6875_vm7 = vcmp.eq.f32.partialorder %v6874_v58, 8.507059e+37 }
 0x5d7   :  { %v6877_v28 = vor.u32 1.1754944e-38, %v6876_v17  ;;  %v6888_v44 = vsel %vm14413_vm8, %v14279_v47, %v6884_v6  ;;  %vm6900_vm0 = vweird.f32 %v14213_v33  ;;  %v6913_v15 = vmul.f32 %v14344_v63, %v6912_v4  ;;  %v4695_v47 = vpop.xlane.xlu2 %4694 }
 0x5d8   :  { %v8424_v42 = vpop.eup %8423  ;;  %v7966_v50 = vmul.f32 -1.442695, %v4862_v21  ;;  %vm6811_vm13 = vweird.f32 %v14273_v32  ;;  %v6823_v17 = vmul.f32 %v14306_v16, %v6822_v23  ;;  %vm6890_vm4 = vcmp.eq.f32.partialorder %v6889_v48, 8.507059e+37  ;;  %vm14428_vm2 = vmor %vm6900_vm0, %vm6901_vm11 }
 0x5d9   :  { %v8426_v58 = vpop.eup %8425  ;;  %v14424_v2 = vsel %vm6875_vm7, %v6877_v28, %v6873_v22  ;;  %v6892_v57 = vor.u32 1.1754944e-38, %v6891_v60  ;;  %v6903_v33 = vsel %vm14428_vm2, %v14297_v51, %v6899_v5  ;;  %vm14435_vm9 = vcmp.eq.f32.partialorder %v6904_v38, 8.507059e+37 }
 0x5da   :  { %v6907_v23 = vor.u32 1.1754944e-38, %v6906_v3  ;;  %v6928_v22 = vmul.f32 %v14356_v45, %v6927_v25  ;;  %vm6810_vm15 = vweird.f32 %v14185_v54  ;;  %vm6915_vm5 = vweird.f32 %v14267_v62 }
 0x5db   :  { %v14440_v48 = vpop.eup %8427  ;;  %v6893_v6 = vsel %vm6890_vm4, %v6892_v57, %v6888_v44  ;;  %vm6916_vm6 = vweird.f32 %v14344_v63  ;;  %v14445_v21 = vadd.f32 1.0, %v8424_v42  ;;  %v6914_v60 = vadd.f32 %v14344_v63, %v6913_v15 }
 0x5dc   :  { %v8430_v51 = vpop.eup %8429  ;;  %v14448_v38 = vadd.f32 1.0, %v8426_v58  ;;  %8431 = vpow2.f32 %v7966_v50  ;;  %v4863_v3 = vadd.f32 %v9036_v59, %v4695_v47  ;;  %v4707_v5 = vpop.xlane.xlu0 %4706  ;;  %v6908_v25 = vsel %vm14435_vm9, %v6907_v23, %v6903_v33  ;;  %vm14472_vm4 = vmor %vm6915_vm5, %vm6916_vm6 }
 0x5dd   :  { %v6919_v57 = vand.u32 2147483647, %v14267_v62  ;;  %v6921_v28 = vand.u32 2147483648, %v14267_v62  ;;  %vm6930_vm11 = vweird.f32 %v14291_v31  ;;  %v16119_v20 = vand.u32 2147483647, %v14140_v43 }
 0x5de   :  { %vm6825_vm8 = vweird.f32 %v14226_v39  ;;  %v6929_v50 = vadd.f32 %v14356_v45, %v6928_v22  ;;  %vm6931_vm0 = vweird.f32 %v14356_v45  ;;  %v6941_v44 = vmul.f32 %v14440_v48, %v14369_v19 }
 0x5df   :  { %vm14458_vm7 = vcmp.eq.f32.partialorder %v16119_v20, 8.507059e+37  ;;  %v4864_v15 = vadd.f32 %v9036_v59, %v4698_v56  ;;  %v6936_v58 = vand.u32 2147483648, %v14291_v31  ;;  %8433 = vrcp.f32 %v14445_v21  ;;  %v16127_v20 = vld [vmem:[#allocation8_spill] sm:$0xff]  ;;  %vm14499_vm5 = vmor %vm6930_vm11, %vm6931_vm0 }
 0x5e0   :  { %v14478_v47 = vadd.f32 1.0, %v8430_v51  ;;  %v4867_v33 = vadd.f32 %v9036_v59, %v4707_v5  ;;  %v16124_v4 = vand.u32 2147483647, %v14185_v54  ;;  %v6918_v62 = vsel %vm14472_vm4, %v14344_v63, %v6914_v60  ;;  %vm14518_vm11 = vmor %vm6810_vm15, %vm6811_vm13 }
 0x5e1   :  { %v6934_v22 = vand.u32 2147483647, %v14291_v31  ;;  %8435 = vrcp.f32 %v14448_v38  ;;  %v7967_v56 = vmul.f32 -1.442695, %v4863_v3  ;;  %v7664_v51 = vperm.slane %v14424_v2, %v16127_v20 }
 0x5e2   :  { %vm14483_vm2 = vcmp.eq.f32.partialorder %v16124_v4, 8.507059e+37  ;;  %v7666_v5 = vperm.slane %v6893_v6, %v9152_v61  ;;  %vm6920_vm9 = vcmp.eq.f32.partialorder %v6919_v57, 8.507059e+37  ;;  %v6922_v40 = vor.u32 1.1754944e-38, %v6921_v28  ;;  %v8432_v63 = vpop.eup %8431 }
 0x5e3   :  { %v16130_v60 = vand.u32 2147483647, %v14226_v39  ;;  %v7668_v2 = vperm.slane %v6908_v25, %v9281_v10  ;;  %v6933_v6 = vsel %vm14499_vm5, %v14356_v45, %v6929_v50  ;;  %v6942_v57 = vsub.f32 1.0, %v6941_v44 }
 0x5e4   :  { %v7968_v28 = vmul.f32 -1.442695, %v4864_v15  ;;  %v6923_v31 = vsel %vm6920_vm9, %v6922_v40, %v6918_v62  ;;  %v6937_v43 = vor.u32 1.1754944e-38, %v6936_v58  ;;  %8437 = vrcp.f32 %v14478_v47  ;;  %v4710_v15 = vpop.xlane.xlu1 %4709  ;;  %v4713_v42 = vpop.xlane.xlu0 %4712 }
 0x5e5   :  { %vm14505_vm6 = vcmp.eq.f32.partialorder %v16130_v60, 8.507059e+37  ;;  %v7971_v24 = vmul.f32 -1.442695, %v4867_v33  ;;  %v6824_v25 = vadd.f32 %v14306_v16, %v6823_v17  ;;  %vm6826_vm0 = vweird.f32 %v14306_v16  ;;  %v14524_v45 = vpop.eup %8433 }
 0x5e6   :  { %vm6935_vm4 = vcmp.eq.f32.partialorder %v6934_v22, 8.507059e+37  ;;  %8439 = vpow2.f32 %v7967_v56  ;;  %v6813_v40 = vsel %vm14518_vm11, %v14273_v32, %v14407_v49  ;;  %vm16135_vm9 = vcmask 195712   ;;  %vm14553_vm15 = vmor %vm6825_vm8, %vm6826_vm0 }
 0x5e7   :  { %v7665_v54 = vsel %vm16135_vm9, %v7664_v51, %v13645_v41  ;;  %v6938_v50 = vsel %vm6935_vm4, %v6937_v43, %v6933_v6  ;;  %v14532_v44 = vadd.f32 1.0, %v8432_v63  ;;  %v14534_v58 = vpop.eup %8435  ;;  %vm16136_vm13 = vcmask 261312  }
 0x5e8   :  { %v7667_v17 = vsel %vm16136_vm13, %v7666_v5, %v7665_v54  ;;  %v7670_v33 = vperm.slane %v6923_v31, %v9287_v12  ;;  %v6943_v62 = vmul.f32 %v14440_v48, %v6942_v57  ;;  %8441 = vpow2.f32 %v7968_v28  ;;  %v4716_v31 = vpop.xlane.xlu2 %4715 }
 0x5e9   :  { %v16137_v32 = vsel %vm14396_vm3, %v14215_v53, %v14347_v7  ;;  %v16141_v22 = vand.u32 2147483648, %v14226_v39  ;;  %vm16142_vm5 = vcmask 326912   ;;  %8443 = vpow2.f32 %v7971_v24 }
 0x5ea   :  { %v14547_v41 = vsel %vm14458_vm7, %v14334_v1, %v16137_v32  ;;  %v7669_v30 = vsel %vm16142_vm5, %v7668_v2, %v7667_v17  ;;  %v7672_v53 = vperm.slane %v6938_v50, %v9377_v46  ;;  %v6956_v1 = vmul.f32 %v14524_v45, %v14445_v21  ;;  %v14567_v5 = vpop.eup %8437 }
 0x5eb   :  { %16138 = vst [vmem:[#allocation9_spill] sm:$0xff] %v14547_v41  ;;  %v6832_v56 = vor.u32 1.1754944e-38, %v16141_v22  ;;  %v4868_v7 = vadd.f32 %v9036_v59, %v4710_v15  ;;  %v6828_v51 = vsel %vm14553_vm15, %v14306_v16, %v6824_v25  ;;  %v6949_v39 = vand.u32 2147483647, %v14369_v19 }
 0x5ec   :  { %v6971_v4 = vmul.f32 %v14534_v58, %v14448_v38  ;;  %8445 = vrcp.f32 %v14532_v44  ;;  %v14576_v24 = vsel %vm14483_vm2, %v14352_v18, %v6813_v40  ;;  %v8440_v63 = vpop.eup %8439  ;;  %vm16144_vm3 = vcmask 392512  }
 0x5ed   :  { %16143 = vst [vmem:[#allocation8_spill] sm:$0xff] %v14576_v24  ;;  %v7671_v2 = vsel %vm16144_vm3, %v7670_v33, %v7669_v30  ;;  %v6944_v6 = vadd.f32 %v14440_v48, %v6943_v62  ;;  %vm6946_vm7 = vweird.f32 %v14440_v48  ;;  %v4865_v16 = vadd.f32 %v9036_v59, %v14386_v52 }
 0x5ee   :  { %vm6945_vm8 = vweird.f32 %v14369_v19  ;;  %v6951_v57 = vand.u32 2147483648, %v14369_v19  ;;  %v6966_v28 = vand.u32 2147483648, %v14445_v21  ;;  %v14588_v18 = vsel %vm14505_vm6, %v6832_v56, %v6828_v51  ;;  %v8442_v23 = vpop.eup %8441 }
 0x5ef   :  { %16145 = vst [vmem:[#allocation36_spill] sm:$0xff] %v14588_v18  ;;  %vm16146_vm2 = vcmask 458112   ;;  %v6957_v60 = vsub.f32 1.0, %v6956_v1  ;;  %v6986_v25 = vmul.f32 %v14567_v5, %v14478_v47  ;;  %v7972_v52 = vmul.f32 -1.442695, %v4868_v7  ;;  %v8444_v40 = vpop.eup %8443  ;;  %vm14595_vm11 = vmor %vm6945_vm8, %vm6946_vm7 }
 0x5f0   :  { %v14591_v43 = vsel %vm16146_vm2, %v7672_v53, %v7671_v2  ;;  %vm14599_vm0 = vcmp.eq.f32.partialorder %v6949_v39, 8.507059e+37  ;;  %v6972_v3 = vsub.f32 1.0, %v6971_v4  ;;  %v14603_v50 = vadd.f32 1.0, %v8440_v63  ;;  %v4719_v53 = vpop.xlane.xlu1 %4718 }
 0x5f1   :  { %v4869_v15 = vadd.f32 %v9036_v59, %v4713_v42  ;;  %v6948_v17 = vsel %vm14595_vm11, %v14440_v48, %v6944_v6  ;;  %v6964_v33 = vand.u32 2147483647, %v14445_v21  ;;  %v7969_v62 = vmul.f32 -1.442695, %v4865_v16  ;;  %v4722_v48 = vpop.xlane.xlu0 %4721 }
 0x5f2   :  { %v4870_v32 = vadd.f32 %v9036_v59, %v4716_v31  ;;  %v14611_v49 = vpop.eup %8445  ;;  %v6952_v22 = vor.u32 1.1754944e-38, %v6951_v57  ;;  %vm6960_vm6 = vweird.f32 %v14445_v21  ;;  %v6967_v56 = vor.u32 1.1754944e-38, %v6966_v28  ;;  %v4725_v31 = vpop.xlane.xlu2 %4724 }
 0x5f3   :  { %v14614_v30 = vadd.f32 1.0, %v8442_v23  ;;  %v6958_v1 = vmul.f32 %v14524_v45, %v6957_v60  ;;  %v6987_v7 = vsub.f32 1.0, %v6986_v25  ;;  %v14617_v42 = vadd.f32 1.0, %v8444_v40 }
 0x5f4   :  { %8447 = vpow2.f32 %v7972_v52  ;;  %v6953_v51 = vsel %vm14599_vm0, %v6952_v22, %v6948_v17  ;;  %v6973_v39 = vmul.f32 %v14534_v58, %v6972_v3  ;;  %v7973_v4 = vmul.f32 -1.442695, %v4869_v15 }
 0x5f5   :  { %8449 = vrcp.f32 %v14603_v50  ;;  %vm14623_vm4 = vcmp.eq.f32.partialorder %v6964_v33, 8.507059e+37  ;;  %v7001_v2 = vmul.f32 %v14611_v49, %v14532_v44  ;;  %v7974_v6 = vmul.f32 -1.442695, %v4870_v32 }
 0x5f6   :  { %8451 = vpow2.f32 %v7969_v62  ;;  %v4871_v16 = vadd.f32 %v9036_v59, %v4719_v53  ;;  %vm6961_vm9 = vweird.f32 %v14524_v45  ;;  %v6979_v57 = vand.u32 2147483647, %v14448_v38 }
 0x5f7   :  { %8453 = vrcp.f32 %v14614_v30  ;;  %v4872_v28 = vadd.f32 %v9036_v59, %v4722_v48  ;;  %v6959_v23 = vadd.f32 %v14524_v45, %v6958_v1  ;;  %v6981_v60 = vand.u32 2147483648, %v14448_v38  ;;  %vm14648_vm15 = vmor %vm6960_vm6, %vm6961_vm9 }
 0x5f8   :  { %v6988_v25 = vmul.f32 %v14567_v5, %v6987_v7  ;;  %8455 = vrcp.f32 %v14617_v42  ;;  %v7674_v52 = vperm.slane %v6953_v51, %v9439_v37  ;;  %v6974_v40 = vadd.f32 %v14534_v58, %v6973_v39 }
 0x5f9   :  { %vm6976_vm13 = vweird.f32 %v14534_v58  ;;  %8457 = vpow2.f32 %v7973_v4  ;;  %v7002_v19 = vsub.f32 1.0, %v7001_v2  ;;  %v7975_v3 = vmul.f32 -1.442695, %v4871_v16 }
 0x5fa   :  { %v8448_v54 = vpop.eup %8447  ;;  %8459 = vpow2.f32 %v7974_v6  ;;  %v4873_v15 = vadd.f32 %v9036_v59, %v4725_v31  ;;  %vm6975_vm5 = vweird.f32 %v14448_v38  ;;  %vm14653_vm3 = vcmp.eq.f32.partialorder %v6979_v57, 8.507059e+37 }
 0x5fb   :  { %v14642_v17 = vpop.eup %8449  ;;  %v6994_v32 = vand.u32 2147483647, %v14478_v47  ;;  %v7976_v22 = vmul.f32 -1.442695, %v4872_v28  ;;  %v6963_v1 = vsel %vm14648_vm15, %v14524_v45, %v6959_v23  ;;  %vm14663_vm7 = vmor %vm6975_vm5, %vm6976_vm13  ;;  %v6989_v38 = vadd.f32 %v14567_v5, %v6988_v25 }
 0x5fc   :  { %v8452_v53 = vpop.eup %8451  ;;  %vm6991_vm8 = vweird.f32 %v14567_v5  ;;  %v6996_v7 = vand.u32 2147483648, %v14478_v47  ;;  %v6978_v51 = vsel %vm14663_vm7, %v14534_v58, %v6974_v40  ;;  %v6982_v39 = vor.u32 1.1754944e-38, %v6981_v60 }
 0x5fd   :  { %v14670_v48 = vpop.eup %8453  ;;  %vm6990_vm2 = vweird.f32 %v14478_v47  ;;  %v14676_v45 = vadd.f32 1.0, %v8448_v54  ;;  %vm16159_vm11 = vcmask 523712   ;;  %v7003_v6 = vmul.f32 %v14611_v49, %v7002_v19 }
 0x5fe   :  { %v14678_v4 = vpop.eup %8455  ;;  %v14682_v2 = vsel %vm16159_vm11, %v7674_v52, %v14591_v43  ;;  %8461 = vpow2.f32 %v7975_v3  ;;  %v7977_v16 = vmul.f32 -1.442695, %v4873_v15  ;;  %v14687_v28 = vsel %vm14623_vm4, %v6967_v56, %v6963_v1  ;;  %vm14689_vm0 = vmor %vm6990_vm2, %vm6991_vm8 }
 0x5ff   :  { %16160 = vst [vmem:[#allocation37_spill] sm:$0xff] %v14682_v2  ;;  %v8458_v57 = vpop.eup %8457  ;;  %vm14693_vm6 = vcmp.eq.f32.partialorder %v6994_v32, 8.507059e+37  ;;  %v14697_v31 = vadd.f32 1.0, %v8452_v53  ;;  %8463 = vpow2.f32 %v7976_v22  ;;  %v14701_v23 = vsel %vm14653_vm3, %v6982_v39, %v6978_v51 }
 0x600   :  { %16161 = vst [vmem:[#allocation38_spill] sm:$0xff] %v14687_v28  ;;  %v8460_v43 = vpop.eup %8459  ;;  %v6993_v56 = vsel %vm14689_vm0, %v14567_v5, %v6989_v38  ;;  %v6997_v63 = vor.u32 1.1754944e-38, %v6996_v7  ;;  %v7009_v60 = vand.u32 2147483647, %v14532_v44  ;;  %vm7006_vm4 = vweird.f32 %v14611_v49  ;;  %v4728_v5 = vpop.xlane.xlu1 %4727 }
 0x601   :  { %16166 = vst [vmem:[#allocation39_spill] sm:$0xff] %v14701_v23  ;;  %v7011_v25 = vand.u32 2147483648, %v14532_v44  ;;  %v7016_v52 = vmul.f32 %v14642_v17, %v14603_v50  ;;  %8465 = vrcp.f32 %v14676_v45  ;;  %v7004_v40 = vadd.f32 %v14611_v49, %v7003_v6 }
 0x602   :  { %v7031_v54 = vmul.f32 %v14670_v48, %v14614_v30  ;;  %v14715_v19 = vadd.f32 1.0, %v8458_v57  ;;  %8467 = vpow2.f32 %v7977_v16  ;;  %v14719_v3 = vsel %vm14693_vm6, %v6997_v63, %v6993_v56  ;;  %v4731_v57 = vpop.xlane.xlu0 %4730 }
 0x603   :  { %16167 = vst [vmem:[#allocation40_spill] sm:$0xff] %v14719_v3  ;;  %8469 = vrcp.f32 %v14697_v31  ;;  %v7076_v15 = vmul.f32 %v14678_v4, %v14617_v42  ;;  %v14724_v33 = vadd.f32 1.0, %v8460_v43  ;;  %vm7005_vm9 = vweird.f32 %v14532_v44 }
 0x604   :  { %v8462_v62 = vpop.eup %8461  ;;  %v7026_v53 = vand.u32 2147483648, %v14603_v50  ;;  %vm14734_vm13 = vmor %vm7005_vm9, %vm7006_vm4  ;;  %vm14738_vm15 = vcmp.eq.f32.partialorder %v7009_v60, 8.507059e+37  ;;  %v7012_v7 = vor.u32 1.1754944e-38, %v7011_v25  ;;  %v7017_v51 = vsub.f32 1.0, %v7016_v52  ;;  %v4734_v52 = vpop.xlane.xlu2 %4733 }
 0x605   :  { %v8464_v1 = vpop.eup %8463  ;;  %v4874_v39 = vadd.f32 %v9036_v59, %v4728_v5  ;;  %v7008_v6 = vsel %vm14734_vm13, %v14611_v49, %v7004_v40  ;;  %v7032_v16 = vsub.f32 1.0, %v7031_v54  ;;  %8471 = vrcp.f32 %v14715_v19 }
 0x606   :  { %vm7020_vm5 = vweird.f32 %v14603_v50  ;;  %v7077_v43 = vsub.f32 1.0, %v7076_v15  ;;  %8473 = vrcp.f32 %v14724_v33  ;;  %v14754_v56 = vadd.f32 1.0, %v8462_v62 }
 0x607   :  { %v14749_v58 = vpop.eup %8465  ;;  %v14756_v60 = vor.u32 1.1754944e-38, %v7026_v53  ;;  %vm7035_vm3 = vweird.f32 %v14614_v30  ;;  %v7041_v49 = vand.u32 2147483648, %v14614_v30  ;;  %v14760_v25 = vadd.f32 1.0, %v8464_v1 }
 0x608   :  { %v8468_v63 = vpop.eup %8467  ;;  %v14766_v54 = vsel %vm14738_vm15, %v7012_v7, %v7008_v6  ;;  %v7018_v5 = vmul.f32 %v14642_v17, %v7017_v51  ;;  %v7978_v15 = vmul.f32 -1.442695, %v4874_v39  ;;  %v4875_v62 = vadd.f32 %v9036_v59, %v4731_v57 }
 0x609   :  { %v14762_v40 = vpop.eup %8469  ;;  %16172 = vst [vmem:[#allocation41_spill] sm:$0xff] %v14766_v54  ;;  %vm7021_vm7 = vweird.f32 %v14642_v17  ;;  %v7033_v53 = vmul.f32 %v14670_v48, %v7032_v16  ;;  %v4876_v1 = vadd.f32 %v9036_v59, %v4734_v52  ;;  %v7078_v44 = vmul.f32 %v14678_v4, %v7077_v43 }
 0x60a   :  { %v7091_v38 = vmul.f32 %v14749_v58, %v14676_v45  ;;  %8475 = vrcp.f32 %v14754_v56  ;;  %v14778_v7 = vadd.f32 1.0, %v8468_v63  ;;  %v14784_v6 = vor.u32 1.1754944e-38, %v7041_v49  ;;  %vm14808_vm11 = vmor %vm7020_vm5, %vm7021_vm7 }
 0x60b   :  { %v14780_v51 = vpop.eup %8471  ;;  %v7046_v16 = vmul.f32 %v14762_v40, %v14697_v31  ;;  %8477 = vrcp.f32 %v14760_v25  ;;  %v14792_v43 = vadd.f32 %v14642_v17, %v7018_v5  ;;  %vm7036_vm8 = vweird.f32 %v14670_v48 }
 0x60c   :  { %v14789_v57 = vpop.eup %8473  ;;  %8479 = vpow2.f32 %v7978_v15  ;;  %v7979_v63 = vmul.f32 -1.442695, %v4875_v62  ;;  %v14796_v52 = vadd.f32 %v14670_v48, %v7033_v53  ;;  %v7056_v49 = vand.u32 2147483648, %v14697_v31  ;;  %vm14826_vm0 = vmor %vm7035_vm3, %vm7036_vm8 }
 0x60d   :  { %vm7081_vm2 = vweird.f32 %v14678_v4  ;;  %v7980_v39 = vmul.f32 -1.442695, %v4876_v1  ;;  %v7079_v22 = vadd.f32 %v14678_v4, %v7078_v44  ;;  %v7092_v32 = vsub.f32 1.0, %v7091_v38 }
 0x60e   :  { %v7106_v21 = vmul.f32 %v14780_v51, %v14715_v19  ;;  %8481 = vrcp.f32 %v14778_v7  ;;  %v7047_v15 = vsub.f32 1.0, %v7046_v16  ;;  %v7086_v53 = vand.u32 2147483648, %v14617_v42 }
 0x60f   :  { %v7121_v44 = vmul.f32 %v14789_v57, %v14724_v33  ;;  %vm7080_vm6 = vweird.f32 %v14617_v42  ;;  %v7084_v62 = vand.u32 2147483647, %v14617_v42  ;;  %8483 = vpow2.f32 %v7979_v63 }
 0x610   :  { %v14816_v1 = vpop.eup %8475  ;;  %v14838_v54 = vor.u32 1.1754944e-38, %v7056_v49  ;;  %vm14842_vm4 = vmor %vm7080_vm6, %vm7081_vm2  ;;  %v7099_v23 = vand.u32 2147483647, %v14676_v45  ;;  %8485 = vpow2.f32 %v7980_v39  ;;  %v7093_v28 = vmul.f32 %v14749_v58, %v7092_v32 }
 0x611   :  { %v14832_v47 = vpop.eup %8477  ;;  %v7083_v63 = vsel %vm14842_vm4, %v14678_v4, %v7079_v22  ;;  %v7101_v38 = vand.u32 2147483648, %v14676_v45  ;;  %v7107_v49 = vsub.f32 1.0, %v7106_v21  ;;  %v14853_v2 = vmul.f32 %v14762_v40, %v7047_v15 }
 0x612   :  { %v8480_v42 = vpop.eup %8479  ;;  %v7087_v18 = vor.u32 1.1754944e-38, %v7086_v53  ;;  %v7122_v24 = vsub.f32 1.0, %v7121_v44  ;;  %v7136_v41 = vmul.f32 %v14816_v1, %v14754_v56  ;;  %vm7085_vm9 = vcmp.eq.f32.partialorder %v7084_v62, 8.507059e+37 }
 0x613   :  { %vm7095_vm13 = vweird.f32 %v14676_v45  ;;  %v7114_v4 = vand.u32 2147483647, %v14715_v19  ;;  %v7116_v3 = vand.u32 2147483648, %v14715_v19  ;;  %vm14864_vm15 = vcmp.eq.f32.partialorder %v7099_v23, 8.507059e+37 }
 0x614   :  { %v14857_v26 = vpop.eup %8481  ;;  %v14862_v32 = vsel %vm7085_vm9, %v7087_v18, %v7083_v63  ;;  %v7151_v21 = vmul.f32 %v14832_v47, %v14760_v25  ;;  %v14870_v39 = vadd.f32 1.0, %v8480_v42  ;;  %v7094_v62 = vadd.f32 %v14749_v58, %v7093_v28 }
 0x615   :  { %v8484_v15 = vpop.eup %8483  ;;  %vm7096_vm5 = vweird.f32 %v14749_v58  ;;  %v7102_v53 = vor.u32 1.1754944e-38, %v7101_v38  ;;  %v7108_v44 = vmul.f32 %v14780_v51, %v7107_v49  ;;  %vm7110_vm3 = vweird.f32 %v14715_v19  ;;  %v4737_v27 = vpop.xlane.xlu1 %4736 }
 0x616   :  { %v8486_v14 = vpop.eup %8485  ;;  %v7123_v18 = vmul.f32 %v14789_v57, %v7122_v24  ;;  %v7137_v23 = vsub.f32 1.0, %v7136_v41  ;;  %v7166_v63 = vmul.f32 %v14857_v26, %v14778_v7  ;;  %vm14881_vm7 = vcmp.eq.f32.partialorder %v7114_v4, 8.507059e+37  ;;  %vm14889_vm8 = vmor %vm7095_vm13, %vm7096_vm5 }
 0x617   :  { %v7117_v28 = vor.u32 1.1754944e-38, %v7116_v3  ;;  %v7129_v38 = vand.u32 2147483647, %v14724_v33  ;;  %v7131_v49 = vand.u32 2147483648, %v14724_v33  ;;  %vm7111_vm2 = vweird.f32 %v14780_v51 }
 0x618   :  { %v7152_v41 = vsub.f32 1.0, %v7151_v21  ;;  %8487 = vrcp.f32 %v14870_v39  ;;  %v14895_v4 = vadd.f32 1.0, %v8484_v15  ;;  %v7098_v3 = vsel %vm14889_vm8, %v14749_v58, %v7094_v62  ;;  %vm14919_vm13 = vmor %vm7110_vm3, %vm7111_vm2 }
 0x619   :  { %v7109_v42 = vadd.f32 %v14780_v51, %v7108_v44  ;;  %vm7126_vm6 = vweird.f32 %v14789_v57  ;;  %v14902_v45 = vadd.f32 1.0, %v8486_v14  ;;  %v7124_v0 = vadd.f32 %v14789_v57, %v7123_v18 }
 0x61a   :  { %v7138_v55 = vmul.f32 %v14816_v1, %v7137_v23  ;;  %v7167_v21 = vsub.f32 1.0, %v7166_v63  ;;  %v4877_v35 = vadd.f32 %v9036_v59, %v4737_v27  ;;  %vm7125_vm4 = vweird.f32 %v14724_v33 }
 0x61b   :  { %vm14908_vm9 = vcmp.eq.f32.partialorder %v7129_v38, 8.507059e+37  ;;  %v7132_v58 = vor.u32 1.1754944e-38, %v7131_v49  ;;  %v7144_v62 = vand.u32 2147483647, %v14754_v56  ;;  %v7103_v14 = vsel %vm14864_vm15, %v7102_v53, %v7098_v3  ;;  %vm14930_vm15 = vmor %vm7125_vm4, %vm7126_vm6  ;;  %v4740_v49 = vpop.xlane.xlu0 %4739 }
 0x61c   :  { %v7153_v27 = vmul.f32 %v14832_v47, %v7152_v41  ;;  %8489 = vrcp.f32 %v14895_v4  ;;  %v7981_v33 = vmul.f32 -1.442695, %v4877_v35  ;;  %v7113_v18 = vsel %vm14919_vm13, %v14780_v51, %v7109_v42 }
 0x61d   :  { %vm7140_vm5 = vweird.f32 %v14754_v56  ;;  %vm7141_vm3 = vweird.f32 %v14816_v1  ;;  %8491 = vrcp.f32 %v14902_v45  ;;  %v7128_v35 = vsel %vm14930_vm15, %v14789_v57, %v7124_v0 }
 0x61e   :  { %v14937_v19 = vpop.eup %8487  ;;  %v7139_v51 = vadd.f32 %v14816_v1, %v7138_v55  ;;  %v7168_v53 = vmul.f32 %v14857_v26, %v7167_v21  ;;  %8493 = vpow2.f32 %v7981_v33  ;;  %v7693_v23 = vperm.slane %v7103_v14, %v16003_v11  ;;  %vm14963_vm4 = vmor %vm7140_vm5, %vm7141_vm3 }
 0x61f   :  { %vm14945_vm8 = vcmp.eq.f32.partialorder %v7144_v62, 8.507059e+37  ;;  %v7146_v42 = vand.u32 2147483648, %v14754_v56  ;;  %v7161_v38 = vand.u32 2147483648, %v14760_v25  ;;  %v7118_v24 = vsel %vm14881_vm7, %v7117_v28, %v7113_v18 }
 0x620   :  { %v7154_v0 = vadd.f32 %v14832_v47, %v7153_v27  ;;  %vm7156_vm2 = vweird.f32 %v14832_v47  ;;  %v4878_v55 = vadd.f32 %v9036_v59, %v4740_v49  ;;  %vm7051_vm6 = vweird.f32 %v14762_v40  ;;  %v16212_v27 = vld [vmem:[#allocation32_spill] sm:$0xff] }
 0x621   :  { %v7133_v11 = vsel %vm14908_vm9, %v7132_v58, %v7128_v35  ;;  %vm7155_vm7 = vweird.f32 %v14760_v25  ;;  %v7159_v9 = vand.u32 2147483647, %v14760_v25  ;;  %v7181_v28 = vmul.f32 %v14937_v19, %v14870_v39 }
 0x622   :  { %v14971_v41 = vpop.eup %8489  ;;  %v7143_v3 = vsel %vm14963_vm4, %v14816_v1, %v7139_v51  ;;  %v7169_v21 = vadd.f32 %v14857_v26, %v7168_v53  ;;  %vm7171_vm9 = vweird.f32 %v14857_v26  ;;  %v7982_v56 = vmul.f32 -1.442695, %v4878_v55  ;;  %vm14996_vm3 = vmor %vm7155_vm7, %vm7156_vm2 }
 0x623   :  { %v14978_v15 = vpop.eup %8491  ;;  %v16195_v58 = vand.u32 2147483647, %v14603_v50  ;;  %v16198_v62 = vand.u32 2147483647, %v14614_v30  ;;  %vm7050_vm5 = vweird.f32 %v14697_v31  ;;  %v7695_v1 = vperm.slane %v7118_v24, %v16127_v20 }
 0x624   :  { %v7147_v44 = vor.u32 1.1754944e-38, %v7146_v42  ;;  %v7162_v50 = vor.u32 1.1754944e-38, %v7161_v38  ;;  %v7176_v33 = vand.u32 2147483648, %v14778_v7  ;;  %v8494_v18 = vpop.eup %8493  ;;  %v7158_v30 = vsel %vm14996_vm3, %v14832_v47, %v7154_v0  ;;  %v4743_v55 = vpop.xlane.xlu2 %4742 }
 0x625   :  { %vm14982_vm13 = vcmp.eq.f32.partialorder %v16195_v58, 8.507059e+37  ;;  %vm14988_vm15 = vcmp.eq.f32.partialorder %v16198_v62, 8.507059e+37  ;;  %vm7170_vm4 = vweird.f32 %v14778_v7  ;;  %v7174_v22 = vand.u32 2147483647, %v14778_v7 }
 0x626   :  { %8495 = vpow2.f32 %v7982_v56  ;;  %v7697_v20 = vperm.slane %v7133_v11, %v9152_v61  ;;  %v7148_v35 = vsel %vm14945_vm8, %v7147_v44, %v7143_v3  ;;  %vm15011_vm2 = vmor %vm7170_vm4, %vm7171_vm9  ;;  %v7182_v53 = vsub.f32 1.0, %v7181_v28  ;;  %v16211_v44 = vld [vmem:[#allocation15_spill] sm:$0xff] }
 0x627   :  { %v15015_v42 = vadd.f32 1.0, %v8494_v18  ;;  %v16205_v47 = vperm.slane %v14862_v32, %v16002_v13  ;;  %vm7160_vm7 = vcmp.eq.f32.partialorder %v7159_v9, 8.507059e+37  ;;  %v7173_v61 = vsel %vm15011_vm2, %v14857_v26, %v7169_v21  ;;  %vm15066_vm2 = vmor %vm7050_vm5, %vm7051_vm6 }
 0x628   :  { %v7196_v63 = vmul.f32 %v14971_v41, %v14895_v4  ;;  %v16206_v38 = vand.u32 2147483647, %v14697_v31  ;;  %v7163_v24 = vsel %vm7160_vm7, %v7162_v50, %v7158_v30  ;;  %v7177_v0 = vor.u32 1.1754944e-38, %v7176_v33 }
 0x629   :  { %v7694_v7 = vsel %vm7448_vm1, %v7693_v23, %v16205_v47  ;;  %v7211_v13 = vmul.f32 %v14978_v15, %v14902_v45  ;;  %8497 = vrcp.f32 %v15015_v42  ;;  %v7049_v32 = vadd.f32 %v14762_v40, %v14853_v2 }
 0x62a   :  { %vm15028_vm8 = vcmp.eq.f32.partialorder %v16206_v38, 8.507059e+37  ;;  %vm16209_vm1 = vcmask 195712   ;;  %v7699_v23 = vperm.slane %v7148_v35, %v9281_v10  ;;  %vm7175_vm9 = vcmp.eq.f32.partialorder %v7174_v22, 8.507059e+37 }
 0x62b   :  { %v7696_v26 = vsel %vm16209_vm1, %v7695_v1, %v7694_v7  ;;  %vm16210_vm3 = vcmask 261312   ;;  %v7178_v57 = vsel %vm7175_vm9, %v7177_v0, %v7173_v61  ;;  %v7183_v9 = vmul.f32 %v14937_v19, %v7182_v53 }
 0x62c   :  { %v7698_v11 = vsel %vm16210_vm3, %v7697_v20, %v7696_v26  ;;  %v4879_v28 = vadd.f32 %v9036_v59, %v4743_v55  ;;  %v8496_v3 = vpop.eup %8495  ;;  %v7701_v21 = vperm.slane %v7163_v24, %v9287_v12  ;;  %v7189_v56 = vand.u32 2147483647, %v14870_v39 }
 0x62d   :  { %v7191_v2 = vand.u32 2147483648, %v14870_v39  ;;  %v7197_v58 = vsub.f32 1.0, %v7196_v63  ;;  %v7212_v62 = vsub.f32 1.0, %v7211_v13  ;;  %v15045_v1 = vadd.f32 1.0, %v8496_v3  ;;  %v4704_v53 = vpop.xlane.xlu2 %4703  ;;  %v16226_v13 = vld [vmem:[#allocation34_spill] sm:$0xff] }
 0x62e   :  { %v7983_v10 = vmul.f32 -1.442695, %v4879_v28  ;;  %v16213_v50 = vperm.slane %v16212_v27, %v15974_v34  ;;  %vm16214_vm4 = vcmask 851712   ;;  %v16215_v12 = vsel %vm14808_vm11, %v14642_v17, %v14792_v43 }
 0x62f   :  { %v15060_v18 = vsel %vm14982_vm13, %v14756_v60, %v16215_v12  ;;  %vm16218_vm7 = vcmask 326912   ;;  %v7703_v5 = vperm.slane %v7178_v57, %v9377_v46  ;;  %v16219_v17 = vsel %vm14826_vm0, %v14670_v48, %v14796_v52  ;;  %v15082_v43 = vpop.eup %8497  ;;  %v4746_v63 = vpop.xlane.xlu1 %4745 }
 0x630   :  { %v7561_v33 = vsel %vm16214_vm4, %v16213_v50, %v16211_v44  ;;  %v7700_v22 = vsel %vm16218_vm7, %v7699_v23, %v7698_v11  ;;  %v15080_v60 = vsel %vm14988_vm15, %v14784_v6, %v16219_v17  ;;  %v7184_v31 = vadd.f32 %v14937_v19, %v7183_v9 }
 0x631   :  { %vm7186_vm11 = vweird.f32 %v14937_v19  ;;  %8499 = vrcp.f32 %v15045_v1  ;;  %v7053_v46 = vsel %vm15066_vm2, %v14762_v40, %v7049_v32  ;;  %vm16220_vm6 = vcmask 392512   ;;  %v16227_v32 = vld [vmem:[#allocation25_spill] sm:$0xff] }
 0x632   :  { %v7702_v16 = vsel %vm16220_vm6, %v7701_v21, %v7700_v22  ;;  %v7198_v48 = vmul.f32 %v14971_v41, %v7197_v58  ;;  %v7226_v6 = vmul.f32 %v15082_v43, %v15015_v42  ;;  %8501 = vpow2.f32 %v7983_v10 }
 0x633   :  { %vm7185_vm0 = vweird.f32 %v14870_v39  ;;  %vm15095_vm13 = vcmp.eq.f32.partialorder %v7189_v56, 8.507059e+37  ;;  %v7192_v25 = vor.u32 1.1754944e-38, %v7191_v2  ;;  %v7213_v14 = vmul.f32 %v14978_v15, %v7212_v62 }
 0x634   :  { %vm16223_vm15 = vcmask 458112   ;;  %vm15103_vm5 = vmor %vm7185_vm0, %vm7186_vm11  ;;  %v7204_v35 = vand.u32 2147483647, %v14895_v4  ;;  %v7227_v51 = vsub.f32 1.0, %v7226_v6  ;;  %v15111_v39 = vsel %vm15028_vm8, %v14838_v54, %v7053_v46 }
 0x635   :  { %v15101_v20 = vsel %vm16223_vm15, %v7703_v5, %v7702_v16  ;;  %v7188_v47 = vsel %vm15103_vm5, %v14937_v19, %v7184_v31  ;;  %vm7200_vm1 = vweird.f32 %v14895_v4  ;;  %v7206_v7 = vand.u32 2147483648, %v14895_v4  ;;  %v16246_v4 = vld [vmem:[#allocation20_spill] sm:$0xff]  ;;  %v16255_v5 = vld [vmem:[#allocation22_spill] sm:$0xff] }
 0x636   :  { %v4866_v61 = vadd.f32 %v9036_v59, %v4704_v53  ;;  %v7199_v38 = vadd.f32 %v14971_v41, %v7198_v48  ;;  %vm7201_vm9 = vweird.f32 %v14971_v41  ;;  %vm7216_vm3 = vweird.f32 %v14978_v15  ;;  %v16237_v48 = vld [vmem:[#allocation16_spill] sm:$0xff] }
 0x637   :  { %v4880_v54 = vadd.f32 %v9036_v59, %v4746_v63  ;;  %v15123_v49 = vpop.eup %8499  ;;  %v7214_v24 = vadd.f32 %v14978_v15, %v7213_v14  ;;  %v7228_v19 = vmul.f32 %v15082_v43, %v7227_v51  ;;  %v16228_v26 = vperm.slane %v16226_v13, %v16227_v32  ;;  %vm15140_vm4 = vmor %vm7200_vm1, %vm7201_vm9  ;;  %v16263_v63 = vld [vmem:[#allocation21_spill] sm:$0xff] }
 0x638   :  { %v7970_v0 = vmul.f32 -1.442695, %v4866_v61  ;;  %v8502_v55 = vpop.eup %8501  ;;  %vm15131_vm8 = vcmp.eq.f32.partialorder %v7204_v35, 8.507059e+37  ;;  %v7221_v57 = vand.u32 2147483648, %v14902_v45  ;;  %v7241_v9 = vmul.f32 %v15123_v49, %v15045_v1  ;;  %v4749_v12 = vpop.xlane.xlu0 %4748 }
 0x639   :  { %v7563_v23 = vsel %vm7496_vm12, %v16228_v26, %v7561_v33  ;;  %v7984_v28 = vmul.f32 -1.442695, %v4880_v54  ;;  %vm7215_vm2 = vweird.f32 %v14902_v45  ;;  %v7219_v21 = vand.u32 2147483647, %v14902_v45  ;;  %v16241_v26 = vld [vmem:[#allocation10_spill] sm:$0xff] }
 0x63a   :  { %v15146_v56 = vadd.f32 1.0, %v8502_v55  ;;  %8503 = vpow2.f32 %v7970_v0  ;;  %v15150_v2 = vsel %vm15095_vm13, %v7192_v25, %v7188_v47  ;;  %v7203_v58 = vsel %vm15140_vm4, %v14971_v41, %v7199_v38  ;;  %vm15157_vm7 = vmor %vm7215_vm2, %vm7216_vm3 }
 0x63b   :  { %v7242_v62 = vsub.f32 1.0, %v7241_v9  ;;  %8505 = vpow2.f32 %v7984_v28  ;;  %v7218_v45 = vsel %vm15157_vm7, %v14978_v15, %v7214_v24  ;;  %v7229_v10 = vadd.f32 %v15082_v43, %v7228_v19  ;;  %v16243_v9 = vld [vmem:[#allocation27_spill] sm:$0xff] }
 0x63c   :  { %vm7231_vm11 = vweird.f32 %v15082_v43  ;;  %8507 = vrcp.f32 %v15146_v56  ;;  %v7207_v44 = vor.u32 1.1754944e-38, %v7206_v7  ;;  %v7222_v41 = vor.u32 1.1754944e-38, %v7221_v57  ;;  %v16242_v57 = vld [vmem:[#allocation19_spill] sm:$0xff] }
 0x63d   :  { %v7236_v27 = vand.u32 2147483648, %v15015_v42  ;;  %v7243_v50 = vmul.f32 %v15123_v49, %v7242_v62  ;;  %v7705_v33 = vperm.slane %v15150_v2, %v9439_v37  ;;  %vm7220_vm6 = vcmp.eq.f32.partialorder %v7219_v21, 8.507059e+37  ;;  %v4752_v54 = vpop.xlane.xlu1 %4751  ;;  %v16247_v62 = vld [vmem:[#allocation11_spill] sm:$0xff] }
 0x63e   :  { %vm7230_vm0 = vweird.f32 %v15015_v42  ;;  %v7234_v15 = vand.u32 2147483647, %v15015_v42  ;;  %v15175_v30 = vsel %vm15131_vm8, %v7207_v44, %v7203_v58  ;;  %v15177_v22 = vsel %vm7220_vm6, %v7222_v41, %v7218_v45  ;;  %v16245_v58 = vld [vmem:[#allocation17_spill] sm:$0xff] }
 0x63f   :  { %vm15179_vm13 = vmor %vm7230_vm0, %vm7231_vm11  ;;  %v7249_v17 = vand.u32 2147483647, %v15045_v1  ;;  %v4881_v31 = vadd.f32 %v9036_v59, %v4749_v12  ;;  %v7244_v16 = vadd.f32 %v15123_v49, %v7243_v50  ;;  %vm7246_vm15 = vweird.f32 %v15123_v49  ;;  %v16253_v50 = vld [vmem:[#allocation13_spill] sm:$0xff]  ;;  %v16254_v12 = vld [vmem:[#allocation23_spill] sm:$0xff] }
 0x640   :  { %v8504_v46 = vpop.eup %8503  ;;  %v7233_v42 = vsel %vm15179_vm13, %v15082_v43, %v7229_v10  ;;  %v16238_v6 = vperm.slane %v16237_v48, %v12397_v8  ;;  %v7237_v14 = vor.u32 1.1754944e-38, %v7236_v27  ;;  %v7251_v40 = vand.u32 2147483648, %v15045_v1 }
 0x641   :  { %v8506_v25 = vpop.eup %8505  ;;  %v15195_v35 = vadd.f32 1.0, %v8504_v46  ;;  %v7985_v51 = vmul.f32 -1.442695, %v4881_v31  ;;  %vm7235_vm5 = vcmp.eq.f32.partialorder %v7234_v15, 8.507059e+37  ;;  %vm7245_vm1 = vweird.f32 %v15045_v1 }
 0x642   :  { %v7565_v52 = vsel %vm7500_vm14, %v16238_v6, %v7563_v23  ;;  %v15197_v53 = vpop.eup %8507  ;;  %v7266_v43 = vand.u32 2147483648, %v15146_v56  ;;  %v15201_v47 = vadd.f32 1.0, %v8506_v25  ;;  %v7707_v7 = vperm.slane %v15175_v30, %v9458_v36  ;;  %vm15207_vm9 = vmor %vm7245_vm1, %vm7246_vm15 }
 0x643   :  { %v15205_v61 = vsel %vm7235_vm5, %v7237_v14, %v7233_v42  ;;  %v7256_v38 = vmul.f32 %v15197_v53, %v15146_v56  ;;  %8509 = vrcp.f32 %v15195_v35  ;;  %v7709_v1 = vperm.slane %v15177_v22, %v16102_v29 }
 0x644   :  { %v7248_v24 = vsel %vm15207_vm9, %v15123_v49, %v7244_v16  ;;  %vm7250_vm3 = vcmp.eq.f32.partialorder %v7249_v17, 8.507059e+37  ;;  %8511 = vrcp.f32 %v15201_v47  ;;  %v7252_v19 = vor.u32 1.1754944e-38, %v7251_v40  ;;  %v16258_v16 = vld [vmem:[#allocation12_spill] sm:$0xff] }
 0x645   :  { %v7257_v0 = vsub.f32 1.0, %v7256_v38  ;;  %v7264_v13 = vand.u32 2147483647, %v15146_v56  ;;  %8513 = vpow2.f32 %v7985_v51  ;;  %v7711_v23 = vperm.slane %v15205_v61, %v16241_v26 }
 0x646   :  { %vm7260_vm8 = vweird.f32 %v15146_v56  ;;  %v15224_v55 = vor.u32 1.1754944e-38, %v7266_v43  ;;  %v4882_v11 = vadd.f32 %v9036_v59, %v4752_v54  ;;  %v16244_v49 = vperm.slane %v16242_v57, %v16243_v9  ;;  %v16250_v59 = vld [vmem:[#allocation18_spill] sm:$0xff] }
 0x647   :  { %v15233_v3 = vsel %vm7250_vm3, %v7252_v19, %v7248_v24  ;;  %v7258_v21 = vmul.f32 %v15197_v53, %v7257_v0  ;;  %vm7261_vm4 = vweird.f32 %v15197_v53  ;;  %v16248_v45 = vperm.slane %v16246_v4, %v16247_v62 }
 0x648   :  { %v15231_v28 = vsel %vm7504_vm10, %v16244_v49, %v7565_v52  ;;  %vm16249_vm2 = vcmask 786112   ;;  %v7986_v44 = vmul.f32 -1.442695, %v4882_v11  ;;  %v16251_v41 = vperm.slane %v16250_v59, %v15974_v34  ;;  %v16260_v52 = vld [vmem:[#allocation31_spill] sm:$0xff]  ;;  %v16267_v49 = vld [vmem:[#allocation29_spill] sm:$0xff]  ;;  %vm15312_vm9 = vmor %vm7260_vm8, %vm7261_vm4 }
 0x649   :  { %v7590_v10 = vsel %vm16249_vm2, %v16248_v45, %v16245_v58  ;;  %vm16252_vm7 = vcmask 851712   ;;  %v7597_v15 = vperm.slane %v16253_v50, %v16243_v9  ;;  %v16256_v17 = vperm.slane %v16255_v5, %v16241_v26  ;;  %v15253_v46 = vpop.eup %8509  ;;  %vm16262_vm0 = vmmov %vm16249_vm2 }
 0x64a   :  { %v7592_v27 = vsel %vm16252_vm7, %v16251_v41, %v7590_v10  ;;  %vm16257_vm11 = vcmask 720512   ;;  %vm7065_vm6 = vweird.f32 %v15195_v35  ;;  %v7069_v42 = vand.u32 2147483647, %v15195_v35  ;;  %v15265_v40 = vpop.eup %8511  ;;  %v16268_v10 = vld [vmem:[#allocation24_spill] sm:$0xff]  ;;  %vm16270_vm5 = vmmov %vm16252_vm7 }
 0x64b   :  { %v7619_v31 = vsel %vm16257_vm11, %v16256_v17, %v16254_v12  ;;  %v16259_v48 = vperm.slane %v16258_v16, %v16227_v32  ;;  %v16261_v25 = vperm.slane %v16260_v52, %v16247_v62  ;;  %v7061_v51 = vmul.f32 %v15253_v46, %v15195_v35  ;;  %v8514_v24 = vpop.eup %8513  ;;  %v16273_v12 = vld [vmem:[#allocation14_spill] sm:$0xff]  ;;  %vm16282_vm2 = vmmov %vm16257_vm11 }
 0x64c   :  { %v7071_v43 = vand.u32 2147483648, %v15195_v35  ;;  %8515 = vpow2.f32 %v7986_v44  ;;  %v16264_v38 = vperm.slane %v16263_v63, %v12397_v8  ;;  %vm15274_vm13 = vcmp.eq.f32.partialorder %v7264_v13, 8.507059e+37  ;;  %v16275_v17 = vld [vmem:[#allocation6_spill] sm:$0xff]  ;;  %v16280_v63 = vld [vmem:[#allocation7_spill] sm:$0xff]  ;;  %vm16285_vm8 = vmmov %vm16262_vm0 }
 0x64d   :  { %v7594_v6 = vsel %vm7496_vm12, %v16259_v48, %v7592_v27  ;;  %v7621_v14 = vsel %vm16262_vm0, %v16261_v25, %v7619_v31  ;;  %v7271_v0 = vmul.f32 %v15265_v40, %v15201_v47  ;;  %v7279_v11 = vand.u32 2147483647, %v15201_v47  ;;  %v16271_v27 = vld [vmem:[#allocation28_spill] sm:$0xff]  ;;  %vm16288_vm4 = vmmov %vm16270_vm5 }
 0x64e   :  { %v7596_v54 = vsel %vm7500_vm14, %v16264_v38, %v7594_v6  ;;  %v7626_v58 = vperm.slane %v16267_v49, %v12397_v8  ;;  %v7259_v4 = vadd.f32 %v15197_v53, %v7258_v21  ;;  %v7062_v45 = vsub.f32 1.0, %v7061_v51  ;;  %v16274_v21 = vld [vmem:[#allocation35_spill] sm:$0xff]  ;;  %v16283_v49 = vld [vmem:[#allocation30_spill] sm:$0xff] }
 0x64f   :  { %v15282_v57 = vsel %vm7504_vm10, %v7597_v15, %v7596_v54  ;;  %vm7275_vm15 = vweird.f32 %v15201_v47  ;;  %v15288_v13 = vadd.f32 1.0, %v8514_v24  ;;  %v16269_v44 = vperm.slane %v16268_v10, %v15974_v34 }
 0x650   :  { %v7272_v41 = vsub.f32 1.0, %v7271_v0  ;;  %v16272_v50 = vperm.slane %v16271_v27, %v16227_v32  ;;  %v7628_v5 = vperm.slane %v16273_v12, %v16243_v9  ;;  %v16276_v31 = vperm.slane %v16275_v17, %v16102_v29  ;;  %v16293_v17 = vld [vmem:[#allocation36_spill] sm:$0xff] }
 0x651   :  { %v7623_v59 = vsel %vm16270_vm5, %v16269_v44, %v7621_v14  ;;  %vm16277_vm1 = vcmask 654912   ;;  %v7063_v48 = vmul.f32 %v15253_v46, %v7062_v45  ;;  %v7072_v6 = vor.u32 1.1754944e-38, %v7071_v43 }
 0x652   :  { %v7625_v15 = vsel %vm7496_vm12, %v16272_v50, %v7623_v59  ;;  %v7648_v16 = vsel %vm16277_vm1, %v16276_v31, %v16274_v21  ;;  %v7281_v52 = vand.u32 2147483648, %v15201_v47  ;;  %8517 = vrcp.f32 %v15288_v13  ;;  %v8516_v54 = vpop.eup %8515 }
 0x653   :  { %vm7066_vm3 = vweird.f32 %v15253_v46  ;;  %v7273_v14 = vmul.f32 %v15265_v40, %v7272_v41  ;;  %v7627_v51 = vsel %vm7500_vm14, %v7626_v58, %v7625_v15  ;;  %v16281_v43 = vperm.slane %v16280_v63, %v16241_v26  ;;  %v16286_v41 = vld [vmem:[#allocation33_spill] sm:$0xff] }
 0x654   :  { %v7263_v56 = vsel %vm15312_vm9, %v15197_v53, %v7259_v4  ;;  %v7064_v24 = vadd.f32 %v15253_v46, %v7063_v48  ;;  %v15328_v0 = vsel %vm7504_vm10, %v7628_v5, %v7627_v51  ;;  %v16284_v45 = vperm.slane %v16283_v49, %v16247_v62  ;;  %vm15344_vm7 = vmor %vm7065_vm6, %vm7066_vm3  ;;  %v16291_v15 = vld [vmem:[#allocation9_spill] sm:$0xff]  ;;  %v16292_v5 = vld [vmem:[#allocation8_spill] sm:$0xff] }
 0x655   :  { %v7650_v38 = vsel %vm16282_vm2, %v16281_v43, %v7648_v16  ;;  %v7294_v10 = vand.u32 2147483647, %v15288_v13  ;;  %v7296_v44 = vand.u32 2147483648, %v15288_v13  ;;  %v15336_v59 = vadd.f32 1.0, %v8516_v54  ;;  %v16300_v54 = vld [vmem:[#allocation37_spill] sm:$0xff]  ;;  %v16307_v4 = vld [vmem:[#allocation40_spill] sm:$0xff] }
 0x656   :  { %v7652_v58 = vsel %vm16285_vm8, %v16284_v45, %v7650_v38  ;;  %v16287_v27 = vperm.slane %v16286_v41, %v15974_v34  ;;  %v7274_v50 = vadd.f32 %v15265_v40, %v7273_v14  ;;  %vm7276_vm11 = vweird.f32 %v15265_v40 }
 0x657   :  { %v7655_v12 = vperm.slane %v16291_v15, %v16227_v32  ;;  %v7657_v21 = vperm.slane %v16292_v5, %v12397_v8  ;;  %8519 = vrcp.f32 %v15336_v59  ;;  %v7068_v35 = vsel %vm15344_vm7, %v15253_v46, %v7064_v24  ;;  %vm15372_vm5 = vmor %vm7275_vm15, %vm7276_vm11  ;;  %v16310_v5 = vld [vmem:[#allocation41_spill] sm:$0xff] }
 0x658   :  { %v7654_v53 = vsel %vm16288_vm4, %v16287_v27, %v7652_v58  ;;  %vm7070_vm6 = vcmp.eq.f32.partialorder %v7069_v42, 8.507059e+37  ;;  %v7659_v31 = vperm.slane %v16293_v17, %v16243_v9  ;;  %v8518_v16 = vpop.eup %8517  ;;  %vm15360_vm0 = vcmp.eq.f32.partialorder %v7279_v11, 8.507059e+37 }
 0x659   :  { %v7282_v25 = vor.u32 1.1754944e-38, %v7281_v52  ;;  %v15367_v14 = vsel %vm15274_vm13, %v15224_v55, %v7263_v56  ;;  %v7656_v51 = vsel %vm7496_vm12, %v7655_v12, %v7654_v53  ;;  %v7286_v42 = vmul.f32 %v8518_v16, %v15288_v13  ;;  %v16301_v56 = vld [vmem:[#allocation38_spill] sm:$0xff] }
 0x65a   :  { %vm7290_vm1 = vweird.f32 %v15288_v13  ;;  %v7297_v11 = vor.u32 1.1754944e-38, %v7296_v44  ;;  %vm15378_vm9 = vcmp.eq.f32.partialorder %v7294_v10, 8.507059e+37  ;;  %v7311_v55 = vand.u32 2147483648, %v15336_v59 }
 0x65b   :  { %v7073_v19 = vsel %vm7070_vm6, %v7072_v6, %v7068_v35  ;;  %v7278_v47 = vsel %vm15372_vm5, %v15265_v40, %v7274_v50  ;;  %v7658_v63 = vsel %vm7500_vm14, %v7657_v21, %v7656_v51  ;;  %v7287_v43 = vsub.f32 1.0, %v7286_v42  ;;  %v16304_v40 = vld [vmem:[#allocation39_spill] sm:$0xff] }
 0x65c   :  { %v7660_v38 = vsel %vm7504_vm10, %v7659_v31, %v7658_v63  ;;  %v16302_v24 = vperm.slane %v16301_v56, %v9458_v36  ;;  %vm16303_vm13 = vcmask 589312   ;;  %v7684_v45 = vperm.slane %v15060_v18, %v15974_v34 }
 0x65d   :  { %vm7291_vm15 = vweird.f32 %v8518_v16  ;;  %vm7305_vm3 = vweird.f32 %v15336_v59  ;;  %v7309_v6 = vand.u32 2147483647, %v15336_v59  ;;  %v16305_v58 = vperm.slane %v16304_v40, %v16102_v29  ;;  %v8520_v41 = vpop.eup %8519  ;;  %vm16315_vm6 = vmmov %vm16303_vm13 }
 0x65e   :  { %v7677_v49 = vsel %vm16303_vm13, %v16302_v24, %v16300_v54  ;;  %vm16306_vm2 = vcmask 654912   ;;  %v7686_v44 = vperm.slane %v15080_v60, %v16227_v32  ;;  %v7288_v27 = vmul.f32 %v8518_v16, %v7287_v43 }
 0x65f   :  { %v7679_v10 = vsel %vm16306_vm2, %v16305_v58, %v7677_v49  ;;  %v7283_v53 = vsel %vm15360_vm0, %v7282_v25, %v7278_v47  ;;  %v16308_v18 = vperm.slane %v16307_v4, %v16241_v26  ;;  %vm16309_vm8 = vcmask 720512   ;;  %vm7292_vm0 = vmor %vm7290_vm1, %vm7291_vm15 }
 0x660   :  { %v7688_v15 = vperm.slane %v15111_v39, %v12397_v8  ;;  %v7301_v12 = vmul.f32 %v8520_v41, %v15336_v59  ;;  %v16311_v21 = vperm.slane %v16310_v5, %v16247_v62  ;;  %vm16312_vm4 = vcmask 786112   ;;  %vm16316_vm13 = vmmov %vm16306_vm2 }
 0x661   :  { %v7681_v50 = vsel %vm16309_vm8, %v16308_v18, %v7679_v10  ;;  %v7690_v35 = vperm.slane %v7073_v19, %v16243_v9  ;;  %vm16313_vm7 = vcmask 523712   ;;  %v7289_v31 = vadd.f32 %v8518_v16, %v7288_v27 }
 0x662   :  { %v7683_v60 = vsel %vm16312_vm4, %v16311_v21, %v7681_v50  ;;  %v7706_v17 = vsel %vm16313_vm7, %v7705_v33, %v15101_v20  ;;  %vm16314_vm11 = vcmask 851712   ;;  %v7713_v25 = vperm.slane %v15233_v3, %v16247_v62  ;;  %v16317_v3 = vld [vmem:[#allocation26_spill] sm:$0xff] }
 0x663   :  { %v7685_v48 = vsel %vm16314_vm11, %v7684_v45, %v7683_v60  ;;  %v7708_v39 = vsel %vm16315_vm6, %v7707_v7, %v7706_v17  ;;  %v7302_v51 = vsub.f32 1.0, %v7301_v12  ;;  %vm7306_vm5 = vweird.f32 %v8520_v41 }
 0x664   :  { %v7687_v37 = vsel %vm7496_vm12, %v7686_v44, %v7685_v48  ;;  %v7710_v20 = vsel %vm16316_vm13, %v7709_v1, %v7708_v39  ;;  %v7293_v2 = vsel %vm7292_vm0, %v8518_v16, %v7289_v31  ;;  %vm7725_vm2 = vcmask 1042434  }
 0x665   :  { %v7689_v36 = vsel %vm7500_vm14, %v7688_v15, %v7687_v37  ;;  %vm7727_vm8 = vcmask 1043459   ;;  %v7303_v33 = vmul.f32 %v8520_v41, %v7302_v51  ;;  %v7298_v30 = vsel %vm15378_vm9, %v7297_v11, %v7293_v2  ;;  %vm7307_vm9 = vmor %vm7305_vm3, %vm7306_vm5 }
 0x666   :  { %v7715_v7 = vperm.slane %v15367_v14, %v15974_v34  ;;  %v7726_v62 = vsel %vm7725_vm2, %v15231_v28, %v16317_v3  ;;  %v7691_v13 = vsel %vm7504_vm10, %v7690_v35, %v7689_v36  ;;  %vm7729_vm1 = vcmask 1044484  }
 0x667   :  { %v7728_v29 = vsel %vm7727_vm8, %v15282_v57, %v7726_v62  ;;  %vm7731_vm15 = vcmask 1045509   ;;  %v7304_v22 = vadd.f32 %v8520_v41, %v7303_v33  ;;  %v7717_v1 = vperm.slane %v7283_v53, %v16227_v32 }
 0x668   :  { %v7730_v16 = vsel %vm7729_vm1, %v15328_v0, %v7728_v29  ;;  %vm7733_vm4 = vcmask 1046534   ;;  %v7312_v34 = vor.u32 1.1754944e-38, %v7311_v55  ;;  %vm16318_vm7 = vcmask 720512  }
 0x669   :  { %v7712_v28 = vsel %vm16318_vm7, %v7711_v23, %v7710_v20  ;;  %v7719_v57 = vperm.slane %v7298_v30, %v12397_v8  ;;  %v7732_v14 = vsel %vm7731_vm15, %v7660_v38, %v7730_v16  ;;  %v7308_v46 = vsel %vm7307_vm9, %v8520_v41, %v7304_v22 }
 0x66a   :  { %vm7310_vm11 = vcmp.eq.f32.partialorder %v7309_v6, 8.507059e+37  ;;  %vm16319_vm6 = vcmask 786112   ;;  %v7734_v42 = vsel %vm7733_vm4, %v7691_v13, %v7732_v14  ;;  %vm16320_vm0 = vcmask 851712  }
 0x66b   :  { %v7714_v32 = vsel %vm16319_vm6, %v7713_v25, %v7712_v28  ;;  %v7313_v0 = vsel %vm7310_vm11, %v7312_v34, %v7308_v46  ;;  %vm7735_vm3 = vcmask 1047559  }
 0x66c   :  { %v7716_v11 = vsel %vm16320_vm0, %v7715_v7, %v7714_v32  ;;  %v7721_v26 = vperm.slane %v7313_v0, %v16243_v9 }
 0x66d   :  { %v7718_v61 = vsel %vm7496_vm12, %v7717_v1, %v7716_v11 }
 0x66e   :  { %v7720_v8 = vsel %vm7500_vm14, %v7719_v57, %v7718_v61 }
 0x66f   :  { %v7722_v23 = vsel %vm7504_vm10, %v7721_v26, %v7720_v8 }
 0x670   :  { %v7736_v59 = vsel %vm7735_vm3, %v7722_v23, %v7734_v42 }
 0x671   :  { %7738 = vst [vmem:[#allocation3] sm:$0xff] %v7736_v59 }
 0x672   :  { %7749 = dma.vmem_to_hbm [thread:$0]  %s7745_s8, 128, %s7747_s10, [#allocation4]  }
 0x673   :  { %8555 = dma.done.wait [#allocation4], 128  }
 0x674   :  { %8556 = vsyncadd [#allocation4], 4294967168 }
 0x675   :  { %7754 = vsyncpa [#allocation4], 1 }

</bundles_post_ra>
